<compile_context>
chip_gen: v5e
topology: v5e:2x2
jax: 0.10.0
libtpu: 0.0.40
codegen_flags: <defaults>
</compile_context>

<pallas_src>
import functools

import jax
import jax.numpy as jnp
from jax import lax
from jax.experimental import pallas as pl
from jax.experimental.pallas import tpu as pltpu


def spatial_attention_kernel(x_ref, w0m_ref, b0_ref, wsm_ref, bs_ref,
                             w1_ref, b1_ref, w2_ref, b2_ref,
                             sqa0_ref, sqm0_ref, sqa1_ref, sqm1_ref, bsq_ref,
                             wf_ref, bf_ref, out_ref, *, W):
    C, L = x_ref.shape
    f32 = jnp.float32

    x = x_ref[...].astype(f32)                                # (C, L)

    def shifted(a, dy, dx):
        # a[:, p] -> a[:, p + dy*W + dx]; out-of-image positions are zeroed by
        # the mask already folded into the per-tap weight tables.
        s = dy * W + dx
        return a if s == 0 else pltpu.roll(a, (-s) % L, axis=1)

    # conv0: depthwise 5x5, padding 2 (mask x weight folded into w0m)
    a1dw = jnp.zeros_like(x)
    for ky in range(5):
        for kx in range(5):
            t = ky * 5 + kx
            a1dw = a1dw + shifted(x, ky - 2, kx - 2) * w0m_ref[t]
    a1dw = a1dw + b0_ref[...]

    # conv_spatial: depthwise 7x7, dilation 3, padding 9
    a2dw = jnp.zeros_like(x)
    for ky in range(7):
        for kx in range(7):
            t = ky * 7 + kx
            a2dw = a2dw + shifted(a1dw, 3 * ky - 9, 3 * kx - 9) * wsm_ref[t]
    a2dw = a2dw + bs_ref[...]

    # conv1 / conv2: 1x1 pointwise, C -> C//2 (MXU, f32 accumulation)
    a1 = jnp.dot(w1_ref[...], a1dw, preferred_element_type=f32) + b1_ref[...]
    a2 = jnp.dot(w2_ref[...], a2dw, preferred_element_type=f32) + b2_ref[...]
    C2 = a1.shape[0]

    # channel mean / max of concat([a1, a2], axis=0), kept as separate slabs
    avg = (jnp.sum(a1, axis=0, keepdims=True) +
           jnp.sum(a2, axis=0, keepdims=True)) * (1.0 / float(2 * C2))
    mx = jnp.maximum(jnp.max(a1, axis=0, keepdims=True),
                     jnp.max(a2, axis=0, keepdims=True))

    # conv_squeeze: 2 -> 2, 7x7, padding 3, then sigmoid.
    acc0 = jnp.zeros((1, L), f32)
    acc1 = jnp.zeros((1, L), f32)
    for ky in range(7):
        for kx in range(7):
            t = ky * 7 + kx
            ra = shifted(avg, ky - 3, kx - 3)
            rm = shifted(mx, ky - 3, kx - 3)
            acc0 = acc0 + ra * sqa0_ref[t:t + 1, :] + rm * sqm0_ref[t:t + 1, :]
            acc1 = acc1 + ra * sqa1_ref[t:t + 1, :] + rm * sqm1_ref[t:t + 1, :]
    sig0 = jax.nn.sigmoid(acc0 + bsq_ref[0])
    sig1 = jax.nn.sigmoid(acc1 + bsq_ref[1])

    # attn = attn1*sig[:,0] + attn2*sig[:,1]; final 1x1 conv C//2 -> C (MXU)
    attn = a1 * sig0 + a2 * sig1
    attn = jnp.dot(wf_ref[...], attn, preferred_element_type=f32) + bf_ref[...]

    # x * attn, explicit cast, single full-width lane-dense slab store
    out_ref[...] = (x * attn).astype(out_ref.dtype)


def _pick_batch_block(N, C, HW):
    """Images folded per grid step, sized against VMEM and v7x's 2 TCs."""
    per_b_tables = (25 * C + 49 * C + 4 * 49) * HW * 4     # resident tap tables
    per_b_io = 2 * 2 * C * HW * 4                          # double-buffered in+out
    budget = 8 << 20                                       # well under every scoped default
    b_cap = max(1, budget // max(per_b_tables + per_b_io, 1))
    b_cap = min(b_cap, max(1, N))
    if N >= 2:
        b_cap = min(b_cap, max(1, N // 2))                 # keep >= 2 grid steps (v7x)
    for b in range(b_cap, 0, -1):
        if N % b == 0:
            return b
    return 1


def spatial_attention(x, params):
    N, C, H, W = x.shape
    HW = H * W
    C2 = params['w1'].shape[0]
    f32 = jnp.float32

    # roll-with-mask scheme needs the largest tap offset (dilated conv: 9W+9)
    # to stay shorter than one image's flattened length.
    assert 9 * W + 9 < HW, "image too small for the flattened roll scheme"

    B = _pick_batch_block(N, C, HW)
    L = B * HW
    n_blocks = N // B

    # lane-dense, batch-folded layout: (C, N*HW); each grid step sees (C, B*HW)
    xt = jnp.transpose(x.reshape(N, C, HW), (1, 0, 2)).reshape(C, N * HW)

    # ---- precomputed per-tap (boundary-mask x weight) tables (host side) ----
    pos = jnp.arange(HW, dtype=jnp.int32)
    row = pos // W
    col = pos % W

    def tap_masks(offsets):
        ms = []
        for dy, dx in offsets:
            m = ((row + dy >= 0) & (row + dy < H) &
                 (col + dx >= 0) & (col + dx < W))
            ms.append(m.astype(f32))
        m = jnp.stack(ms)                       # (T, HW)
        return jnp.tile(m, (1, B))              # (T, B*HW) — mask repeats per image

    offs5 = [(ky - 2, kx - 2) for ky in range(5) for kx in range(5)]
    offs7d = [(3 * ky - 9, 3 * kx - 9) for ky in range(7) for kx in range(7)]
    offs7 = [(ky - 3, kx - 3) for ky in range(7) for kx in range(7)]

    m5 = tap_masks(offs5)                       # (25, L)
    m7d = tap_masks(offs7d)                     # (49, L)
    m7 = tap_masks(offs7)                       # (49, L)

    w0_t = params['w0'][:, 0].reshape(C, 25).T.astype(f32)       # (25, C)
    ws_t = params['ws'][:, 0].reshape(C, 49).T.astype(f32)       # (49, C)
    w0m = m5[:, None, :] * w0_t[:, :, None]                      # (25, C, L)
    wsm = m7d[:, None, :] * ws_t[:, :, None]                     # (49, C, L)

    wsq = params['wsq'].reshape(2, 2, 49).astype(f32)
    sqa0 = m7 * wsq[0, 0][:, None]                               # (49, L)
    sqm0 = m7 * wsq[0, 1][:, None]
    sqa1 = m7 * wsq[1, 0][:, None]
    sqm1 = m7 * wsq[1, 1][:, None]

    # pointwise weights for the MXU; biases as (rows, 1) sublane columns
    w1 = params['w1'][:, :, 0, 0].astype(f32)                    # (C//2, C)
    w2 = params['w2'][:, :, 0, 0].astype(f32)                    # (C//2, C)
    wf = params['wf'][:, :, 0, 0].astype(f32)                    # (C, C//2)
    b0 = params['b0'].reshape(C, 1).astype(f32)
    bs = params['bs'].reshape(C, 1).astype(f32)
    b1 = params['b1'].reshape(C2, 1).astype(f32)
    b2 = params['b2'].reshape(C2, 1).astype(f32)
    bf = params['bf'].reshape(C, 1).astype(f32)
    bsq = params['bsq'].astype(f32)                              # (2,) SMEM scalars

    vmem = pl.BlockSpec(memory_space=pltpu.MemorySpace.VMEM)
    smem = pl.BlockSpec(memory_space=pltpu.MemorySpace.SMEM)

    in_specs = [
        pl.BlockSpec((C, L), lambda g: (0, g)),   # x: B images per grid step
        vmem, vmem,                               # w0m, b0
        vmem, vmem,                               # wsm, bs
        vmem, vmem, vmem, vmem,                   # w1, b1, w2, b2
        vmem, vmem, vmem, vmem,                   # sqa0, sqm0, sqa1, sqm1
        smem,                                     # bsq
        vmem, vmem,                               # wf, bf
    ]

    out = pl.pallas_call(
        functools.partial(spatial_attention_kernel, W=W),
        out_shape=jax.ShapeDtypeStruct((C, N * HW), x.dtype),
        grid=(n_blocks,),
        in_specs=in_specs,
        out_specs=pl.BlockSpec((C, L), lambda g: (0, g)),
        compiler_params=pltpu.CompilerParams(
            dimension_semantics=("parallel",)),   # grid steps independent
    )(xt, w0m, b0, wsm, bs, w1, b1, w2, b2,
      sqa0, sqm0, sqa1, sqm1, bsq, wf, bf)

    return jnp.transpose(out.reshape(C, N, HW), (1, 0, 2)).reshape(N, C, H, W)


def ref_forward(x, p):
    """Pure-JAX reference mirroring the PyTorch forward (for verification)."""
    hp = lax.Precision.HIGHEST

    def conv2d(inp, w, b, pad, dil=1, groups=1):
        out = lax.conv_general_dilated(
            inp, w, window_strides=(1, 1),
            padding=[(pad, pad), (pad, pad)],
            rhs_dilation=(dil, dil),
            dimension_numbers=('NCHW', 'OIHW', 'NCHW'),
            feature_group_count=groups,
            precision=hp)
        return out + b[None, :, None, None]

    c = x.shape[1]
    a1 = conv2d(x, p['w0'], p['b0'], pad=2, groups=c)
    a2 = conv2d(a1, p['ws'], p['bs'], pad=9, dil=3, groups=c)
    a1 = conv2d(a1, p['w1'], p['b1'], pad=0)
    a2 = conv2d(a2, p['w2'], p['b2'], pad=0)
    attn = jnp.concatenate([a1, a2], axis=1)
    avg = jnp.mean(attn, axis=1, keepdims=True)
    mx = jnp.max(attn, axis=1, keepdims=True)
    agg = jnp.concatenate([avg, mx], axis=1)
    sig = jax.nn.sigmoid(conv2d(agg, p['wsq'], p['bsq'], pad=3))
    attn = a1 * sig[:, 0:1] + a2 * sig[:, 1:2]
    attn = conv2d(attn, p['wf'], p['bf'], pad=0)
    return x * attn


if __name__ == "__main__":
    # SpatialAttention(c1=4, c2=8, e=0.5) -> self.c = 4; forward() consumes a
    # tensor with self.c channels, so x is (N=2, 4, 16, 16).
    N, c, H, W = 2, 4, 16, 16
    c_half = c // 2

    key = jax.random.PRNGKey(0)
    keys = jax.random.split(key, 13)

    def rnd(k, shape, scale=0.2):
        return jax.random.normal(k, shape, dtype=jnp.float32) * scale

    params = dict(
        w0=rnd(keys[0], (c, 1, 5, 5)),        b0=rnd(keys[1], (c,)),
        ws=rnd(keys[2], (c, 1, 7, 7)),        bs=rnd(keys[3], (c,)),
        w1=rnd(keys[4], (c_half, c, 1, 1)),   b1=rnd(keys[5], (c_half,)),
        w2=rnd(keys[6], (c_half, c, 1, 1)),   b2=rnd(keys[7], (c_half,)),
        wsq=rnd(keys[8], (2, 2, 7, 7)),       bsq=rnd(keys[9], (2,)),
        wf=rnd(keys[10], (c, c_half, 1, 1)),  bf=rnd(keys[11], (c,)),
    )
    x = rnd(keys[12], (N, c, H, W), scale=1.0)

    out = spatial_attention(x, params)
    jax.block_until_ready(out)

    ref = ref_forward(x, params)
    assert out.shape == (N, c, H, W)
    assert jnp.max(jnp.abs(out - ref)) < 1e-4, "mismatch vs pure-JAX reference"
    print("KERNEL_OK")
</pallas_src>

<mosaic_0001>
module attributes {stable_mosaic.version = 11 : i64} {
  func.func @spatial_attention_kernel(%arg0: i32, %arg1: memref<4x256xf32, #tpu.memory_space<vmem>>, %arg2: memref<25x4x256xf32, #tpu.memory_space<vmem>>, %arg3: memref<4x1xf32, #tpu.memory_space<vmem>>, %arg4: memref<49x4x256xf32, #tpu.memory_space<vmem>>, %arg5: memref<4x1xf32, #tpu.memory_space<vmem>>, %arg6: memref<2x4xf32, #tpu.memory_space<vmem>>, %arg7: memref<2x1xf32, #tpu.memory_space<vmem>>, %arg8: memref<2x4xf32, #tpu.memory_space<vmem>>, %arg9: memref<2x1xf32, #tpu.memory_space<vmem>>, %arg10: memref<49x256xf32, #tpu.memory_space<vmem>>, %arg11: memref<49x256xf32, #tpu.memory_space<vmem>>, %arg12: memref<49x256xf32, #tpu.memory_space<vmem>>, %arg13: memref<49x256xf32, #tpu.memory_space<vmem>>, %arg14: memref<2xf32, #tpu.memory_space<smem>>, %arg15: memref<4x2xf32, #tpu.memory_space<vmem>>, %arg16: memref<4x1xf32, #tpu.memory_space<vmem>>, %arg17: memref<4x256xf32, #tpu.memory_space<vmem>>) attributes {dimension_semantics = [#tpu.dimension_semantics<parallel>], iteration_bounds = array<i64: 2>, scalar_prefetch = 0 : i64, scratch_operands = 0 : i64, tpu.core_type = #tpu.core_type<tc>, window_params = [{transform_indices = @transform_0, window_bounds = array<i64: 4, 256>}, {pipeline_mode = #tpu.pipeline_mode<synchronous>, transform_indices = @transform_1, window_bounds = array<i64: 25, 4, 256>}, {pipeline_mode = #tpu.pipeline_mode<synchronous>, transform_indices = @transform_2, window_bounds = array<i64: 4, 1>}, {pipeline_mode = #tpu.pipeline_mode<synchronous>, transform_indices = @transform_3, window_bounds = array<i64: 49, 4, 256>}, {pipeline_mode = #tpu.pipeline_mode<synchronous>, transform_indices = @transform_4, window_bounds = array<i64: 4, 1>}, {pipeline_mode = #tpu.pipeline_mode<synchronous>, transform_indices = @transform_5, window_bounds = array<i64: 2, 4>}, {pipeline_mode = #tpu.pipeline_mode<synchronous>, transform_indices = @transform_6, window_bounds = array<i64: 2, 1>}, {pipeline_mode = #tpu.pipeline_mode<synchronous>, transform_indices = @transform_7, window_bounds = array<i64: 2, 4>}, {pipeline_mode = #tpu.pipeline_mode<synchronous>, transform_indices = @transform_8, window_bounds = array<i64: 2, 1>}, {pipeline_mode = #tpu.pipeline_mode<synchronous>, transform_indices = @transform_9, window_bounds = array<i64: 49, 256>}, {pipeline_mode = #tpu.pipeline_mode<synchronous>, transform_indices = @transform_10, window_bounds = array<i64: 49, 256>}, {pipeline_mode = #tpu.pipeline_mode<synchronous>, transform_indices = @transform_11, window_bounds = array<i64: 49, 256>}, {pipeline_mode = #tpu.pipeline_mode<synchronous>, transform_indices = @transform_12, window_bounds = array<i64: 49, 256>}, {transform_indices = @transform_13, window_bounds = array<i64: 2>}, {pipeline_mode = #tpu.pipeline_mode<synchronous>, transform_indices = @transform_14, window_bounds = array<i64: 4, 2>}, {pipeline_mode = #tpu.pipeline_mode<synchronous>, transform_indices = @transform_15, window_bounds = array<i64: 4, 1>}, {transform_indices = @transform_16, window_bounds = array<i64: 4, 256>}]} {
    %c0 = arith.constant 0 : index
    %c0_0 = arith.constant 0 : index
    %0 = vector.load %arg1[%c0, %c0_0] : memref<4x256xf32, #tpu.memory_space<vmem>>, vector<4x256xf32>
    %cst = arith.constant 0.000000e+00 : f32
    %1 = vector.broadcast %cst : f32 to vector<4x256xf32>
    %c34_i32 = arith.constant 34 : i32
    %2 = tpu.dynamic_rotate %0 by %c34_i32 dim 1 : vector<4x256xf32>, i32 -> vector<4x256xf32>
    %c0_1 = arith.constant 0 : index
    %c0_2 = arith.constant 0 : index
    %c0_3 = arith.constant 0 : index
    %3 = vector.load %arg2[%c0_1, %c0_2, %c0_3] : memref<25x4x256xf32, #tpu.memory_space<vmem>>, vector<1x4x256xf32>
    %4 = vector.shape_cast %3 : vector<1x4x256xf32> to vector<4x256xf32>
    %5 = arith.mulf %2, %4 : vector<4x256xf32>
    %6 = arith.addf %1, %5 : vector<4x256xf32>
    %c33_i32 = arith.constant 33 : i32
    %7 = tpu.dynamic_rotate %0 by %c33_i32 dim 1 : vector<4x256xf32>, i32 -> vector<4x256xf32>
    %c1 = arith.constant 1 : index
    %c0_4 = arith.constant 0 : index
    %c0_5 = arith.constant 0 : index
    %8 = vector.load %arg2[%c1, %c0_4, %c0_5] : memref<25x4x256xf32, #tpu.memory_space<vmem>>, vector<1x4x256xf32>
    %9 = vector.shape_cast %8 : vector<1x4x256xf32> to vector<4x256xf32>
    %10 = arith.mulf %7, %9 : vector<4x256xf32>
    %11 = arith.addf %6, %10 : vector<4x256xf32>
    %c32_i32 = arith.constant 32 : i32
    %12 = tpu.dynamic_rotate %0 by %c32_i32 dim 1 : vector<4x256xf32>, i32 -> vector<4x256xf32>
    %c2 = arith.constant 2 : index
    %c0_6 = arith.constant 0 : index
    %c0_7 = arith.constant 0 : index
    %13 = vector.load %arg2[%c2, %c0_6, %c0_7] : memref<25x4x256xf32, #tpu.memory_space<vmem>>, vector<1x4x256xf32>
    %14 = vector.shape_cast %13 : vector<1x4x256xf32> to vector<4x256xf32>
    %15 = arith.mulf %12, %14 : vector<4x256xf32>
    %16 = arith.addf %11, %15 : vector<4x256xf32>
    %c31_i32 = arith.constant 31 : i32
    %17 = tpu.dynamic_rotate %0 by %c31_i32 dim 1 : vector<4x256xf32>, i32 -> vector<4x256xf32>
    %c3 = arith.constant 3 : index
    %c0_8 = arith.constant 0 : index
    %c0_9 = arith.constant 0 : index
    %18 = vector.load %arg2[%c3, %c0_8, %c0_9] : memref<25x4x256xf32, #tpu.memory_space<vmem>>, vector<1x4x256xf32>
    %19 = vector.shape_cast %18 : vector<1x4x256xf32> to vector<4x256xf32>
    %20 = arith.mulf %17, %19 : vector<4x256xf32>
    %21 = arith.addf %16, %20 : vector<4x256xf32>
    %c30_i32 = arith.constant 30 : i32
    %22 = tpu.dynamic_rotate %0 by %c30_i32 dim 1 : vector<4x256xf32>, i32 -> vector<4x256xf32>
    %c4 = arith.constant 4 : index
    %c0_10 = arith.constant 0 : index
    %c0_11 = arith.constant 0 : index
    %23 = vector.load %arg2[%c4, %c0_10, %c0_11] : memref<25x4x256xf32, #tpu.memory_space<vmem>>, vector<1x4x256xf32>
    %24 = vector.shape_cast %23 : vector<1x4x256xf32> to vector<4x256xf32>
    %25 = arith.mulf %22, %24 : vector<4x256xf32>
    %26 = arith.addf %21, %25 : vector<4x256xf32>
    %c18_i32 = arith.constant 18 : i32
    %27 = tpu.dynamic_rotate %0 by %c18_i32 dim 1 : vector<4x256xf32>, i32 -> vector<4x256xf32>
    %c5 = arith.constant 5 : index
    %c0_12 = arith.constant 0 : index
    %c0_13 = arith.constant 0 : index
    %28 = vector.load %arg2[%c5, %c0_12, %c0_13] : memref<25x4x256xf32, #tpu.memory_space<vmem>>, vector<1x4x256xf32>
    %29 = vector.shape_cast %28 : vector<1x4x256xf32> to vector<4x256xf32>
    %30 = arith.mulf %27, %29 : vector<4x256xf32>
    %31 = arith.addf %26, %30 : vector<4x256xf32>
    %c17_i32 = arith.constant 17 : i32
    %32 = tpu.dynamic_rotate %0 by %c17_i32 dim 1 : vector<4x256xf32>, i32 -> vector<4x256xf32>
    %c6 = arith.constant 6 : index
    %c0_14 = arith.constant 0 : index
    %c0_15 = arith.constant 0 : index
    %33 = vector.load %arg2[%c6, %c0_14, %c0_15] : memref<25x4x256xf32, #tpu.memory_space<vmem>>, vector<1x4x256xf32>
    %34 = vector.shape_cast %33 : vector<1x4x256xf32> to vector<4x256xf32>
    %35 = arith.mulf %32, %34 : vector<4x256xf32>
    %36 = arith.addf %31, %35 : vector<4x256xf32>
    %c16_i32 = arith.constant 16 : i32
    %37 = tpu.dynamic_rotate %0 by %c16_i32 dim 1 : vector<4x256xf32>, i32 -> vector<4x256xf32>
    %c7 = arith.constant 7 : index
    %c0_16 = arith.constant 0 : index
    %c0_17 = arith.constant 0 : index
    %38 = vector.load %arg2[%c7, %c0_16, %c0_17] : memref<25x4x256xf32, #tpu.memory_space<vmem>>, vector<1x4x256xf32>
    %39 = vector.shape_cast %38 : vector<1x4x256xf32> to vector<4x256xf32>
    %40 = arith.mulf %37, %39 : vector<4x256xf32>
    %41 = arith.addf %36, %40 : vector<4x256xf32>
    %c15_i32 = arith.constant 15 : i32
    %42 = tpu.dynamic_rotate %0 by %c15_i32 dim 1 : vector<4x256xf32>, i32 -> vector<4x256xf32>
    %c8 = arith.constant 8 : index
    %c0_18 = arith.constant 0 : index
    %c0_19 = arith.constant 0 : index
    %43 = vector.load %arg2[%c8, %c0_18, %c0_19] : memref<25x4x256xf32, #tpu.memory_space<vmem>>, vector<1x4x256xf32>
    %44 = vector.shape_cast %43 : vector<1x4x256xf32> to vector<4x256xf32>
    %45 = arith.mulf %42, %44 : vector<4x256xf32>
    %46 = arith.addf %41, %45 : vector<4x256xf32>
    %c14_i32 = arith.constant 14 : i32
    %47 = tpu.dynamic_rotate %0 by %c14_i32 dim 1 : vector<4x256xf32>, i32 -> vector<4x256xf32>
    %c9 = arith.constant 9 : index
    %c0_20 = arith.constant 0 : index
    %c0_21 = arith.constant 0 : index
    %48 = vector.load %arg2[%c9, %c0_20, %c0_21] : memref<25x4x256xf32, #tpu.memory_space<vmem>>, vector<1x4x256xf32>
    %49 = vector.shape_cast %48 : vector<1x4x256xf32> to vector<4x256xf32>
    %50 = arith.mulf %47, %49 : vector<4x256xf32>
    %51 = arith.addf %46, %50 : vector<4x256xf32>
    %c2_i32 = arith.constant 2 : i32
    %52 = tpu.dynamic_rotate %0 by %c2_i32 dim 1 : vector<4x256xf32>, i32 -> vector<4x256xf32>
    %c10 = arith.constant 10 : index
    %c0_22 = arith.constant 0 : index
    %c0_23 = arith.constant 0 : index
    %53 = vector.load %arg2[%c10, %c0_22, %c0_23] : memref<25x4x256xf32, #tpu.memory_space<vmem>>, vector<1x4x256xf32>
    %54 = vector.shape_cast %53 : vector<1x4x256xf32> to vector<4x256xf32>
    %55 = arith.mulf %52, %54 : vector<4x256xf32>
    %56 = arith.addf %51, %55 : vector<4x256xf32>
    %c1_i32 = arith.constant 1 : i32
    %57 = tpu.dynamic_rotate %0 by %c1_i32 dim 1 : vector<4x256xf32>, i32 -> vector<4x256xf32>
    %c11 = arith.constant 11 : index
    %c0_24 = arith.constant 0 : index
    %c0_25 = arith.constant 0 : index
    %58 = vector.load %arg2[%c11, %c0_24, %c0_25] : memref<25x4x256xf32, #tpu.memory_space<vmem>>, vector<1x4x256xf32>
    %59 = vector.shape_cast %58 : vector<1x4x256xf32> to vector<4x256xf32>
    %60 = arith.mulf %57, %59 : vector<4x256xf32>
    %61 = arith.addf %56, %60 : vector<4x256xf32>
    %c12 = arith.constant 12 : index
    %c0_26 = arith.constant 0 : index
    %c0_27 = arith.constant 0 : index
    %62 = vector.load %arg2[%c12, %c0_26, %c0_27] : memref<25x4x256xf32, #tpu.memory_space<vmem>>, vector<1x4x256xf32>
    %63 = vector.shape_cast %62 : vector<1x4x256xf32> to vector<4x256xf32>
    %64 = arith.mulf %0, %63 : vector<4x256xf32>
    %65 = arith.addf %61, %64 : vector<4x256xf32>
    %c255_i32 = arith.constant 255 : i32
    %66 = tpu.dynamic_rotate %0 by %c255_i32 dim 1 : vector<4x256xf32>, i32 -> vector<4x256xf32>
    %c13 = arith.constant 13 : index
    %c0_28 = arith.constant 0 : index
    %c0_29 = arith.constant 0 : index
    %67 = vector.load %arg2[%c13, %c0_28, %c0_29] : memref<25x4x256xf32, #tpu.memory_space<vmem>>, vector<1x4x256xf32>
    %68 = vector.shape_cast %67 : vector<1x4x256xf32> to vector<4x256xf32>
    %69 = arith.mulf %66, %68 : vector<4x256xf32>
    %70 = arith.addf %65, %69 : vector<4x256xf32>
    %c254_i32 = arith.constant 254 : i32
    %71 = tpu.dynamic_rotate %0 by %c254_i32 dim 1 : vector<4x256xf32>, i32 -> vector<4x256xf32>
    %c14 = arith.constant 14 : index
    %c0_30 = arith.constant 0 : index
    %c0_31 = arith.constant 0 : index
    %72 = vector.load %arg2[%c14, %c0_30, %c0_31] : memref<25x4x256xf32, #tpu.memory_space<vmem>>, vector<1x4x256xf32>
    %73 = vector.shape_cast %72 : vector<1x4x256xf32> to vector<4x256xf32>
    %74 = arith.mulf %71, %73 : vector<4x256xf32>
    %75 = arith.addf %70, %74 : vector<4x256xf32>
    %c242_i32 = arith.constant 242 : i32
    %76 = tpu.dynamic_rotate %0 by %c242_i32 dim 1 : vector<4x256xf32>, i32 -> vector<4x256xf32>
    %c15 = arith.constant 15 : index
    %c0_32 = arith.constant 0 : index
    %c0_33 = arith.constant 0 : index
    %77 = vector.load %arg2[%c15, %c0_32, %c0_33] : memref<25x4x256xf32, #tpu.memory_space<vmem>>, vector<1x4x256xf32>
    %78 = vector.shape_cast %77 : vector<1x4x256xf32> to vector<4x256xf32>
    %79 = arith.mulf %76, %78 : vector<4x256xf32>
    %80 = arith.addf %75, %79 : vector<4x256xf32>
    %c241_i32 = arith.constant 241 : i32
    %81 = tpu.dynamic_rotate %0 by %c241_i32 dim 1 : vector<4x256xf32>, i32 -> vector<4x256xf32>
    %c16 = arith.constant 16 : index
    %c0_34 = arith.constant 0 : index
    %c0_35 = arith.constant 0 : index
    %82 = vector.load %arg2[%c16, %c0_34, %c0_35] : memref<25x4x256xf32, #tpu.memory_space<vmem>>, vector<1x4x256xf32>
    %83 = vector.shape_cast %82 : vector<1x4x256xf32> to vector<4x256xf32>
    %84 = arith.mulf %81, %83 : vector<4x256xf32>
    %85 = arith.addf %80, %84 : vector<4x256xf32>
    %c240_i32 = arith.constant 240 : i32
    %86 = tpu.dynamic_rotate %0 by %c240_i32 dim 1 : vector<4x256xf32>, i32 -> vector<4x256xf32>
    %c17 = arith.constant 17 : index
    %c0_36 = arith.constant 0 : index
    %c0_37 = arith.constant 0 : index
    %87 = vector.load %arg2[%c17, %c0_36, %c0_37] : memref<25x4x256xf32, #tpu.memory_space<vmem>>, vector<1x4x256xf32>
    %88 = vector.shape_cast %87 : vector<1x4x256xf32> to vector<4x256xf32>
    %89 = arith.mulf %86, %88 : vector<4x256xf32>
    %90 = arith.addf %85, %89 : vector<4x256xf32>
    %c239_i32 = arith.constant 239 : i32
    %91 = tpu.dynamic_rotate %0 by %c239_i32 dim 1 : vector<4x256xf32>, i32 -> vector<4x256xf32>
    %c18 = arith.constant 18 : index
    %c0_38 = arith.constant 0 : index
    %c0_39 = arith.constant 0 : index
    %92 = vector.load %arg2[%c18, %c0_38, %c0_39] : memref<25x4x256xf32, #tpu.memory_space<vmem>>, vector<1x4x256xf32>
    %93 = vector.shape_cast %92 : vector<1x4x256xf32> to vector<4x256xf32>
    %94 = arith.mulf %91, %93 : vector<4x256xf32>
    %95 = arith.addf %90, %94 : vector<4x256xf32>
    %c238_i32 = arith.constant 238 : i32
    %96 = tpu.dynamic_rotate %0 by %c238_i32 dim 1 : vector<4x256xf32>, i32 -> vector<4x256xf32>
    %c19 = arith.constant 19 : index
    %c0_40 = arith.constant 0 : index
    %c0_41 = arith.constant 0 : index
    %97 = vector.load %arg2[%c19, %c0_40, %c0_41] : memref<25x4x256xf32, #tpu.memory_space<vmem>>, vector<1x4x256xf32>
    %98 = vector.shape_cast %97 : vector<1x4x256xf32> to vector<4x256xf32>
    %99 = arith.mulf %96, %98 : vector<4x256xf32>
    %100 = arith.addf %95, %99 : vector<4x256xf32>
    %c226_i32 = arith.constant 226 : i32
    %101 = tpu.dynamic_rotate %0 by %c226_i32 dim 1 : vector<4x256xf32>, i32 -> vector<4x256xf32>
    %c20 = arith.constant 20 : index
    %c0_42 = arith.constant 0 : index
    %c0_43 = arith.constant 0 : index
    %102 = vector.load %arg2[%c20, %c0_42, %c0_43] : memref<25x4x256xf32, #tpu.memory_space<vmem>>, vector<1x4x256xf32>
    %103 = vector.shape_cast %102 : vector<1x4x256xf32> to vector<4x256xf32>
    %104 = arith.mulf %101, %103 : vector<4x256xf32>
    %105 = arith.addf %100, %104 : vector<4x256xf32>
    %c225_i32 = arith.constant 225 : i32
    %106 = tpu.dynamic_rotate %0 by %c225_i32 dim 1 : vector<4x256xf32>, i32 -> vector<4x256xf32>
    %c21 = arith.constant 21 : index
    %c0_44 = arith.constant 0 : index
    %c0_45 = arith.constant 0 : index
    %107 = vector.load %arg2[%c21, %c0_44, %c0_45] : memref<25x4x256xf32, #tpu.memory_space<vmem>>, vector<1x4x256xf32>
    %108 = vector.shape_cast %107 : vector<1x4x256xf32> to vector<4x256xf32>
    %109 = arith.mulf %106, %108 : vector<4x256xf32>
    %110 = arith.addf %105, %109 : vector<4x256xf32>
    %c224_i32 = arith.constant 224 : i32
    %111 = tpu.dynamic_rotate %0 by %c224_i32 dim 1 : vector<4x256xf32>, i32 -> vector<4x256xf32>
    %c22 = arith.constant 22 : index
    %c0_46 = arith.constant 0 : index
    %c0_47 = arith.constant 0 : index
    %112 = vector.load %arg2[%c22, %c0_46, %c0_47] : memref<25x4x256xf32, #tpu.memory_space<vmem>>, vector<1x4x256xf32>
    %113 = vector.shape_cast %112 : vector<1x4x256xf32> to vector<4x256xf32>
    %114 = arith.mulf %111, %113 : vector<4x256xf32>
    %115 = arith.addf %110, %114 : vector<4x256xf32>
    %c223_i32 = arith.constant 223 : i32
    %116 = tpu.dynamic_rotate %0 by %c223_i32 dim 1 : vector<4x256xf32>, i32 -> vector<4x256xf32>
    %c23 = arith.constant 23 : index
    %c0_48 = arith.constant 0 : index
    %c0_49 = arith.constant 0 : index
    %117 = vector.load %arg2[%c23, %c0_48, %c0_49] : memref<25x4x256xf32, #tpu.memory_space<vmem>>, vector<1x4x256xf32>
    %118 = vector.shape_cast %117 : vector<1x4x256xf32> to vector<4x256xf32>
    %119 = arith.mulf %116, %118 : vector<4x256xf32>
    %120 = arith.addf %115, %119 : vector<4x256xf32>
    %c222_i32 = arith.constant 222 : i32
    %121 = tpu.dynamic_rotate %0 by %c222_i32 dim 1 : vector<4x256xf32>, i32 -> vector<4x256xf32>
    %c24 = arith.constant 24 : index
    %c0_50 = arith.constant 0 : index
    %c0_51 = arith.constant 0 : index
    %122 = vector.load %arg2[%c24, %c0_50, %c0_51] : memref<25x4x256xf32, #tpu.memory_space<vmem>>, vector<1x4x256xf32>
    %123 = vector.shape_cast %122 : vector<1x4x256xf32> to vector<4x256xf32>
    %124 = arith.mulf %121, %123 : vector<4x256xf32>
    %125 = arith.addf %120, %124 : vector<4x256xf32>
    %c0_52 = arith.constant 0 : index
    %c0_53 = arith.constant 0 : index
    %126 = vector.load %arg3[%c0_52, %c0_53] : memref<4x1xf32, #tpu.memory_space<vmem>>, vector<4x1xf32>
    %127 = vector.broadcast %126 : vector<4x1xf32> to vector<4x256xf32>
    %128 = arith.addf %125, %127 : vector<4x256xf32>
    %cst_54 = arith.constant 0.000000e+00 : f32
    %129 = vector.broadcast %cst_54 : f32 to vector<4x256xf32>
    %c153_i32 = arith.constant 153 : i32
    %130 = tpu.dynamic_rotate %128 by %c153_i32 dim 1 : vector<4x256xf32>, i32 -> vector<4x256xf32>
    %c0_55 = arith.constant 0 : index
    %c0_56 = arith.constant 0 : index
    %c0_57 = arith.constant 0 : index
    %131 = vector.load %arg4[%c0_55, %c0_56, %c0_57] : memref<49x4x256xf32, #tpu.memory_space<vmem>>, vector<1x4x256xf32>
    %132 = vector.shape_cast %131 : vector<1x4x256xf32> to vector<4x256xf32>
    %133 = arith.mulf %130, %132 : vector<4x256xf32>
    %134 = arith.addf %129, %133 : vector<4x256xf32>
    %c150_i32 = arith.constant 150 : i32
    %135 = tpu.dynamic_rotate %128 by %c150_i32 dim 1 : vector<4x256xf32>, i32 -> vector<4x256xf32>
    %c1_58 = arith.constant 1 : index
    %c0_59 = arith.constant 0 : index
    %c0_60 = arith.constant 0 : index
    %136 = vector.load %arg4[%c1_58, %c0_59, %c0_60] : memref<49x4x256xf32, #tpu.memory_space<vmem>>, vector<1x4x256xf32>
    %137 = vector.shape_cast %136 : vector<1x4x256xf32> to vector<4x256xf32>
    %138 = arith.mulf %135, %137 : vector<4x256xf32>
    %139 = arith.addf %134, %138 : vector<4x256xf32>
    %c147_i32 = arith.constant 147 : i32
    %140 = tpu.dynamic_rotate %128 by %c147_i32 dim 1 : vector<4x256xf32>, i32 -> vector<4x256xf32>
    %c2_61 = arith.constant 2 : index
    %c0_62 = arith.constant 0 : index
    %c0_63 = arith.constant 0 : index
    %141 = vector.load %arg4[%c2_61, %c0_62, %c0_63] : memref<49x4x256xf32, #tpu.memory_space<vmem>>, vector<1x4x256xf32>
    %142 = vector.shape_cast %141 : vector<1x4x256xf32> to vector<4x256xf32>
    %143 = arith.mulf %140, %142 : vector<4x256xf32>
    %144 = arith.addf %139, %143 : vector<4x256xf32>
    %c144_i32 = arith.constant 144 : i32
    %145 = tpu.dynamic_rotate %128 by %c144_i32 dim 1 : vector<4x256xf32>, i32 -> vector<4x256xf32>
    %c3_64 = arith.constant 3 : index
    %c0_65 = arith.constant 0 : index
    %c0_66 = arith.constant 0 : index
    %146 = vector.load %arg4[%c3_64, %c0_65, %c0_66] : memref<49x4x256xf32, #tpu.memory_space<vmem>>, vector<1x4x256xf32>
    %147 = vector.shape_cast %146 : vector<1x4x256xf32> to vector<4x256xf32>
    %148 = arith.mulf %145, %147 : vector<4x256xf32>
    %149 = arith.addf %144, %148 : vector<4x256xf32>
    %c141_i32 = arith.constant 141 : i32
    %150 = tpu.dynamic_rotate %128 by %c141_i32 dim 1 : vector<4x256xf32>, i32 -> vector<4x256xf32>
    %c4_67 = arith.constant 4 : index
    %c0_68 = arith.constant 0 : index
    %c0_69 = arith.constant 0 : index
    %151 = vector.load %arg4[%c4_67, %c0_68, %c0_69] : memref<49x4x256xf32, #tpu.memory_space<vmem>>, vector<1x4x256xf32>
    %152 = vector.shape_cast %151 : vector<1x4x256xf32> to vector<4x256xf32>
    %153 = arith.mulf %150, %152 : vector<4x256xf32>
    %154 = arith.addf %149, %153 : vector<4x256xf32>
    %c138_i32 = arith.constant 138 : i32
    %155 = tpu.dynamic_rotate %128 by %c138_i32 dim 1 : vector<4x256xf32>, i32 -> vector<4x256xf32>
    %c5_70 = arith.constant 5 : index
    %c0_71 = arith.constant 0 : index
    %c0_72 = arith.constant 0 : index
    %156 = vector.load %arg4[%c5_70, %c0_71, %c0_72] : memref<49x4x256xf32, #tpu.memory_space<vmem>>, vector<1x4x256xf32>
    %157 = vector.shape_cast %156 : vector<1x4x256xf32> to vector<4x256xf32>
    %158 = arith.mulf %155, %157 : vector<4x256xf32>
    %159 = arith.addf %154, %158 : vector<4x256xf32>
    %c135_i32 = arith.constant 135 : i32
    %160 = tpu.dynamic_rotate %128 by %c135_i32 dim 1 : vector<4x256xf32>, i32 -> vector<4x256xf32>
    %c6_73 = arith.constant 6 : index
    %c0_74 = arith.constant 0 : index
    %c0_75 = arith.constant 0 : index
    %161 = vector.load %arg4[%c6_73, %c0_74, %c0_75] : memref<49x4x256xf32, #tpu.memory_space<vmem>>, vector<1x4x256xf32>
    %162 = vector.shape_cast %161 : vector<1x4x256xf32> to vector<4x256xf32>
    %163 = arith.mulf %160, %162 : vector<4x256xf32>
    %164 = arith.addf %159, %163 : vector<4x256xf32>
    %c105_i32 = arith.constant 105 : i32
    %165 = tpu.dynamic_rotate %128 by %c105_i32 dim 1 : vector<4x256xf32>, i32 -> vector<4x256xf32>
    %c7_76 = arith.constant 7 : index
    %c0_77 = arith.constant 0 : index
    %c0_78 = arith.constant 0 : index
    %166 = vector.load %arg4[%c7_76, %c0_77, %c0_78] : memref<49x4x256xf32, #tpu.memory_space<vmem>>, vector<1x4x256xf32>
    %167 = vector.shape_cast %166 : vector<1x4x256xf32> to vector<4x256xf32>
    %168 = arith.mulf %165, %167 : vector<4x256xf32>
    %169 = arith.addf %164, %168 : vector<4x256xf32>
    %c102_i32 = arith.constant 102 : i32
    %170 = tpu.dynamic_rotate %128 by %c102_i32 dim 1 : vector<4x256xf32>, i32 -> vector<4x256xf32>
    %c8_79 = arith.constant 8 : index
    %c0_80 = arith.constant 0 : index
    %c0_81 = arith.constant 0 : index
    %171 = vector.load %arg4[%c8_79, %c0_80, %c0_81] : memref<49x4x256xf32, #tpu.memory_space<vmem>>, vector<1x4x256xf32>
    %172 = vector.shape_cast %171 : vector<1x4x256xf32> to vector<4x256xf32>
    %173 = arith.mulf %170, %172 : vector<4x256xf32>
    %174 = arith.addf %169, %173 : vector<4x256xf32>
    %c99_i32 = arith.constant 99 : i32
    %175 = tpu.dynamic_rotate %128 by %c99_i32 dim 1 : vector<4x256xf32>, i32 -> vector<4x256xf32>
    %c9_82 = arith.constant 9 : index
    %c0_83 = arith.constant 0 : index
    %c0_84 = arith.constant 0 : index
    %176 = vector.load %arg4[%c9_82, %c0_83, %c0_84] : memref<49x4x256xf32, #tpu.memory_space<vmem>>, vector<1x4x256xf32>
    %177 = vector.shape_cast %176 : vector<1x4x256xf32> to vector<4x256xf32>
    %178 = arith.mulf %175, %177 : vector<4x256xf32>
    %179 = arith.addf %174, %178 : vector<4x256xf32>
    %c96_i32 = arith.constant 96 : i32
    %180 = tpu.dynamic_rotate %128 by %c96_i32 dim 1 : vector<4x256xf32>, i32 -> vector<4x256xf32>
    %c10_85 = arith.constant 10 : index
    %c0_86 = arith.constant 0 : index
    %c0_87 = arith.constant 0 : index
    %181 = vector.load %arg4[%c10_85, %c0_86, %c0_87] : memref<49x4x256xf32, #tpu.memory_space<vmem>>, vector<1x4x256xf32>
    %182 = vector.shape_cast %181 : vector<1x4x256xf32> to vector<4x256xf32>
    %183 = arith.mulf %180, %182 : vector<4x256xf32>
    %184 = arith.addf %179, %183 : vector<4x256xf32>
    %c93_i32 = arith.constant 93 : i32
    %185 = tpu.dynamic_rotate %128 by %c93_i32 dim 1 : vector<4x256xf32>, i32 -> vector<4x256xf32>
    %c11_88 = arith.constant 11 : index
    %c0_89 = arith.constant 0 : index
    %c0_90 = arith.constant 0 : index
    %186 = vector.load %arg4[%c11_88, %c0_89, %c0_90] : memref<49x4x256xf32, #tpu.memory_space<vmem>>, vector<1x4x256xf32>
    %187 = vector.shape_cast %186 : vector<1x4x256xf32> to vector<4x256xf32>
    %188 = arith.mulf %185, %187 : vector<4x256xf32>
    %189 = arith.addf %184, %188 : vector<4x256xf32>
    %c90_i32 = arith.constant 90 : i32
    %190 = tpu.dynamic_rotate %128 by %c90_i32 dim 1 : vector<4x256xf32>, i32 -> vector<4x256xf32>
    %c12_91 = arith.constant 12 : index
    %c0_92 = arith.constant 0 : index
    %c0_93 = arith.constant 0 : index
    %191 = vector.load %arg4[%c12_91, %c0_92, %c0_93] : memref<49x4x256xf32, #tpu.memory_space<vmem>>, vector<1x4x256xf32>
    %192 = vector.shape_cast %191 : vector<1x4x256xf32> to vector<4x256xf32>
    %193 = arith.mulf %190, %192 : vector<4x256xf32>
    %194 = arith.addf %189, %193 : vector<4x256xf32>
    %c87_i32 = arith.constant 87 : i32
    %195 = tpu.dynamic_rotate %128 by %c87_i32 dim 1 : vector<4x256xf32>, i32 -> vector<4x256xf32>
    %c13_94 = arith.constant 13 : index
    %c0_95 = arith.constant 0 : index
    %c0_96 = arith.constant 0 : index
    %196 = vector.load %arg4[%c13_94, %c0_95, %c0_96] : memref<49x4x256xf32, #tpu.memory_space<vmem>>, vector<1x4x256xf32>
    %197 = vector.shape_cast %196 : vector<1x4x256xf32> to vector<4x256xf32>
    %198 = arith.mulf %195, %197 : vector<4x256xf32>
    %199 = arith.addf %194, %198 : vector<4x256xf32>
    %c57_i32 = arith.constant 57 : i32
    %200 = tpu.dynamic_rotate %128 by %c57_i32 dim 1 : vector<4x256xf32>, i32 -> vector<4x256xf32>
    %c14_97 = arith.constant 14 : index
    %c0_98 = arith.constant 0 : index
    %c0_99 = arith.constant 0 : index
    %201 = vector.load %arg4[%c14_97, %c0_98, %c0_99] : memref<49x4x256xf32, #tpu.memory_space<vmem>>, vector<1x4x256xf32>
    %202 = vector.shape_cast %201 : vector<1x4x256xf32> to vector<4x256xf32>
    %203 = arith.mulf %200, %202 : vector<4x256xf32>
    %204 = arith.addf %199, %203 : vector<4x256xf32>
    %c54_i32 = arith.constant 54 : i32
    %205 = tpu.dynamic_rotate %128 by %c54_i32 dim 1 : vector<4x256xf32>, i32 -> vector<4x256xf32>
    %c15_100 = arith.constant 15 : index
    %c0_101 = arith.constant 0 : index
    %c0_102 = arith.constant 0 : index
    %206 = vector.load %arg4[%c15_100, %c0_101, %c0_102] : memref<49x4x256xf32, #tpu.memory_space<vmem>>, vector<1x4x256xf32>
    %207 = vector.shape_cast %206 : vector<1x4x256xf32> to vector<4x256xf32>
    %208 = arith.mulf %205, %207 : vector<4x256xf32>
    %209 = arith.addf %204, %208 : vector<4x256xf32>
    %c51_i32 = arith.constant 51 : i32
    %210 = tpu.dynamic_rotate %128 by %c51_i32 dim 1 : vector<4x256xf32>, i32 -> vector<4x256xf32>
    %c16_103 = arith.constant 16 : index
    %c0_104 = arith.constant 0 : index
    %c0_105 = arith.constant 0 : index
    %211 = vector.load %arg4[%c16_103, %c0_104, %c0_105] : memref<49x4x256xf32, #tpu.memory_space<vmem>>, vector<1x4x256xf32>
    %212 = vector.shape_cast %211 : vector<1x4x256xf32> to vector<4x256xf32>
    %213 = arith.mulf %210, %212 : vector<4x256xf32>
    %214 = arith.addf %209, %213 : vector<4x256xf32>
    %c48_i32 = arith.constant 48 : i32
    %215 = tpu.dynamic_rotate %128 by %c48_i32 dim 1 : vector<4x256xf32>, i32 -> vector<4x256xf32>
    %c17_106 = arith.constant 17 : index
    %c0_107 = arith.constant 0 : index
    %c0_108 = arith.constant 0 : index
    %216 = vector.load %arg4[%c17_106, %c0_107, %c0_108] : memref<49x4x256xf32, #tpu.memory_space<vmem>>, vector<1x4x256xf32>
    %217 = vector.shape_cast %216 : vector<1x4x256xf32> to vector<4x256xf32>
    %218 = arith.mulf %215, %217 : vector<4x256xf32>
    %219 = arith.addf %214, %218 : vector<4x256xf32>
    %c45_i32 = arith.constant 45 : i32
    %220 = tpu.dynamic_rotate %128 by %c45_i32 dim 1 : vector<4x256xf32>, i32 -> vector<4x256xf32>
    %c18_109 = arith.constant 18 : index
    %c0_110 = arith.constant 0 : index
    %c0_111 = arith.constant 0 : index
    %221 = vector.load %arg4[%c18_109, %c0_110, %c0_111] : memref<49x4x256xf32, #tpu.memory_space<vmem>>, vector<1x4x256xf32>
    %222 = vector.shape_cast %221 : vector<1x4x256xf32> to vector<4x256xf32>
    %223 = arith.mulf %220, %222 : vector<4x256xf32>
    %224 = arith.addf %219, %223 : vector<4x256xf32>
    %c42_i32 = arith.constant 42 : i32
    %225 = tpu.dynamic_rotate %128 by %c42_i32 dim 1 : vector<4x256xf32>, i32 -> vector<4x256xf32>
    %c19_112 = arith.constant 19 : index
    %c0_113 = arith.constant 0 : index
    %c0_114 = arith.constant 0 : index
    %226 = vector.load %arg4[%c19_112, %c0_113, %c0_114] : memref<49x4x256xf32, #tpu.memory_space<vmem>>, vector<1x4x256xf32>
    %227 = vector.shape_cast %226 : vector<1x4x256xf32> to vector<4x256xf32>
    %228 = arith.mulf %225, %227 : vector<4x256xf32>
    %229 = arith.addf %224, %228 : vector<4x256xf32>
    %c39_i32 = arith.constant 39 : i32
    %230 = tpu.dynamic_rotate %128 by %c39_i32 dim 1 : vector<4x256xf32>, i32 -> vector<4x256xf32>
    %c20_115 = arith.constant 20 : index
    %c0_116 = arith.constant 0 : index
    %c0_117 = arith.constant 0 : index
    %231 = vector.load %arg4[%c20_115, %c0_116, %c0_117] : memref<49x4x256xf32, #tpu.memory_space<vmem>>, vector<1x4x256xf32>
    %232 = vector.shape_cast %231 : vector<1x4x256xf32> to vector<4x256xf32>
    %233 = arith.mulf %230, %232 : vector<4x256xf32>
    %234 = arith.addf %229, %233 : vector<4x256xf32>
    %c9_i32 = arith.constant 9 : i32
    %235 = tpu.dynamic_rotate %128 by %c9_i32 dim 1 : vector<4x256xf32>, i32 -> vector<4x256xf32>
    %c21_118 = arith.constant 21 : index
    %c0_119 = arith.constant 0 : index
    %c0_120 = arith.constant 0 : index
    %236 = vector.load %arg4[%c21_118, %c0_119, %c0_120] : memref<49x4x256xf32, #tpu.memory_space<vmem>>, vector<1x4x256xf32>
    %237 = vector.shape_cast %236 : vector<1x4x256xf32> to vector<4x256xf32>
    %238 = arith.mulf %235, %237 : vector<4x256xf32>
    %239 = arith.addf %234, %238 : vector<4x256xf32>
    %c6_i32 = arith.constant 6 : i32
    %240 = tpu.dynamic_rotate %128 by %c6_i32 dim 1 : vector<4x256xf32>, i32 -> vector<4x256xf32>
    %c22_121 = arith.constant 22 : index
    %c0_122 = arith.constant 0 : index
    %c0_123 = arith.constant 0 : index
    %241 = vector.load %arg4[%c22_121, %c0_122, %c0_123] : memref<49x4x256xf32, #tpu.memory_space<vmem>>, vector<1x4x256xf32>
    %242 = vector.shape_cast %241 : vector<1x4x256xf32> to vector<4x256xf32>
    %243 = arith.mulf %240, %242 : vector<4x256xf32>
    %244 = arith.addf %239, %243 : vector<4x256xf32>
    %c3_i32 = arith.constant 3 : i32
    %245 = tpu.dynamic_rotate %128 by %c3_i32 dim 1 : vector<4x256xf32>, i32 -> vector<4x256xf32>
    %c23_124 = arith.constant 23 : index
    %c0_125 = arith.constant 0 : index
    %c0_126 = arith.constant 0 : index
    %246 = vector.load %arg4[%c23_124, %c0_125, %c0_126] : memref<49x4x256xf32, #tpu.memory_space<vmem>>, vector<1x4x256xf32>
    %247 = vector.shape_cast %246 : vector<1x4x256xf32> to vector<4x256xf32>
    %248 = arith.mulf %245, %247 : vector<4x256xf32>
    %249 = arith.addf %244, %248 : vector<4x256xf32>
    %c24_127 = arith.constant 24 : index
    %c0_128 = arith.constant 0 : index
    %c0_129 = arith.constant 0 : index
    %250 = vector.load %arg4[%c24_127, %c0_128, %c0_129] : memref<49x4x256xf32, #tpu.memory_space<vmem>>, vector<1x4x256xf32>
    %251 = vector.shape_cast %250 : vector<1x4x256xf32> to vector<4x256xf32>
    %252 = arith.mulf %128, %251 : vector<4x256xf32>
    %253 = arith.addf %249, %252 : vector<4x256xf32>
    %c253_i32 = arith.constant 253 : i32
    %254 = tpu.dynamic_rotate %128 by %c253_i32 dim 1 : vector<4x256xf32>, i32 -> vector<4x256xf32>
    %c25 = arith.constant 25 : index
    %c0_130 = arith.constant 0 : index
    %c0_131 = arith.constant 0 : index
    %255 = vector.load %arg4[%c25, %c0_130, %c0_131] : memref<49x4x256xf32, #tpu.memory_space<vmem>>, vector<1x4x256xf32>
    %256 = vector.shape_cast %255 : vector<1x4x256xf32> to vector<4x256xf32>
    %257 = arith.mulf %254, %256 : vector<4x256xf32>
    %258 = arith.addf %253, %257 : vector<4x256xf32>
    %c250_i32 = arith.constant 250 : i32
    %259 = tpu.dynamic_rotate %128 by %c250_i32 dim 1 : vector<4x256xf32>, i32 -> vector<4x256xf32>
    %c26 = arith.constant 26 : index
    %c0_132 = arith.constant 0 : index
    %c0_133 = arith.constant 0 : index
    %260 = vector.load %arg4[%c26, %c0_132, %c0_133] : memref<49x4x256xf32, #tpu.memory_space<vmem>>, vector<1x4x256xf32>
    %261 = vector.shape_cast %260 : vector<1x4x256xf32> to vector<4x256xf32>
    %262 = arith.mulf %259, %261 : vector<4x256xf32>
    %263 = arith.addf %258, %262 : vector<4x256xf32>
    %c247_i32 = arith.constant 247 : i32
    %264 = tpu.dynamic_rotate %128 by %c247_i32 dim 1 : vector<4x256xf32>, i32 -> vector<4x256xf32>
    %c27 = arith.constant 27 : index
    %c0_134 = arith.constant 0 : index
    %c0_135 = arith.constant 0 : index
    %265 = vector.load %arg4[%c27, %c0_134, %c0_135] : memref<49x4x256xf32, #tpu.memory_space<vmem>>, vector<1x4x256xf32>
    %266 = vector.shape_cast %265 : vector<1x4x256xf32> to vector<4x256xf32>
    %267 = arith.mulf %264, %266 : vector<4x256xf32>
    %268 = arith.addf %263, %267 : vector<4x256xf32>
    %c217_i32 = arith.constant 217 : i32
    %269 = tpu.dynamic_rotate %128 by %c217_i32 dim 1 : vector<4x256xf32>, i32 -> vector<4x256xf32>
    %c28 = arith.constant 28 : index
    %c0_136 = arith.constant 0 : index
    %c0_137 = arith.constant 0 : index
    %270 = vector.load %arg4[%c28, %c0_136, %c0_137] : memref<49x4x256xf32, #tpu.memory_space<vmem>>, vector<1x4x256xf32>
    %271 = vector.shape_cast %270 : vector<1x4x256xf32> to vector<4x256xf32>
    %272 = arith.mulf %269, %271 : vector<4x256xf32>
    %273 = arith.addf %268, %272 : vector<4x256xf32>
    %c214_i32 = arith.constant 214 : i32
    %274 = tpu.dynamic_rotate %128 by %c214_i32 dim 1 : vector<4x256xf32>, i32 -> vector<4x256xf32>
    %c29 = arith.constant 29 : index
    %c0_138 = arith.constant 0 : index
    %c0_139 = arith.constant 0 : index
    %275 = vector.load %arg4[%c29, %c0_138, %c0_139] : memref<49x4x256xf32, #tpu.memory_space<vmem>>, vector<1x4x256xf32>
    %276 = vector.shape_cast %275 : vector<1x4x256xf32> to vector<4x256xf32>
    %277 = arith.mulf %274, %276 : vector<4x256xf32>
    %278 = arith.addf %273, %277 : vector<4x256xf32>
    %c211_i32 = arith.constant 211 : i32
    %279 = tpu.dynamic_rotate %128 by %c211_i32 dim 1 : vector<4x256xf32>, i32 -> vector<4x256xf32>
    %c30 = arith.constant 30 : index
    %c0_140 = arith.constant 0 : index
    %c0_141 = arith.constant 0 : index
    %280 = vector.load %arg4[%c30, %c0_140, %c0_141] : memref<49x4x256xf32, #tpu.memory_space<vmem>>, vector<1x4x256xf32>
    %281 = vector.shape_cast %280 : vector<1x4x256xf32> to vector<4x256xf32>
    %282 = arith.mulf %279, %281 : vector<4x256xf32>
    %283 = arith.addf %278, %282 : vector<4x256xf32>
    %c208_i32 = arith.constant 208 : i32
    %284 = tpu.dynamic_rotate %128 by %c208_i32 dim 1 : vector<4x256xf32>, i32 -> vector<4x256xf32>
    %c31 = arith.constant 31 : index
    %c0_142 = arith.constant 0 : index
    %c0_143 = arith.constant 0 : index
    %285 = vector.load %arg4[%c31, %c0_142, %c0_143] : memref<49x4x256xf32, #tpu.memory_space<vmem>>, vector<1x4x256xf32>
    %286 = vector.shape_cast %285 : vector<1x4x256xf32> to vector<4x256xf32>
    %287 = arith.mulf %284, %286 : vector<4x256xf32>
    %288 = arith.addf %283, %287 : vector<4x256xf32>
    %c205_i32 = arith.constant 205 : i32
    %289 = tpu.dynamic_rotate %128 by %c205_i32 dim 1 : vector<4x256xf32>, i32 -> vector<4x256xf32>
    %c32 = arith.constant 32 : index
    %c0_144 = arith.constant 0 : index
    %c0_145 = arith.constant 0 : index
    %290 = vector.load %arg4[%c32, %c0_144, %c0_145] : memref<49x4x256xf32, #tpu.memory_space<vmem>>, vector<1x4x256xf32>
    %291 = vector.shape_cast %290 : vector<1x4x256xf32> to vector<4x256xf32>
    %292 = arith.mulf %289, %291 : vector<4x256xf32>
    %293 = arith.addf %288, %292 : vector<4x256xf32>
    %c202_i32 = arith.constant 202 : i32
    %294 = tpu.dynamic_rotate %128 by %c202_i32 dim 1 : vector<4x256xf32>, i32 -> vector<4x256xf32>
    %c33 = arith.constant 33 : index
    %c0_146 = arith.constant 0 : index
    %c0_147 = arith.constant 0 : index
    %295 = vector.load %arg4[%c33, %c0_146, %c0_147] : memref<49x4x256xf32, #tpu.memory_space<vmem>>, vector<1x4x256xf32>
    %296 = vector.shape_cast %295 : vector<1x4x256xf32> to vector<4x256xf32>
    %297 = arith.mulf %294, %296 : vector<4x256xf32>
    %298 = arith.addf %293, %297 : vector<4x256xf32>
    %c199_i32 = arith.constant 199 : i32
    %299 = tpu.dynamic_rotate %128 by %c199_i32 dim 1 : vector<4x256xf32>, i32 -> vector<4x256xf32>
    %c34 = arith.constant 34 : index
    %c0_148 = arith.constant 0 : index
    %c0_149 = arith.constant 0 : index
    %300 = vector.load %arg4[%c34, %c0_148, %c0_149] : memref<49x4x256xf32, #tpu.memory_space<vmem>>, vector<1x4x256xf32>
    %301 = vector.shape_cast %300 : vector<1x4x256xf32> to vector<4x256xf32>
    %302 = arith.mulf %299, %301 : vector<4x256xf32>
    %303 = arith.addf %298, %302 : vector<4x256xf32>
    %c169_i32 = arith.constant 169 : i32
    %304 = tpu.dynamic_rotate %128 by %c169_i32 dim 1 : vector<4x256xf32>, i32 -> vector<4x256xf32>
    %c35 = arith.constant 35 : index
    %c0_150 = arith.constant 0 : index
    %c0_151 = arith.constant 0 : index
    %305 = vector.load %arg4[%c35, %c0_150, %c0_151] : memref<49x4x256xf32, #tpu.memory_space<vmem>>, vector<1x4x256xf32>
    %306 = vector.shape_cast %305 : vector<1x4x256xf32> to vector<4x256xf32>
    %307 = arith.mulf %304, %306 : vector<4x256xf32>
    %308 = arith.addf %303, %307 : vector<4x256xf32>
    %c166_i32 = arith.constant 166 : i32
    %309 = tpu.dynamic_rotate %128 by %c166_i32 dim 1 : vector<4x256xf32>, i32 -> vector<4x256xf32>
    %c36 = arith.constant 36 : index
    %c0_152 = arith.constant 0 : index
    %c0_153 = arith.constant 0 : index
    %310 = vector.load %arg4[%c36, %c0_152, %c0_153] : memref<49x4x256xf32, #tpu.memory_space<vmem>>, vector<1x4x256xf32>
    %311 = vector.shape_cast %310 : vector<1x4x256xf32> to vector<4x256xf32>
    %312 = arith.mulf %309, %311 : vector<4x256xf32>
    %313 = arith.addf %308, %312 : vector<4x256xf32>
    %c163_i32 = arith.constant 163 : i32
    %314 = tpu.dynamic_rotate %128 by %c163_i32 dim 1 : vector<4x256xf32>, i32 -> vector<4x256xf32>
    %c37 = arith.constant 37 : index
    %c0_154 = arith.constant 0 : index
    %c0_155 = arith.constant 0 : index
    %315 = vector.load %arg4[%c37, %c0_154, %c0_155] : memref<49x4x256xf32, #tpu.memory_space<vmem>>, vector<1x4x256xf32>
    %316 = vector.shape_cast %315 : vector<1x4x256xf32> to vector<4x256xf32>
    %317 = arith.mulf %314, %316 : vector<4x256xf32>
    %318 = arith.addf %313, %317 : vector<4x256xf32>
    %c160_i32 = arith.constant 160 : i32
    %319 = tpu.dynamic_rotate %128 by %c160_i32 dim 1 : vector<4x256xf32>, i32 -> vector<4x256xf32>
    %c38 = arith.constant 38 : index
    %c0_156 = arith.constant 0 : index
    %c0_157 = arith.constant 0 : index
    %320 = vector.load %arg4[%c38, %c0_156, %c0_157] : memref<49x4x256xf32, #tpu.memory_space<vmem>>, vector<1x4x256xf32>
    %321 = vector.shape_cast %320 : vector<1x4x256xf32> to vector<4x256xf32>
    %322 = arith.mulf %319, %321 : vector<4x256xf32>
    %323 = arith.addf %318, %322 : vector<4x256xf32>
    %c157_i32 = arith.constant 157 : i32
    %324 = tpu.dynamic_rotate %128 by %c157_i32 dim 1 : vector<4x256xf32>, i32 -> vector<4x256xf32>
    %c39 = arith.constant 39 : index
    %c0_158 = arith.constant 0 : index
    %c0_159 = arith.constant 0 : index
    %325 = vector.load %arg4[%c39, %c0_158, %c0_159] : memref<49x4x256xf32, #tpu.memory_space<vmem>>, vector<1x4x256xf32>
    %326 = vector.shape_cast %325 : vector<1x4x256xf32> to vector<4x256xf32>
    %327 = arith.mulf %324, %326 : vector<4x256xf32>
    %328 = arith.addf %323, %327 : vector<4x256xf32>
    %c154_i32 = arith.constant 154 : i32
    %329 = tpu.dynamic_rotate %128 by %c154_i32 dim 1 : vector<4x256xf32>, i32 -> vector<4x256xf32>
    %c40 = arith.constant 40 : index
    %c0_160 = arith.constant 0 : index
    %c0_161 = arith.constant 0 : index
    %330 = vector.load %arg4[%c40, %c0_160, %c0_161] : memref<49x4x256xf32, #tpu.memory_space<vmem>>, vector<1x4x256xf32>
    %331 = vector.shape_cast %330 : vector<1x4x256xf32> to vector<4x256xf32>
    %332 = arith.mulf %329, %331 : vector<4x256xf32>
    %333 = arith.addf %328, %332 : vector<4x256xf32>
    %c151_i32 = arith.constant 151 : i32
    %334 = tpu.dynamic_rotate %128 by %c151_i32 dim 1 : vector<4x256xf32>, i32 -> vector<4x256xf32>
    %c41 = arith.constant 41 : index
    %c0_162 = arith.constant 0 : index
    %c0_163 = arith.constant 0 : index
    %335 = vector.load %arg4[%c41, %c0_162, %c0_163] : memref<49x4x256xf32, #tpu.memory_space<vmem>>, vector<1x4x256xf32>
    %336 = vector.shape_cast %335 : vector<1x4x256xf32> to vector<4x256xf32>
    %337 = arith.mulf %334, %336 : vector<4x256xf32>
    %338 = arith.addf %333, %337 : vector<4x256xf32>
    %c121_i32 = arith.constant 121 : i32
    %339 = tpu.dynamic_rotate %128 by %c121_i32 dim 1 : vector<4x256xf32>, i32 -> vector<4x256xf32>
    %c42 = arith.constant 42 : index
    %c0_164 = arith.constant 0 : index
    %c0_165 = arith.constant 0 : index
    %340 = vector.load %arg4[%c42, %c0_164, %c0_165] : memref<49x4x256xf32, #tpu.memory_space<vmem>>, vector<1x4x256xf32>
    %341 = vector.shape_cast %340 : vector<1x4x256xf32> to vector<4x256xf32>
    %342 = arith.mulf %339, %341 : vector<4x256xf32>
    %343 = arith.addf %338, %342 : vector<4x256xf32>
    %c118_i32 = arith.constant 118 : i32
    %344 = tpu.dynamic_rotate %128 by %c118_i32 dim 1 : vector<4x256xf32>, i32 -> vector<4x256xf32>
    %c43 = arith.constant 43 : index
    %c0_166 = arith.constant 0 : index
    %c0_167 = arith.constant 0 : index
    %345 = vector.load %arg4[%c43, %c0_166, %c0_167] : memref<49x4x256xf32, #tpu.memory_space<vmem>>, vector<1x4x256xf32>
    %346 = vector.shape_cast %345 : vector<1x4x256xf32> to vector<4x256xf32>
    %347 = arith.mulf %344, %346 : vector<4x256xf32>
    %348 = arith.addf %343, %347 : vector<4x256xf32>
    %c115_i32 = arith.constant 115 : i32
    %349 = tpu.dynamic_rotate %128 by %c115_i32 dim 1 : vector<4x256xf32>, i32 -> vector<4x256xf32>
    %c44 = arith.constant 44 : index
    %c0_168 = arith.constant 0 : index
    %c0_169 = arith.constant 0 : index
    %350 = vector.load %arg4[%c44, %c0_168, %c0_169] : memref<49x4x256xf32, #tpu.memory_space<vmem>>, vector<1x4x256xf32>
    %351 = vector.shape_cast %350 : vector<1x4x256xf32> to vector<4x256xf32>
    %352 = arith.mulf %349, %351 : vector<4x256xf32>
    %353 = arith.addf %348, %352 : vector<4x256xf32>
    %c112_i32 = arith.constant 112 : i32
    %354 = tpu.dynamic_rotate %128 by %c112_i32 dim 1 : vector<4x256xf32>, i32 -> vector<4x256xf32>
    %c45 = arith.constant 45 : index
    %c0_170 = arith.constant 0 : index
    %c0_171 = arith.constant 0 : index
    %355 = vector.load %arg4[%c45, %c0_170, %c0_171] : memref<49x4x256xf32, #tpu.memory_space<vmem>>, vector<1x4x256xf32>
    %356 = vector.shape_cast %355 : vector<1x4x256xf32> to vector<4x256xf32>
    %357 = arith.mulf %354, %356 : vector<4x256xf32>
    %358 = arith.addf %353, %357 : vector<4x256xf32>
    %c109_i32 = arith.constant 109 : i32
    %359 = tpu.dynamic_rotate %128 by %c109_i32 dim 1 : vector<4x256xf32>, i32 -> vector<4x256xf32>
    %c46 = arith.constant 46 : index
    %c0_172 = arith.constant 0 : index
    %c0_173 = arith.constant 0 : index
    %360 = vector.load %arg4[%c46, %c0_172, %c0_173] : memref<49x4x256xf32, #tpu.memory_space<vmem>>, vector<1x4x256xf32>
    %361 = vector.shape_cast %360 : vector<1x4x256xf32> to vector<4x256xf32>
    %362 = arith.mulf %359, %361 : vector<4x256xf32>
    %363 = arith.addf %358, %362 : vector<4x256xf32>
    %c106_i32 = arith.constant 106 : i32
    %364 = tpu.dynamic_rotate %128 by %c106_i32 dim 1 : vector<4x256xf32>, i32 -> vector<4x256xf32>
    %c47 = arith.constant 47 : index
    %c0_174 = arith.constant 0 : index
    %c0_175 = arith.constant 0 : index
    %365 = vector.load %arg4[%c47, %c0_174, %c0_175] : memref<49x4x256xf32, #tpu.memory_space<vmem>>, vector<1x4x256xf32>
    %366 = vector.shape_cast %365 : vector<1x4x256xf32> to vector<4x256xf32>
    %367 = arith.mulf %364, %366 : vector<4x256xf32>
    %368 = arith.addf %363, %367 : vector<4x256xf32>
    %c103_i32 = arith.constant 103 : i32
    %369 = tpu.dynamic_rotate %128 by %c103_i32 dim 1 : vector<4x256xf32>, i32 -> vector<4x256xf32>
    %c48 = arith.constant 48 : index
    %c0_176 = arith.constant 0 : index
    %c0_177 = arith.constant 0 : index
    %370 = vector.load %arg4[%c48, %c0_176, %c0_177] : memref<49x4x256xf32, #tpu.memory_space<vmem>>, vector<1x4x256xf32>
    %371 = vector.shape_cast %370 : vector<1x4x256xf32> to vector<4x256xf32>
    %372 = arith.mulf %369, %371 : vector<4x256xf32>
    %373 = arith.addf %368, %372 : vector<4x256xf32>
    %c0_178 = arith.constant 0 : index
    %c0_179 = arith.constant 0 : index
    %374 = vector.load %arg5[%c0_178, %c0_179] : memref<4x1xf32, #tpu.memory_space<vmem>>, vector<4x1xf32>
    %375 = vector.broadcast %374 : vector<4x1xf32> to vector<4x256xf32>
    %376 = arith.addf %373, %375 : vector<4x256xf32>
    %c0_180 = arith.constant 0 : index
    %c0_181 = arith.constant 0 : index
    %377 = vector.load %arg6[%c0_180, %c0_181] : memref<2x4xf32, #tpu.memory_space<vmem>>, vector<2x4xf32>
    %cst_182 = arith.constant dense<0.000000e+00> : vector<2x256xf32>
    %378 = tpu.matmul %377, %128, %cst_182 {dimension_numbers = #tpu.dot_dimension_numbers<[1], [0], [0], [1], [0, 0, 1, 1], [], []>} : vector<2x4xf32>, vector<4x256xf32>, vector<2x256xf32> -> vector<2x256xf32>
    %c0_183 = arith.constant 0 : index
    %c0_184 = arith.constant 0 : index
    %379 = vector.load %arg7[%c0_183, %c0_184] : memref<2x1xf32, #tpu.memory_space<vmem>>, vector<2x1xf32>
    %380 = vector.broadcast %379 : vector<2x1xf32> to vector<2x256xf32>
    %381 = arith.addf %378, %380 : vector<2x256xf32>
    %c0_185 = arith.constant 0 : index
    %c0_186 = arith.constant 0 : index
    %382 = vector.load %arg8[%c0_185, %c0_186] : memref<2x4xf32, #tpu.memory_space<vmem>>, vector<2x4xf32>
    %cst_187 = arith.constant dense<0.000000e+00> : vector<2x256xf32>
    %383 = tpu.matmul %382, %376, %cst_187 {dimension_numbers = #tpu.dot_dimension_numbers<[1], [0], [0], [1], [0, 0, 1, 1], [], []>} : vector<2x4xf32>, vector<4x256xf32>, vector<2x256xf32> -> vector<2x256xf32>
    %c0_188 = arith.constant 0 : index
    %c0_189 = arith.constant 0 : index
    %384 = vector.load %arg9[%c0_188, %c0_189] : memref<2x1xf32, #tpu.memory_space<vmem>>, vector<2x1xf32>
    %385 = vector.broadcast %384 : vector<2x1xf32> to vector<2x256xf32>
    %386 = arith.addf %383, %385 : vector<2x256xf32>
    %cst_190 = arith.constant dense<0.000000e+00> : vector<256xf32>
    %387 = vector.multi_reduction <add>, %381, %cst_190 [0] : vector<2x256xf32> to vector<256xf32>
    %388 = vector.shape_cast %387 : vector<256xf32> to vector<1x256xf32>
    %cst_191 = arith.constant dense<0.000000e+00> : vector<256xf32>
    %389 = vector.multi_reduction <add>, %386, %cst_191 [0] : vector<2x256xf32> to vector<256xf32>
    %390 = vector.shape_cast %389 : vector<256xf32> to vector<1x256xf32>
    %391 = arith.addf %388, %390 : vector<1x256xf32>
    %cst_192 = arith.constant 2.500000e-01 : f32
    %392 = vector.broadcast %cst_192 : f32 to vector<1x256xf32>
    %393 = arith.mulf %391, %392 : vector<1x256xf32>
    %cst_193 = arith.constant dense<0xFF800000> : vector<256xf32>
    %394 = vector.multi_reduction <maximumf>, %381, %cst_193 [0] : vector<2x256xf32> to vector<256xf32>
    %395 = vector.shape_cast %394 : vector<256xf32> to vector<1x256xf32>
    %cst_194 = arith.constant dense<0xFF800000> : vector<256xf32>
    %396 = vector.multi_reduction <maximumf>, %386, %cst_194 [0] : vector<2x256xf32> to vector<256xf32>
    %397 = vector.shape_cast %396 : vector<256xf32> to vector<1x256xf32>
    %398 = arith.maximumf %395, %397 : vector<1x256xf32>
    %cst_195 = arith.constant 0.000000e+00 : f32
    %399 = vector.broadcast %cst_195 : f32 to vector<1x256xf32>
    %cst_196 = arith.constant 0.000000e+00 : f32
    %400 = vector.broadcast %cst_196 : f32 to vector<1x256xf32>
    %c51_i32_197 = arith.constant 51 : i32
    %401 = tpu.dynamic_rotate %393 by %c51_i32_197 dim 1 : vector<1x256xf32>, i32 -> vector<1x256xf32>
    %c51_i32_198 = arith.constant 51 : i32
    %402 = tpu.dynamic_rotate %398 by %c51_i32_198 dim 1 : vector<1x256xf32>, i32 -> vector<1x256xf32>
    %c0_199 = arith.constant 0 : index
    %c0_200 = arith.constant 0 : index
    %403 = vector.load %arg10[%c0_199, %c0_200] : memref<49x256xf32, #tpu.memory_space<vmem>>, vector<1x256xf32>
    %404 = arith.mulf %401, %403 : vector<1x256xf32>
    %405 = arith.addf %399, %404 : vector<1x256xf32>
    %c0_201 = arith.constant 0 : index
    %c0_202 = arith.constant 0 : index
    %406 = vector.load %arg11[%c0_201, %c0_202] : memref<49x256xf32, #tpu.memory_space<vmem>>, vector<1x256xf32>
    %407 = arith.mulf %402, %406 : vector<1x256xf32>
    %408 = arith.addf %405, %407 : vector<1x256xf32>
    %c0_203 = arith.constant 0 : index
    %c0_204 = arith.constant 0 : index
    %409 = vector.load %arg12[%c0_203, %c0_204] : memref<49x256xf32, #tpu.memory_space<vmem>>, vector<1x256xf32>
    %410 = arith.mulf %401, %409 : vector<1x256xf32>
    %411 = arith.addf %400, %410 : vector<1x256xf32>
    %c0_205 = arith.constant 0 : index
    %c0_206 = arith.constant 0 : index
    %412 = vector.load %arg13[%c0_205, %c0_206] : memref<49x256xf32, #tpu.memory_space<vmem>>, vector<1x256xf32>
    %413 = arith.mulf %402, %412 : vector<1x256xf32>
    %414 = arith.addf %411, %413 : vector<1x256xf32>
    %c50_i32 = arith.constant 50 : i32
    %415 = tpu.dynamic_rotate %393 by %c50_i32 dim 1 : vector<1x256xf32>, i32 -> vector<1x256xf32>
    %c50_i32_207 = arith.constant 50 : i32
    %416 = tpu.dynamic_rotate %398 by %c50_i32_207 dim 1 : vector<1x256xf32>, i32 -> vector<1x256xf32>
    %c1_208 = arith.constant 1 : index
    %c0_209 = arith.constant 0 : index
    %417 = vector.load %arg10[%c1_208, %c0_209] : memref<49x256xf32, #tpu.memory_space<vmem>>, vector<1x256xf32>
    %418 = arith.mulf %415, %417 : vector<1x256xf32>
    %419 = arith.addf %408, %418 : vector<1x256xf32>
    %c1_210 = arith.constant 1 : index
    %c0_211 = arith.constant 0 : index
    %420 = vector.load %arg11[%c1_210, %c0_211] : memref<49x256xf32, #tpu.memory_space<vmem>>, vector<1x256xf32>
    %421 = arith.mulf %416, %420 : vector<1x256xf32>
    %422 = arith.addf %419, %421 : vector<1x256xf32>
    %c1_212 = arith.constant 1 : index
    %c0_213 = arith.constant 0 : index
    %423 = vector.load %arg12[%c1_212, %c0_213] : memref<49x256xf32, #tpu.memory_space<vmem>>, vector<1x256xf32>
    %424 = arith.mulf %415, %423 : vector<1x256xf32>
    %425 = arith.addf %414, %424 : vector<1x256xf32>
    %c1_214 = arith.constant 1 : index
    %c0_215 = arith.constant 0 : index
    %426 = vector.load %arg13[%c1_214, %c0_215] : memref<49x256xf32, #tpu.memory_space<vmem>>, vector<1x256xf32>
    %427 = arith.mulf %416, %426 : vector<1x256xf32>
    %428 = arith.addf %425, %427 : vector<1x256xf32>
    %c49_i32 = arith.constant 49 : i32
    %429 = tpu.dynamic_rotate %393 by %c49_i32 dim 1 : vector<1x256xf32>, i32 -> vector<1x256xf32>
    %c49_i32_216 = arith.constant 49 : i32
    %430 = tpu.dynamic_rotate %398 by %c49_i32_216 dim 1 : vector<1x256xf32>, i32 -> vector<1x256xf32>
    %c2_217 = arith.constant 2 : index
    %c0_218 = arith.constant 0 : index
    %431 = vector.load %arg10[%c2_217, %c0_218] : memref<49x256xf32, #tpu.memory_space<vmem>>, vector<1x256xf32>
    %432 = arith.mulf %429, %431 : vector<1x256xf32>
    %433 = arith.addf %422, %432 : vector<1x256xf32>
    %c2_219 = arith.constant 2 : index
    %c0_220 = arith.constant 0 : index
    %434 = vector.load %arg11[%c2_219, %c0_220] : memref<49x256xf32, #tpu.memory_space<vmem>>, vector<1x256xf32>
    %435 = arith.mulf %430, %434 : vector<1x256xf32>
    %436 = arith.addf %433, %435 : vector<1x256xf32>
    %c2_221 = arith.constant 2 : index
    %c0_222 = arith.constant 0 : index
    %437 = vector.load %arg12[%c2_221, %c0_222] : memref<49x256xf32, #tpu.memory_space<vmem>>, vector<1x256xf32>
    %438 = arith.mulf %429, %437 : vector<1x256xf32>
    %439 = arith.addf %428, %438 : vector<1x256xf32>
    %c2_223 = arith.constant 2 : index
    %c0_224 = arith.constant 0 : index
    %440 = vector.load %arg13[%c2_223, %c0_224] : memref<49x256xf32, #tpu.memory_space<vmem>>, vector<1x256xf32>
    %441 = arith.mulf %430, %440 : vector<1x256xf32>
    %442 = arith.addf %439, %441 : vector<1x256xf32>
    %c48_i32_225 = arith.constant 48 : i32
    %443 = tpu.dynamic_rotate %393 by %c48_i32_225 dim 1 : vector<1x256xf32>, i32 -> vector<1x256xf32>
    %c48_i32_226 = arith.constant 48 : i32
    %444 = tpu.dynamic_rotate %398 by %c48_i32_226 dim 1 : vector<1x256xf32>, i32 -> vector<1x256xf32>
    %c3_227 = arith.constant 3 : index
    %c0_228 = arith.constant 0 : index
    %445 = vector.load %arg10[%c3_227, %c0_228] : memref<49x256xf32, #tpu.memory_space<vmem>>, vector<1x256xf32>
    %446 = arith.mulf %443, %445 : vector<1x256xf32>
    %447 = arith.addf %436, %446 : vector<1x256xf32>
    %c3_229 = arith.constant 3 : index
    %c0_230 = arith.constant 0 : index
    %448 = vector.load %arg11[%c3_229, %c0_230] : memref<49x256xf32, #tpu.memory_space<vmem>>, vector<1x256xf32>
    %449 = arith.mulf %444, %448 : vector<1x256xf32>
    %450 = arith.addf %447, %449 : vector<1x256xf32>
    %c3_231 = arith.constant 3 : index
    %c0_232 = arith.constant 0 : index
    %451 = vector.load %arg12[%c3_231, %c0_232] : memref<49x256xf32, #tpu.memory_space<vmem>>, vector<1x256xf32>
    %452 = arith.mulf %443, %451 : vector<1x256xf32>
    %453 = arith.addf %442, %452 : vector<1x256xf32>
    %c3_233 = arith.constant 3 : index
    %c0_234 = arith.constant 0 : index
    %454 = vector.load %arg13[%c3_233, %c0_234] : memref<49x256xf32, #tpu.memory_space<vmem>>, vector<1x256xf32>
    %455 = arith.mulf %444, %454 : vector<1x256xf32>
    %456 = arith.addf %453, %455 : vector<1x256xf32>
    %c47_i32 = arith.constant 47 : i32
    %457 = tpu.dynamic_rotate %393 by %c47_i32 dim 1 : vector<1x256xf32>, i32 -> vector<1x256xf32>
    %c47_i32_235 = arith.constant 47 : i32
    %458 = tpu.dynamic_rotate %398 by %c47_i32_235 dim 1 : vector<1x256xf32>, i32 -> vector<1x256xf32>
    %c4_236 = arith.constant 4 : index
    %c0_237 = arith.constant 0 : index
    %459 = vector.load %arg10[%c4_236, %c0_237] : memref<49x256xf32, #tpu.memory_space<vmem>>, vector<1x256xf32>
    %460 = arith.mulf %457, %459 : vector<1x256xf32>
    %461 = arith.addf %450, %460 : vector<1x256xf32>
    %c4_238 = arith.constant 4 : index
    %c0_239 = arith.constant 0 : index
    %462 = vector.load %arg11[%c4_238, %c0_239] : memref<49x256xf32, #tpu.memory_space<vmem>>, vector<1x256xf32>
    %463 = arith.mulf %458, %462 : vector<1x256xf32>
    %464 = arith.addf %461, %463 : vector<1x256xf32>
    %c4_240 = arith.constant 4 : index
    %c0_241 = arith.constant 0 : index
    %465 = vector.load %arg12[%c4_240, %c0_241] : memref<49x256xf32, #tpu.memory_space<vmem>>, vector<1x256xf32>
    %466 = arith.mulf %457, %465 : vector<1x256xf32>
    %467 = arith.addf %456, %466 : vector<1x256xf32>
    %c4_242 = arith.constant 4 : index
    %c0_243 = arith.constant 0 : index
    %468 = vector.load %arg13[%c4_242, %c0_243] : memref<49x256xf32, #tpu.memory_space<vmem>>, vector<1x256xf32>
    %469 = arith.mulf %458, %468 : vector<1x256xf32>
    %470 = arith.addf %467, %469 : vector<1x256xf32>
    %c46_i32 = arith.constant 46 : i32
    %471 = tpu.dynamic_rotate %393 by %c46_i32 dim 1 : vector<1x256xf32>, i32 -> vector<1x256xf32>
    %c46_i32_244 = arith.constant 46 : i32
    %472 = tpu.dynamic_rotate %398 by %c46_i32_244 dim 1 : vector<1x256xf32>, i32 -> vector<1x256xf32>
    %c5_245 = arith.constant 5 : index
    %c0_246 = arith.constant 0 : index
    %473 = vector.load %arg10[%c5_245, %c0_246] : memref<49x256xf32, #tpu.memory_space<vmem>>, vector<1x256xf32>
    %474 = arith.mulf %471, %473 : vector<1x256xf32>
    %475 = arith.addf %464, %474 : vector<1x256xf32>
    %c5_247 = arith.constant 5 : index
    %c0_248 = arith.constant 0 : index
    %476 = vector.load %arg11[%c5_247, %c0_248] : memref<49x256xf32, #tpu.memory_space<vmem>>, vector<1x256xf32>
    %477 = arith.mulf %472, %476 : vector<1x256xf32>
    %478 = arith.addf %475, %477 : vector<1x256xf32>
    %c5_249 = arith.constant 5 : index
    %c0_250 = arith.constant 0 : index
    %479 = vector.load %arg12[%c5_249, %c0_250] : memref<49x256xf32, #tpu.memory_space<vmem>>, vector<1x256xf32>
    %480 = arith.mulf %471, %479 : vector<1x256xf32>
    %481 = arith.addf %470, %480 : vector<1x256xf32>
    %c5_251 = arith.constant 5 : index
    %c0_252 = arith.constant 0 : index
    %482 = vector.load %arg13[%c5_251, %c0_252] : memref<49x256xf32, #tpu.memory_space<vmem>>, vector<1x256xf32>
    %483 = arith.mulf %472, %482 : vector<1x256xf32>
    %484 = arith.addf %481, %483 : vector<1x256xf32>
    %c45_i32_253 = arith.constant 45 : i32
    %485 = tpu.dynamic_rotate %393 by %c45_i32_253 dim 1 : vector<1x256xf32>, i32 -> vector<1x256xf32>
    %c45_i32_254 = arith.constant 45 : i32
    %486 = tpu.dynamic_rotate %398 by %c45_i32_254 dim 1 : vector<1x256xf32>, i32 -> vector<1x256xf32>
    %c6_255 = arith.constant 6 : index
    %c0_256 = arith.constant 0 : index
    %487 = vector.load %arg10[%c6_255, %c0_256] : memref<49x256xf32, #tpu.memory_space<vmem>>, vector<1x256xf32>
    %488 = arith.mulf %485, %487 : vector<1x256xf32>
    %489 = arith.addf %478, %488 : vector<1x256xf32>
    %c6_257 = arith.constant 6 : index
    %c0_258 = arith.constant 0 : index
    %490 = vector.load %arg11[%c6_257, %c0_258] : memref<49x256xf32, #tpu.memory_space<vmem>>, vector<1x256xf32>
    %491 = arith.mulf %486, %490 : vector<1x256xf32>
    %492 = arith.addf %489, %491 : vector<1x256xf32>
    %c6_259 = arith.constant 6 : index
    %c0_260 = arith.constant 0 : index
    %493 = vector.load %arg12[%c6_259, %c0_260] : memref<49x256xf32, #tpu.memory_space<vmem>>, vector<1x256xf32>
    %494 = arith.mulf %485, %493 : vector<1x256xf32>
    %495 = arith.addf %484, %494 : vector<1x256xf32>
    %c6_261 = arith.constant 6 : index
    %c0_262 = arith.constant 0 : index
    %496 = vector.load %arg13[%c6_261, %c0_262] : memref<49x256xf32, #tpu.memory_space<vmem>>, vector<1x256xf32>
    %497 = arith.mulf %486, %496 : vector<1x256xf32>
    %498 = arith.addf %495, %497 : vector<1x256xf32>
    %c35_i32 = arith.constant 35 : i32
    %499 = tpu.dynamic_rotate %393 by %c35_i32 dim 1 : vector<1x256xf32>, i32 -> vector<1x256xf32>
    %c35_i32_263 = arith.constant 35 : i32
    %500 = tpu.dynamic_rotate %398 by %c35_i32_263 dim 1 : vector<1x256xf32>, i32 -> vector<1x256xf32>
    %c7_264 = arith.constant 7 : index
    %c0_265 = arith.constant 0 : index
    %501 = vector.load %arg10[%c7_264, %c0_265] : memref<49x256xf32, #tpu.memory_space<vmem>>, vector<1x256xf32>
    %502 = arith.mulf %499, %501 : vector<1x256xf32>
    %503 = arith.addf %492, %502 : vector<1x256xf32>
    %c7_266 = arith.constant 7 : index
    %c0_267 = arith.constant 0 : index
    %504 = vector.load %arg11[%c7_266, %c0_267] : memref<49x256xf32, #tpu.memory_space<vmem>>, vector<1x256xf32>
    %505 = arith.mulf %500, %504 : vector<1x256xf32>
    %506 = arith.addf %503, %505 : vector<1x256xf32>
    %c7_268 = arith.constant 7 : index
    %c0_269 = arith.constant 0 : index
    %507 = vector.load %arg12[%c7_268, %c0_269] : memref<49x256xf32, #tpu.memory_space<vmem>>, vector<1x256xf32>
    %508 = arith.mulf %499, %507 : vector<1x256xf32>
    %509 = arith.addf %498, %508 : vector<1x256xf32>
    %c7_270 = arith.constant 7 : index
    %c0_271 = arith.constant 0 : index
    %510 = vector.load %arg13[%c7_270, %c0_271] : memref<49x256xf32, #tpu.memory_space<vmem>>, vector<1x256xf32>
    %511 = arith.mulf %500, %510 : vector<1x256xf32>
    %512 = arith.addf %509, %511 : vector<1x256xf32>
    %c34_i32_272 = arith.constant 34 : i32
    %513 = tpu.dynamic_rotate %393 by %c34_i32_272 dim 1 : vector<1x256xf32>, i32 -> vector<1x256xf32>
    %c34_i32_273 = arith.constant 34 : i32
    %514 = tpu.dynamic_rotate %398 by %c34_i32_273 dim 1 : vector<1x256xf32>, i32 -> vector<1x256xf32>
    %c8_274 = arith.constant 8 : index
    %c0_275 = arith.constant 0 : index
    %515 = vector.load %arg10[%c8_274, %c0_275] : memref<49x256xf32, #tpu.memory_space<vmem>>, vector<1x256xf32>
    %516 = arith.mulf %513, %515 : vector<1x256xf32>
    %517 = arith.addf %506, %516 : vector<1x256xf32>
    %c8_276 = arith.constant 8 : index
    %c0_277 = arith.constant 0 : index
    %518 = vector.load %arg11[%c8_276, %c0_277] : memref<49x256xf32, #tpu.memory_space<vmem>>, vector<1x256xf32>
    %519 = arith.mulf %514, %518 : vector<1x256xf32>
    %520 = arith.addf %517, %519 : vector<1x256xf32>
    %c8_278 = arith.constant 8 : index
    %c0_279 = arith.constant 0 : index
    %521 = vector.load %arg12[%c8_278, %c0_279] : memref<49x256xf32, #tpu.memory_space<vmem>>, vector<1x256xf32>
    %522 = arith.mulf %513, %521 : vector<1x256xf32>
    %523 = arith.addf %512, %522 : vector<1x256xf32>
    %c8_280 = arith.constant 8 : index
    %c0_281 = arith.constant 0 : index
    %524 = vector.load %arg13[%c8_280, %c0_281] : memref<49x256xf32, #tpu.memory_space<vmem>>, vector<1x256xf32>
    %525 = arith.mulf %514, %524 : vector<1x256xf32>
    %526 = arith.addf %523, %525 : vector<1x256xf32>
    %c33_i32_282 = arith.constant 33 : i32
    %527 = tpu.dynamic_rotate %393 by %c33_i32_282 dim 1 : vector<1x256xf32>, i32 -> vector<1x256xf32>
    %c33_i32_283 = arith.constant 33 : i32
    %528 = tpu.dynamic_rotate %398 by %c33_i32_283 dim 1 : vector<1x256xf32>, i32 -> vector<1x256xf32>
    %c9_284 = arith.constant 9 : index
    %c0_285 = arith.constant 0 : index
    %529 = vector.load %arg10[%c9_284, %c0_285] : memref<49x256xf32, #tpu.memory_space<vmem>>, vector<1x256xf32>
    %530 = arith.mulf %527, %529 : vector<1x256xf32>
    %531 = arith.addf %520, %530 : vector<1x256xf32>
    %c9_286 = arith.constant 9 : index
    %c0_287 = arith.constant 0 : index
    %532 = vector.load %arg11[%c9_286, %c0_287] : memref<49x256xf32, #tpu.memory_space<vmem>>, vector<1x256xf32>
    %533 = arith.mulf %528, %532 : vector<1x256xf32>
    %534 = arith.addf %531, %533 : vector<1x256xf32>
    %c9_288 = arith.constant 9 : index
    %c0_289 = arith.constant 0 : index
    %535 = vector.load %arg12[%c9_288, %c0_289] : memref<49x256xf32, #tpu.memory_space<vmem>>, vector<1x256xf32>
    %536 = arith.mulf %527, %535 : vector<1x256xf32>
    %537 = arith.addf %526, %536 : vector<1x256xf32>
    %c9_290 = arith.constant 9 : index
    %c0_291 = arith.constant 0 : index
    %538 = vector.load %arg13[%c9_290, %c0_291] : memref<49x256xf32, #tpu.memory_space<vmem>>, vector<1x256xf32>
    %539 = arith.mulf %528, %538 : vector<1x256xf32>
    %540 = arith.addf %537, %539 : vector<1x256xf32>
    %c32_i32_292 = arith.constant 32 : i32
    %541 = tpu.dynamic_rotate %393 by %c32_i32_292 dim 1 : vector<1x256xf32>, i32 -> vector<1x256xf32>
    %c32_i32_293 = arith.constant 32 : i32
    %542 = tpu.dynamic_rotate %398 by %c32_i32_293 dim 1 : vector<1x256xf32>, i32 -> vector<1x256xf32>
    %c10_294 = arith.constant 10 : index
    %c0_295 = arith.constant 0 : index
    %543 = vector.load %arg10[%c10_294, %c0_295] : memref<49x256xf32, #tpu.memory_space<vmem>>, vector<1x256xf32>
    %544 = arith.mulf %541, %543 : vector<1x256xf32>
    %545 = arith.addf %534, %544 : vector<1x256xf32>
    %c10_296 = arith.constant 10 : index
    %c0_297 = arith.constant 0 : index
    %546 = vector.load %arg11[%c10_296, %c0_297] : memref<49x256xf32, #tpu.memory_space<vmem>>, vector<1x256xf32>
    %547 = arith.mulf %542, %546 : vector<1x256xf32>
    %548 = arith.addf %545, %547 : vector<1x256xf32>
    %c10_298 = arith.constant 10 : index
    %c0_299 = arith.constant 0 : index
    %549 = vector.load %arg12[%c10_298, %c0_299] : memref<49x256xf32, #tpu.memory_space<vmem>>, vector<1x256xf32>
    %550 = arith.mulf %541, %549 : vector<1x256xf32>
    %551 = arith.addf %540, %550 : vector<1x256xf32>
    %c10_300 = arith.constant 10 : index
    %c0_301 = arith.constant 0 : index
    %552 = vector.load %arg13[%c10_300, %c0_301] : memref<49x256xf32, #tpu.memory_space<vmem>>, vector<1x256xf32>
    %553 = arith.mulf %542, %552 : vector<1x256xf32>
    %554 = arith.addf %551, %553 : vector<1x256xf32>
    %c31_i32_302 = arith.constant 31 : i32
    %555 = tpu.dynamic_rotate %393 by %c31_i32_302 dim 1 : vector<1x256xf32>, i32 -> vector<1x256xf32>
    %c31_i32_303 = arith.constant 31 : i32
    %556 = tpu.dynamic_rotate %398 by %c31_i32_303 dim 1 : vector<1x256xf32>, i32 -> vector<1x256xf32>
    %c11_304 = arith.constant 11 : index
    %c0_305 = arith.constant 0 : index
    %557 = vector.load %arg10[%c11_304, %c0_305] : memref<49x256xf32, #tpu.memory_space<vmem>>, vector<1x256xf32>
    %558 = arith.mulf %555, %557 : vector<1x256xf32>
    %559 = arith.addf %548, %558 : vector<1x256xf32>
    %c11_306 = arith.constant 11 : index
    %c0_307 = arith.constant 0 : index
    %560 = vector.load %arg11[%c11_306, %c0_307] : memref<49x256xf32, #tpu.memory_space<vmem>>, vector<1x256xf32>
    %561 = arith.mulf %556, %560 : vector<1x256xf32>
    %562 = arith.addf %559, %561 : vector<1x256xf32>
    %c11_308 = arith.constant 11 : index
    %c0_309 = arith.constant 0 : index
    %563 = vector.load %arg12[%c11_308, %c0_309] : memref<49x256xf32, #tpu.memory_space<vmem>>, vector<1x256xf32>
    %564 = arith.mulf %555, %563 : vector<1x256xf32>
    %565 = arith.addf %554, %564 : vector<1x256xf32>
    %c11_310 = arith.constant 11 : index
    %c0_311 = arith.constant 0 : index
    %566 = vector.load %arg13[%c11_310, %c0_311] : memref<49x256xf32, #tpu.memory_space<vmem>>, vector<1x256xf32>
    %567 = arith.mulf %556, %566 : vector<1x256xf32>
    %568 = arith.addf %565, %567 : vector<1x256xf32>
    %c30_i32_312 = arith.constant 30 : i32
    %569 = tpu.dynamic_rotate %393 by %c30_i32_312 dim 1 : vector<1x256xf32>, i32 -> vector<1x256xf32>
    %c30_i32_313 = arith.constant 30 : i32
    %570 = tpu.dynamic_rotate %398 by %c30_i32_313 dim 1 : vector<1x256xf32>, i32 -> vector<1x256xf32>
    %c12_314 = arith.constant 12 : index
    %c0_315 = arith.constant 0 : index
    %571 = vector.load %arg10[%c12_314, %c0_315] : memref<49x256xf32, #tpu.memory_space<vmem>>, vector<1x256xf32>
    %572 = arith.mulf %569, %571 : vector<1x256xf32>
    %573 = arith.addf %562, %572 : vector<1x256xf32>
    %c12_316 = arith.constant 12 : index
    %c0_317 = arith.constant 0 : index
    %574 = vector.load %arg11[%c12_316, %c0_317] : memref<49x256xf32, #tpu.memory_space<vmem>>, vector<1x256xf32>
    %575 = arith.mulf %570, %574 : vector<1x256xf32>
    %576 = arith.addf %573, %575 : vector<1x256xf32>
    %c12_318 = arith.constant 12 : index
    %c0_319 = arith.constant 0 : index
    %577 = vector.load %arg12[%c12_318, %c0_319] : memref<49x256xf32, #tpu.memory_space<vmem>>, vector<1x256xf32>
    %578 = arith.mulf %569, %577 : vector<1x256xf32>
    %579 = arith.addf %568, %578 : vector<1x256xf32>
    %c12_320 = arith.constant 12 : index
    %c0_321 = arith.constant 0 : index
    %580 = vector.load %arg13[%c12_320, %c0_321] : memref<49x256xf32, #tpu.memory_space<vmem>>, vector<1x256xf32>
    %581 = arith.mulf %570, %580 : vector<1x256xf32>
    %582 = arith.addf %579, %581 : vector<1x256xf32>
    %c29_i32 = arith.constant 29 : i32
    %583 = tpu.dynamic_rotate %393 by %c29_i32 dim 1 : vector<1x256xf32>, i32 -> vector<1x256xf32>
    %c29_i32_322 = arith.constant 29 : i32
    %584 = tpu.dynamic_rotate %398 by %c29_i32_322 dim 1 : vector<1x256xf32>, i32 -> vector<1x256xf32>
    %c13_323 = arith.constant 13 : index
    %c0_324 = arith.constant 0 : index
    %585 = vector.load %arg10[%c13_323, %c0_324] : memref<49x256xf32, #tpu.memory_space<vmem>>, vector<1x256xf32>
    %586 = arith.mulf %583, %585 : vector<1x256xf32>
    %587 = arith.addf %576, %586 : vector<1x256xf32>
    %c13_325 = arith.constant 13 : index
    %c0_326 = arith.constant 0 : index
    %588 = vector.load %arg11[%c13_325, %c0_326] : memref<49x256xf32, #tpu.memory_space<vmem>>, vector<1x256xf32>
    %589 = arith.mulf %584, %588 : vector<1x256xf32>
    %590 = arith.addf %587, %589 : vector<1x256xf32>
    %c13_327 = arith.constant 13 : index
    %c0_328 = arith.constant 0 : index
    %591 = vector.load %arg12[%c13_327, %c0_328] : memref<49x256xf32, #tpu.memory_space<vmem>>, vector<1x256xf32>
    %592 = arith.mulf %583, %591 : vector<1x256xf32>
    %593 = arith.addf %582, %592 : vector<1x256xf32>
    %c13_329 = arith.constant 13 : index
    %c0_330 = arith.constant 0 : index
    %594 = vector.load %arg13[%c13_329, %c0_330] : memref<49x256xf32, #tpu.memory_space<vmem>>, vector<1x256xf32>
    %595 = arith.mulf %584, %594 : vector<1x256xf32>
    %596 = arith.addf %593, %595 : vector<1x256xf32>
    %c19_i32 = arith.constant 19 : i32
    %597 = tpu.dynamic_rotate %393 by %c19_i32 dim 1 : vector<1x256xf32>, i32 -> vector<1x256xf32>
    %c19_i32_331 = arith.constant 19 : i32
    %598 = tpu.dynamic_rotate %398 by %c19_i32_331 dim 1 : vector<1x256xf32>, i32 -> vector<1x256xf32>
    %c14_332 = arith.constant 14 : index
    %c0_333 = arith.constant 0 : index
    %599 = vector.load %arg10[%c14_332, %c0_333] : memref<49x256xf32, #tpu.memory_space<vmem>>, vector<1x256xf32>
    %600 = arith.mulf %597, %599 : vector<1x256xf32>
    %601 = arith.addf %590, %600 : vector<1x256xf32>
    %c14_334 = arith.constant 14 : index
    %c0_335 = arith.constant 0 : index
    %602 = vector.load %arg11[%c14_334, %c0_335] : memref<49x256xf32, #tpu.memory_space<vmem>>, vector<1x256xf32>
    %603 = arith.mulf %598, %602 : vector<1x256xf32>
    %604 = arith.addf %601, %603 : vector<1x256xf32>
    %c14_336 = arith.constant 14 : index
    %c0_337 = arith.constant 0 : index
    %605 = vector.load %arg12[%c14_336, %c0_337] : memref<49x256xf32, #tpu.memory_space<vmem>>, vector<1x256xf32>
    %606 = arith.mulf %597, %605 : vector<1x256xf32>
    %607 = arith.addf %596, %606 : vector<1x256xf32>
    %c14_338 = arith.constant 14 : index
    %c0_339 = arith.constant 0 : index
    %608 = vector.load %arg13[%c14_338, %c0_339] : memref<49x256xf32, #tpu.memory_space<vmem>>, vector<1x256xf32>
    %609 = arith.mulf %598, %608 : vector<1x256xf32>
    %610 = arith.addf %607, %609 : vector<1x256xf32>
    %c18_i32_340 = arith.constant 18 : i32
    %611 = tpu.dynamic_rotate %393 by %c18_i32_340 dim 1 : vector<1x256xf32>, i32 -> vector<1x256xf32>
    %c18_i32_341 = arith.constant 18 : i32
    %612 = tpu.dynamic_rotate %398 by %c18_i32_341 dim 1 : vector<1x256xf32>, i32 -> vector<1x256xf32>
    %c15_342 = arith.constant 15 : index
    %c0_343 = arith.constant 0 : index
    %613 = vector.load %arg10[%c15_342, %c0_343] : memref<49x256xf32, #tpu.memory_space<vmem>>, vector<1x256xf32>
    %614 = arith.mulf %611, %613 : vector<1x256xf32>
    %615 = arith.addf %604, %614 : vector<1x256xf32>
    %c15_344 = arith.constant 15 : index
    %c0_345 = arith.constant 0 : index
    %616 = vector.load %arg11[%c15_344, %c0_345] : memref<49x256xf32, #tpu.memory_space<vmem>>, vector<1x256xf32>
    %617 = arith.mulf %612, %616 : vector<1x256xf32>
    %618 = arith.addf %615, %617 : vector<1x256xf32>
    %c15_346 = arith.constant 15 : index
    %c0_347 = arith.constant 0 : index
    %619 = vector.load %arg12[%c15_346, %c0_347] : memref<49x256xf32, #tpu.memory_space<vmem>>, vector<1x256xf32>
    %620 = arith.mulf %611, %619 : vector<1x256xf32>
    %621 = arith.addf %610, %620 : vector<1x256xf32>
    %c15_348 = arith.constant 15 : index
    %c0_349 = arith.constant 0 : index
    %622 = vector.load %arg13[%c15_348, %c0_349] : memref<49x256xf32, #tpu.memory_space<vmem>>, vector<1x256xf32>
    %623 = arith.mulf %612, %622 : vector<1x256xf32>
    %624 = arith.addf %621, %623 : vector<1x256xf32>
    %c17_i32_350 = arith.constant 17 : i32
    %625 = tpu.dynamic_rotate %393 by %c17_i32_350 dim 1 : vector<1x256xf32>, i32 -> vector<1x256xf32>
    %c17_i32_351 = arith.constant 17 : i32
    %626 = tpu.dynamic_rotate %398 by %c17_i32_351 dim 1 : vector<1x256xf32>, i32 -> vector<1x256xf32>
    %c16_352 = arith.constant 16 : index
    %c0_353 = arith.constant 0 : index
    %627 = vector.load %arg10[%c16_352, %c0_353] : memref<49x256xf32, #tpu.memory_space<vmem>>, vector<1x256xf32>
    %628 = arith.mulf %625, %627 : vector<1x256xf32>
    %629 = arith.addf %618, %628 : vector<1x256xf32>
    %c16_354 = arith.constant 16 : index
    %c0_355 = arith.constant 0 : index
    %630 = vector.load %arg11[%c16_354, %c0_355] : memref<49x256xf32, #tpu.memory_space<vmem>>, vector<1x256xf32>
    %631 = arith.mulf %626, %630 : vector<1x256xf32>
    %632 = arith.addf %629, %631 : vector<1x256xf32>
    %c16_356 = arith.constant 16 : index
    %c0_357 = arith.constant 0 : index
    %633 = vector.load %arg12[%c16_356, %c0_357] : memref<49x256xf32, #tpu.memory_space<vmem>>, vector<1x256xf32>
    %634 = arith.mulf %625, %633 : vector<1x256xf32>
    %635 = arith.addf %624, %634 : vector<1x256xf32>
    %c16_358 = arith.constant 16 : index
    %c0_359 = arith.constant 0 : index
    %636 = vector.load %arg13[%c16_358, %c0_359] : memref<49x256xf32, #tpu.memory_space<vmem>>, vector<1x256xf32>
    %637 = arith.mulf %626, %636 : vector<1x256xf32>
    %638 = arith.addf %635, %637 : vector<1x256xf32>
    %c16_i32_360 = arith.constant 16 : i32
    %639 = tpu.dynamic_rotate %393 by %c16_i32_360 dim 1 : vector<1x256xf32>, i32 -> vector<1x256xf32>
    %c16_i32_361 = arith.constant 16 : i32
    %640 = tpu.dynamic_rotate %398 by %c16_i32_361 dim 1 : vector<1x256xf32>, i32 -> vector<1x256xf32>
    %c17_362 = arith.constant 17 : index
    %c0_363 = arith.constant 0 : index
    %641 = vector.load %arg10[%c17_362, %c0_363] : memref<49x256xf32, #tpu.memory_space<vmem>>, vector<1x256xf32>
    %642 = arith.mulf %639, %641 : vector<1x256xf32>
    %643 = arith.addf %632, %642 : vector<1x256xf32>
    %c17_364 = arith.constant 17 : index
    %c0_365 = arith.constant 0 : index
    %644 = vector.load %arg11[%c17_364, %c0_365] : memref<49x256xf32, #tpu.memory_space<vmem>>, vector<1x256xf32>
    %645 = arith.mulf %640, %644 : vector<1x256xf32>
    %646 = arith.addf %643, %645 : vector<1x256xf32>
    %c17_366 = arith.constant 17 : index
    %c0_367 = arith.constant 0 : index
    %647 = vector.load %arg12[%c17_366, %c0_367] : memref<49x256xf32, #tpu.memory_space<vmem>>, vector<1x256xf32>
    %648 = arith.mulf %639, %647 : vector<1x256xf32>
    %649 = arith.addf %638, %648 : vector<1x256xf32>
    %c17_368 = arith.constant 17 : index
    %c0_369 = arith.constant 0 : index
    %650 = vector.load %arg13[%c17_368, %c0_369] : memref<49x256xf32, #tpu.memory_space<vmem>>, vector<1x256xf32>
    %651 = arith.mulf %640, %650 : vector<1x256xf32>
    %652 = arith.addf %649, %651 : vector<1x256xf32>
    %c15_i32_370 = arith.constant 15 : i32
    %653 = tpu.dynamic_rotate %393 by %c15_i32_370 dim 1 : vector<1x256xf32>, i32 -> vector<1x256xf32>
    %c15_i32_371 = arith.constant 15 : i32
    %654 = tpu.dynamic_rotate %398 by %c15_i32_371 dim 1 : vector<1x256xf32>, i32 -> vector<1x256xf32>
    %c18_372 = arith.constant 18 : index
    %c0_373 = arith.constant 0 : index
    %655 = vector.load %arg10[%c18_372, %c0_373] : memref<49x256xf32, #tpu.memory_space<vmem>>, vector<1x256xf32>
    %656 = arith.mulf %653, %655 : vector<1x256xf32>
    %657 = arith.addf %646, %656 : vector<1x256xf32>
    %c18_374 = arith.constant 18 : index
    %c0_375 = arith.constant 0 : index
    %658 = vector.load %arg11[%c18_374, %c0_375] : memref<49x256xf32, #tpu.memory_space<vmem>>, vector<1x256xf32>
    %659 = arith.mulf %654, %658 : vector<1x256xf32>
    %660 = arith.addf %657, %659 : vector<1x256xf32>
    %c18_376 = arith.constant 18 : index
    %c0_377 = arith.constant 0 : index
    %661 = vector.load %arg12[%c18_376, %c0_377] : memref<49x256xf32, #tpu.memory_space<vmem>>, vector<1x256xf32>
    %662 = arith.mulf %653, %661 : vector<1x256xf32>
    %663 = arith.addf %652, %662 : vector<1x256xf32>
    %c18_378 = arith.constant 18 : index
    %c0_379 = arith.constant 0 : index
    %664 = vector.load %arg13[%c18_378, %c0_379] : memref<49x256xf32, #tpu.memory_space<vmem>>, vector<1x256xf32>
    %665 = arith.mulf %654, %664 : vector<1x256xf32>
    %666 = arith.addf %663, %665 : vector<1x256xf32>
    %c14_i32_380 = arith.constant 14 : i32
    %667 = tpu.dynamic_rotate %393 by %c14_i32_380 dim 1 : vector<1x256xf32>, i32 -> vector<1x256xf32>
    %c14_i32_381 = arith.constant 14 : i32
    %668 = tpu.dynamic_rotate %398 by %c14_i32_381 dim 1 : vector<1x256xf32>, i32 -> vector<1x256xf32>
    %c19_382 = arith.constant 19 : index
    %c0_383 = arith.constant 0 : index
    %669 = vector.load %arg10[%c19_382, %c0_383] : memref<49x256xf32, #tpu.memory_space<vmem>>, vector<1x256xf32>
    %670 = arith.mulf %667, %669 : vector<1x256xf32>
    %671 = arith.addf %660, %670 : vector<1x256xf32>
    %c19_384 = arith.constant 19 : index
    %c0_385 = arith.constant 0 : index
    %672 = vector.load %arg11[%c19_384, %c0_385] : memref<49x256xf32, #tpu.memory_space<vmem>>, vector<1x256xf32>
    %673 = arith.mulf %668, %672 : vector<1x256xf32>
    %674 = arith.addf %671, %673 : vector<1x256xf32>
    %c19_386 = arith.constant 19 : index
    %c0_387 = arith.constant 0 : index
    %675 = vector.load %arg12[%c19_386, %c0_387] : memref<49x256xf32, #tpu.memory_space<vmem>>, vector<1x256xf32>
    %676 = arith.mulf %667, %675 : vector<1x256xf32>
    %677 = arith.addf %666, %676 : vector<1x256xf32>
    %c19_388 = arith.constant 19 : index
    %c0_389 = arith.constant 0 : index
    %678 = vector.load %arg13[%c19_388, %c0_389] : memref<49x256xf32, #tpu.memory_space<vmem>>, vector<1x256xf32>
    %679 = arith.mulf %668, %678 : vector<1x256xf32>
    %680 = arith.addf %677, %679 : vector<1x256xf32>
    %c13_i32 = arith.constant 13 : i32
    %681 = tpu.dynamic_rotate %393 by %c13_i32 dim 1 : vector<1x256xf32>, i32 -> vector<1x256xf32>
    %c13_i32_390 = arith.constant 13 : i32
    %682 = tpu.dynamic_rotate %398 by %c13_i32_390 dim 1 : vector<1x256xf32>, i32 -> vector<1x256xf32>
    %c20_391 = arith.constant 20 : index
    %c0_392 = arith.constant 0 : index
    %683 = vector.load %arg10[%c20_391, %c0_392] : memref<49x256xf32, #tpu.memory_space<vmem>>, vector<1x256xf32>
    %684 = arith.mulf %681, %683 : vector<1x256xf32>
    %685 = arith.addf %674, %684 : vector<1x256xf32>
    %c20_393 = arith.constant 20 : index
    %c0_394 = arith.constant 0 : index
    %686 = vector.load %arg11[%c20_393, %c0_394] : memref<49x256xf32, #tpu.memory_space<vmem>>, vector<1x256xf32>
    %687 = arith.mulf %682, %686 : vector<1x256xf32>
    %688 = arith.addf %685, %687 : vector<1x256xf32>
    %c20_395 = arith.constant 20 : index
    %c0_396 = arith.constant 0 : index
    %689 = vector.load %arg12[%c20_395, %c0_396] : memref<49x256xf32, #tpu.memory_space<vmem>>, vector<1x256xf32>
    %690 = arith.mulf %681, %689 : vector<1x256xf32>
    %691 = arith.addf %680, %690 : vector<1x256xf32>
    %c20_397 = arith.constant 20 : index
    %c0_398 = arith.constant 0 : index
    %692 = vector.load %arg13[%c20_397, %c0_398] : memref<49x256xf32, #tpu.memory_space<vmem>>, vector<1x256xf32>
    %693 = arith.mulf %682, %692 : vector<1x256xf32>
    %694 = arith.addf %691, %693 : vector<1x256xf32>
    %c3_i32_399 = arith.constant 3 : i32
    %695 = tpu.dynamic_rotate %393 by %c3_i32_399 dim 1 : vector<1x256xf32>, i32 -> vector<1x256xf32>
    %c3_i32_400 = arith.constant 3 : i32
    %696 = tpu.dynamic_rotate %398 by %c3_i32_400 dim 1 : vector<1x256xf32>, i32 -> vector<1x256xf32>
    %c21_401 = arith.constant 21 : index
    %c0_402 = arith.constant 0 : index
    %697 = vector.load %arg10[%c21_401, %c0_402] : memref<49x256xf32, #tpu.memory_space<vmem>>, vector<1x256xf32>
    %698 = arith.mulf %695, %697 : vector<1x256xf32>
    %699 = arith.addf %688, %698 : vector<1x256xf32>
    %c21_403 = arith.constant 21 : index
    %c0_404 = arith.constant 0 : index
    %700 = vector.load %arg11[%c21_403, %c0_404] : memref<49x256xf32, #tpu.memory_space<vmem>>, vector<1x256xf32>
    %701 = arith.mulf %696, %700 : vector<1x256xf32>
    %702 = arith.addf %699, %701 : vector<1x256xf32>
    %c21_405 = arith.constant 21 : index
    %c0_406 = arith.constant 0 : index
    %703 = vector.load %arg12[%c21_405, %c0_406] : memref<49x256xf32, #tpu.memory_space<vmem>>, vector<1x256xf32>
    %704 = arith.mulf %695, %703 : vector<1x256xf32>
    %705 = arith.addf %694, %704 : vector<1x256xf32>
    %c21_407 = arith.constant 21 : index
    %c0_408 = arith.constant 0 : index
    %706 = vector.load %arg13[%c21_407, %c0_408] : memref<49x256xf32, #tpu.memory_space<vmem>>, vector<1x256xf32>
    %707 = arith.mulf %696, %706 : vector<1x256xf32>
    %708 = arith.addf %705, %707 : vector<1x256xf32>
    %c2_i32_409 = arith.constant 2 : i32
    %709 = tpu.dynamic_rotate %393 by %c2_i32_409 dim 1 : vector<1x256xf32>, i32 -> vector<1x256xf32>
    %c2_i32_410 = arith.constant 2 : i32
    %710 = tpu.dynamic_rotate %398 by %c2_i32_410 dim 1 : vector<1x256xf32>, i32 -> vector<1x256xf32>
    %c22_411 = arith.constant 22 : index
    %c0_412 = arith.constant 0 : index
    %711 = vector.load %arg10[%c22_411, %c0_412] : memref<49x256xf32, #tpu.memory_space<vmem>>, vector<1x256xf32>
    %712 = arith.mulf %709, %711 : vector<1x256xf32>
    %713 = arith.addf %702, %712 : vector<1x256xf32>
    %c22_413 = arith.constant 22 : index
    %c0_414 = arith.constant 0 : index
    %714 = vector.load %arg11[%c22_413, %c0_414] : memref<49x256xf32, #tpu.memory_space<vmem>>, vector<1x256xf32>
    %715 = arith.mulf %710, %714 : vector<1x256xf32>
    %716 = arith.addf %713, %715 : vector<1x256xf32>
    %c22_415 = arith.constant 22 : index
    %c0_416 = arith.constant 0 : index
    %717 = vector.load %arg12[%c22_415, %c0_416] : memref<49x256xf32, #tpu.memory_space<vmem>>, vector<1x256xf32>
    %718 = arith.mulf %709, %717 : vector<1x256xf32>
    %719 = arith.addf %708, %718 : vector<1x256xf32>
    %c22_417 = arith.constant 22 : index
    %c0_418 = arith.constant 0 : index
    %720 = vector.load %arg13[%c22_417, %c0_418] : memref<49x256xf32, #tpu.memory_space<vmem>>, vector<1x256xf32>
    %721 = arith.mulf %710, %720 : vector<1x256xf32>
    %722 = arith.addf %719, %721 : vector<1x256xf32>
    %c1_i32_419 = arith.constant 1 : i32
    %723 = tpu.dynamic_rotate %393 by %c1_i32_419 dim 1 : vector<1x256xf32>, i32 -> vector<1x256xf32>
    %c1_i32_420 = arith.constant 1 : i32
    %724 = tpu.dynamic_rotate %398 by %c1_i32_420 dim 1 : vector<1x256xf32>, i32 -> vector<1x256xf32>
    %c23_421 = arith.constant 23 : index
    %c0_422 = arith.constant 0 : index
    %725 = vector.load %arg10[%c23_421, %c0_422] : memref<49x256xf32, #tpu.memory_space<vmem>>, vector<1x256xf32>
    %726 = arith.mulf %723, %725 : vector<1x256xf32>
    %727 = arith.addf %716, %726 : vector<1x256xf32>
    %c23_423 = arith.constant 23 : index
    %c0_424 = arith.constant 0 : index
    %728 = vector.load %arg11[%c23_423, %c0_424] : memref<49x256xf32, #tpu.memory_space<vmem>>, vector<1x256xf32>
    %729 = arith.mulf %724, %728 : vector<1x256xf32>
    %730 = arith.addf %727, %729 : vector<1x256xf32>
    %c23_425 = arith.constant 23 : index
    %c0_426 = arith.constant 0 : index
    %731 = vector.load %arg12[%c23_425, %c0_426] : memref<49x256xf32, #tpu.memory_space<vmem>>, vector<1x256xf32>
    %732 = arith.mulf %723, %731 : vector<1x256xf32>
    %733 = arith.addf %722, %732 : vector<1x256xf32>
    %c23_427 = arith.constant 23 : index
    %c0_428 = arith.constant 0 : index
    %734 = vector.load %arg13[%c23_427, %c0_428] : memref<49x256xf32, #tpu.memory_space<vmem>>, vector<1x256xf32>
    %735 = arith.mulf %724, %734 : vector<1x256xf32>
    %736 = arith.addf %733, %735 : vector<1x256xf32>
    %c24_429 = arith.constant 24 : index
    %c0_430 = arith.constant 0 : index
    %737 = vector.load %arg10[%c24_429, %c0_430] : memref<49x256xf32, #tpu.memory_space<vmem>>, vector<1x256xf32>
    %738 = arith.mulf %393, %737 : vector<1x256xf32>
    %739 = arith.addf %730, %738 : vector<1x256xf32>
    %c24_431 = arith.constant 24 : index
    %c0_432 = arith.constant 0 : index
    %740 = vector.load %arg11[%c24_431, %c0_432] : memref<49x256xf32, #tpu.memory_space<vmem>>, vector<1x256xf32>
    %741 = arith.mulf %398, %740 : vector<1x256xf32>
    %742 = arith.addf %739, %741 : vector<1x256xf32>
    %c24_433 = arith.constant 24 : index
    %c0_434 = arith.constant 0 : index
    %743 = vector.load %arg12[%c24_433, %c0_434] : memref<49x256xf32, #tpu.memory_space<vmem>>, vector<1x256xf32>
    %744 = arith.mulf %393, %743 : vector<1x256xf32>
    %745 = arith.addf %736, %744 : vector<1x256xf32>
    %c24_435 = arith.constant 24 : index
    %c0_436 = arith.constant 0 : index
    %746 = vector.load %arg13[%c24_435, %c0_436] : memref<49x256xf32, #tpu.memory_space<vmem>>, vector<1x256xf32>
    %747 = arith.mulf %398, %746 : vector<1x256xf32>
    %748 = arith.addf %745, %747 : vector<1x256xf32>
    %c255_i32_437 = arith.constant 255 : i32
    %749 = tpu.dynamic_rotate %393 by %c255_i32_437 dim 1 : vector<1x256xf32>, i32 -> vector<1x256xf32>
    %c255_i32_438 = arith.constant 255 : i32
    %750 = tpu.dynamic_rotate %398 by %c255_i32_438 dim 1 : vector<1x256xf32>, i32 -> vector<1x256xf32>
    %c25_439 = arith.constant 25 : index
    %c0_440 = arith.constant 0 : index
    %751 = vector.load %arg10[%c25_439, %c0_440] : memref<49x256xf32, #tpu.memory_space<vmem>>, vector<1x256xf32>
    %752 = arith.mulf %749, %751 : vector<1x256xf32>
    %753 = arith.addf %742, %752 : vector<1x256xf32>
    %c25_441 = arith.constant 25 : index
    %c0_442 = arith.constant 0 : index
    %754 = vector.load %arg11[%c25_441, %c0_442] : memref<49x256xf32, #tpu.memory_space<vmem>>, vector<1x256xf32>
    %755 = arith.mulf %750, %754 : vector<1x256xf32>
    %756 = arith.addf %753, %755 : vector<1x256xf32>
    %c25_443 = arith.constant 25 : index
    %c0_444 = arith.constant 0 : index
    %757 = vector.load %arg12[%c25_443, %c0_444] : memref<49x256xf32, #tpu.memory_space<vmem>>, vector<1x256xf32>
    %758 = arith.mulf %749, %757 : vector<1x256xf32>
    %759 = arith.addf %748, %758 : vector<1x256xf32>
    %c25_445 = arith.constant 25 : index
    %c0_446 = arith.constant 0 : index
    %760 = vector.load %arg13[%c25_445, %c0_446] : memref<49x256xf32, #tpu.memory_space<vmem>>, vector<1x256xf32>
    %761 = arith.mulf %750, %760 : vector<1x256xf32>
    %762 = arith.addf %759, %761 : vector<1x256xf32>
    %c254_i32_447 = arith.constant 254 : i32
    %763 = tpu.dynamic_rotate %393 by %c254_i32_447 dim 1 : vector<1x256xf32>, i32 -> vector<1x256xf32>
    %c254_i32_448 = arith.constant 254 : i32
    %764 = tpu.dynamic_rotate %398 by %c254_i32_448 dim 1 : vector<1x256xf32>, i32 -> vector<1x256xf32>
    %c26_449 = arith.constant 26 : index
    %c0_450 = arith.constant 0 : index
    %765 = vector.load %arg10[%c26_449, %c0_450] : memref<49x256xf32, #tpu.memory_space<vmem>>, vector<1x256xf32>
    %766 = arith.mulf %763, %765 : vector<1x256xf32>
    %767 = arith.addf %756, %766 : vector<1x256xf32>
    %c26_451 = arith.constant 26 : index
    %c0_452 = arith.constant 0 : index
    %768 = vector.load %arg11[%c26_451, %c0_452] : memref<49x256xf32, #tpu.memory_space<vmem>>, vector<1x256xf32>
    %769 = arith.mulf %764, %768 : vector<1x256xf32>
    %770 = arith.addf %767, %769 : vector<1x256xf32>
    %c26_453 = arith.constant 26 : index
    %c0_454 = arith.constant 0 : index
    %771 = vector.load %arg12[%c26_453, %c0_454] : memref<49x256xf32, #tpu.memory_space<vmem>>, vector<1x256xf32>
    %772 = arith.mulf %763, %771 : vector<1x256xf32>
    %773 = arith.addf %762, %772 : vector<1x256xf32>
    %c26_455 = arith.constant 26 : index
    %c0_456 = arith.constant 0 : index
    %774 = vector.load %arg13[%c26_455, %c0_456] : memref<49x256xf32, #tpu.memory_space<vmem>>, vector<1x256xf32>
    %775 = arith.mulf %764, %774 : vector<1x256xf32>
    %776 = arith.addf %773, %775 : vector<1x256xf32>
    %c253_i32_457 = arith.constant 253 : i32
    %777 = tpu.dynamic_rotate %393 by %c253_i32_457 dim 1 : vector<1x256xf32>, i32 -> vector<1x256xf32>
    %c253_i32_458 = arith.constant 253 : i32
    %778 = tpu.dynamic_rotate %398 by %c253_i32_458 dim 1 : vector<1x256xf32>, i32 -> vector<1x256xf32>
    %c27_459 = arith.constant 27 : index
    %c0_460 = arith.constant 0 : index
    %779 = vector.load %arg10[%c27_459, %c0_460] : memref<49x256xf32, #tpu.memory_space<vmem>>, vector<1x256xf32>
    %780 = arith.mulf %777, %779 : vector<1x256xf32>
    %781 = arith.addf %770, %780 : vector<1x256xf32>
    %c27_461 = arith.constant 27 : index
    %c0_462 = arith.constant 0 : index
    %782 = vector.load %arg11[%c27_461, %c0_462] : memref<49x256xf32, #tpu.memory_space<vmem>>, vector<1x256xf32>
    %783 = arith.mulf %778, %782 : vector<1x256xf32>
    %784 = arith.addf %781, %783 : vector<1x256xf32>
    %c27_463 = arith.constant 27 : index
    %c0_464 = arith.constant 0 : index
    %785 = vector.load %arg12[%c27_463, %c0_464] : memref<49x256xf32, #tpu.memory_space<vmem>>, vector<1x256xf32>
    %786 = arith.mulf %777, %785 : vector<1x256xf32>
    %787 = arith.addf %776, %786 : vector<1x256xf32>
    %c27_465 = arith.constant 27 : index
    %c0_466 = arith.constant 0 : index
    %788 = vector.load %arg13[%c27_465, %c0_466] : memref<49x256xf32, #tpu.memory_space<vmem>>, vector<1x256xf32>
    %789 = arith.mulf %778, %788 : vector<1x256xf32>
    %790 = arith.addf %787, %789 : vector<1x256xf32>
    %c243_i32 = arith.constant 243 : i32
    %791 = tpu.dynamic_rotate %393 by %c243_i32 dim 1 : vector<1x256xf32>, i32 -> vector<1x256xf32>
    %c243_i32_467 = arith.constant 243 : i32
    %792 = tpu.dynamic_rotate %398 by %c243_i32_467 dim 1 : vector<1x256xf32>, i32 -> vector<1x256xf32>
    %c28_468 = arith.constant 28 : index
    %c0_469 = arith.constant 0 : index
    %793 = vector.load %arg10[%c28_468, %c0_469] : memref<49x256xf32, #tpu.memory_space<vmem>>, vector<1x256xf32>
    %794 = arith.mulf %791, %793 : vector<1x256xf32>
    %795 = arith.addf %784, %794 : vector<1x256xf32>
    %c28_470 = arith.constant 28 : index
    %c0_471 = arith.constant 0 : index
    %796 = vector.load %arg11[%c28_470, %c0_471] : memref<49x256xf32, #tpu.memory_space<vmem>>, vector<1x256xf32>
    %797 = arith.mulf %792, %796 : vector<1x256xf32>
    %798 = arith.addf %795, %797 : vector<1x256xf32>
    %c28_472 = arith.constant 28 : index
    %c0_473 = arith.constant 0 : index
    %799 = vector.load %arg12[%c28_472, %c0_473] : memref<49x256xf32, #tpu.memory_space<vmem>>, vector<1x256xf32>
    %800 = arith.mulf %791, %799 : vector<1x256xf32>
    %801 = arith.addf %790, %800 : vector<1x256xf32>
    %c28_474 = arith.constant 28 : index
    %c0_475 = arith.constant 0 : index
    %802 = vector.load %arg13[%c28_474, %c0_475] : memref<49x256xf32, #tpu.memory_space<vmem>>, vector<1x256xf32>
    %803 = arith.mulf %792, %802 : vector<1x256xf32>
    %804 = arith.addf %801, %803 : vector<1x256xf32>
    %c242_i32_476 = arith.constant 242 : i32
    %805 = tpu.dynamic_rotate %393 by %c242_i32_476 dim 1 : vector<1x256xf32>, i32 -> vector<1x256xf32>
    %c242_i32_477 = arith.constant 242 : i32
    %806 = tpu.dynamic_rotate %398 by %c242_i32_477 dim 1 : vector<1x256xf32>, i32 -> vector<1x256xf32>
    %c29_478 = arith.constant 29 : index
    %c0_479 = arith.constant 0 : index
    %807 = vector.load %arg10[%c29_478, %c0_479] : memref<49x256xf32, #tpu.memory_space<vmem>>, vector<1x256xf32>
    %808 = arith.mulf %805, %807 : vector<1x256xf32>
    %809 = arith.addf %798, %808 : vector<1x256xf32>
    %c29_480 = arith.constant 29 : index
    %c0_481 = arith.constant 0 : index
    %810 = vector.load %arg11[%c29_480, %c0_481] : memref<49x256xf32, #tpu.memory_space<vmem>>, vector<1x256xf32>
    %811 = arith.mulf %806, %810 : vector<1x256xf32>
    %812 = arith.addf %809, %811 : vector<1x256xf32>
    %c29_482 = arith.constant 29 : index
    %c0_483 = arith.constant 0 : index
    %813 = vector.load %arg12[%c29_482, %c0_483] : memref<49x256xf32, #tpu.memory_space<vmem>>, vector<1x256xf32>
    %814 = arith.mulf %805, %813 : vector<1x256xf32>
    %815 = arith.addf %804, %814 : vector<1x256xf32>
    %c29_484 = arith.constant 29 : index
    %c0_485 = arith.constant 0 : index
    %816 = vector.load %arg13[%c29_484, %c0_485] : memref<49x256xf32, #tpu.memory_space<vmem>>, vector<1x256xf32>
    %817 = arith.mulf %806, %816 : vector<1x256xf32>
    %818 = arith.addf %815, %817 : vector<1x256xf32>
    %c241_i32_486 = arith.constant 241 : i32
    %819 = tpu.dynamic_rotate %393 by %c241_i32_486 dim 1 : vector<1x256xf32>, i32 -> vector<1x256xf32>
    %c241_i32_487 = arith.constant 241 : i32
    %820 = tpu.dynamic_rotate %398 by %c241_i32_487 dim 1 : vector<1x256xf32>, i32 -> vector<1x256xf32>
    %c30_488 = arith.constant 30 : index
    %c0_489 = arith.constant 0 : index
    %821 = vector.load %arg10[%c30_488, %c0_489] : memref<49x256xf32, #tpu.memory_space<vmem>>, vector<1x256xf32>
    %822 = arith.mulf %819, %821 : vector<1x256xf32>
    %823 = arith.addf %812, %822 : vector<1x256xf32>
    %c30_490 = arith.constant 30 : index
    %c0_491 = arith.constant 0 : index
    %824 = vector.load %arg11[%c30_490, %c0_491] : memref<49x256xf32, #tpu.memory_space<vmem>>, vector<1x256xf32>
    %825 = arith.mulf %820, %824 : vector<1x256xf32>
    %826 = arith.addf %823, %825 : vector<1x256xf32>
    %c30_492 = arith.constant 30 : index
    %c0_493 = arith.constant 0 : index
    %827 = vector.load %arg12[%c30_492, %c0_493] : memref<49x256xf32, #tpu.memory_space<vmem>>, vector<1x256xf32>
    %828 = arith.mulf %819, %827 : vector<1x256xf32>
    %829 = arith.addf %818, %828 : vector<1x256xf32>
    %c30_494 = arith.constant 30 : index
    %c0_495 = arith.constant 0 : index
    %830 = vector.load %arg13[%c30_494, %c0_495] : memref<49x256xf32, #tpu.memory_space<vmem>>, vector<1x256xf32>
    %831 = arith.mulf %820, %830 : vector<1x256xf32>
    %832 = arith.addf %829, %831 : vector<1x256xf32>
    %c240_i32_496 = arith.constant 240 : i32
    %833 = tpu.dynamic_rotate %393 by %c240_i32_496 dim 1 : vector<1x256xf32>, i32 -> vector<1x256xf32>
    %c240_i32_497 = arith.constant 240 : i32
    %834 = tpu.dynamic_rotate %398 by %c240_i32_497 dim 1 : vector<1x256xf32>, i32 -> vector<1x256xf32>
    %c31_498 = arith.constant 31 : index
    %c0_499 = arith.constant 0 : index
    %835 = vector.load %arg10[%c31_498, %c0_499] : memref<49x256xf32, #tpu.memory_space<vmem>>, vector<1x256xf32>
    %836 = arith.mulf %833, %835 : vector<1x256xf32>
    %837 = arith.addf %826, %836 : vector<1x256xf32>
    %c31_500 = arith.constant 31 : index
    %c0_501 = arith.constant 0 : index
    %838 = vector.load %arg11[%c31_500, %c0_501] : memref<49x256xf32, #tpu.memory_space<vmem>>, vector<1x256xf32>
    %839 = arith.mulf %834, %838 : vector<1x256xf32>
    %840 = arith.addf %837, %839 : vector<1x256xf32>
    %c31_502 = arith.constant 31 : index
    %c0_503 = arith.constant 0 : index
    %841 = vector.load %arg12[%c31_502, %c0_503] : memref<49x256xf32, #tpu.memory_space<vmem>>, vector<1x256xf32>
    %842 = arith.mulf %833, %841 : vector<1x256xf32>
    %843 = arith.addf %832, %842 : vector<1x256xf32>
    %c31_504 = arith.constant 31 : index
    %c0_505 = arith.constant 0 : index
    %844 = vector.load %arg13[%c31_504, %c0_505] : memref<49x256xf32, #tpu.memory_space<vmem>>, vector<1x256xf32>
    %845 = arith.mulf %834, %844 : vector<1x256xf32>
    %846 = arith.addf %843, %845 : vector<1x256xf32>
    %c239_i32_506 = arith.constant 239 : i32
    %847 = tpu.dynamic_rotate %393 by %c239_i32_506 dim 1 : vector<1x256xf32>, i32 -> vector<1x256xf32>
    %c239_i32_507 = arith.constant 239 : i32
    %848 = tpu.dynamic_rotate %398 by %c239_i32_507 dim 1 : vector<1x256xf32>, i32 -> vector<1x256xf32>
    %c32_508 = arith.constant 32 : index
    %c0_509 = arith.constant 0 : index
    %849 = vector.load %arg10[%c32_508, %c0_509] : memref<49x256xf32, #tpu.memory_space<vmem>>, vector<1x256xf32>
    %850 = arith.mulf %847, %849 : vector<1x256xf32>
    %851 = arith.addf %840, %850 : vector<1x256xf32>
    %c32_510 = arith.constant 32 : index
    %c0_511 = arith.constant 0 : index
    %852 = vector.load %arg11[%c32_510, %c0_511] : memref<49x256xf32, #tpu.memory_space<vmem>>, vector<1x256xf32>
    %853 = arith.mulf %848, %852 : vector<1x256xf32>
    %854 = arith.addf %851, %853 : vector<1x256xf32>
    %c32_512 = arith.constant 32 : index
    %c0_513 = arith.constant 0 : index
    %855 = vector.load %arg12[%c32_512, %c0_513] : memref<49x256xf32, #tpu.memory_space<vmem>>, vector<1x256xf32>
    %856 = arith.mulf %847, %855 : vector<1x256xf32>
    %857 = arith.addf %846, %856 : vector<1x256xf32>
    %c32_514 = arith.constant 32 : index
    %c0_515 = arith.constant 0 : index
    %858 = vector.load %arg13[%c32_514, %c0_515] : memref<49x256xf32, #tpu.memory_space<vmem>>, vector<1x256xf32>
    %859 = arith.mulf %848, %858 : vector<1x256xf32>
    %860 = arith.addf %857, %859 : vector<1x256xf32>
    %c238_i32_516 = arith.constant 238 : i32
    %861 = tpu.dynamic_rotate %393 by %c238_i32_516 dim 1 : vector<1x256xf32>, i32 -> vector<1x256xf32>
    %c238_i32_517 = arith.constant 238 : i32
    %862 = tpu.dynamic_rotate %398 by %c238_i32_517 dim 1 : vector<1x256xf32>, i32 -> vector<1x256xf32>
    %c33_518 = arith.constant 33 : index
    %c0_519 = arith.constant 0 : index
    %863 = vector.load %arg10[%c33_518, %c0_519] : memref<49x256xf32, #tpu.memory_space<vmem>>, vector<1x256xf32>
    %864 = arith.mulf %861, %863 : vector<1x256xf32>
    %865 = arith.addf %854, %864 : vector<1x256xf32>
    %c33_520 = arith.constant 33 : index
    %c0_521 = arith.constant 0 : index
    %866 = vector.load %arg11[%c33_520, %c0_521] : memref<49x256xf32, #tpu.memory_space<vmem>>, vector<1x256xf32>
    %867 = arith.mulf %862, %866 : vector<1x256xf32>
    %868 = arith.addf %865, %867 : vector<1x256xf32>
    %c33_522 = arith.constant 33 : index
    %c0_523 = arith.constant 0 : index
    %869 = vector.load %arg12[%c33_522, %c0_523] : memref<49x256xf32, #tpu.memory_space<vmem>>, vector<1x256xf32>
    %870 = arith.mulf %861, %869 : vector<1x256xf32>
    %871 = arith.addf %860, %870 : vector<1x256xf32>
    %c33_524 = arith.constant 33 : index
    %c0_525 = arith.constant 0 : index
    %872 = vector.load %arg13[%c33_524, %c0_525] : memref<49x256xf32, #tpu.memory_space<vmem>>, vector<1x256xf32>
    %873 = arith.mulf %862, %872 : vector<1x256xf32>
    %874 = arith.addf %871, %873 : vector<1x256xf32>
    %c237_i32 = arith.constant 237 : i32
    %875 = tpu.dynamic_rotate %393 by %c237_i32 dim 1 : vector<1x256xf32>, i32 -> vector<1x256xf32>
    %c237_i32_526 = arith.constant 237 : i32
    %876 = tpu.dynamic_rotate %398 by %c237_i32_526 dim 1 : vector<1x256xf32>, i32 -> vector<1x256xf32>
    %c34_527 = arith.constant 34 : index
    %c0_528 = arith.constant 0 : index
    %877 = vector.load %arg10[%c34_527, %c0_528] : memref<49x256xf32, #tpu.memory_space<vmem>>, vector<1x256xf32>
    %878 = arith.mulf %875, %877 : vector<1x256xf32>
    %879 = arith.addf %868, %878 : vector<1x256xf32>
    %c34_529 = arith.constant 34 : index
    %c0_530 = arith.constant 0 : index
    %880 = vector.load %arg11[%c34_529, %c0_530] : memref<49x256xf32, #tpu.memory_space<vmem>>, vector<1x256xf32>
    %881 = arith.mulf %876, %880 : vector<1x256xf32>
    %882 = arith.addf %879, %881 : vector<1x256xf32>
    %c34_531 = arith.constant 34 : index
    %c0_532 = arith.constant 0 : index
    %883 = vector.load %arg12[%c34_531, %c0_532] : memref<49x256xf32, #tpu.memory_space<vmem>>, vector<1x256xf32>
    %884 = arith.mulf %875, %883 : vector<1x256xf32>
    %885 = arith.addf %874, %884 : vector<1x256xf32>
    %c34_533 = arith.constant 34 : index
    %c0_534 = arith.constant 0 : index
    %886 = vector.load %arg13[%c34_533, %c0_534] : memref<49x256xf32, #tpu.memory_space<vmem>>, vector<1x256xf32>
    %887 = arith.mulf %876, %886 : vector<1x256xf32>
    %888 = arith.addf %885, %887 : vector<1x256xf32>
    %c227_i32 = arith.constant 227 : i32
    %889 = tpu.dynamic_rotate %393 by %c227_i32 dim 1 : vector<1x256xf32>, i32 -> vector<1x256xf32>
    %c227_i32_535 = arith.constant 227 : i32
    %890 = tpu.dynamic_rotate %398 by %c227_i32_535 dim 1 : vector<1x256xf32>, i32 -> vector<1x256xf32>
    %c35_536 = arith.constant 35 : index
    %c0_537 = arith.constant 0 : index
    %891 = vector.load %arg10[%c35_536, %c0_537] : memref<49x256xf32, #tpu.memory_space<vmem>>, vector<1x256xf32>
    %892 = arith.mulf %889, %891 : vector<1x256xf32>
    %893 = arith.addf %882, %892 : vector<1x256xf32>
    %c35_538 = arith.constant 35 : index
    %c0_539 = arith.constant 0 : index
    %894 = vector.load %arg11[%c35_538, %c0_539] : memref<49x256xf32, #tpu.memory_space<vmem>>, vector<1x256xf32>
    %895 = arith.mulf %890, %894 : vector<1x256xf32>
    %896 = arith.addf %893, %895 : vector<1x256xf32>
    %c35_540 = arith.constant 35 : index
    %c0_541 = arith.constant 0 : index
    %897 = vector.load %arg12[%c35_540, %c0_541] : memref<49x256xf32, #tpu.memory_space<vmem>>, vector<1x256xf32>
    %898 = arith.mulf %889, %897 : vector<1x256xf32>
    %899 = arith.addf %888, %898 : vector<1x256xf32>
    %c35_542 = arith.constant 35 : index
    %c0_543 = arith.constant 0 : index
    %900 = vector.load %arg13[%c35_542, %c0_543] : memref<49x256xf32, #tpu.memory_space<vmem>>, vector<1x256xf32>
    %901 = arith.mulf %890, %900 : vector<1x256xf32>
    %902 = arith.addf %899, %901 : vector<1x256xf32>
    %c226_i32_544 = arith.constant 226 : i32
    %903 = tpu.dynamic_rotate %393 by %c226_i32_544 dim 1 : vector<1x256xf32>, i32 -> vector<1x256xf32>
    %c226_i32_545 = arith.constant 226 : i32
    %904 = tpu.dynamic_rotate %398 by %c226_i32_545 dim 1 : vector<1x256xf32>, i32 -> vector<1x256xf32>
    %c36_546 = arith.constant 36 : index
    %c0_547 = arith.constant 0 : index
    %905 = vector.load %arg10[%c36_546, %c0_547] : memref<49x256xf32, #tpu.memory_space<vmem>>, vector<1x256xf32>
    %906 = arith.mulf %903, %905 : vector<1x256xf32>
    %907 = arith.addf %896, %906 : vector<1x256xf32>
    %c36_548 = arith.constant 36 : index
    %c0_549 = arith.constant 0 : index
    %908 = vector.load %arg11[%c36_548, %c0_549] : memref<49x256xf32, #tpu.memory_space<vmem>>, vector<1x256xf32>
    %909 = arith.mulf %904, %908 : vector<1x256xf32>
    %910 = arith.addf %907, %909 : vector<1x256xf32>
    %c36_550 = arith.constant 36 : index
    %c0_551 = arith.constant 0 : index
    %911 = vector.load %arg12[%c36_550, %c0_551] : memref<49x256xf32, #tpu.memory_space<vmem>>, vector<1x256xf32>
    %912 = arith.mulf %903, %911 : vector<1x256xf32>
    %913 = arith.addf %902, %912 : vector<1x256xf32>
    %c36_552 = arith.constant 36 : index
    %c0_553 = arith.constant 0 : index
    %914 = vector.load %arg13[%c36_552, %c0_553] : memref<49x256xf32, #tpu.memory_space<vmem>>, vector<1x256xf32>
    %915 = arith.mulf %904, %914 : vector<1x256xf32>
    %916 = arith.addf %913, %915 : vector<1x256xf32>
    %c225_i32_554 = arith.constant 225 : i32
    %917 = tpu.dynamic_rotate %393 by %c225_i32_554 dim 1 : vector<1x256xf32>, i32 -> vector<1x256xf32>
    %c225_i32_555 = arith.constant 225 : i32
    %918 = tpu.dynamic_rotate %398 by %c225_i32_555 dim 1 : vector<1x256xf32>, i32 -> vector<1x256xf32>
    %c37_556 = arith.constant 37 : index
    %c0_557 = arith.constant 0 : index
    %919 = vector.load %arg10[%c37_556, %c0_557] : memref<49x256xf32, #tpu.memory_space<vmem>>, vector<1x256xf32>
    %920 = arith.mulf %917, %919 : vector<1x256xf32>
    %921 = arith.addf %910, %920 : vector<1x256xf32>
    %c37_558 = arith.constant 37 : index
    %c0_559 = arith.constant 0 : index
    %922 = vector.load %arg11[%c37_558, %c0_559] : memref<49x256xf32, #tpu.memory_space<vmem>>, vector<1x256xf32>
    %923 = arith.mulf %918, %922 : vector<1x256xf32>
    %924 = arith.addf %921, %923 : vector<1x256xf32>
    %c37_560 = arith.constant 37 : index
    %c0_561 = arith.constant 0 : index
    %925 = vector.load %arg12[%c37_560, %c0_561] : memref<49x256xf32, #tpu.memory_space<vmem>>, vector<1x256xf32>
    %926 = arith.mulf %917, %925 : vector<1x256xf32>
    %927 = arith.addf %916, %926 : vector<1x256xf32>
    %c37_562 = arith.constant 37 : index
    %c0_563 = arith.constant 0 : index
    %928 = vector.load %arg13[%c37_562, %c0_563] : memref<49x256xf32, #tpu.memory_space<vmem>>, vector<1x256xf32>
    %929 = arith.mulf %918, %928 : vector<1x256xf32>
    %930 = arith.addf %927, %929 : vector<1x256xf32>
    %c224_i32_564 = arith.constant 224 : i32
    %931 = tpu.dynamic_rotate %393 by %c224_i32_564 dim 1 : vector<1x256xf32>, i32 -> vector<1x256xf32>
    %c224_i32_565 = arith.constant 224 : i32
    %932 = tpu.dynamic_rotate %398 by %c224_i32_565 dim 1 : vector<1x256xf32>, i32 -> vector<1x256xf32>
    %c38_566 = arith.constant 38 : index
    %c0_567 = arith.constant 0 : index
    %933 = vector.load %arg10[%c38_566, %c0_567] : memref<49x256xf32, #tpu.memory_space<vmem>>, vector<1x256xf32>
    %934 = arith.mulf %931, %933 : vector<1x256xf32>
    %935 = arith.addf %924, %934 : vector<1x256xf32>
    %c38_568 = arith.constant 38 : index
    %c0_569 = arith.constant 0 : index
    %936 = vector.load %arg11[%c38_568, %c0_569] : memref<49x256xf32, #tpu.memory_space<vmem>>, vector<1x256xf32>
    %937 = arith.mulf %932, %936 : vector<1x256xf32>
    %938 = arith.addf %935, %937 : vector<1x256xf32>
    %c38_570 = arith.constant 38 : index
    %c0_571 = arith.constant 0 : index
    %939 = vector.load %arg12[%c38_570, %c0_571] : memref<49x256xf32, #tpu.memory_space<vmem>>, vector<1x256xf32>
    %940 = arith.mulf %931, %939 : vector<1x256xf32>
    %941 = arith.addf %930, %940 : vector<1x256xf32>
    %c38_572 = arith.constant 38 : index
    %c0_573 = arith.constant 0 : index
    %942 = vector.load %arg13[%c38_572, %c0_573] : memref<49x256xf32, #tpu.memory_space<vmem>>, vector<1x256xf32>
    %943 = arith.mulf %932, %942 : vector<1x256xf32>
    %944 = arith.addf %941, %943 : vector<1x256xf32>
    %c223_i32_574 = arith.constant 223 : i32
    %945 = tpu.dynamic_rotate %393 by %c223_i32_574 dim 1 : vector<1x256xf32>, i32 -> vector<1x256xf32>
    %c223_i32_575 = arith.constant 223 : i32
    %946 = tpu.dynamic_rotate %398 by %c223_i32_575 dim 1 : vector<1x256xf32>, i32 -> vector<1x256xf32>
    %c39_576 = arith.constant 39 : index
    %c0_577 = arith.constant 0 : index
    %947 = vector.load %arg10[%c39_576, %c0_577] : memref<49x256xf32, #tpu.memory_space<vmem>>, vector<1x256xf32>
    %948 = arith.mulf %945, %947 : vector<1x256xf32>
    %949 = arith.addf %938, %948 : vector<1x256xf32>
    %c39_578 = arith.constant 39 : index
    %c0_579 = arith.constant 0 : index
    %950 = vector.load %arg11[%c39_578, %c0_579] : memref<49x256xf32, #tpu.memory_space<vmem>>, vector<1x256xf32>
    %951 = arith.mulf %946, %950 : vector<1x256xf32>
    %952 = arith.addf %949, %951 : vector<1x256xf32>
    %c39_580 = arith.constant 39 : index
    %c0_581 = arith.constant 0 : index
    %953 = vector.load %arg12[%c39_580, %c0_581] : memref<49x256xf32, #tpu.memory_space<vmem>>, vector<1x256xf32>
    %954 = arith.mulf %945, %953 : vector<1x256xf32>
    %955 = arith.addf %944, %954 : vector<1x256xf32>
    %c39_582 = arith.constant 39 : index
    %c0_583 = arith.constant 0 : index
    %956 = vector.load %arg13[%c39_582, %c0_583] : memref<49x256xf32, #tpu.memory_space<vmem>>, vector<1x256xf32>
    %957 = arith.mulf %946, %956 : vector<1x256xf32>
    %958 = arith.addf %955, %957 : vector<1x256xf32>
    %c222_i32_584 = arith.constant 222 : i32
    %959 = tpu.dynamic_rotate %393 by %c222_i32_584 dim 1 : vector<1x256xf32>, i32 -> vector<1x256xf32>
    %c222_i32_585 = arith.constant 222 : i32
    %960 = tpu.dynamic_rotate %398 by %c222_i32_585 dim 1 : vector<1x256xf32>, i32 -> vector<1x256xf32>
    %c40_586 = arith.constant 40 : index
    %c0_587 = arith.constant 0 : index
    %961 = vector.load %arg10[%c40_586, %c0_587] : memref<49x256xf32, #tpu.memory_space<vmem>>, vector<1x256xf32>
    %962 = arith.mulf %959, %961 : vector<1x256xf32>
    %963 = arith.addf %952, %962 : vector<1x256xf32>
    %c40_588 = arith.constant 40 : index
    %c0_589 = arith.constant 0 : index
    %964 = vector.load %arg11[%c40_588, %c0_589] : memref<49x256xf32, #tpu.memory_space<vmem>>, vector<1x256xf32>
    %965 = arith.mulf %960, %964 : vector<1x256xf32>
    %966 = arith.addf %963, %965 : vector<1x256xf32>
    %c40_590 = arith.constant 40 : index
    %c0_591 = arith.constant 0 : index
    %967 = vector.load %arg12[%c40_590, %c0_591] : memref<49x256xf32, #tpu.memory_space<vmem>>, vector<1x256xf32>
    %968 = arith.mulf %959, %967 : vector<1x256xf32>
    %969 = arith.addf %958, %968 : vector<1x256xf32>
    %c40_592 = arith.constant 40 : index
    %c0_593 = arith.constant 0 : index
    %970 = vector.load %arg13[%c40_592, %c0_593] : memref<49x256xf32, #tpu.memory_space<vmem>>, vector<1x256xf32>
    %971 = arith.mulf %960, %970 : vector<1x256xf32>
    %972 = arith.addf %969, %971 : vector<1x256xf32>
    %c221_i32 = arith.constant 221 : i32
    %973 = tpu.dynamic_rotate %393 by %c221_i32 dim 1 : vector<1x256xf32>, i32 -> vector<1x256xf32>
    %c221_i32_594 = arith.constant 221 : i32
    %974 = tpu.dynamic_rotate %398 by %c221_i32_594 dim 1 : vector<1x256xf32>, i32 -> vector<1x256xf32>
    %c41_595 = arith.constant 41 : index
    %c0_596 = arith.constant 0 : index
    %975 = vector.load %arg10[%c41_595, %c0_596] : memref<49x256xf32, #tpu.memory_space<vmem>>, vector<1x256xf32>
    %976 = arith.mulf %973, %975 : vector<1x256xf32>
    %977 = arith.addf %966, %976 : vector<1x256xf32>
    %c41_597 = arith.constant 41 : index
    %c0_598 = arith.constant 0 : index
    %978 = vector.load %arg11[%c41_597, %c0_598] : memref<49x256xf32, #tpu.memory_space<vmem>>, vector<1x256xf32>
    %979 = arith.mulf %974, %978 : vector<1x256xf32>
    %980 = arith.addf %977, %979 : vector<1x256xf32>
    %c41_599 = arith.constant 41 : index
    %c0_600 = arith.constant 0 : index
    %981 = vector.load %arg12[%c41_599, %c0_600] : memref<49x256xf32, #tpu.memory_space<vmem>>, vector<1x256xf32>
    %982 = arith.mulf %973, %981 : vector<1x256xf32>
    %983 = arith.addf %972, %982 : vector<1x256xf32>
    %c41_601 = arith.constant 41 : index
    %c0_602 = arith.constant 0 : index
    %984 = vector.load %arg13[%c41_601, %c0_602] : memref<49x256xf32, #tpu.memory_space<vmem>>, vector<1x256xf32>
    %985 = arith.mulf %974, %984 : vector<1x256xf32>
    %986 = arith.addf %983, %985 : vector<1x256xf32>
    %c211_i32_603 = arith.constant 211 : i32
    %987 = tpu.dynamic_rotate %393 by %c211_i32_603 dim 1 : vector<1x256xf32>, i32 -> vector<1x256xf32>
    %c211_i32_604 = arith.constant 211 : i32
    %988 = tpu.dynamic_rotate %398 by %c211_i32_604 dim 1 : vector<1x256xf32>, i32 -> vector<1x256xf32>
    %c42_605 = arith.constant 42 : index
    %c0_606 = arith.constant 0 : index
    %989 = vector.load %arg10[%c42_605, %c0_606] : memref<49x256xf32, #tpu.memory_space<vmem>>, vector<1x256xf32>
    %990 = arith.mulf %987, %989 : vector<1x256xf32>
    %991 = arith.addf %980, %990 : vector<1x256xf32>
    %c42_607 = arith.constant 42 : index
    %c0_608 = arith.constant 0 : index
    %992 = vector.load %arg11[%c42_607, %c0_608] : memref<49x256xf32, #tpu.memory_space<vmem>>, vector<1x256xf32>
    %993 = arith.mulf %988, %992 : vector<1x256xf32>
    %994 = arith.addf %991, %993 : vector<1x256xf32>
    %c42_609 = arith.constant 42 : index
    %c0_610 = arith.constant 0 : index
    %995 = vector.load %arg12[%c42_609, %c0_610] : memref<49x256xf32, #tpu.memory_space<vmem>>, vector<1x256xf32>
    %996 = arith.mulf %987, %995 : vector<1x256xf32>
    %997 = arith.addf %986, %996 : vector<1x256xf32>
    %c42_611 = arith.constant 42 : index
    %c0_612 = arith.constant 0 : index
    %998 = vector.load %arg13[%c42_611, %c0_612] : memref<49x256xf32, #tpu.memory_space<vmem>>, vector<1x256xf32>
    %999 = arith.mulf %988, %998 : vector<1x256xf32>
    %1000 = arith.addf %997, %999 : vector<1x256xf32>
    %c210_i32 = arith.constant 210 : i32
    %1001 = tpu.dynamic_rotate %393 by %c210_i32 dim 1 : vector<1x256xf32>, i32 -> vector<1x256xf32>
    %c210_i32_613 = arith.constant 210 : i32
    %1002 = tpu.dynamic_rotate %398 by %c210_i32_613 dim 1 : vector<1x256xf32>, i32 -> vector<1x256xf32>
    %c43_614 = arith.constant 43 : index
    %c0_615 = arith.constant 0 : index
    %1003 = vector.load %arg10[%c43_614, %c0_615] : memref<49x256xf32, #tpu.memory_space<vmem>>, vector<1x256xf32>
    %1004 = arith.mulf %1001, %1003 : vector<1x256xf32>
    %1005 = arith.addf %994, %1004 : vector<1x256xf32>
    %c43_616 = arith.constant 43 : index
    %c0_617 = arith.constant 0 : index
    %1006 = vector.load %arg11[%c43_616, %c0_617] : memref<49x256xf32, #tpu.memory_space<vmem>>, vector<1x256xf32>
    %1007 = arith.mulf %1002, %1006 : vector<1x256xf32>
    %1008 = arith.addf %1005, %1007 : vector<1x256xf32>
    %c43_618 = arith.constant 43 : index
    %c0_619 = arith.constant 0 : index
    %1009 = vector.load %arg12[%c43_618, %c0_619] : memref<49x256xf32, #tpu.memory_space<vmem>>, vector<1x256xf32>
    %1010 = arith.mulf %1001, %1009 : vector<1x256xf32>
    %1011 = arith.addf %1000, %1010 : vector<1x256xf32>
    %c43_620 = arith.constant 43 : index
    %c0_621 = arith.constant 0 : index
    %1012 = vector.load %arg13[%c43_620, %c0_621] : memref<49x256xf32, #tpu.memory_space<vmem>>, vector<1x256xf32>
    %1013 = arith.mulf %1002, %1012 : vector<1x256xf32>
    %1014 = arith.addf %1011, %1013 : vector<1x256xf32>
    %c209_i32 = arith.constant 209 : i32
    %1015 = tpu.dynamic_rotate %393 by %c209_i32 dim 1 : vector<1x256xf32>, i32 -> vector<1x256xf32>
    %c209_i32_622 = arith.constant 209 : i32
    %1016 = tpu.dynamic_rotate %398 by %c209_i32_622 dim 1 : vector<1x256xf32>, i32 -> vector<1x256xf32>
    %c44_623 = arith.constant 44 : index
    %c0_624 = arith.constant 0 : index
    %1017 = vector.load %arg10[%c44_623, %c0_624] : memref<49x256xf32, #tpu.memory_space<vmem>>, vector<1x256xf32>
    %1018 = arith.mulf %1015, %1017 : vector<1x256xf32>
    %1019 = arith.addf %1008, %1018 : vector<1x256xf32>
    %c44_625 = arith.constant 44 : index
    %c0_626 = arith.constant 0 : index
    %1020 = vector.load %arg11[%c44_625, %c0_626] : memref<49x256xf32, #tpu.memory_space<vmem>>, vector<1x256xf32>
    %1021 = arith.mulf %1016, %1020 : vector<1x256xf32>
    %1022 = arith.addf %1019, %1021 : vector<1x256xf32>
    %c44_627 = arith.constant 44 : index
    %c0_628 = arith.constant 0 : index
    %1023 = vector.load %arg12[%c44_627, %c0_628] : memref<49x256xf32, #tpu.memory_space<vmem>>, vector<1x256xf32>
    %1024 = arith.mulf %1015, %1023 : vector<1x256xf32>
    %1025 = arith.addf %1014, %1024 : vector<1x256xf32>
    %c44_629 = arith.constant 44 : index
    %c0_630 = arith.constant 0 : index
    %1026 = vector.load %arg13[%c44_629, %c0_630] : memref<49x256xf32, #tpu.memory_space<vmem>>, vector<1x256xf32>
    %1027 = arith.mulf %1016, %1026 : vector<1x256xf32>
    %1028 = arith.addf %1025, %1027 : vector<1x256xf32>
    %c208_i32_631 = arith.constant 208 : i32
    %1029 = tpu.dynamic_rotate %393 by %c208_i32_631 dim 1 : vector<1x256xf32>, i32 -> vector<1x256xf32>
    %c208_i32_632 = arith.constant 208 : i32
    %1030 = tpu.dynamic_rotate %398 by %c208_i32_632 dim 1 : vector<1x256xf32>, i32 -> vector<1x256xf32>
    %c45_633 = arith.constant 45 : index
    %c0_634 = arith.constant 0 : index
    %1031 = vector.load %arg10[%c45_633, %c0_634] : memref<49x256xf32, #tpu.memory_space<vmem>>, vector<1x256xf32>
    %1032 = arith.mulf %1029, %1031 : vector<1x256xf32>
    %1033 = arith.addf %1022, %1032 : vector<1x256xf32>
    %c45_635 = arith.constant 45 : index
    %c0_636 = arith.constant 0 : index
    %1034 = vector.load %arg11[%c45_635, %c0_636] : memref<49x256xf32, #tpu.memory_space<vmem>>, vector<1x256xf32>
    %1035 = arith.mulf %1030, %1034 : vector<1x256xf32>
    %1036 = arith.addf %1033, %1035 : vector<1x256xf32>
    %c45_637 = arith.constant 45 : index
    %c0_638 = arith.constant 0 : index
    %1037 = vector.load %arg12[%c45_637, %c0_638] : memref<49x256xf32, #tpu.memory_space<vmem>>, vector<1x256xf32>
    %1038 = arith.mulf %1029, %1037 : vector<1x256xf32>
    %1039 = arith.addf %1028, %1038 : vector<1x256xf32>
    %c45_639 = arith.constant 45 : index
    %c0_640 = arith.constant 0 : index
    %1040 = vector.load %arg13[%c45_639, %c0_640] : memref<49x256xf32, #tpu.memory_space<vmem>>, vector<1x256xf32>
    %1041 = arith.mulf %1030, %1040 : vector<1x256xf32>
    %1042 = arith.addf %1039, %1041 : vector<1x256xf32>
    %c207_i32 = arith.constant 207 : i32
    %1043 = tpu.dynamic_rotate %393 by %c207_i32 dim 1 : vector<1x256xf32>, i32 -> vector<1x256xf32>
    %c207_i32_641 = arith.constant 207 : i32
    %1044 = tpu.dynamic_rotate %398 by %c207_i32_641 dim 1 : vector<1x256xf32>, i32 -> vector<1x256xf32>
    %c46_642 = arith.constant 46 : index
    %c0_643 = arith.constant 0 : index
    %1045 = vector.load %arg10[%c46_642, %c0_643] : memref<49x256xf32, #tpu.memory_space<vmem>>, vector<1x256xf32>
    %1046 = arith.mulf %1043, %1045 : vector<1x256xf32>
    %1047 = arith.addf %1036, %1046 : vector<1x256xf32>
    %c46_644 = arith.constant 46 : index
    %c0_645 = arith.constant 0 : index
    %1048 = vector.load %arg11[%c46_644, %c0_645] : memref<49x256xf32, #tpu.memory_space<vmem>>, vector<1x256xf32>
    %1049 = arith.mulf %1044, %1048 : vector<1x256xf32>
    %1050 = arith.addf %1047, %1049 : vector<1x256xf32>
    %c46_646 = arith.constant 46 : index
    %c0_647 = arith.constant 0 : index
    %1051 = vector.load %arg12[%c46_646, %c0_647] : memref<49x256xf32, #tpu.memory_space<vmem>>, vector<1x256xf32>
    %1052 = arith.mulf %1043, %1051 : vector<1x256xf32>
    %1053 = arith.addf %1042, %1052 : vector<1x256xf32>
    %c46_648 = arith.constant 46 : index
    %c0_649 = arith.constant 0 : index
    %1054 = vector.load %arg13[%c46_648, %c0_649] : memref<49x256xf32, #tpu.memory_space<vmem>>, vector<1x256xf32>
    %1055 = arith.mulf %1044, %1054 : vector<1x256xf32>
    %1056 = arith.addf %1053, %1055 : vector<1x256xf32>
    %c206_i32 = arith.constant 206 : i32
    %1057 = tpu.dynamic_rotate %393 by %c206_i32 dim 1 : vector<1x256xf32>, i32 -> vector<1x256xf32>
    %c206_i32_650 = arith.constant 206 : i32
    %1058 = tpu.dynamic_rotate %398 by %c206_i32_650 dim 1 : vector<1x256xf32>, i32 -> vector<1x256xf32>
    %c47_651 = arith.constant 47 : index
    %c0_652 = arith.constant 0 : index
    %1059 = vector.load %arg10[%c47_651, %c0_652] : memref<49x256xf32, #tpu.memory_space<vmem>>, vector<1x256xf32>
    %1060 = arith.mulf %1057, %1059 : vector<1x256xf32>
    %1061 = arith.addf %1050, %1060 : vector<1x256xf32>
    %c47_653 = arith.constant 47 : index
    %c0_654 = arith.constant 0 : index
    %1062 = vector.load %arg11[%c47_653, %c0_654] : memref<49x256xf32, #tpu.memory_space<vmem>>, vector<1x256xf32>
    %1063 = arith.mulf %1058, %1062 : vector<1x256xf32>
    %1064 = arith.addf %1061, %1063 : vector<1x256xf32>
    %c47_655 = arith.constant 47 : index
    %c0_656 = arith.constant 0 : index
    %1065 = vector.load %arg12[%c47_655, %c0_656] : memref<49x256xf32, #tpu.memory_space<vmem>>, vector<1x256xf32>
    %1066 = arith.mulf %1057, %1065 : vector<1x256xf32>
    %1067 = arith.addf %1056, %1066 : vector<1x256xf32>
    %c47_657 = arith.constant 47 : index
    %c0_658 = arith.constant 0 : index
    %1068 = vector.load %arg13[%c47_657, %c0_658] : memref<49x256xf32, #tpu.memory_space<vmem>>, vector<1x256xf32>
    %1069 = arith.mulf %1058, %1068 : vector<1x256xf32>
    %1070 = arith.addf %1067, %1069 : vector<1x256xf32>
    %c205_i32_659 = arith.constant 205 : i32
    %1071 = tpu.dynamic_rotate %393 by %c205_i32_659 dim 1 : vector<1x256xf32>, i32 -> vector<1x256xf32>
    %c205_i32_660 = arith.constant 205 : i32
    %1072 = tpu.dynamic_rotate %398 by %c205_i32_660 dim 1 : vector<1x256xf32>, i32 -> vector<1x256xf32>
    %c48_661 = arith.constant 48 : index
    %c0_662 = arith.constant 0 : index
    %1073 = vector.load %arg10[%c48_661, %c0_662] : memref<49x256xf32, #tpu.memory_space<vmem>>, vector<1x256xf32>
    %1074 = arith.mulf %1071, %1073 : vector<1x256xf32>
    %1075 = arith.addf %1064, %1074 : vector<1x256xf32>
    %c48_663 = arith.constant 48 : index
    %c0_664 = arith.constant 0 : index
    %1076 = vector.load %arg11[%c48_663, %c0_664] : memref<49x256xf32, #tpu.memory_space<vmem>>, vector<1x256xf32>
    %1077 = arith.mulf %1072, %1076 : vector<1x256xf32>
    %1078 = arith.addf %1075, %1077 : vector<1x256xf32>
    %c48_665 = arith.constant 48 : index
    %c0_666 = arith.constant 0 : index
    %1079 = vector.load %arg12[%c48_665, %c0_666] : memref<49x256xf32, #tpu.memory_space<vmem>>, vector<1x256xf32>
    %1080 = arith.mulf %1071, %1079 : vector<1x256xf32>
    %1081 = arith.addf %1070, %1080 : vector<1x256xf32>
    %c48_667 = arith.constant 48 : index
    %c0_668 = arith.constant 0 : index
    %1082 = vector.load %arg13[%c48_667, %c0_668] : memref<49x256xf32, #tpu.memory_space<vmem>>, vector<1x256xf32>
    %1083 = arith.mulf %1072, %1082 : vector<1x256xf32>
    %1084 = arith.addf %1081, %1083 : vector<1x256xf32>
    %c0_669 = arith.constant 0 : index
    %1085 = memref.load %arg14[%c0_669] : memref<2xf32, #tpu.memory_space<smem>>
    %1086 = vector.broadcast %1085 : f32 to vector<1x256xf32>
    %1087 = arith.addf %1078, %1086 : vector<1x256xf32>
    %1088 = arith.negf %1087 : vector<1x256xf32>
    %1089 = math.exp %1088 : vector<1x256xf32>
    %cst_670 = arith.constant 1.000000e+00 : f32
    %1090 = vector.broadcast %cst_670 : f32 to vector<1x256xf32>
    %1091 = arith.addf %1090, %1089 : vector<1x256xf32>
    %1092 = arith.divf %1090, %1091 : vector<1x256xf32>
    %c1_671 = arith.constant 1 : index
    %1093 = memref.load %arg14[%c1_671] : memref<2xf32, #tpu.memory_space<smem>>
    %1094 = vector.broadcast %1093 : f32 to vector<1x256xf32>
    %1095 = arith.addf %1084, %1094 : vector<1x256xf32>
    %1096 = arith.negf %1095 : vector<1x256xf32>
    %1097 = math.exp %1096 : vector<1x256xf32>
    %cst_672 = arith.constant 1.000000e+00 : f32
    %1098 = vector.broadcast %cst_672 : f32 to vector<1x256xf32>
    %1099 = arith.addf %1098, %1097 : vector<1x256xf32>
    %1100 = arith.divf %1098, %1099 : vector<1x256xf32>
    %1101 = vector.broadcast %1092 : vector<1x256xf32> to vector<2x256xf32>
    %1102 = arith.mulf %381, %1101 : vector<2x256xf32>
    %1103 = vector.broadcast %1100 : vector<1x256xf32> to vector<2x256xf32>
    %1104 = arith.mulf %386, %1103 : vector<2x256xf32>
    %1105 = arith.addf %1102, %1104 : vector<2x256xf32>
    %c0_673 = arith.constant 0 : index
    %c0_674 = arith.constant 0 : index
    %1106 = vector.load %arg15[%c0_673, %c0_674] : memref<4x2xf32, #tpu.memory_space<vmem>>, vector<4x2xf32>
    %cst_675 = arith.constant dense<0.000000e+00> : vector<4x256xf32>
    %1107 = tpu.matmul %1106, %1105, %cst_675 {dimension_numbers = #tpu.dot_dimension_numbers<[1], [0], [0], [1], [0, 0, 1, 1], [], []>} : vector<4x2xf32>, vector<2x256xf32>, vector<4x256xf32> -> vector<4x256xf32>
    %c0_676 = arith.constant 0 : index
    %c0_677 = arith.constant 0 : index
    %1108 = vector.load %arg16[%c0_676, %c0_677] : memref<4x1xf32, #tpu.memory_space<vmem>>, vector<4x1xf32>
    %1109 = vector.broadcast %1108 : vector<4x1xf32> to vector<4x256xf32>
    %1110 = arith.addf %1107, %1109 : vector<4x256xf32>
    %1111 = arith.mulf %0, %1110 : vector<4x256xf32>
    %c0_678 = arith.constant 0 : index
    %c0_679 = arith.constant 0 : index
    %1112 = vector.load %arg17[%c0_678, %c0_679] : memref<4x256xf32, #tpu.memory_space<vmem>>, vector<4x256xf32>
    tpu.vector_store %arg17[%c0_678, %c0_679], %1111 {strides = array<i32>} : memref<4x256xf32, #tpu.memory_space<vmem>>, vector<4x256xf32>,
    return
  }
  func.func @transform_0(%arg0: i32) -> (i32, i32) {
    %c0_i32 = arith.constant 0 : i32
    %c0_i32_0 = arith.constant 0 : i32
    return %c0_i32, %arg0 : i32, i32
  }
  func.func @transform_1(%arg0: i32) -> (i32, i32, i32) {
    %c0_i32 = arith.constant 0 : i32
    %c0_i32_0 = arith.constant 0 : i32
    %c0_i32_1 = arith.constant 0 : i32
    %c0_i32_2 = arith.constant 0 : i32
    return %c0_i32, %c0_i32_0, %c0_i32_1 : i32, i32, i32
  }
  func.func @transform_2(%arg0: i32) -> (i32, i32) {
    %c0_i32 = arith.constant 0 : i32
    %c0_i32_0 = arith.constant 0 : i32
    %c0_i32_1 = arith.constant 0 : i32
    return %c0_i32, %c0_i32_0 : i32, i32
  }
  func.func @transform_3(%arg0: i32) -> (i32, i32, i32) {
    %c0_i32 = arith.constant 0 : i32
    %c0_i32_0 = arith.constant 0 : i32
    %c0_i32_1 = arith.constant 0 : i32
    %c0_i32_2 = arith.constant 0 : i32
    return %c0_i32, %c0_i32_0, %c0_i32_1 : i32, i32, i32
  }
  func.func @transform_4(%arg0: i32) -> (i32, i32) {
    %c0_i32 = arith.constant 0 : i32
    %c0_i32_0 = arith.constant 0 : i32
    %c0_i32_1 = arith.constant 0 : i32
    return %c0_i32, %c0_i32_0 : i32, i32
  }
  func.func @transform_5(%arg0: i32) -> (i32, i32) {
    %c0_i32 = arith.constant 0 : i32
    %c0_i32_0 = arith.constant 0 : i32
    %c0_i32_1 = arith.constant 0 : i32
    return %c0_i32, %c0_i32_0 : i32, i32
  }
  func.func @transform_6(%arg0: i32) -> (i32, i32) {
    %c0_i32 = arith.constant 0 : i32
    %c0_i32_0 = arith.constant 0 : i32
    %c0_i32_1 = arith.constant 0 : i32
    return %c0_i32, %c0_i32_0 : i32, i32
  }
  func.func @transform_7(%arg0: i32) -> (i32, i32) {
    %c0_i32 = arith.constant 0 : i32
    %c0_i32_0 = arith.constant 0 : i32
    %c0_i32_1 = arith.constant 0 : i32
    return %c0_i32, %c0_i32_0 : i32, i32
  }
  func.func @transform_8(%arg0: i32) -> (i32, i32) {
    %c0_i32 = arith.constant 0 : i32
    %c0_i32_0 = arith.constant 0 : i32
    %c0_i32_1 = arith.constant 0 : i32
    return %c0_i32, %c0_i32_0 : i32, i32
  }
  func.func @transform_9(%arg0: i32) -> (i32, i32) {
    %c0_i32 = arith.constant 0 : i32
    %c0_i32_0 = arith.constant 0 : i32
    %c0_i32_1 = arith.constant 0 : i32
    return %c0_i32, %c0_i32_0 : i32, i32
  }
  func.func @transform_10(%arg0: i32) -> (i32, i32) {
    %c0_i32 = arith.constant 0 : i32
    %c0_i32_0 = arith.constant 0 : i32
    %c0_i32_1 = arith.constant 0 : i32
    return %c0_i32, %c0_i32_0 : i32, i32
  }
  func.func @transform_11(%arg0: i32) -> (i32, i32) {
    %c0_i32 = arith.constant 0 : i32
    %c0_i32_0 = arith.constant 0 : i32
    %c0_i32_1 = arith.constant 0 : i32
    return %c0_i32, %c0_i32_0 : i32, i32
  }
  func.func @transform_12(%arg0: i32) -> (i32, i32) {
    %c0_i32 = arith.constant 0 : i32
    %c0_i32_0 = arith.constant 0 : i32
    %c0_i32_1 = arith.constant 0 : i32
    return %c0_i32, %c0_i32_0 : i32, i32
  }
  func.func @transform_13(%arg0: i32) -> i32 {
    %c0_i32 = arith.constant 0 : i32
    %c0_i32_0 = arith.constant 0 : i32
    return %c0_i32 : i32
  }
  func.func @transform_14(%arg0: i32) -> (i32, i32) {
    %c0_i32 = arith.constant 0 : i32
    %c0_i32_0 = arith.constant 0 : i32
    %c0_i32_1 = arith.constant 0 : i32
    return %c0_i32, %c0_i32_0 : i32, i32
  }
  func.func @transform_15(%arg0: i32) -> (i32, i32) {
    %c0_i32 = arith.constant 0 : i32
    %c0_i32_0 = arith.constant 0 : i32
    %c0_i32_1 = arith.constant 0 : i32
    return %c0_i32, %c0_i32_0 : i32, i32
  }
  func.func @transform_16(%arg0: i32) -> (i32, i32) {
    %c0_i32 = arith.constant 0 : i32
    %c0_i32_0 = arith.constant 0 : i32
    return %c0_i32, %arg0 : i32, i32
  }
}

</mosaic_0001>

<bundles_post_ra>
// kernel: tpu_custom_call.1
= control target key start
LH: loop header
LB: loop body
LE: loop exit
PB: predicated region body
PF: predicated region fallthrough
CT: control target
= control target key end

     0   :  { %s10346_s0 = inlined_call_operand.hbm [shape: f32[4,512], index: 0, kind: input, shape index: {}]   ;;  %s10347_s1 = inlined_call_operand.hbm [shape: f32[25,4,256], index: 1, kind: input, shape index: {}]   ;;  %s10348_s2 = inlined_call_operand.vmem [shape: f32[4,1], index: 2, kind: input, shape index: {}]   ;;  %s10349_s3 = inlined_call_operand.hbm [shape: f32[49,4,256], index: 3, kind: input, shape index: {}]   ;;  %s10350_s4 = inlined_call_operand.vmem [shape: f32[4,1], index: 4, kind: input, shape index: {}]   ;;  %s10351_s5 = inlined_call_operand.vmem [shape: f32[2,4], index: 5, kind: input, shape index: {}]   ;;  %s10352_s6 = inlined_call_operand.vmem [shape: f32[2,1], index: 6, kind: input, shape index: {}]   ;;  %s10353_s7 = inlined_call_operand.vmem [shape: f32[2,4], index: 7, kind: input, shape index: {}]   ;;  %s10354_s8 = inlined_call_operand.vmem [shape: f32[2,1], index: 8, kind: input, shape index: {}]   ;;  %s10355_s9 = inlined_call_operand.hbm [shape: f32[49,256], index: 9, kind: input, shape index: {}]   ;;  %s10356_s10 = inlined_call_operand.hbm [shape: f32[49,256], index: 10, kind: input, shape index: {}]   ;;  %s10357_s11 = inlined_call_operand.hbm [shape: f32[49,256], index: 11, kind: input, shape index: {}]   ;;  %s10358_s12 = inlined_call_operand.hbm [shape: f32[49,256], index: 12, kind: input, shape index: {}]   ;;  %s10359_s13 = inlined_call_operand.vmem [shape: f32[2], index: 13, kind: input, shape index: {}]   ;;  %s10360_s14 = inlined_call_operand.vmem [shape: f32[4,2], index: 14, kind: input, shape index: {}]   ;;  %s10361_s15 = inlined_call_operand.vmem [shape: f32[4,1], index: 15, kind: input, shape index: {}]   ;;  %s10362_s16 = inlined_call_operand.hbm [shape: f32[4,512], index: 16, kind: output, shape index: {}]  }
   0x1   :  { %10636 = sst [smem:[#allocation179_spill]] %s10346_s0 }
   0x2   :  { %10637 = sst [smem:[#allocation180_spill]] %s10347_s1 }
   0x3   :  { %10638 = sst [smem:[#allocation181_spill]] %s10348_s2 }
   0x4   :  { %10639 = sst [smem:[#allocation182_spill]] %s10349_s3 }
   0x5   :  { %10640 = sst [smem:[#allocation183_spill]] %s10350_s4 }
   0x6   :  { %10641 = sst [smem:[#allocation184_spill]] %s10351_s5 }
   0x7   :  { %10642 = sst [smem:[#allocation185_spill]] %s10352_s6 }
   0x8   :  { %10643 = sst [smem:[#allocation186_spill]] %s10353_s7 }
   0x9   :  { %10644 = sst [smem:[#allocation187_spill]] %s10354_s8 }
   0xa   :  { %10645 = sst [smem:[#allocation188_spill]] %s10355_s9 }
   0xb   :  { %10646 = sst [smem:[#allocation189_spill]] %s10356_s10 }
   0xc   :  { %10647 = sst [smem:[#allocation190_spill]] %s10357_s11 }
   0xd   :  { %10648 = sst [smem:[#allocation191_spill]] %s10358_s12 }
   0xe   :  { %10649 = sst [smem:[#allocation192_spill]] %s10359_s13 }
   0xf   :  { %10650 = sst [smem:[#allocation193_spill]] %s10360_s14 }
  0x10   :  { %10651 = sst [smem:[#allocation194_spill]] %s10361_s15 }
  0x11   :  { %10652 = sst [smem:[#allocation195_spill]] %s10362_s16 }
  0x12   :  { %21 = vsyncpa [#allocation3], 0 }
  0x13   :  { %23 = vsyncpa [#allocation3 + $0x1], 0 }
  0x14   :  { %24 = vsyncpa [#allocation7], 0 }
  0x15   :  { %25 = vsyncpa [#allocation10], 0 }
  0x16   :  { %26 = vsyncpa [#allocation13], 0 }
  0x17   :  { %27 = vsyncpa [#allocation5], 0 }
  0x18   :  { %28 = vsyncpa [#allocation4], 0 }
  0x19   :  { %30 = vsyncpa [#allocation4 + $0x1], 0  ;;  %s6153_s21 = smov 0   ;;  %s6155_s22 = smov 0  }
  0x1a   :  { %s6157_s23 = smov 0   ;;  %s6159_s24 = smov 0  }
  0x1b LB: > { %10653 = sst [smem:[#allocation23_spill]] %s5966_s21  ;;  %s6177_s28 = sadd.s32 4294967295, %s5978_s24   ;;  %s5978_s24 = sphi %s6159_s24, %s11623_s24   ;;  %s5974_s23 = sphi %s6157_s23, %s11626_s23   ;;  %s5970_s22 = sphi %s6155_s22, %s11625_s22   ;;  %s5966_s21 = sphi %s6153_s21, %s11624_s21  }
  0x1c   : > { %10654 = sst [smem:[#allocation24_spill]] %s5970_s22  ;;  %p5408_p0 = scmp.ge.s32.totalorder %s5978_s24, 1 }
  0x1d   : > { %10655 = sst [smem:[#allocation25_spill]] %s5974_s23  ;;  %p57_p1 = scmp.eq.s32.totalorder %s6177_s28, 0 }
  0x1e   : > { %10656 = sst [smem:[#allocation26_spill]] %s5978_s24  ;;  %p408_p2 = scmp.lt.s32.totalorder %s5978_s24, 3 }
  0x1f   : > { %s10657_s1 = sld [smem:[#allocation180_spill]]  ;;  %s5980_s30 = smov [#allocation6]  }
  0x20   : > { %10658 = sst [smem:[#allocation27_spill]] %s6177_s28  ;;  %p6182_p3 = pnand %p5408_p0, %p408_p2 }
  0x21   : > { %s421_s0 = sshll.u32 %s5980_s30, 4  ;;  %s10660_s9 = sld [smem:[#allocation188_spill]]  ;;  %s422_s0 = int_to_ptr.vmem [resolvable:$true] %s421_s0 }
  0x22   : > { %p5486_p4 = pneg %p6182_p3  ;;  %s5981_s25 = smov [#allocation9]  }
  0x23   : > { %s467_s26 = sshll.u32 %s5981_s25, 4  ;;  %s5982_s30 = smov 128   ;;  %s468_s26 = int_to_ptr.vmem [resolvable:$true] %s467_s26 }
  0x24   : > { %p6194_p6 = pnand %p5486_p4, %p57_p1  ;;  %s5984_s16 = smov 256  }
  0x25   : > { %s419_s27 = sshll.u32 %s10657_s1, 4  ;;  %s5983_s1 = smov 8   ;;  %s420_s27 = int_to_ptr.hbm [resolvable:$true] %s419_s27 }
  0x26   : > { %5489 = dma.hbm_to_vmem [thread:$0]  (!%p6194_p6), %s420_s27, 3200, %s422_s0, [#allocation7], %s5982_s30, %s5982_s30, %s5983_s1  }
  0x27   : > { %s465_s19 = sshll.u32 %s10660_s9, 4  ;;  %s5985_s17 = smov 16   ;;  %s466_s19 = int_to_ptr.hbm [resolvable:$true] %s465_s19 }
  0x28   : > { %5495 = dma.hbm_to_vmem [thread:$0]  (!%p6194_p6), %s466_s19, 1792, %s468_s26, [#allocation10], %s5984_s16, %s5984_s16, %s5985_s17  }
  0x29   : > { %s10662_s11 = sld [smem:[#allocation190_spill]]  ;;  %s5986_s15 = smov [#allocation12]  }
  0x2a   : > { %s495_s25 = sshll.u32 %s5986_s15, 4  ;;  %s10663_s3 = sld [smem:[#allocation182_spill]]  ;;  %s496_s25 = int_to_ptr.vmem [resolvable:$true] %s495_s25 }
  0x2b   : > { %s5987_s19 = smov [#allocation8]   ;;  %s10664_s10 = sld [smem:[#allocation189_spill]] }
  0x2c   : > { %s438_s26 = sshll.u32 %s5987_s19, 4  ;;  %s10665_s12 = sld [smem:[#allocation191_spill]]  ;;  %s439_s26 = int_to_ptr.vmem [resolvable:$true] %s438_s26 }
  0x2d   : > { %s10666_s13 = sld [smem:[#allocation192_spill]]  ;;  %s5407_s9 = sadd.s32 4294967294, %s5978_s24  }
  0x2e   : > { %s43_s7 = sadd.s32 1, %s5974_s23  ;;  %p50_p7 = scmp.ne.s32.totalorder %s5974_s23, %s5970_s22 }
  0x2f   : > { %s493_s14 = sshll.u32 %s10662_s11, 4  ;;  %p51_p9 = scmp.eq.s32.totalorder %s5978_s24, 0  ;;  %s494_s14 = int_to_ptr.hbm [resolvable:$true] %s493_s14 }
  0x30   : > { %s436_s0 = sshll.u32 %s10663_s3, 4  ;;  %p56_p10 = scmp.ne.s32.totalorder %s5970_s22, %s5966_s21  ;;  %s437_s0 = int_to_ptr.hbm [resolvable:$true] %s436_s0 }
  0x31   : > { %5501 = dma.hbm_to_vmem [thread:$0]  (!%p6194_p6), %s494_s14, 1792, %s496_s25, [#allocation13], %s5984_s16, %s5984_s16, %s5985_s17  }
  0x32   : > { %s479_s18 = sshll.u32 %s10664_s10, 4  ;;  %s507_s27 = sshll.u32 %s10665_s12, 4  ;;  %s480_s18 = int_to_ptr.hbm [resolvable:$true] %s479_s18  ;;  %s508_s27 = int_to_ptr.hbm [resolvable:$true] %s507_s27 }
  0x33   : > { %5492 = dma.hbm_to_vmem [thread:$0]  (!%p6194_p6), %s437_s0, 6272, %s439_s26, [#allocation7], %s5982_s30, %s5982_s30, %s5983_s1  }
  0x34   : > { %s5988_s14 = smov [#allocation11]   ;;  %s5989_s1 = smov [#allocation14]  }
  0x35   : > { %s481_s25 = sshll.u32 %s5988_s14, 4  ;;  %s509_s5 = sshll.u32 %s5989_s1, 4  ;;  %s482_s25 = int_to_ptr.vmem [resolvable:$true] %s481_s25  ;;  %s510_s5 = int_to_ptr.vmem [resolvable:$true] %s509_s5 }
  0x36   : > { %5498 = dma.hbm_to_vmem [thread:$0]  (!%p6194_p6), %s480_s18, 1792, %s482_s25, [#allocation10], %s5984_s16, %s5984_s16, %s5985_s17  }
  0x37   : > { %s522_s19 = sshll.u32 %s10666_s13, 4  ;;  %s5990_s26 = smov [#allocation15]   ;;  %s523_s19 = int_to_ptr.vmem [resolvable:$true] %s522_s19 }
  0x38   : > { %5504 = dma.hbm_to_vmem [thread:$0]  (!%p6194_p6), %s508_s27, 1792, %s510_s5, [#allocation13], %s5984_s16, %s5984_s16, %s5985_s17  }
  0x39   : > { %5507 = dma.vmem_to_smem (!%p6194_p6), %s523_s19, 16, %s5990_s26, [#allocation5]  }
  0x3a   : > { %s6241_s18 = sadd.s32 1, %s5978_s24   ;;  %p395_p11 = scmp.eq.s32.totalorder %s6177_s28, 1 }
  0x3b   : > { %10667 = sst [smem:[#allocation28_spill]] %s6241_s18  ;;  %s40_s15 = ssub.s32 %s5978_s24, %s6241_s18 }
  0x3c   : > { %p41_p8 = scmp.eq.s32.totalorder %s40_s15, 0  ;;  %p6257_p12 = por %p57_p1, %p56_p10 }
  0x3d   : > { %p6261_p13 = por %p395_p11, %p50_p7  ;;  %p401_p0 = scmp.eq.s32.totalorder %s5407_s9, 1 }
  0x3e   : > { %s6253_s14 = scalar_select %p41_p8, %s5974_s23, %s43_s7  }
  0x3f   : > { %s10670_s20 = scalar_select %p6261_p13, 1, 0 }
  0x40   : > { %10668 = sst [smem:[#allocation29_spill]] %s6253_s14  ;;  %p52_p2 = por %p51_p9, %p50_p7 }
  0x41   : > { %10671 = sst [smem:[#allocation30_spill]] %s10670_s20  ;;  %s539_s17 = sand.u32 1, %s5974_s23  }
  0x42   : > { %p6266_p4 = por %p401_p0, %p56_p10  ;;  %p5523_p6 = scmp.lt.s32.totalorder %s5978_s24, 2 }
  0x43   : > { %s5417_s25 = sshll.u32 %s539_s17, 3  ;;  %s5452_s1 = sshll.u32 %s5978_s24, 3 }
  0x44   : > { %s10672_s27 = scalar_select %p6266_p4, 1, 0 }
  0x45   : > { %s10674_s0 = sld [smem:[#allocation179_spill]]  ;;  %s543_s7 = scalar_lea.vmem [#allocation2], %s5417_s25 }
  0x46   : > { %10673 = sst [smem:[#allocation31_spill]] %s10672_s27  ;;  %s552_s15 = sshll.u32 %s543_s7, 4  ;;  %s553_s15 = int_to_ptr.vmem [resolvable:$true] %s552_s15 }
  0x47   : > { %p6275_p8 = pnand %p5523_p6, %p52_p2  ;;  %s540_s3 = scalar_lea.sflag [#allocation3], %s539_s17 }
  0x49   : > { %p5870_p9 = pneg %p6275_p8 }
  0x4b   : > { %s548_s19 = scalar_lea.hbm %s10674_s0, %s5452_s1  ;;  %s5873_s25 = scalar_lea.hbm %s10674_s0, 16 }
  0x4c   : > { %s550_s26 = sshll.u32 %s548_s19, 4  ;;  %s551_s26 = int_to_ptr.hbm [resolvable:$true] %s550_s26 }
  0x4d   : > { %s5866_s10 = sshra.s32 %s551_s26, 4  ;;  %s5867_s10 = int_to_ptr.hbm [resolvable:$true] %s5866_s10 }
  0x4e   : > { %s5868_s11 = scalar_lea.hbm %s5867_s10, 8  ;;  %p5874_p0 = scmp.lt.s32.totalorder %s5867_s10, %s10674_s0 }
  0x4f   : > { %p5869_p7 = scmp.ne.s32.totalorder %s5867_s10, %s5868_s11  ;;  %p5875_p2 = scmp.lt.s32.totalorder %s5873_s25, %s5868_s11 }
  0x51   : > { %p5871_p10 = pnand %p5870_p9, %p5869_p7  ;;  %p5876_p6 = por %p5875_p2, %p5874_p0 }
  0x53   : > { %p5872_p11 = pneg %p5871_p10 }
  0x55   : > { %p5877_p5 = pnand %p5876_p6, %p5872_p11 }
  0x57   : > { %5880 = shalt.err (!%p5877_p5)
}
  0x58   : > { %5511 = dma.hbm_to_vmem [thread:$0]  (!%p6275_p8), %s551_s26, 128, %s553_s15, %s540_s3  }
  0x59   : > { %561 = sbr.rel (%p6182_p3) target bundleno = 2016 (0x7e0), region = 84 }
  0x5e   : > { %s6292_s17 = sand.u32 1, %s5970_s22  }
  0x5f   : > { %10676 = sst [smem:[#allocation32_spill]] %s6292_s17  ;;  %s10365_s7 = sshll.u32 %s6292_s17, 3 }
  0x60   : > { %s564_s1 = scalar_lea.sflag [#allocation3], %s6292_s17  ;;  %s567_s10 = scalar_lea.vmem [#allocation2], %s10365_s7 }
  0x61   : > { %5941 = dma.done.wait (%p6257_p12), %s564_s1, 128  }
  0x62   : > { %5943 = vsyncadd (%p6257_p12), %s564_s1, 4294967168 }
  0x63   : > { %5945 = dma.done.wait (%p57_p1), [#allocation7], 9472  }
  0x64   : > { %5947 = vsyncadd (%p57_p1), [#allocation7], 4294957824 }
  0x65   : > { %5949 = dma.done.wait (%p57_p1), [#allocation10], 3584  }
  0x66   : > { %5951 = vsyncadd (%p57_p1), [#allocation10], 4294963712 }
  0x67   : > { %5953 = dma.done.wait (%p57_p1), [#allocation13], 3584  }
  0x68   : > { %5955 = vsyncadd (%p57_p1), [#allocation13], 4294963712 }
  0x69   : > { %5957 = dma.done.wait (%p57_p1), [#allocation5], 16  }
  0x6a   : > { %5959 = vsyncadd (%p57_p1), [#allocation5], 4294967280 }
  0x6b   : > { %608 = sfence }
  0x6c   : > { %v6318_v0 = vld [vmem:[%s567_s10] sm:$0xff]  ;;  %s10678_s8 = sld [smem:[#allocation187_spill]]  ;;  %v5991_v2 = vmov 0   ;;  %v671_v3 = vld [vmem:[#allocation6] sm:$0xff]  ;;  %s10476_s29 = smov 34   ;;  %v695_v9 = vld [vmem:[#allocation6 + $0x8] sm:$0xff] }
  0x6d   : > { %10677 = vst [vmem:[#allocation33_spill] sm:$0xff] %v6318_v0  ;;  %5654 = vset.pattern.permute.xlu1 %v5991_v2  ;;  %5652 = vset.pattern.permute.xlu0 %v5991_v2  ;;  %s10679_s2 = sld [smem:[#allocation181_spill]]  ;;  %s10482_s15 = smov 33   ;;  %v719_v16 = vld [vmem:[#allocation6 + $0x10] sm:$0xff]  ;;  %v743_v21 = vld [vmem:[#allocation6 + $0x18] sm:$0xff]  ;;  %v767_v26 = vld [vmem:[#allocation6 + $0x20] sm:$0xff] }
  0x6e   : > { %657 = vst [vmem:[#allocation1] ss:$2 sm:$0xff] %v6318_v0  ;;  %5653 = vset.pattern.permute.xlu2 %v5991_v2  ;;  %s10680_s4 = sld [smem:[#allocation183_spill]]  ;;  %s10478_s19 = smov 32   ;;  %v791_v31 = vld [vmem:[#allocation6 + $0x28] sm:$0xff]  ;;  %v815_v36 = vld [vmem:[#allocation6 + $0x30] sm:$0xff] }
  0x6f   : > { %s10681_s6 = sld [smem:[#allocation185_spill]]  ;;  %s10480_s1 = smov 31   ;;  %v839_v41 = vld [vmem:[#allocation6 + $0x38] sm:$0xff]  ;;  %v863_v46 = vld [vmem:[#allocation6 + $0x40] sm:$0xff]  ;;  %v887_v51 = vld [vmem:[#allocation6 + $0x48] sm:$0xff] }
  0x70   : > { %s10486_s10 = smov 30   ;;  %s10409_s3 = smov 18   ;;  %v911_v56 = vld [vmem:[#allocation6 + $0x50] sm:$0xff]  ;;  %v935_v61 = vld [vmem:[#allocation6 + $0x58] sm:$0xff] }
  0x71   : > { %s10421_s11 = smov 17   ;;  %s10413_s16 = smov 16  }
  0x72   : > { %v2239_v1 = vld [vmem:[%s10678_s8] sm:$0x3]  ;;  %s10404_s26 = smov 15   ;;  %s10407_s9 = smov 14  }
  0x73   : > { %2242 = vperm.xlu1 %5654, %v2239_v1   ;;  %v1245_v8 = vld [vmem:[%s10679_s2] sm:$0xf]  ;;  %s10388_s5 = smov 2   ;;  %s10374_s25 = smov 1   ;;  %v947_v1 = vld [vmem:[#allocation6 + $0x60] sm:$0xff] }
  0x74   : > { %v2172_v12 = vld [vmem:[%s10680_s4] sm:$0xf]  ;;  %v948_v2 = vmul.f32 %v947_v1, %v6318_v0  ;;  %s10366_s30 = smov 127   ;;  %s10368_s7 = smov 126   ;;  %v1138_v1 = vld [vmem:[#allocation6 + $0xa0] sm:$0xff] }
  0x75   : > { %v658_v4 = vld.sshfl [vmem:[#allocation1] sm:$0xff pattern:$0x75316420]  ;;  %v659_v5 = vld.sshfl [vmem:[#allocation1 + $0x8] sm:$0xff pattern:$0x75316420]  ;;  %2175 = vperm.xlu2 %5653, %v2172_v12  }
  0x76   : > { %662 = vrot.lane.b32.xlu0 %v658_v4, %s10476_s29  ;;  %673 = vst [vmem:[#allocation1] ss:$2 sm:$0xff] %v671_v3  ;;  %v2181_v13 = vld [vmem:[%s10681_s6] sm:$0x3]  ;;  %s10880_s0 = smov 115   ;;  %s10881_s2 = smov 113  }
  0x77   : > { %s10882_s4 = smov 111   ;;  %s10883_s6 = smov 112  }
  0x78   : > { %s10884_s8 = smov 110   ;;  %s10886_s12 = smov 99  }
  0x79   : > { %s10887_s13 = smov 109   ;;  %s10889_s14 = smov 98  }
  0x7a   : > { %s10891_s23 = smov 96   ;;  %s10892_s22 = smov 97  }
  0x7b   : > { %s10896_s18 = smov 95   ;;  %s10900_s24 = smov 93  }
  0x7c   : > { %s10901_s27 = smov 94   ;;  %s10905_s21 = smov 83  }
  0x7d   : > { %v6325_v6 = vld.sshfl [vmem:[#allocation1] sm:$0xff pattern:$0x75316420]  ;;  %v6327_v7 = vld.sshfl [vmem:[#allocation1 + $0x8] sm:$0xff pattern:$0x75316420] }
  0x7e   : > { %664 = vrot.lane.b32.xlu0 %v659_v5, %s10476_s29  ;;  %682 = vst [vmem:[#allocation1] ss:$2 sm:$0xff] %v6318_v0  ;;  %s10519_s20 = smov 81   ;;  %s10529_s17 = smov 82  }
  0x7f   : > { %s10911_s28 = smov 81  }
  0x85   : > { %v683_v10 = vld.sshfl [vmem:[#allocation1] sm:$0xff pattern:$0x75316420]  ;;  %v684_v11 = vld.sshfl [vmem:[#allocation1 + $0x8] sm:$0xff pattern:$0x75316420] }
  0x86   : > { %1248 = vperm.xlu0 %5652, %v1245_v8   ;;  %687 = vrot.lane.b32.xlu1 %v683_v10, %s10482_s15  ;;  %697 = vst [vmem:[#allocation1] ss:$2 sm:$0xff] %v695_v9  ;;  %v970_v9 = vld [vmem:[#allocation6 + $0x68] sm:$0xff] }
  0x8d   : > { %v6341_v14 = vld.sshfl [vmem:[#allocation1] sm:$0xff pattern:$0x75316420]  ;;  %v6343_v15 = vld.sshfl [vmem:[#allocation1 + $0x8] sm:$0xff pattern:$0x75316420] }
  0x8e   : > { %2184 = vperm.xlu0 %5652, %v2181_v13   ;;  %689 = vrot.lane.b32.xlu1 %v684_v11, %s10482_s15  ;;  %706 = vst [vmem:[#allocation1] ss:$2 sm:$0xff] %v6318_v0 }
  0x95   : > { %v707_v17 = vld.sshfl [vmem:[#allocation1] sm:$0xff pattern:$0x75316420]  ;;  %v708_v18 = vld.sshfl [vmem:[#allocation1 + $0x8] sm:$0xff pattern:$0x75316420] }
  0x96   : > { %721 = vst [vmem:[#allocation1] ss:$2 sm:$0xff] %v719_v16  ;;  %711 = vrot.lane.b32.xlu2 %v707_v17, %s10478_s19  ;;  %v994_v16 = vld [vmem:[#allocation6 + $0x70] sm:$0xff] }
  0x9d   : > { %v6348_v19 = vld.sshfl [vmem:[#allocation1] sm:$0xff pattern:$0x75316420]  ;;  %v6350_v20 = vld.sshfl [vmem:[#allocation1 + $0x8] sm:$0xff pattern:$0x75316420] }
  0x9e   : > { %730 = vst [vmem:[#allocation1] ss:$2 sm:$0xff] %v6318_v0  ;;  %713 = vrot.lane.b32.xlu2 %v708_v18, %s10478_s19 }
  0xa5   : > { %v731_v22 = vld.sshfl [vmem:[#allocation1] sm:$0xff pattern:$0x75316420]  ;;  %v732_v23 = vld.sshfl [vmem:[#allocation1 + $0x8] sm:$0xff pattern:$0x75316420] }
  0xa6   : > { %735 = vrot.lane.b32.xlu0 %v731_v22, %s10480_s1  ;;  %737 = vrot.lane.b32.xlu1 %v732_v23, %s10480_s1  ;;  %745 = vst [vmem:[#allocation1] ss:$2 sm:$0xff] %v743_v21  ;;  %v1018_v23 = vld [vmem:[#allocation6 + $0x78] sm:$0xff] }
  0xad   : > { %v6356_v24 = vld.sshfl [vmem:[#allocation1] sm:$0xff pattern:$0x75316420]  ;;  %v6358_v25 = vld.sshfl [vmem:[#allocation1 + $0x8] sm:$0xff pattern:$0x75316420] }
  0xae   : > { %754 = vst [vmem:[#allocation1] ss:$2 sm:$0xff] %v6318_v0 }
  0xb5   : > { %v756_v27 = vld.sshfl [vmem:[#allocation1 + $0x8] sm:$0xff pattern:$0x75316420]  ;;  %v755_v28 = vld.sshfl [vmem:[#allocation1] sm:$0xff pattern:$0x75316420] }
  0xb6   : > { %761 = vrot.lane.b32.xlu0 %v756_v27, %s10486_s10  ;;  %769 = vst [vmem:[#allocation1] ss:$2 sm:$0xff] %v767_v26  ;;  %759 = vrot.lane.b32.xlu2 %v755_v28, %s10486_s10 }
  0xbd   : > { %v6363_v29 = vld.sshfl [vmem:[#allocation1] sm:$0xff pattern:$0x75316420]  ;;  %v6365_v30 = vld.sshfl [vmem:[#allocation1 + $0x8] sm:$0xff pattern:$0x75316420] }
  0xbe   : > { %778 = vst [vmem:[#allocation1] ss:$2 sm:$0xff] %v6318_v0 }
  0xc5   : > { %v779_v32 = vld.sshfl [vmem:[#allocation1] sm:$0xff pattern:$0x75316420]  ;;  %v780_v33 = vld.sshfl [vmem:[#allocation1 + $0x8] sm:$0xff pattern:$0x75316420] }
  0xc6   : > { %783 = vrot.lane.b32.xlu1 %v779_v32, %s10409_s3  ;;  %793 = vst [vmem:[#allocation1] ss:$2 sm:$0xff] %v791_v31  ;;  %785 = vrot.lane.b32.xlu2 %v780_v33, %s10409_s3  ;;  %v1042_v32 = vld [vmem:[#allocation6 + $0x80] sm:$0xff]  ;;  %s10423_s3 = smov 19  }
  0xcd   : > { %v6370_v34 = vld.sshfl [vmem:[#allocation1] sm:$0xff pattern:$0x75316420]  ;;  %v6372_v35 = vld.sshfl [vmem:[#allocation1 + $0x8] sm:$0xff pattern:$0x75316420] }
  0xce   : > { %802 = vst [vmem:[#allocation1] ss:$2 sm:$0xff] %v6318_v0 }
  0xd5   : > { %v803_v37 = vld.sshfl [vmem:[#allocation1] sm:$0xff pattern:$0x75316420]  ;;  %v804_v38 = vld.sshfl [vmem:[#allocation1 + $0x8] sm:$0xff pattern:$0x75316420] }
  0xd6   : > { %807 = vrot.lane.b32.xlu0 %v803_v37, %s10421_s11  ;;  %809 = vrot.lane.b32.xlu1 %v804_v38, %s10421_s11  ;;  %817 = vst [vmem:[#allocation1] ss:$2 sm:$0xff] %v815_v36  ;;  %s10443_s11 = smov 3  }
  0xdd   : > { %v6377_v39 = vld.sshfl [vmem:[#allocation1] sm:$0xff pattern:$0x75316420]  ;;  %v6379_v40 = vld.sshfl [vmem:[#allocation1 + $0x8] sm:$0xff pattern:$0x75316420] }
  0xde   : > { %826 = vst [vmem:[#allocation1] ss:$2 sm:$0xff] %v6318_v0 }
  0xe5   : > { %v828_v42 = vld.sshfl [vmem:[#allocation1 + $0x8] sm:$0xff pattern:$0x75316420]  ;;  %v827_v43 = vld.sshfl [vmem:[#allocation1] sm:$0xff pattern:$0x75316420] }
  0xe6   : > { %833 = vrot.lane.b32.xlu0 %v828_v42, %s10413_s16  ;;  %841 = vst [vmem:[#allocation1] ss:$2 sm:$0xff] %v839_v41  ;;  %831 = vrot.lane.b32.xlu2 %v827_v43, %s10413_s16  ;;  %v1066_v41 = vld [vmem:[#allocation6 + $0x88] sm:$0xff] }
  0xed   : > { %v6384_v44 = vld.sshfl [vmem:[#allocation1] sm:$0xff pattern:$0x75316420]  ;;  %v6386_v45 = vld.sshfl [vmem:[#allocation1 + $0x8] sm:$0xff pattern:$0x75316420] }
  0xee   : > { %850 = vst [vmem:[#allocation1] ss:$2 sm:$0xff] %v6318_v0 }
  0xf5   : > { %v851_v47 = vld.sshfl [vmem:[#allocation1] sm:$0xff pattern:$0x75316420]  ;;  %v852_v48 = vld.sshfl [vmem:[#allocation1 + $0x8] sm:$0xff pattern:$0x75316420] }
  0xf6   : > { %855 = vrot.lane.b32.xlu1 %v851_v47, %s10404_s26  ;;  %865 = vst [vmem:[#allocation1] ss:$2 sm:$0xff] %v863_v46  ;;  %857 = vrot.lane.b32.xlu2 %v852_v48, %s10404_s26  ;;  %v1090_v48 = vld [vmem:[#allocation6 + $0x90] sm:$0xff]  ;;  %s10731_s26 = sld [smem:[#allocation184_spill]] }
  0xfd   : > { %v6391_v49 = vld.sshfl [vmem:[#allocation1] sm:$0xff pattern:$0x75316420]  ;;  %v6393_v50 = vld.sshfl [vmem:[#allocation1 + $0x8] sm:$0xff pattern:$0x75316420] }
  0xfe   : > { %874 = vst [vmem:[#allocation1] ss:$2 sm:$0xff] %v6318_v0 }
 0x105   : > { %v875_v52 = vld.sshfl [vmem:[#allocation1] sm:$0xff pattern:$0x75316420]  ;;  %v876_v53 = vld.sshfl [vmem:[#allocation1 + $0x8] sm:$0xff pattern:$0x75316420] }
 0x106   : > { %879 = vrot.lane.b32.xlu0 %v875_v52, %s10407_s9  ;;  %881 = vrot.lane.b32.xlu1 %v876_v53, %s10407_s9  ;;  %889 = vst [vmem:[#allocation1] ss:$2 sm:$0xff] %v887_v51  ;;  %s6016_s9 = smov 25  }
 0x10d   : > { %v6398_v54 = vld.sshfl [vmem:[#allocation1] sm:$0xff pattern:$0x75316420]  ;;  %v6400_v55 = vld.sshfl [vmem:[#allocation1 + $0x8] sm:$0xff pattern:$0x75316420] }
 0x10e   : > { %898 = vst [vmem:[#allocation1] ss:$2 sm:$0xff] %v6318_v0 }
 0x115   : > { %v900_v57 = vld.sshfl [vmem:[#allocation1 + $0x8] sm:$0xff pattern:$0x75316420]  ;;  %v899_v58 = vld.sshfl [vmem:[#allocation1] sm:$0xff pattern:$0x75316420] }
 0x116   : > { %905 = vrot.lane.b32.xlu0 %v900_v57, %s10388_s5  ;;  %913 = vst [vmem:[#allocation1] ss:$2 sm:$0xff] %v911_v56  ;;  %903 = vrot.lane.b32.xlu2 %v899_v58, %s10388_s5  ;;  %v1114_v57 = vld [vmem:[#allocation6 + $0x98] sm:$0xff]  ;;  %s10400_s5 = smov 94  }
 0x11d   : > { %v6405_v59 = vld.sshfl [vmem:[#allocation1] sm:$0xff pattern:$0x75316420]  ;;  %v6407_v60 = vld.sshfl [vmem:[#allocation1 + $0x8] sm:$0xff pattern:$0x75316420] }
 0x11e   : > { %922 = vst [vmem:[#allocation1] ss:$2 sm:$0xff] %v6318_v0 }
 0x125   : > { %v923_v62 = vld.sshfl [vmem:[#allocation1] sm:$0xff pattern:$0x75316420]  ;;  %v924_v63 = vld.sshfl [vmem:[#allocation1 + $0x8] sm:$0xff pattern:$0x75316420] }
 0x126   : > { %927 = vrot.lane.b32.xlu1 %v923_v62, %s10374_s25  ;;  %937 = vst [vmem:[#allocation1] ss:$2 sm:$0xff] %v935_v61  ;;  %929 = vrot.lane.b32.xlu2 %v924_v63, %s10374_s25  ;;  %s10378_s25 = smov 110  }
 0x12d   : > { %v6413_v3 = vld.sshfl [vmem:[#allocation1] sm:$0xff pattern:$0x75316420]  ;;  %v6415_v4 = vld.sshfl [vmem:[#allocation1 + $0x8] sm:$0xff pattern:$0x75316420] }
 0x12e   : > { %950 = vst [vmem:[#allocation1] ss:$2 sm:$0xff] %v948_v2 }
 0x135   : > { %v6417_v5 = vld.sshfl [vmem:[#allocation1] sm:$0xff pattern:$0x75316420]  ;;  %v6419_v8 = vld.sshfl [vmem:[#allocation1 + $0x8] sm:$0xff pattern:$0x75316420] }
 0x136   : > { %957 = vst [vmem:[#allocation1] ss:$2 sm:$0xff] %v6318_v0 }
 0x13d   : > { %v958_v10 = vld.sshfl [vmem:[#allocation1] sm:$0xff pattern:$0x75316420]  ;;  %v959_v11 = vld.sshfl [vmem:[#allocation1 + $0x8] sm:$0xff pattern:$0x75316420] }
 0x13e   : > { %962 = vrot.lane.b32.xlu0 %v958_v10, %s10366_s30  ;;  %964 = vrot.lane.b32.xlu1 %v959_v11, %s10366_s30  ;;  %972 = vst [vmem:[#allocation1] ss:$2 sm:$0xff] %v970_v9  ;;  %s10370_s30 = smov 114  }
 0x145   : > { %v6424_v12 = vld.sshfl [vmem:[#allocation1] sm:$0xff pattern:$0x75316420]  ;;  %v6426_v13 = vld.sshfl [vmem:[#allocation1 + $0x8] sm:$0xff pattern:$0x75316420] }
 0x146   : > { %981 = vst [vmem:[#allocation1] ss:$2 sm:$0xff] %v6318_v0 }
 0x14d   : > { %v983_v17 = vld.sshfl [vmem:[#allocation1 + $0x8] sm:$0xff pattern:$0x75316420]  ;;  %v982_v18 = vld.sshfl [vmem:[#allocation1] sm:$0xff pattern:$0x75316420] }
 0x14e   : > { %988 = vrot.lane.b32.xlu0 %v983_v17, %s10368_s7  ;;  %996 = vst [vmem:[#allocation1] ss:$2 sm:$0xff] %v994_v16  ;;  %986 = vrot.lane.b32.xlu2 %v982_v18, %s10368_s7  ;;  %s10372_s7 = smov 113   ;;  %v6477_v16 = vpop.permute.xlu0 %662  ;;  %v1162_v17 = vld [vmem:[#allocation6 + $0xa8] sm:$0xff] }
 0x155   : > { %v6431_v21 = vld.sshfl [vmem:[#allocation1] sm:$0xff pattern:$0x75316420]  ;;  %v6433_v22 = vld.sshfl [vmem:[#allocation1 + $0x8] sm:$0xff pattern:$0x75316420] }
 0x156   : > { %1005 = vst [vmem:[#allocation1] ss:$2 sm:$0xff] %v6318_v0 }
 0x15d   : > { %v1006_v26 = vld.sshfl [vmem:[#allocation1] sm:$0xff pattern:$0x75316420]  ;;  %v1007_v27 = vld.sshfl [vmem:[#allocation1 + $0x8] sm:$0xff pattern:$0x75316420] }
 0x15e   : > { %1010 = vrot.lane.b32.xlu1 %v1006_v26, %s10370_s30  ;;  %1020 = vst [vmem:[#allocation1] ss:$2 sm:$0xff] %v1018_v23  ;;  %1012 = vrot.lane.b32.xlu2 %v1007_v27, %s10370_s30  ;;  %s10472_s30 = smov 112   ;;  %v6482_v26 = vpop.permute.xlu0 %664 }
 0x165   : > { %v6438_v28 = vld.sshfl [vmem:[#allocation1] sm:$0xff pattern:$0x75316420]  ;;  %v6440_v31 = vld.sshfl [vmem:[#allocation1 + $0x8] sm:$0xff pattern:$0x75316420] }
 0x166   : > { %1029 = vst [vmem:[#allocation1] ss:$2 sm:$0xff] %v6318_v0 }
 0x16d   : > { %v1030_v33 = vld.sshfl [vmem:[#allocation1] sm:$0xff pattern:$0x75316420]  ;;  %v1031_v36 = vld.sshfl [vmem:[#allocation1 + $0x8] sm:$0xff pattern:$0x75316420] }
 0x16e   : > { %1034 = vrot.lane.b32.xlu0 %v1030_v33, %s10372_s7  ;;  %1044 = vst [vmem:[#allocation1] ss:$2 sm:$0xff] %v1042_v32  ;;  %1036 = vrot.lane.b32.xlu1 %v1031_v36, %s10372_s7  ;;  %s10376_s7 = smov 111   ;;  %v6489_v33 = vpop.permute.xlu1 %2242  ;;  %v6491_v36 = vpop.permute.xlu2 %2175 }
 0x16f   : > { %10693 = vst [vmem:[#allocation45_spill] sm:$0xff] %v6489_v33 }
 0x170   : > { %10694 = vst [vmem:[#allocation46_spill] sm:$0xff] %v6491_v36  ;;  %v1234_v36 = vld [vmem:[#allocation6 + $0xc0] sm:$0xff] }
 0x175   : > { %v6445_v37 = vld.sshfl [vmem:[#allocation1] sm:$0xff pattern:$0x75316420]  ;;  %v6447_v38 = vld.sshfl [vmem:[#allocation1 + $0x8] sm:$0xff pattern:$0x75316420] }
 0x176   : > { %10682 = vst [vmem:[#allocation34_spill] sm:$0xff] %v6447_v38 }
 0x177   : > { %1053 = vst [vmem:[#allocation1] ss:$2 sm:$0xff] %v6318_v0 }
 0x17e   : > { %v1055_v42 = vld.sshfl [vmem:[#allocation1 + $0x8] sm:$0xff pattern:$0x75316420]  ;;  %v1054_v43 = vld.sshfl [vmem:[#allocation1] sm:$0xff pattern:$0x75316420] }
 0x17f   : > { %1060 = vrot.lane.b32.xlu0 %v1055_v42, %s10472_s30  ;;  %1068 = vst [vmem:[#allocation1] ss:$2 sm:$0xff] %v1066_v41  ;;  %1058 = vrot.lane.b32.xlu2 %v1054_v43, %s10472_s30  ;;  %v6493_v41 = vpop.permute.xlu0 %1248  ;;  %v1186_v42 = vld [vmem:[#allocation6 + $0xb0] sm:$0xff] }
 0x180   : > { %10695 = vst [vmem:[#allocation47_spill] sm:$0xff] %v6493_v41 }
 0x186   : > { %v6452_v46 = vld.sshfl [vmem:[#allocation1] sm:$0xff pattern:$0x75316420]  ;;  %v6454_v47 = vld.sshfl [vmem:[#allocation1 + $0x8] sm:$0xff pattern:$0x75316420] }
 0x187   : > { %10683 = vst [vmem:[#allocation35_spill] sm:$0xff] %v6452_v46 }
 0x188   : > { %10684 = vst [vmem:[#allocation36_spill] sm:$0xff] %v6454_v47 }
 0x189   : > { %1077 = vst [vmem:[#allocation1] ss:$2 sm:$0xff] %v6318_v0 }
 0x190   : > { %v1078_v51 = vld.sshfl [vmem:[#allocation1] sm:$0xff pattern:$0x75316420]  ;;  %v1079_v52 = vld.sshfl [vmem:[#allocation1 + $0x8] sm:$0xff pattern:$0x75316420] }
 0x191   : > { %1082 = vrot.lane.b32.xlu1 %v1078_v51, %s10376_s7  ;;  %1092 = vst [vmem:[#allocation1] ss:$2 sm:$0xff] %v1090_v48  ;;  %1084 = vrot.lane.b32.xlu2 %v1079_v52, %s10376_s7  ;;  %s10380_s7 = smov 98   ;;  %v6497_v51 = vpop.permute.xlu1 %687  ;;  %v6499_v52 = vpop.permute.xlu2 %711 }
 0x198   : > { %v6459_v53 = vld.sshfl [vmem:[#allocation1] sm:$0xff pattern:$0x75316420]  ;;  %v6461_v56 = vld.sshfl [vmem:[#allocation1 + $0x8] sm:$0xff pattern:$0x75316420] }
 0x199   : > { %10685 = vst [vmem:[#allocation37_spill] sm:$0xff] %v6459_v53 }
 0x19a   : > { %10686 = vst [vmem:[#allocation38_spill] sm:$0xff] %v6461_v56 }
 0x19b   : > { %1101 = vst [vmem:[#allocation1] ss:$2 sm:$0xff] %v6318_v0 }
 0x1a2   : > { %v1103_v58 = vld.sshfl [vmem:[#allocation1 + $0x8] sm:$0xff pattern:$0x75316420]  ;;  %v1102_v61 = vld.sshfl [vmem:[#allocation1] sm:$0xff pattern:$0x75316420] }
 0x1a3   : > { %1108 = vrot.lane.b32.xlu1 %v1103_v58, %s10378_s25  ;;  %1116 = vst [vmem:[#allocation1] ss:$2 sm:$0xff] %v1114_v57  ;;  %1106 = vrot.lane.b32.xlu0 %v1102_v61, %s10378_s25  ;;  %s10382_s25 = smov 97   ;;  %v6501_v57 = vpop.permute.xlu0 %2184 }
 0x1a4   : > { %10696 = vst [vmem:[#allocation48_spill] sm:$0xff] %v6501_v57 }
 0x1aa   : > { %v6466_v62 = vld.sshfl [vmem:[#allocation1] sm:$0xff pattern:$0x75316420]  ;;  %v6468_v63 = vld.sshfl [vmem:[#allocation1 + $0x8] sm:$0xff pattern:$0x75316420] }
 0x1ab   : > { %10687 = vst [vmem:[#allocation39_spill] sm:$0xff] %v6466_v62 }
 0x1ac   : > { %10688 = vst [vmem:[#allocation40_spill] sm:$0xff] %v6468_v63 }
 0x1ad   : > { %1125 = vst [vmem:[#allocation1] ss:$2 sm:$0xff] %v6318_v0 }
 0x1b4   : > { %v1127_v2 = vld.sshfl [vmem:[#allocation1 + $0x8] sm:$0xff pattern:$0x75316420]  ;;  %v1126_v9 = vld.sshfl [vmem:[#allocation1] sm:$0xff pattern:$0x75316420] }
 0x1b5   : > { %1132 = vrot.lane.b32.xlu0 %v1127_v2, %s10380_s7  ;;  %1140 = vst [vmem:[#allocation1] ss:$2 sm:$0xff] %v1138_v1  ;;  %1130 = vrot.lane.b32.xlu2 %v1126_v9, %s10380_s7  ;;  %s10415_s7 = smov 96   ;;  %v1210_v1 = vld [vmem:[#allocation6 + $0xb8] sm:$0xff]  ;;  %v690_v2 = vpop.permute.xlu1 %689  ;;  %v6508_v9 = vpop.permute.xlu2 %713 }
 0x1bc   : > { %v6473_v10 = vld.sshfl [vmem:[#allocation1] sm:$0xff pattern:$0x75316420]  ;;  %v6475_v11 = vld.sshfl [vmem:[#allocation1 + $0x8] sm:$0xff pattern:$0x75316420] }
 0x1bd   : > { %10689 = vst [vmem:[#allocation41_spill] sm:$0xff] %v6473_v10  ;;  %v6520_v33 = vpop.permute.xlu2 %759  ;;  %v1298_v10 = vld [vmem:[#allocation8 + $0x10] sm:$0xff] }
 0x1be   : > { %10690 = vst [vmem:[#allocation42_spill] sm:$0xff] %v6475_v11  ;;  %v666_v11 = vlaneseq }
 0x1bf   : > { %1149 = vst [vmem:[#allocation1] ss:$2 sm:$0xff] %v6318_v0 }
 0x1c0   : > { %v6557_v56 = vand.u32 127, %v666_v11 }
 0x1c2   : > { %vm10442_vm0 = vcmp.lt.s32.totalorder %v6557_v56, 34  ;;  %vm10398_vm1 = vcmp.lt.s32.totalorder %v6557_v56, 33  ;;  %vm10470_vm2 = vcmp.lt.s32.totalorder %v6557_v56, 32  ;;  %vm10397_vm3 = vcmp.lt.s32.totalorder %v6557_v56, 31 }
 0x1c3   : > { %vm10396_vm4 = vcmp.lt.s32.totalorder %v6557_v56, 30  ;;  %vm10394_vm5 = vcmp.lt.s32.totalorder %v6557_v56, 18  ;;  %vm10395_vm6 = vcmp.lt.s32.totalorder %v6557_v56, 17  ;;  %vm10456_vm7 = vcmp.lt.s32.totalorder %v6557_v56, 16 }
 0x1c4   : > { %vm10392_vm8 = vcmp.lt.s32.totalorder %v6557_v56, 15  ;;  %vm10393_vm9 = vcmp.lt.s32.totalorder %v6557_v56, 14  ;;  %vm10391_vm10 = vcmp.lt.s32.totalorder %v6557_v56, 2  ;;  %vm931_vm11 = vcmp.lt.s32.totalorder %v6557_v56, 1 }
 0x1c5   : > { %vm966_vm12 = vcmp.lt.s32.totalorder %v6557_v56, 127  ;;  %vm990_vm13 = vcmp.lt.s32.totalorder %v6557_v56, 126  ;;  %vm1014_vm14 = vcmp.lt.s32.totalorder %v6557_v56, 114  ;;  %vm1038_vm15 = vcmp.lt.s32.totalorder %v6557_v56, 113 }
 0x1c6   : > { %v1150_v18 = vld.sshfl [vmem:[#allocation1] sm:$0xff pattern:$0x75316420]  ;;  %v1151_v23 = vld.sshfl [vmem:[#allocation1 + $0x8] sm:$0xff pattern:$0x75316420] }
 0x1c7   : > { %1154 = vrot.lane.b32.xlu1 %v1150_v18, %s10382_s25  ;;  %1164 = vst [vmem:[#allocation1] ss:$2 sm:$0xff] %v1162_v17  ;;  %1156 = vrot.lane.b32.xlu2 %v1151_v23, %s10382_s25  ;;  %v6510_v23 = vpop.permute.xlu0 %735  ;;  %s10402_s25 = smov 95  }
 0x1ce   : > { %v6484_v27 = vld.sshfl [vmem:[#allocation1] sm:$0xff pattern:$0x75316420]  ;;  %v6486_v32 = vld.sshfl [vmem:[#allocation1 + $0x8] sm:$0xff pattern:$0x75316420] }
 0x1cf   : > { %10691 = vst [vmem:[#allocation43_spill] sm:$0xff] %v6484_v27  ;;  %v6523_v57 = vpop.permute.xlu0 %761 }
 0x1d0   : > { %10692 = vst [vmem:[#allocation44_spill] sm:$0xff] %v6486_v32 }
 0x1d1   : > { %1173 = vst [vmem:[#allocation1] ss:$2 sm:$0xff] %v6318_v0 }
 0x1d8   : > { %v1175_v43 = vld.sshfl [vmem:[#allocation1 + $0x8] sm:$0xff pattern:$0x75316420]  ;;  %v1174_v48 = vld.sshfl [vmem:[#allocation1] sm:$0xff pattern:$0x75316420] }
 0x1d9   : > { %1180 = vrot.lane.b32.xlu1 %v1175_v43, %s10415_s7  ;;  %1188 = vst [vmem:[#allocation1] ss:$2 sm:$0xff] %v1186_v42  ;;  %1178 = vrot.lane.b32.xlu0 %v1174_v48, %s10415_s7  ;;  %v6518_v48 = vpop.permute.xlu1 %737 }
 0x1e0   : > { %v6503_v58 = vld.sshfl [vmem:[#allocation1] sm:$0xff pattern:$0x75316420]  ;;  %v6505_v61 = vld.sshfl [vmem:[#allocation1 + $0x8] sm:$0xff pattern:$0x75316420] }
 0x1e1   : > { %10697 = vst [vmem:[#allocation49_spill] sm:$0xff] %v6503_v58 }
 0x1e2   : > { %10698 = vst [vmem:[#allocation50_spill] sm:$0xff] %v6505_v61 }
 0x1e3   : > { %1197 = vst [vmem:[#allocation1] ss:$2 sm:$0xff] %v6318_v0 }
 0x1ea   : > { %v1199_v17 = vld.sshfl [vmem:[#allocation1 + $0x8] sm:$0xff pattern:$0x75316420]  ;;  %v1198_v18 = vld.sshfl [vmem:[#allocation1] sm:$0xff pattern:$0x75316420] }
 0x1eb   : > { %1204 = vrot.lane.b32.xlu0 %v1199_v17, %s10402_s25  ;;  %1212 = vst [vmem:[#allocation1] ss:$2 sm:$0xff] %v1210_v1  ;;  %1202 = vrot.lane.b32.xlu2 %v1198_v18, %s10402_s25  ;;  %v6527_v1 = vpop.permute.xlu1 %783  ;;  %v6529_v17 = vpop.permute.xlu2 %785  ;;  %s6021_s25 = smov 7  }
 0x1ec   : > { %v6531_v18 = vpop.permute.xlu0 %807 }
 0x1f2   : > { %v6514_v42 = vld.sshfl [vmem:[#allocation1] sm:$0xff pattern:$0x75316420]  ;;  %v6516_v43 = vld.sshfl [vmem:[#allocation1 + $0x8] sm:$0xff pattern:$0x75316420] }
 0x1f3   : > { %10699 = vst [vmem:[#allocation51_spill] sm:$0xff] %v6514_v42  ;;  %v6537_v58 = vpop.permute.xlu1 %809  ;;  %v6539_v32 = vpop.permute.xlu2 %831 }
 0x1f4   : > { %10700 = vst [vmem:[#allocation52_spill] sm:$0xff] %v6516_v43  ;;  %v1260_v43 = vld [vmem:[#allocation8] sm:$0xff] }
 0x1f5   : > { %1221 = vst [vmem:[#allocation1] ss:$2 sm:$0xff] %v6318_v0 }
 0x1fb   : > { %v6547_v63 = vpop.permute.xlu1 %855 }
 0x1fc   : > { %v1222_v41 = vld.sshfl [vmem:[#allocation1] sm:$0xff pattern:$0x75316420]  ;;  %v1223_v61 = vld.sshfl [vmem:[#allocation1 + $0x8] sm:$0xff pattern:$0x75316420] }
 0x1fd   : > { %1226 = vrot.lane.b32.xlu1 %v1222_v41, %s10400_s5  ;;  %1236 = vst [vmem:[#allocation1] ss:$2 sm:$0xff] %v1234_v36  ;;  %1228 = vrot.lane.b32.xlu2 %v1223_v61, %s10400_s5  ;;  %v1279_v41 = vld [vmem:[#allocation8 + $0x8] sm:$0xff]  ;;  %v6541_v36 = vpop.permute.xlu0 %833  ;;  %s10411_s5 = smov 13  }
 0x203   : > { %v6572_v11 = vpop.permute.xlu1 %881 }
 0x204   : > { %v6533_v42 = vld.sshfl [vmem:[#allocation1] sm:$0xff pattern:$0x75316420]  ;;  %v6535_v0 = vld.sshfl [vmem:[#allocation1 + $0x8] sm:$0xff pattern:$0x75316420] }
 0x205   : > { %10701 = vst [vmem:[#allocation53_spill] sm:$0xff] %v6533_v42  ;;  %v6549_v42 = vpop.permute.xlu2 %857  ;;  %v6555_v62 = vpop.permute.xlu0 %879 }
 0x206   : > { %10702 = vst [vmem:[#allocation54_spill] sm:$0xff] %v6535_v0 }
 0x207   : > { %1262 = vst [vmem:[#allocation1] ss:$2 sm:$0xff] %v1260_v43 }
 0x20d   : > { %v6584_v53 = vpop.permute.xlu0 %905 }
 0x20e   : > { %v6543_v61 = vld.sshfl [vmem:[#allocation1] sm:$0xff pattern:$0x75316420]  ;;  %v6545_v27 = vld.sshfl [vmem:[#allocation1 + $0x8] sm:$0xff pattern:$0x75316420] }
 0x20f   : > { %10703 = vst [vmem:[#allocation55_spill] sm:$0xff] %v6543_v61 }
 0x210   : > { %10704 = vst [vmem:[#allocation56_spill] sm:$0xff] %v6545_v27 }
 0x211   : > { %1281 = vst [vmem:[#allocation1] ss:$2 sm:$0xff] %v1279_v41  ;;  %v1316_v41 = vld [vmem:[#allocation8 + $0x18] sm:$0xff] }
 0x218   : > { %v6551_v0 = vld.sshfl [vmem:[#allocation1] sm:$0xff pattern:$0x75316420]  ;;  %v6553_v43 = vld.sshfl [vmem:[#allocation1 + $0x8] sm:$0xff pattern:$0x75316420] }
 0x219   : > { %10705 = vst [vmem:[#allocation57_spill] sm:$0xff] %v6551_v0  ;;  %v670_v0 = vsel %vm10442_vm0, %v6482_v26, %v6477_v16 }
 0x21a   : > { %10706 = vst [vmem:[#allocation58_spill] sm:$0xff] %v6553_v43  ;;  %v6574_v43 = vpop.permute.xlu2 %903  ;;  %v678_v47 = vmul.f32 %v6325_v6, %v670_v0 }
 0x21b   : > { %1300 = vst [vmem:[#allocation1] ss:$2 sm:$0xff] %v1298_v10  ;;  %v693_v10 = vsel %vm10398_vm1, %v690_v2, %v6497_v51 }
 0x21c   : > { %v702_v46 = vmul.f32 %v6341_v14, %v693_v10  ;;  %v6624_v10 = vpop.permute.xlu0 %962 }
 0x21e   : > { %v704_v0 = vadd.f32 %v702_v46, %v678_v47  ;;  %v740_v46 = vsel %vm10397_vm3, %v6510_v23, %v6518_v48 }
 0x222   : > { %v6561_v27 = vld.sshfl [vmem:[#allocation1] sm:$0xff pattern:$0x75316420]  ;;  %v6563_v61 = vld.sshfl [vmem:[#allocation1 + $0x8] sm:$0xff pattern:$0x75316420]  ;;  %v6616_v47 = vpop.permute.xlu2 %929 }
 0x223   : > { %10707 = vst [vmem:[#allocation59_spill] sm:$0xff] %v6561_v27  ;;  %v669_v27 = vsel %vm10442_vm0, %v6477_v16, %v6482_v26  ;;  %v717_v16 = vsel %vm10470_vm2, %v6508_v9, %v6499_v52  ;;  %v716_v26 = vsel %vm10470_vm2, %v6499_v52, %v6508_v9  ;;  %v751_v9 = vmul.f32 %v6358_v25, %v740_v46 }
 0x224   : > { %10708 = vst [vmem:[#allocation60_spill] sm:$0xff] %v6563_v61  ;;  %v692_v61 = vsel %vm10398_vm1, %v6497_v51, %v690_v2  ;;  %v679_v38 = vmul.f32 %v6327_v7, %v669_v27  ;;  %v1335_v51 = vld [vmem:[#allocation8 + $0x20] sm:$0xff]  ;;  %v726_v6 = vmul.f32 %v6348_v19, %v717_v16  ;;  %v727_v27 = vmul.f32 %v6350_v20, %v716_v26  ;;  %v6614_v19 = vpop.permute.xlu1 %927 }
 0x225   : > { %1318 = vst [vmem:[#allocation1] ss:$2 sm:$0xff] %v1316_v41  ;;  %v703_v41 = vmul.f32 %v6343_v15, %v692_v61  ;;  %v741_v2 = vsel %vm10397_vm3, %v6518_v48, %v6510_v23  ;;  %v765_v61 = vsel %vm10396_vm4, %v6523_v57, %v6520_v33  ;;  %v764_v23 = vsel %vm10396_vm4, %v6520_v33, %v6523_v57  ;;  %v1354_v48 = vld [vmem:[#allocation8 + $0x28] sm:$0xff] }
 0x226   : > { %v750_v20 = vmul.f32 %v6356_v24, %v741_v2  ;;  %v774_v24 = vmul.f32 %v6363_v29, %v765_v61  ;;  %v788_v33 = vsel %vm10394_vm5, %v6527_v1, %v6529_v17  ;;  %vm10461_vm4 = vcmp.lt.s32.totalorder %v6557_v56, 96 }
 0x227   : > { %v705_v15 = vadd.f32 %v703_v41, %v679_v38  ;;  %v728_v38 = vadd.f32 %v726_v6, %v704_v0  ;;  %v789_v0 = vsel %vm10394_vm5, %v6529_v17, %v6527_v1  ;;  %v812_v1 = vsel %vm10395_vm6, %v6531_v18, %v6537_v58  ;;  %v6661_v17 = vpop.permute.xlu0 %988 }
 0x228   : > { %v798_v57 = vmul.f32 %v6370_v34, %v789_v0  ;;  %v1373_v34 = vld [vmem:[#allocation8 + $0x30] sm:$0xff]  ;;  %vm10446_vm5 = vcmp.lt.s32.totalorder %v6557_v56, 98  ;;  %vm10399_vm3 = vcmp.lt.s32.totalorder %v6557_v56, 95  ;;  %vm10406_vm1 = vcmp.lt.s32.totalorder %v6557_v56, 94 }
 0x229   : > { %v729_v52 = vadd.f32 %v727_v27, %v705_v15  ;;  %v752_v41 = vadd.f32 %v750_v20, %v728_v38  ;;  %v799_v15 = vmul.f32 %v6372_v35, %v788_v33  ;;  %vm1275_vm0 = vcmp.lt.s32.totalorder %v6557_v56, 22 }
 0x22a   : > { %v6654_v2 = vpop.permute.xlu2 %986 }
 0x22b   : > { %v753_v26 = vadd.f32 %v751_v9, %v729_v52  ;;  %v776_v29 = vadd.f32 %v774_v24, %v752_v41  ;;  %v823_v9 = vmul.f32 %v6379_v40, %v812_v1  ;;  %v861_v40 = vsel %vm10392_vm8, %v6549_v42, %v6547_v63 }
 0x22c   : > { %v6600_v14 = vld.sshfl [vmem:[#allocation1] sm:$0xff pattern:$0x75316420]  ;;  %v6602_v7 = vld.sshfl [vmem:[#allocation1 + $0x8] sm:$0xff pattern:$0x75316420]  ;;  %v6652_v27 = vpop.permute.xlu1 %964  ;;  %v860_v41 = vsel %vm10392_vm8, %v6547_v63, %v6549_v42  ;;  %v885_v63 = vsel %vm10393_vm9, %v6572_v11, %v6555_v62 }
 0x22d   : > { %1337 = vst [vmem:[#allocation1] ss:$2 sm:$0xff] %v1335_v51  ;;  %v775_v51 = vmul.f32 %v6365_v30, %v764_v23  ;;  %v813_v30 = vsel %vm10395_vm6, %v6537_v58, %v6531_v18  ;;  %v800_v35 = vadd.f32 %v798_v57, %v776_v29  ;;  %v837_v58 = vsel %vm10456_vm7, %v6541_v36, %v6539_v32 }
 0x22e   : > { %v822_v46 = vmul.f32 %v6377_v39, %v813_v30  ;;  %v836_v18 = vsel %vm10456_vm7, %v6539_v32, %v6541_v36  ;;  %v846_v61 = vmul.f32 %v6384_v44, %v837_v58  ;;  %v1392_v32 = vld [vmem:[#allocation8 + $0x38] sm:$0xff]  ;;  %v871_v33 = vmul.f32 %v6393_v50, %v860_v41 }
 0x22f   : > { %v777_v6 = vadd.f32 %v775_v51, %v753_v26  ;;  %v6703_v42 = vpop.permute.xlu0 %1034  ;;  %v894_v57 = vmul.f32 %v6398_v54, %v885_v63  ;;  %v908_v30 = vsel %vm10391_vm10, %v6574_v43, %v6584_v53  ;;  %vm10586_vm8 = vcmp.lt.s32.totalorder %v6557_v56, 111 }
 0x230   : > { %v824_v39 = vadd.f32 %v822_v46, %v800_v35  ;;  %v919_v35 = vmul.f32 %v6407_v60, %v908_v30  ;;  %v933_v46 = vsel %vm931_vm11, %v6616_v47, %v6614_v19  ;;  %vm10445_vm6 = vcmp.lt.s32.totalorder %v6557_v56, 97 }
 0x231   : > { %v801_v52 = vadd.f32 %v799_v15, %v777_v6  ;;  %v909_v15 = vsel %vm10391_vm10, %v6584_v53, %v6574_v43  ;;  %v942_v58 = vmul.f32 %v6413_v3, %v933_v46  ;;  %v968_v3 = vsel %vm966_vm12, %v6652_v27, %v6624_v10 }
 0x232   : > { %v6691_v24 = vpop.permute.xlu2 %1012  ;;  %v848_v44 = vadd.f32 %v846_v61, %v824_v39  ;;  %v918_v1 = vmul.f32 %v6405_v59, %v909_v15  ;;  %v932_v59 = vsel %vm931_vm11, %v6614_v19, %v6616_v47  ;;  %v1430_v39 = vld [vmem:[#allocation8 + $0x48] sm:$0xff]  ;;  %v967_v19 = vsel %vm966_vm12, %v6624_v10, %v6652_v27  ;;  %v1448_v27 = vld [vmem:[#allocation8 + $0x50] sm:$0xff] }
 0x233   : > { %v825_v23 = vadd.f32 %v823_v9, %v801_v52  ;;  %v943_v60 = vmul.f32 %v6415_v4, %v932_v59  ;;  %v992_v10 = vsel %vm990_vm13, %v6661_v17, %v6654_v2  ;;  %vm1062_vm10 = vcmp.lt.s32.totalorder %v6557_v56, 112 }
 0x234   : > { %v6632_v16 = vld.sshfl [vmem:[#allocation1] sm:$0xff pattern:$0x75316420]  ;;  %v6634_v25 = vld.sshfl [vmem:[#allocation1 + $0x8] sm:$0xff pattern:$0x75316420]  ;;  %v6689_v36 = vpop.permute.xlu1 %1010 }
 0x235   : > { %1356 = vst [vmem:[#allocation1] ss:$2 sm:$0xff] %v1354_v48  ;;  %v847_v48 = vmul.f32 %v6386_v45, %v836_v18  ;;  %v870_v45 = vmul.f32 %v6391_v49, %v861_v40  ;;  %v884_v49 = vsel %vm10393_vm9, %v6555_v62, %v6572_v11  ;;  %v1411_v62 = vld [vmem:[#allocation8 + $0x40] sm:$0xff]  ;;  %vm10578_vm9 = vcmp.lt.s32.totalorder %v6557_v56, 110 }
 0x236   : > { %v895_v50 = vmul.f32 %v6400_v55, %v884_v49  ;;  %v1002_v49 = vmul.f32 %v6433_v22, %v992_v10 }
 0x237   : > { %v849_v0 = vadd.f32 %v847_v48, %v825_v23  ;;  %v872_v29 = vadd.f32 %v870_v45, %v848_v44  ;;  %v1061_v43 = vpop.permute.xlu0 %1060  ;;  %v977_v44 = vmul.f32 %v6424_v12, %v967_v19 }
 0x239   : > { %v873_v6 = vadd.f32 %v871_v33, %v849_v0  ;;  %v896_v11 = vadd.f32 %v894_v57, %v872_v29  ;;  %v978_v0 = vmul.f32 %v6426_v13, %v968_v3  ;;  %v991_v33 = vsel %vm990_vm13, %v6654_v2, %v6661_v17 }
 0x23a   : > { %v1059_v53 = vpop.permute.xlu2 %1058  ;;  %v1001_v12 = vmul.f32 %v6431_v21, %v991_v33  ;;  %v1015_v29 = vsel %vm1014_vm14, %v6689_v36, %v6691_v24  ;;  %v1016_v21 = vsel %vm1014_vm14, %v6691_v24, %v6689_v36  ;;  %v1467_v36 = vld [vmem:[#allocation8 + $0x58] sm:$0xff]  ;;  %v10714_v33 = vld [vmem:[#allocation39_spill] sm:$0xff] }
 0x23b   : > { %v897_v55 = vadd.f32 %v895_v50, %v873_v6  ;;  %v920_v9 = vadd.f32 %v918_v1, %v896_v11  ;;  %v1025_v50 = vmul.f32 %v6438_v28, %v1015_v29  ;;  %v1026_v15 = vmul.f32 %v6440_v31, %v1016_v21 }
 0x23c   : > { %v6664_v38 = vld.sshfl [vmem:[#allocation1] sm:$0xff pattern:$0x75316420]  ;;  %v6666_v20 = vld.sshfl [vmem:[#allocation1 + $0x8] sm:$0xff pattern:$0x75316420]  ;;  %v1037_v52 = vpop.permute.xlu1 %1036  ;;  %v1063_v46 = vsel %vm1062_vm10, %v1059_v53, %v1061_v43 }
 0x23d   : > { %1375 = vst [vmem:[#allocation1] ss:$2 sm:$0xff] %v1373_v34  ;;  %v921_v18 = vadd.f32 %v919_v35, %v897_v55  ;;  %v944_v61 = vadd.f32 %v942_v58, %v920_v9  ;;  %v1039_v30 = vsel %vm1038_vm15, %v6703_v42, %v1037_v52  ;;  %v10709_v55 = vld [vmem:[#allocation34_spill] sm:$0xff] }
 0x23e   : > { %v1049_v11 = vmul.f32 %v6445_v37, %v1039_v30 }
 0x23f   : > { %v945_v40 = vadd.f32 %v943_v60, %v921_v18  ;;  %v1107_v4 = vpop.permute.xlu0 %1106  ;;  %v10710_v18 = vld [vmem:[#allocation35_spill] sm:$0xff] }
 0x240   : > { %v1073_v60 = vmul.f32 %v10710_v18, %v1063_v46  ;;  %v10719_v46 = vld [vmem:[#allocation44_spill] sm:$0xff]  ;;  %v10720_v18 = vld [vmem:[#allocation49_spill] sm:$0xff] }
 0x241   : > { %v956_v45 = vadd.f32 %v6419_v8, %v945_v40  ;;  %v10711_v40 = vld [vmem:[#allocation36_spill] sm:$0xff] }
 0x242   : > { %v1085_v47 = vpop.permute.xlu2 %1084 }
 0x243   : > { %v980_v13 = vadd.f32 %v978_v0, %v956_v45  ;;  %v10713_v45 = vld [vmem:[#allocation38_spill] sm:$0xff] }
 0x244   : > { %v6694_v26 = vld.sshfl [vmem:[#allocation1] sm:$0xff pattern:$0x75316420]  ;;  %v6696_v51 = vld.sshfl [vmem:[#allocation1 + $0x8] sm:$0xff pattern:$0x75316420]  ;;  %v1083_v41 = vpop.permute.xlu1 %1082 }
 0x245   : > { %1394 = vst [vmem:[#allocation1] ss:$2 sm:$0xff] %v1392_v32  ;;  %v955_v32 = vadd.f32 %v6417_v5, %v944_v61  ;;  %v1004_v22 = vadd.f32 %v1002_v49, %v980_v13  ;;  %v1087_v37 = vsel %vm10586_vm8, %v1083_v41, %v1085_v47 }
 0x247   : > { %v979_v5 = vadd.f32 %v977_v44, %v955_v32  ;;  %v1133_v17 = vpop.permute.xlu0 %1132  ;;  %v1028_v31 = vadd.f32 %v1026_v15, %v1004_v22  ;;  %v1486_v44 = vld [vmem:[#allocation8 + $0x60] sm:$0xff] }
 0x248   : > { %v10717_v15 = vld [vmem:[#allocation42_spill] sm:$0xff] }
 0x249   : > { %v1003_v6 = vadd.f32 %v1001_v12, %v979_v5 }
 0x24a   : > { %v1131_v2 = vpop.permute.xlu2 %1130 }
 0x24b   : > { %v1027_v24 = vadd.f32 %v1025_v50, %v1003_v6  ;;  %v10716_v50 = vld [vmem:[#allocation41_spill] sm:$0xff] }
 0x24c   : > { %v6722_v54 = vld.sshfl [vmem:[#allocation1] sm:$0xff pattern:$0x75316420]  ;;  %v6724_v34 = vld.sshfl [vmem:[#allocation1 + $0x8] sm:$0xff pattern:$0x75316420]  ;;  %v1109_v57 = vpop.permute.xlu1 %1108 }
 0x24d   : > { %1413 = vst [vmem:[#allocation1] ss:$2 sm:$0xff] %v1411_v62  ;;  %v1040_v62 = vsel %vm1038_vm15, %v1037_v52, %v6703_v42  ;;  %v1064_v52 = vsel %vm1062_vm10, %v1061_v43, %v1059_v53  ;;  %v1051_v58 = vadd.f32 %v1049_v11, %v1027_v24  ;;  %v1111_v53 = vsel %vm10578_vm9, %v1107_v4, %v1109_v57  ;;  %v10712_v43 = vld [vmem:[#allocation37_spill] sm:$0xff]  ;;  %v10718_v24 = vld [vmem:[#allocation43_spill] sm:$0xff] }
 0x24e   : > { %v1050_v35 = vmul.f32 %v10709_v55, %v1040_v62  ;;  %v1074_v19 = vmul.f32 %v10711_v40, %v1064_v52  ;;  %v1097_v3 = vmul.f32 %v10712_v43, %v1087_v37  ;;  %v1112_v32 = vsel %vm10578_vm9, %v1109_v57, %v1107_v4  ;;  %v10715_v4 = vld [vmem:[#allocation40_spill] sm:$0xff]  ;;  %v1505_v40 = vld [vmem:[#allocation8 + $0x68] sm:$0xff] }
 0x24f   : > { %v1179_v9 = vpop.permute.xlu0 %1178  ;;  %v1121_v10 = vmul.f32 %v10714_v33, %v1111_v53  ;;  %v1122_v49 = vmul.f32 %v10715_v4, %v1112_v32  ;;  %v10723_v43 = vld [vmem:[#allocation51_spill] sm:$0xff]  ;;  %v10724_v32 = vld [vmem:[#allocation52_spill] sm:$0xff] }
 0x250   : > { %v1052_v61 = vadd.f32 %v1050_v35, %v1028_v31 }
 0x252   : > { %v1157_v59 = vpop.permute.xlu2 %1156  ;;  %v1076_v13 = vadd.f32 %v1074_v19, %v1052_v61 }
 0x254   : > { %v6738_v23 = vld.sshfl [vmem:[#allocation1] sm:$0xff pattern:$0x75316420]  ;;  %v6740_v48 = vld.sshfl [vmem:[#allocation1 + $0x8] sm:$0xff pattern:$0x75316420]  ;;  %v1155_v42 = vpop.permute.xlu1 %1154 }
 0x255   : > { %1432 = vst [vmem:[#allocation1] ss:$2 sm:$0xff] %v1430_v39  ;;  %v1088_v39 = vsel %vm10586_vm8, %v1085_v47, %v1083_v41  ;;  %v1135_v47 = vsel %vm10446_vm5, %v1131_v2, %v1133_v17  ;;  %v1075_v41 = vadd.f32 %v1073_v60, %v1051_v58  ;;  %v1159_v29 = vsel %vm10445_vm6, %v1155_v42, %v1157_v59 }
 0x256   : > { %v1098_v0 = vmul.f32 %v10713_v45, %v1088_v39  ;;  %v1145_v22 = vmul.f32 %v10716_v50, %v1135_v47  ;;  %v1169_v11 = vmul.f32 %v10718_v24, %v1159_v29  ;;  %v10721_v39 = vld [vmem:[#allocation50_spill] sm:$0xff]  ;;  %v1543_v24 = vld [vmem:[#allocation8 + $0x78] sm:$0xff] }
 0x257   : > { %v1099_v6 = vadd.f32 %v1097_v3, %v1075_v41 }
 0x25a   : > { %v1203_v21 = vpop.permute.xlu2 %1202 }
 0x25c   : > { %v6765_v63 = vld.sshfl [vmem:[#allocation1] sm:$0xff pattern:$0x75316420]  ;;  %v6767_v8 = vld.sshfl [vmem:[#allocation1 + $0x8] sm:$0xff pattern:$0x75316420]  ;;  %v1181_v57 = vpop.permute.xlu1 %1180 }
 0x25d   : > { %1450 = vst [vmem:[#allocation1] ss:$2 sm:$0xff] %v1448_v27  ;;  %v1136_v27 = vsel %vm10446_vm5, %v1133_v17, %v1131_v2  ;;  %v1160_v2 = vsel %vm10445_vm6, %v1157_v59, %v1155_v42  ;;  %v1100_v17 = vadd.f32 %v1098_v0, %v1076_v13  ;;  %v1205_v62 = vpop.permute.xlu0 %1204  ;;  %v1183_v31 = vsel %vm10461_vm4, %v1179_v9, %v1181_v57 }
 0x25e   : > { %v1146_v30 = vmul.f32 %v10717_v15, %v1136_v27  ;;  %v1184_v55 = vsel %vm10461_vm4, %v1181_v57, %v1179_v9  ;;  %v1170_v52 = vmul.f32 %v10719_v46, %v1160_v2  ;;  %v1207_v59 = vsel %vm10399_vm3, %v1203_v21, %v1205_v62  ;;  %v10727_v57 = vld [vmem:[#allocation54_spill] sm:$0xff]  ;;  %v10728_v2 = vld [vmem:[#allocation47_spill] sm:$0xff] }
 0x25f   : > { %v1124_v35 = vadd.f32 %v1122_v49, %v1100_v17  ;;  %v1208_v42 = vsel %vm10399_vm3, %v1205_v62, %v1203_v21  ;;  %v1193_v60 = vmul.f32 %v10720_v18, %v1183_v31  ;;  %v1194_v61 = vmul.f32 %v10721_v39, %v1184_v55  ;;  %v10726_v49 = vld [vmem:[#allocation53_spill] sm:$0xff]  ;;  %v1562_v55 = vld [vmem:[#allocation8 + $0x80] sm:$0xff] }
 0x260   : > { %v1217_v3 = vmul.f32 %v10723_v43, %v1207_v59  ;;  %vm10566_vm3 = vcmask 1043456   ;;  %v1657_v43 = vld [vmem:[#allocation8 + $0xa8] sm:$0xff]  ;;  %vm1257_vm6 = vcmp.lt.s32.totalorder %v6557_v56, 25  ;;  %vm10457_vm5 = vcmp.lt.s32.totalorder %v6557_v56, 19 }
 0x261   : > { %v1148_v58 = vadd.f32 %v1146_v30, %v1124_v35 }
 0x262   : > { %v1229_v45 = vpop.permute.xlu2 %1228 }
 0x263   : > { %v1172_v9 = vadd.f32 %v1170_v52, %v1148_v58  ;;  %v1581_v52 = vld [vmem:[#allocation8 + $0x88] sm:$0xff] }
 0x264   : > { %v6790_v28 = vld.sshfl [vmem:[#allocation1] sm:$0xff pattern:$0x75316420]  ;;  %v6792_v1 = vld.sshfl [vmem:[#allocation1 + $0x8] sm:$0xff pattern:$0x75316420] }
 0x265   : > { %1469 = vst [vmem:[#allocation1] ss:$2 sm:$0xff] %v1467_v36  ;;  %v1123_v36 = vadd.f32 %v1121_v10, %v1099_v6  ;;  %v1196_v41 = vadd.f32 %v1194_v61, %v1172_v9 }
 0x267   : > { %v1147_v37 = vadd.f32 %v1145_v22, %v1123_v36  ;;  %v1524_v22 = vld [vmem:[#allocation8 + $0x70] sm:$0xff]  ;;  %v2180_v36 = vld [vmem:[%s10731_s26] sm:$0x3]  ;;  %s6018_s26 = smov 22  }
 0x269   : > { %v1171_v19 = vadd.f32 %v1169_v11, %v1147_v37 }
 0x26b   : > { %v1195_v47 = vadd.f32 %v1193_v60, %v1171_v19  ;;  %v1619_v60 = vld [vmem:[#allocation8 + $0x98] sm:$0xff] }
 0x26c   : > { %v6819_v5 = vld.sshfl [vmem:[#allocation1] sm:$0xff pattern:$0x75316420]  ;;  %v6821_v12 = vld.sshfl [vmem:[#allocation1 + $0x8] sm:$0xff pattern:$0x75316420] }
 0x26d   : > { %1488 = vst [vmem:[#allocation1] ss:$2 sm:$0xff] %v1486_v44  ;;  %v1218_v44 = vmul.f32 %v10724_v32, %v1208_v42  ;;  %v1219_v13 = vadd.f32 %v1217_v3, %v1195_v47  ;;  %v1600_v42 = vld [vmem:[#allocation8 + $0x90] sm:$0xff] }
 0x26f   : > { %v1227_v33 = vpop.permute.xlu1 %1226  ;;  %v1220_v4 = vadd.f32 %v1218_v44, %v1196_v41  ;;  %v1676_v44 = vld [vmem:[#allocation8 + $0xb0] sm:$0xff]  ;;  %v1695_v41 = vld [vmem:[#allocation8 + $0xb8] sm:$0xff] }
 0x270   : > { %v1231_v10 = vsel %vm10406_vm1, %v1227_v33, %v1229_v45  ;;  %v1232_v27 = vsel %vm10406_vm1, %v1229_v45, %v1227_v33  ;;  %vm2187_vm1 = vcmask 31744  }
 0x271   : > { %v1241_v29 = vmul.f32 %v10726_v49, %v1231_v10  ;;  %v1242_v21 = vmul.f32 %v10727_v57, %v1232_v27  ;;  %v1707_v27 = vld [vmem:[#allocation8 + $0xc0] sm:$0xff] }
 0x273   : > { %v1243_v6 = vadd.f32 %v1241_v29, %v1219_v13  ;;  %v1244_v50 = vadd.f32 %v1242_v21, %v1220_v4 }
 0x274   : > { %v6844_v53 = vld.sshfl [vmem:[#allocation1] sm:$0xff pattern:$0x75316420]  ;;  %v6849_v0 = vld.sshfl [vmem:[#allocation1 + $0x8] sm:$0xff pattern:$0x75316420] }
 0x275   : > { %10722 = vst [vmem:[#allocation34_spill] sm:$0xff] %v6844_v53  ;;  %v6858_v17 = vadd.f32 %v10728_v2, %v1243_v6  ;;  %v6861_v15 = vadd.f32 %v10728_v2, %v1244_v50 }
 0x276   : > { %10725 = vst [vmem:[#allocation35_spill] sm:$0xff] %v6849_v0  ;;  %v10791_v0 = vld [vmem:[#allocation55_spill] sm:$0xff] }
 0x277   : > { %1507 = vst [vmem:[#allocation1] ss:$2 sm:$0xff] %v1505_v40  ;;  %1255 = vrot.lane.b32.xlu2 %v6861_v15, %s6016_s9  ;;  %5432 = vmatpush.msk.msra.mxu1 %vm10566_vm3, %v6861_v15  ;;  %v1638_v40 = vld [vmem:[#allocation8 + $0xa0] sm:$0xff] }
 0x278   : > { %1290 = vrot.lane.b32.xlu0 %v6858_v17, %s10423_s3  ;;  %1253 = vrot.lane.b32.xlu1 %v6858_v17, %s6016_s9  ;;  %s6019_s9 = smov 10  }
 0x279   : > { %5430 = vmatpush.msk.msra.mxu0 %vm10566_vm3, %v6858_v17  ;;  %5433 = vmatmul.msk.f32.vlgmr.msra.gmra.mxu1 %vm2187_vm1, %v2180_v36 }
 0x27a   : > { %5431 = vmatmul.msk.f32.vlgmr.msra.gmra.mxu0 %vm2187_vm1, %v2180_v36 }
 0x27e   : > { %v6863_v30 = vld.sshfl [vmem:[#allocation1] sm:$0xff pattern:$0x75316420]  ;;  %v6865_v62 = vld.sshfl [vmem:[#allocation1 + $0x8] sm:$0xff pattern:$0x75316420] }
 0x27f   : > { %10729 = vst [vmem:[#allocation36_spill] sm:$0xff] %v6863_v30  ;;  %1273 = vrot.lane.b32.xlu2 %v6861_v15, %s6018_s26 }
 0x280   : > { %10730 = vst [vmem:[#allocation37_spill] sm:$0xff] %v6865_v62  ;;  %1311 = vrot.lane.b32.xlu0 %v6861_v15, %s10413_s16  ;;  %1271 = vrot.lane.b32.xlu1 %v6858_v17, %s6018_s26  ;;  %s6022_s26 = smov 102  }
 0x281   : > { %1526 = vst [vmem:[#allocation1] ss:$2 sm:$0xff] %v1524_v22 }
 0x287   : > { %1309 = vrot.lane.b32.xlu2 %v6858_v17, %s10413_s16  ;;  %s10419_s16 = smov 99  }
 0x288   : > { %v6880_v11 = vld.sshfl [vmem:[#allocation1] sm:$0xff pattern:$0x75316420]  ;;  %v6882_v31 = vld.sshfl [vmem:[#allocation1 + $0x8] sm:$0xff pattern:$0x75316420]  ;;  %1346 = vrot.lane.b32.xlu0 %v6858_v17, %s6019_s9  ;;  %1292 = vrot.lane.b32.xlu1 %v6861_v15, %s10423_s3 }
 0x289   : > { %10732 = vst [vmem:[#allocation38_spill] sm:$0xff] %v6880_v11  ;;  %s6037_s3 = smov 6  }
 0x28a   : > { %10733 = vst [vmem:[#allocation39_spill] sm:$0xff] %v6882_v31  ;;  %v10789_v31 = vld [vmem:[#allocation57_spill] sm:$0xff] }
 0x28b   : > { %1545 = vst [vmem:[#allocation1] ss:$2 sm:$0xff] %v1543_v24 }
 0x28f   : > { %1329 = vrot.lane.b32.xlu2 %v6861_v15, %s10411_s5 }
 0x290   : > { %1367 = vrot.lane.b32.xlu0 %v6861_v15, %s6021_s25  ;;  %1327 = vrot.lane.b32.xlu1 %v6858_v17, %s10411_s5  ;;  %s6023_s5 = smov 105  }
 0x292   : > { %v6888_v35 = vld.sshfl [vmem:[#allocation1] sm:$0xff pattern:$0x75316420]  ;;  %v6890_v46 = vld.sshfl [vmem:[#allocation1 + $0x8] sm:$0xff pattern:$0x75316420] }
 0x293   : > { %10734 = vst [vmem:[#allocation40_spill] sm:$0xff] %v6888_v35  ;;  %v1840_v35 = vld [vmem:[#allocation8 + $0xf8] sm:$0xff] }
 0x294   : > { %10735 = vst [vmem:[#allocation41_spill] sm:$0xff] %v6890_v46 }
 0x295   : > { %1564 = vst [vmem:[#allocation1] ss:$2 sm:$0xff] %v1562_v55 }
 0x297   : > { %1365 = vrot.lane.b32.xlu2 %v6858_v17, %s6021_s25  ;;  %s6027_s25 = smov 57  }
 0x298   : > { %1403 = vrot.lane.b32.xlu0 %v6858_v17, %s6022_s26  ;;  %1348 = vrot.lane.b32.xlu1 %v6861_v15, %s6019_s9  ;;  %s10417_s9 = smov 93  }
 0x29c   : > { %v6897_v37 = vld.sshfl [vmem:[#allocation1] sm:$0xff pattern:$0x75316420]  ;;  %v6899_v59 = vld.sshfl [vmem:[#allocation1 + $0x8] sm:$0xff pattern:$0x75316420] }
 0x29d   : > { %10736 = vst [vmem:[#allocation42_spill] sm:$0xff] %v6897_v37 }
 0x29e   : > { %10737 = vst [vmem:[#allocation43_spill] sm:$0xff] %v6899_v59  ;;  %v1821_v59 = vld [vmem:[#allocation8 + $0xf0] sm:$0xff] }
 0x29f   : > { %1583 = vst [vmem:[#allocation1] ss:$2 sm:$0xff] %v1581_v52  ;;  %1386 = vrot.lane.b32.xlu2 %v6861_v15, %s6023_s5 }
 0x2a0   : > { %1424 = vrot.lane.b32.xlu0 %v6861_v15, %s10419_s16  ;;  %1384 = vrot.lane.b32.xlu1 %v6858_v17, %s6023_s5  ;;  %s6026_s5 = smov 90  }
 0x2a6   : > { %v6906_v58 = vld.sshfl [vmem:[#allocation1] sm:$0xff pattern:$0x75316420]  ;;  %v6908_v18 = vld.sshfl [vmem:[#allocation1 + $0x8] sm:$0xff pattern:$0x75316420] }
 0x2a7   : > { %10738 = vst [vmem:[#allocation44_spill] sm:$0xff] %v6906_v58  ;;  %1422 = vrot.lane.b32.xlu2 %v6858_v17, %s10419_s16  ;;  %s10490_s16 = smov 45  }
 0x2a8   : > { %10739 = vst [vmem:[#allocation49_spill] sm:$0xff] %v6908_v18  ;;  %1459 = vrot.lane.b32.xlu0 %v6858_v17, %s10417_s9  ;;  %1405 = vrot.lane.b32.xlu1 %v6861_v15, %s6022_s26  ;;  %s6028_s26 = smov 87  }
 0x2a9   : > { %1602 = vst [vmem:[#allocation1] ss:$2 sm:$0xff] %v1600_v42 }
 0x2af   : > { %1443 = vrot.lane.b32.xlu2 %v6861_v15, %s10415_s7 }
 0x2b0   : > { %v6913_v39 = vld.sshfl [vmem:[#allocation1] sm:$0xff pattern:$0x75316420]  ;;  %v6915_v61 = vld.sshfl [vmem:[#allocation1 + $0x8] sm:$0xff pattern:$0x75316420]  ;;  %1480 = vrot.lane.b32.xlu0 %v6861_v15, %s6026_s5  ;;  %1441 = vrot.lane.b32.xlu1 %v6858_v17, %s10415_s7 }
 0x2b1   : > { %10740 = vst [vmem:[#allocation50_spill] sm:$0xff] %v6913_v39  ;;  %s6029_s7 = smov 54  }
 0x2b2   : > { %10741 = vst [vmem:[#allocation51_spill] sm:$0xff] %v6915_v61 }
 0x2b3   : > { %1621 = vst [vmem:[#allocation1] ss:$2 sm:$0xff] %v1619_v60 }
 0x2b7   : > { %1478 = vrot.lane.b32.xlu2 %v6858_v17, %s6026_s5  ;;  %s10496_s5 = smov 48  }
 0x2b8   : > { %1516 = vrot.lane.b32.xlu0 %v6858_v17, %s6027_s25  ;;  %1461 = vrot.lane.b32.xlu1 %v6861_v15, %s10417_s9  ;;  %s10474_s9 = smov 51  }
 0x2ba   : > { %v6921_v19 = vld.sshfl [vmem:[#allocation1] sm:$0xff pattern:$0x75316420]  ;;  %v6923_v9 = vld.sshfl [vmem:[#allocation1 + $0x8] sm:$0xff pattern:$0x75316420] }
 0x2bb   : > { %10742 = vst [vmem:[#allocation52_spill] sm:$0xff] %v6921_v19 }
 0x2bc   : > { %10743 = vst [vmem:[#allocation53_spill] sm:$0xff] %v6923_v9  ;;  %v1783_v9 = vld [vmem:[#allocation8 + $0xe0] sm:$0xff] }
 0x2bd   : > { %1640 = vst [vmem:[#allocation1] ss:$2 sm:$0xff] %v1638_v40 }
 0x2bf   : > { %1499 = vrot.lane.b32.xlu2 %v6861_v15, %s6028_s26 }
 0x2c0   : > { %1537 = vrot.lane.b32.xlu0 %v6861_v15, %s6029_s7  ;;  %1497 = vrot.lane.b32.xlu1 %v6858_v17, %s6028_s26  ;;  %s6035_s26 = smov 9  }
 0x2c4   : > { %v6930_v3 = vld.sshfl [vmem:[#allocation1] sm:$0xff pattern:$0x75316420]  ;;  %v6932_v32 = vld.sshfl [vmem:[#allocation1 + $0x8] sm:$0xff pattern:$0x75316420] }
 0x2c5   : > { %10744 = vst [vmem:[#allocation54_spill] sm:$0xff] %v6930_v3 }
 0x2c6   : > { %10745 = vst [vmem:[#allocation47_spill] sm:$0xff] %v6932_v32 }
 0x2c7   : > { %1659 = vst [vmem:[#allocation1] ss:$2 sm:$0xff] %v1657_v43  ;;  %1535 = vrot.lane.b32.xlu2 %v6858_v17, %s6029_s7  ;;  %s6033_s7 = smov 39  }
 0x2c8   : > { %1573 = vrot.lane.b32.xlu0 %v6858_v17, %s10496_s5  ;;  %1518 = vrot.lane.b32.xlu1 %v6861_v15, %s6027_s25  ;;  %s6034_s25 = smov 42  }
 0x2ce   : > { %v6939_v45 = vld.sshfl [vmem:[#allocation1] sm:$0xff pattern:$0x75316420]  ;;  %v6941_v47 = vld.sshfl [vmem:[#allocation1 + $0x8] sm:$0xff pattern:$0x75316420] }
 0x2cf   : > { %10746 = vst [vmem:[#allocation61_spill] sm:$0xff] %v6939_v45  ;;  %1556 = vrot.lane.b32.xlu2 %v6861_v15, %s10474_s9 }
 0x2d0   : > { %10747 = vst [vmem:[#allocation62_spill] sm:$0xff] %v6941_v47  ;;  %1594 = vrot.lane.b32.xlu0 %v6861_v15, %s10490_s16  ;;  %1554 = vrot.lane.b32.xlu1 %v6858_v17, %s10474_s9 }
 0x2d1   : > { %1678 = vst [vmem:[#allocation1] ss:$2 sm:$0xff] %v1676_v44  ;;  %v6968_v49 = vpop.permute.xlu2 %1255 }
 0x2d7   : > { %1592 = vrot.lane.b32.xlu2 %v6858_v17, %s10490_s16 }
 0x2d8   : > { %v6947_v33 = vld.sshfl [vmem:[#allocation1] sm:$0xff pattern:$0x75316420]  ;;  %v6949_v10 = vld.sshfl [vmem:[#allocation1 + $0x8] sm:$0xff pattern:$0x75316420]  ;;  %1630 = vrot.lane.b32.xlu0 %v6858_v17, %s6033_s7  ;;  %1575 = vrot.lane.b32.xlu1 %v6861_v15, %s10496_s5 }
 0x2d9   : > { %10748 = vst [vmem:[#allocation63_spill] sm:$0xff] %v6947_v33  ;;  %v6975_v29 = vpop.permute.xlu2 %1273 }
 0x2da   : > { %10749 = vst [vmem:[#allocation64_spill] sm:$0xff] %v6949_v10 }
 0x2db   : > { %1697 = vst [vmem:[#allocation1] ss:$2 sm:$0xff] %v1695_v41  ;;  %v1726_v41 = vld [vmem:[#allocation8 + $0xc8] sm:$0xff] }
 0x2df   : > { %1613 = vrot.lane.b32.xlu2 %v6861_v15, %s6034_s25 }
 0x2e0   : > { %1651 = vrot.lane.b32.xlu0 %v6861_v15, %s6035_s26  ;;  %1611 = vrot.lane.b32.xlu1 %v6858_v17, %s6034_s25  ;;  %s10425_s25 = smov 125  }
 0x2e1   : > { %v6980_v57 = vpop.permute.xlu2 %1309 }
 0x2e2   : > { %v6954_v13 = vld.sshfl [vmem:[#allocation1] sm:$0xff pattern:$0x75316420]  ;;  %v6956_v4 = vld.sshfl [vmem:[#allocation1 + $0x8] sm:$0xff pattern:$0x75316420] }
 0x2e3   : > { %10750 = vst [vmem:[#allocation65_spill] sm:$0xff] %v6954_v13 }
 0x2e4   : > { %10751 = vst [vmem:[#allocation66_spill] sm:$0xff] %v6956_v4 }
 0x2e5   : > { %1709 = vst [vmem:[#allocation1] ss:$2 sm:$0xff] %v1707_v27 }
 0x2e7   : > { %1649 = vrot.lane.b32.xlu2 %v6858_v17, %s6035_s26  ;;  %s6041_s26 = smov 89  }
 0x2e8   : > { %1687 = vrot.lane.b32.xlu0 %v6858_v17, %s10443_s11  ;;  %1632 = vrot.lane.b32.xlu1 %v6861_v15, %s6033_s7  ;;  %s6039_s7 = smov 119  }
 0x2e9   : > { %v6986_v21 = vpop.permute.xlu2 %1329 }
 0x2ea   : > { %v6988_v6 = vpop.permute.xlu0 %1290  ;;  %v6990_v50 = vpop.permute.xlu1 %1253 }
 0x2ec   : > { %v7022_v43 = vld.sshfl [vmem:[#allocation1] sm:$0xff pattern:$0x75316420]  ;;  %v7024_v44 = vld.sshfl [vmem:[#allocation1 + $0x8] sm:$0xff pattern:$0x75316420] }
 0x2ed   : > { %10752 = vst [vmem:[#allocation67_spill] sm:$0xff] %v7022_v43 }
 0x2ee   : > { %10753 = vst [vmem:[#allocation68_spill] sm:$0xff] %v7024_v44  ;;  %v1745_v44 = vld [vmem:[#allocation8 + $0xd0] sm:$0xff] }
 0x2ef   : > { %1670 = vrot.lane.b32.xlu2 %v6861_v15, %s6037_s3  ;;  %1728 = vst [vmem:[#allocation1] ss:$2 sm:$0xff] %v1726_v41 }
 0x2f0   : > { %1720 = vrot.lane.b32.xlu0 %v6861_v15, %s10425_s25  ;;  %1668 = vrot.lane.b32.xlu1 %v6858_v17, %s6037_s3  ;;  %s6040_s3 = smov 122  }
 0x2f1   : > { %v6996_v22 = vpop.permute.xlu2 %1365 }
 0x2f2   : > { %v6998_v2 = vpop.permute.xlu0 %1311  ;;  %v7000_v36 = vpop.permute.xlu1 %1271 }
 0x2f6   : > { %v7036_v10 = vld.sshfl [vmem:[#allocation1] sm:$0xff pattern:$0x75316420]  ;;  %v7038_v43 = vld.sshfl [vmem:[#allocation1 + $0x8] sm:$0xff pattern:$0x75316420] }
 0x2f7   : > { %1718 = vrot.lane.b32.xlu2 %v6858_v17, %s10425_s25  ;;  %s10429_s25 = smov 83   ;;  %10754 = vst [vmem:[#allocation69_spill] sm:$0xff] %v7036_v10  ;;  %v1764_v10 = vld [vmem:[#allocation8 + $0xd8] sm:$0xff] }
 0x2f8   : > { %1756 = vrot.lane.b32.xlu0 %v6858_v17, %s6039_s7  ;;  %1689 = vrot.lane.b32.xlu1 %v6861_v15, %s10443_s11  ;;  %10755 = vst [vmem:[#allocation70_spill] sm:$0xff] %v7038_v43  ;;  %s6055_s11 = smov 118  }
 0x2f9   : > { %v7007_v24 = vpop.permute.xlu2 %1386  ;;  %1747 = vst [vmem:[#allocation1] ss:$2 sm:$0xff] %v1745_v44 }
 0x2fa   : > { %v7009_v55 = vpop.permute.xlu0 %1346  ;;  %v7011_v52 = vpop.permute.xlu1 %1292 }
 0x2ff   : > { %1739 = vrot.lane.b32.xlu2 %v6861_v15, %s6040_s3 }
 0x300   : > { %1777 = vrot.lane.b32.xlu0 %v6861_v15, %s6041_s26  ;;  %1737 = vrot.lane.b32.xlu1 %v6858_v17, %s6040_s3  ;;  %s6043_s3 = smov 86   ;;  %v7050_v45 = vld.sshfl [vmem:[#allocation1] sm:$0xff pattern:$0x75316420] }
 0x301   : > { %v7016_v42 = vpop.permute.xlu2 %1422  ;;  %10756 = vst [vmem:[#allocation71_spill] sm:$0xff] %v7050_v45  ;;  %v7052_v43 = vld.sshfl [vmem:[#allocation1 + $0x8] sm:$0xff pattern:$0x75316420] }
 0x302   : > { %v7018_v60 = vpop.permute.xlu0 %1367  ;;  %v7020_v40 = vpop.permute.xlu1 %1327  ;;  %10757 = vst [vmem:[#allocation72_spill] sm:$0xff] %v7052_v43 }
 0x303   : > { %1766 = vst [vmem:[#allocation1] ss:$2 sm:$0xff] %v1764_v10 }
 0x307   : > { %1775 = vrot.lane.b32.xlu2 %v6858_v17, %s6041_s26  ;;  %s10427_s26 = smov 80  }
 0x308   : > { %1813 = vrot.lane.b32.xlu0 %v6858_v17, %s10429_s25  ;;  %1758 = vrot.lane.b32.xlu1 %v6861_v15, %s6039_s7  ;;  %s6045_s7 = smov 74  }
 0x309   : > { %v7030_v27 = vpop.permute.xlu2 %1443 }
 0x30a   : > { %v7032_v4 = vpop.permute.xlu0 %1403  ;;  %v7034_v13 = vpop.permute.xlu1 %1348  ;;  %v7065_v45 = vld.sshfl [vmem:[#allocation1] sm:$0xff pattern:$0x75316420]  ;;  %v7067_v43 = vld.sshfl [vmem:[#allocation1 + $0x8] sm:$0xff pattern:$0x75316420] }
 0x30b   : > { %10758 = vst [vmem:[#allocation73_spill] sm:$0xff] %v7065_v45  ;;  %v1802_v45 = vld [vmem:[#allocation8 + $0xe8] sm:$0xff] }
 0x30c   : > { %10759 = vst [vmem:[#allocation74_spill] sm:$0xff] %v7067_v43 }
 0x30d   : > { %1785 = vst [vmem:[#allocation1] ss:$2 sm:$0xff] %v1783_v9 }
 0x30f   : > { %1796 = vrot.lane.b32.xlu2 %v6861_v15, %s6043_s3 }
 0x310   : > { %1834 = vrot.lane.b32.xlu0 %v6861_v15, %s10427_s26  ;;  %1794 = vrot.lane.b32.xlu1 %v6858_v17, %s6043_s3  ;;  %s10431_s3 = smov 77  }
 0x311   : > { %v7044_v41 = vpop.permute.xlu2 %1478 }
 0x312   : > { %v7046_v33 = vpop.permute.xlu0 %1424  ;;  %v7048_v47 = vpop.permute.xlu1 %1384 }
 0x314   : > { %v7080_v39 = vld.sshfl [vmem:[#allocation1] sm:$0xff pattern:$0x75316420]  ;;  %v7082_v43 = vld.sshfl [vmem:[#allocation1 + $0x8] sm:$0xff pattern:$0x75316420] }
 0x315   : > { %10761 = vst [vmem:[#allocation76_spill] sm:$0xff] %v7080_v39 }
 0x316   : > { %10762 = vst [vmem:[#allocation77_spill] sm:$0xff] %v7082_v43 }
 0x317   : > { %1832 = vrot.lane.b32.xlu2 %v6858_v17, %s10427_s26  ;;  %s6047_s26 = smov 71   ;;  %1804 = vst [vmem:[#allocation1] ss:$2 sm:$0xff] %v1802_v45 }
 0x318   : > { %1870 = vrot.lane.b32.xlu0 %v6858_v17, %s6045_s7  ;;  %1815 = vrot.lane.b32.xlu1 %v6861_v15, %s10429_s25  ;;  %s6048_s25 = smov 38  }
 0x319   : > { %v7059_v44 = vpop.permute.xlu2 %1499 }
 0x31a   : > { %v7061_v32 = vpop.permute.xlu0 %1459  ;;  %v7063_v3 = vpop.permute.xlu1 %1405 }
 0x31e   : > { %v7093_v37 = vld.sshfl [vmem:[#allocation1] sm:$0xff pattern:$0x75316420]  ;;  %v7095_v39 = vld.sshfl [vmem:[#allocation1 + $0x8] sm:$0xff pattern:$0x75316420] }
 0x31f   : > { %1853 = vrot.lane.b32.xlu2 %v6861_v15, %s10431_s3  ;;  %10765 = vst [vmem:[#allocation80_spill] sm:$0xff] %v7093_v37 }
 0x320   : > { %1891 = vrot.lane.b32.xlu0 %v6861_v15, %s6047_s26  ;;  %1851 = vrot.lane.b32.xlu1 %v6858_v17, %s10431_s3  ;;  %10766 = vst [vmem:[#allocation81_spill] sm:$0xff] %v7095_v39  ;;  %s6049_s3 = smov 41  }
 0x321   : > { %v7074_v10 = vpop.permute.xlu2 %1535  ;;  %1823 = vst [vmem:[#allocation1] ss:$2 sm:$0xff] %v1821_v59 }
 0x322   : > { %10760 = vst [vmem:[#allocation75_spill] sm:$0xff] %v7074_v10  ;;  %v7076_v19 = vpop.permute.xlu0 %1480  ;;  %v7078_v61 = vpop.permute.xlu1 %1441  ;;  %v1859_v10 = vld [vmem:[#allocation8 + $0x100] sm:$0xff] }
 0x327   : > { %1889 = vrot.lane.b32.xlu2 %v6858_v17, %s6047_s26  ;;  %s10488_s26 = smov 35  }
 0x328   : > { %1927 = vrot.lane.b32.xlu0 %v6858_v17, %s6048_s25  ;;  %1872 = vrot.lane.b32.xlu1 %v6861_v15, %s6045_s7  ;;  %v7107_v37 = vld.sshfl [vmem:[#allocation1] sm:$0xff pattern:$0x75316420]  ;;  %v7109_v39 = vld.sshfl [vmem:[#allocation1 + $0x8] sm:$0xff pattern:$0x75316420] }
 0x329   : > { %v7087_v9 = vpop.permute.xlu2 %1556  ;;  %10769 = vst [vmem:[#allocation84_spill] sm:$0xff] %v7107_v37  ;;  %s10484_s7 = smov 29  }
 0x32a   : > { %10763 = vst [vmem:[#allocation78_spill] sm:$0xff] %v7087_v9  ;;  %v7089_v18 = vpop.permute.xlu0 %1516  ;;  %v7091_v58 = vpop.permute.xlu1 %1461 }
 0x32b   : > { %10764 = vst [vmem:[#allocation79_spill] sm:$0xff] %v7089_v18  ;;  %v10792_v18 = vld [vmem:[#allocation59_spill] sm:$0xff] }
 0x32c   : > { %10770 = vst [vmem:[#allocation85_spill] sm:$0xff] %v7109_v39 }
 0x32d   : > { %1842 = vst [vmem:[#allocation1] ss:$2 sm:$0xff] %v1840_v35 }
 0x32f   : > { %1910 = vrot.lane.b32.xlu2 %v6861_v15, %s6049_s3 }
 0x330   : > { %1948 = vrot.lane.b32.xlu0 %v6861_v15, %s10488_s26  ;;  %1908 = vrot.lane.b32.xlu1 %v6858_v17, %s6049_s3  ;;  %s6052_s3 = smov 26  }
 0x331   : > { %v7101_v45 = vpop.permute.xlu2 %1592 }
 0x332   : > { %10767 = vst [vmem:[#allocation82_spill] sm:$0xff] %v7101_v45  ;;  %v7103_v43 = vpop.permute.xlu0 %1537  ;;  %v7105_v46 = vpop.permute.xlu1 %1497 }
 0x333   : > { %10768 = vst [vmem:[#allocation83_spill] sm:$0xff] %v7103_v43  ;;  %v1878_v43 = vld [vmem:[#allocation8 + $0x108] sm:$0xff] }
 0x334   : > { %v7122_v37 = vld.sshfl [vmem:[#allocation1] sm:$0xff pattern:$0x75316420]  ;;  %v7124_v39 = vld.sshfl [vmem:[#allocation1 + $0x8] sm:$0xff pattern:$0x75316420] }
 0x335   : > { %10774 = vst [vmem:[#allocation89_spill] sm:$0xff] %v7122_v37 }
 0x336   : > { %10775 = vst [vmem:[#allocation90_spill] sm:$0xff] %v7124_v39 }
 0x337   : > { %1946 = vrot.lane.b32.xlu2 %v6858_v17, %s10488_s26  ;;  %1861 = vst [vmem:[#allocation1] ss:$2 sm:$0xff] %v1859_v10 }
 0x338   : > { %1983 = vrot.lane.b32.xlu0 %v6858_v17, %s10484_s7  ;;  %1929 = vrot.lane.b32.xlu1 %v6861_v15, %s6048_s25  ;;  %s6053_s25 = smov 121  }
 0x339   : > { %v7116_v59 = vpop.permute.xlu2 %1613 }
 0x33a   : > { %10771 = vst [vmem:[#allocation86_spill] sm:$0xff] %v7116_v59  ;;  %v7118_v45 = vpop.permute.xlu0 %1573  ;;  %v7120_v9 = vpop.permute.xlu1 %1518 }
 0x33b   : > { %10772 = vst [vmem:[#allocation87_spill] sm:$0xff] %v7118_v45 }
 0x33c   : > { %10773 = vst [vmem:[#allocation88_spill] sm:$0xff] %v7120_v9 }
 0x33e   : > { %v7137_v37 = vld.sshfl [vmem:[#allocation1] sm:$0xff pattern:$0x75316420]  ;;  %v7139_v39 = vld.sshfl [vmem:[#allocation1 + $0x8] sm:$0xff pattern:$0x75316420] }
 0x33f   : > { %1967 = vrot.lane.b32.xlu2 %v6861_v15, %s10478_s19  ;;  %10779 = vst [vmem:[#allocation94_spill] sm:$0xff] %v7137_v37 }
 0x340   : > { %2004 = vrot.lane.b32.xlu0 %v6861_v15, %s6052_s3  ;;  %1965 = vrot.lane.b32.xlu1 %v6858_v17, %s10478_s19  ;;  %10780 = vst [vmem:[#allocation95_spill] sm:$0xff] %v7139_v39 }
 0x341   : > { %v7131_v35 = vpop.permute.xlu2 %1649  ;;  %1880 = vst [vmem:[#allocation1] ss:$2 sm:$0xff] %v1878_v43 }
 0x342   : > { %10776 = vst [vmem:[#allocation91_spill] sm:$0xff] %v7131_v35  ;;  %v7133_v59 = vpop.permute.xlu0 %1594  ;;  %v7135_v45 = vpop.permute.xlu1 %1554 }
 0x343   : > { %10777 = vst [vmem:[#allocation92_spill] sm:$0xff] %v7133_v59 }
 0x344   : > { %10778 = vst [vmem:[#allocation93_spill] sm:$0xff] %v7135_v45  ;;  %v1897_v45 = vld [vmem:[#allocation8 + $0x110] sm:$0xff] }
 0x347   : > { %2002 = vrot.lane.b32.xlu2 %v6858_v17, %s6052_s3  ;;  %s6054_s3 = smov 23  }
 0x348   : > { %2040 = vrot.lane.b32.xlu0 %v6858_v17, %s6053_s25  ;;  %1985 = vrot.lane.b32.xlu1 %v6861_v15, %s10484_s7  ;;  %v7152_v37 = vld.sshfl [vmem:[#allocation1] sm:$0xff pattern:$0x75316420]  ;;  %v7154_v39 = vld.sshfl [vmem:[#allocation1 + $0x8] sm:$0xff pattern:$0x75316420] }
 0x349   : > { %v7146_v10 = vpop.permute.xlu2 %1670  ;;  %10784 = vst [vmem:[#allocation99_spill] sm:$0xff] %v7152_v37 }
 0x34a   : > { %10781 = vst [vmem:[#allocation96_spill] sm:$0xff] %v7146_v10  ;;  %v7148_v35 = vpop.permute.xlu0 %1630  ;;  %v7150_v59 = vpop.permute.xlu1 %1575 }
 0x34b   : > { %10782 = vst [vmem:[#allocation97_spill] sm:$0xff] %v7148_v35  ;;  %v1258_v35 = vsel %vm1257_vm6, %v6990_v50, %v6968_v49 }
 0x34c   : > { %10783 = vst [vmem:[#allocation98_spill] sm:$0xff] %v7150_v59  ;;  %v1295_v59 = vsel %vm10457_vm5, %v6988_v6, %v7011_v52  ;;  %v1267_v53 = vmul.f32 %v10791_v0, %v1258_v35 }
 0x34d   : > { %10785 = vst [vmem:[#allocation100_spill] sm:$0xff] %v7154_v39  ;;  %v1276_v39 = vsel %vm1275_vm0, %v7000_v36, %v6975_v29  ;;  %v1305_v9 = vmul.f32 %v10792_v18, %v1295_v59  ;;  %v1313_v18 = vsel %vm10456_vm7, %v6980_v57, %v6998_v2 }
 0x34e   : > { %1899 = vst [vmem:[#allocation1] ss:$2 sm:$0xff] %v1897_v45  ;;  %v1277_v45 = vsel %vm1275_vm0, %v6975_v29, %v7000_v36  ;;  %v1286_v11 = vmul.f32 %v10789_v31, %v1276_v39  ;;  %v10790_v29 = vld [vmem:[#allocation58_spill] sm:$0xff]  ;;  %vm10455_vm0 = vcmp.lt.s32.totalorder %v6557_v56, 13  ;;  %v10793_v31 = vld [vmem:[#allocation56_spill] sm:$0xff] }
 0x34f   : > { %2023 = vrot.lane.b32.xlu2 %v6861_v15, %s6054_s3  ;;  %v1287_v36 = vmul.f32 %v10790_v29, %v1277_v45  ;;  %v1323_v29 = vmul.f32 %v6600_v14, %v1313_v18 }
 0x350   : > { %2061 = vrot.lane.b32.xlu0 %v6861_v15, %s6055_s11  ;;  %2021 = vrot.lane.b32.xlu1 %v6858_v17, %s6054_s3  ;;  %s6058_s3 = smov 103  }
 0x351   : > { %v7162_v43 = vpop.permute.xlu2 %1718 }
 0x352   : > { %10786 = vst [vmem:[#allocation101_spill] sm:$0xff] %v7162_v43  ;;  %v7166_v37 = vpop.permute.xlu0 %1651  ;;  %v7168_v10 = vpop.permute.xlu1 %1611  ;;  %v1259_v43 = vsel %vm1257_vm6, %v6968_v49, %v6990_v50  ;;  %v10794_v49 = vld [vmem:[#allocation60_spill] sm:$0xff]  ;;  %v1288_v50 = vadd.f32 %v1286_v11, %v1267_v53  ;;  %vm1350_vm6 = vcmp.lt.s32.totalorder %v6557_v56, 10  ;;  %v1314_v53 = vsel %vm10456_vm7, %v6998_v2, %v6980_v57 }
 0x353   : > { %10787 = vst [vmem:[#allocation102_spill] sm:$0xff] %v7166_v37  ;;  %v1296_v37 = vsel %vm10457_vm5, %v7011_v52, %v6988_v6  ;;  %v1268_v39 = vmul.f32 %v10793_v31, %v1259_v43  ;;  %v1351_v45 = vsel %vm1350_vm6, %v7009_v55, %v7034_v13  ;;  %v1352_v31 = vsel %vm1350_vm6, %v7034_v13, %v7009_v55 }
 0x354   : > { %10788 = vst [vmem:[#allocation103_spill] sm:$0xff] %v7168_v10  ;;  %v1916_v10 = vld [vmem:[#allocation8 + $0x118] sm:$0xff]  ;;  %v1306_v6 = vmul.f32 %v10794_v49, %v1296_v37  ;;  %v1332_v37 = vsel %vm10455_vm0, %v7020_v40, %v6986_v21  ;;  %v1307_v11 = vadd.f32 %v1305_v9, %v1288_v50  ;;  %v1324_v57 = vmul.f32 %v6602_v7, %v1314_v53 }
 0x355   : > { %v7186_v62 = vld.sshfl [vmem:[#allocation1] sm:$0xff pattern:$0x75316420]  ;;  %v7188_v30 = vld.sshfl [vmem:[#allocation1 + $0x8] sm:$0xff pattern:$0x75316420]  ;;  %v1289_v52 = vadd.f32 %v1287_v36, %v1268_v39  ;;  %v1342_v36 = vmul.f32 %v6632_v16, %v1332_v37  ;;  %v1362_v16 = vmul.f32 %v6666_v20, %v1352_v31  ;;  %v1445_v31 = vsel %vm10461_vm4, %v7078_v61, %v7030_v27 }
 0x356   : > { %1918 = vst [vmem:[#allocation1] ss:$2 sm:$0xff] %v1916_v10  ;;  %v1333_v10 = vsel %vm10455_vm0, %v6986_v21, %v7020_v40  ;;  %v1935_v39 = vld [vmem:[#allocation8 + $0x120] sm:$0xff]  ;;  %vm1369_vm0 = vcmp.lt.s32.totalorder %v6557_v56, 7  ;;  %v1325_v21 = vadd.f32 %v1323_v29, %v1307_v11  ;;  %v1361_v40 = vmul.f32 %v6664_v38, %v1351_v45 }
 0x357   : > { %2059 = vrot.lane.b32.xlu2 %v6858_v17, %s6055_s11  ;;  %v1308_v43 = vadd.f32 %v1306_v6, %v1289_v52  ;;  %v1343_v2 = vmul.f32 %v6634_v25, %v1333_v10  ;;  %s10502_s11 = smov 115   ;;  %vm1388_vm6 = vcmp.lt.s32.totalorder %v6557_v56, 105  ;;  %v1370_v38 = vsel %vm1369_vm0, %v6996_v22, %v7018_v60 }
 0x358   : > { %2097 = vrot.lane.b32.xlu0 %v6858_v17, %s10472_s30  ;;  %2042 = vrot.lane.b32.xlu1 %v6861_v15, %s6053_s25  ;;  %s10458_s25 = smov 109   ;;  %v1344_v7 = vadd.f32 %v1342_v36, %v1325_v21  ;;  %vm1407_vm7 = vcmp.lt.s32.totalorder %v6557_v56, 102  ;;  %v1371_v6 = vsel %vm1369_vm0, %v7018_v60, %v6996_v22  ;;  %v1389_v18 = vsel %vm1388_vm6, %v7048_v47, %v7007_v24 }
 0x359   : > { %v7201_v0 = vpop.permute.xlu2 %1739  ;;  %v1326_v14 = vadd.f32 %v1324_v57, %v1308_v43  ;;  %v1390_v52 = vsel %vm1388_vm6, %v7007_v24, %v7048_v47  ;;  %v1380_v53 = vmul.f32 %v6694_v26, %v1370_v38  ;;  %v1408_v11 = vsel %vm1407_vm7, %v7032_v4, %v7063_v3  ;;  %v1954_v43 = vld [vmem:[#allocation8 + $0x128] sm:$0xff] }
 0x35a   : > { %v7211_v59 = vpop.permute.xlu0 %1687  ;;  %v7213_v35 = vpop.permute.xlu1 %1632  ;;  %v1363_v50 = vadd.f32 %v1361_v40, %v1344_v7  ;;  %v1409_v10 = vsel %vm1407_vm7, %v7063_v3, %v7032_v4  ;;  %v1381_v45 = vmul.f32 %v6696_v51, %v1371_v6  ;;  %v1399_v22 = vmul.f32 %v6722_v54, %v1390_v52 }
 0x35b   : > { %v1345_v13 = vadd.f32 %v1343_v2, %v1326_v14  ;;  %v1400_v60 = vmul.f32 %v6724_v34, %v1389_v18  ;;  %vm10571_vm0 = vcmp.lt.s32.totalorder %v6557_v56, 99  ;;  %v1418_v3 = vmul.f32 %v6738_v23, %v1409_v10 }
 0x35c   : > { %v1382_v47 = vadd.f32 %v1380_v53, %v1363_v50  ;;  %v1419_v51 = vmul.f32 %v6740_v48, %v1408_v11  ;;  %vm10460_vm7 = vcmp.lt.s32.totalorder %v6557_v56, 93  ;;  %v1427_v23 = vsel %vm10571_vm0, %v7016_v42, %v7046_v33  ;;  %v10795_v53 = vld [vmem:[#allocation88_spill] sm:$0xff]  ;;  %v10796_v11 = vld [vmem:[#allocation79_spill] sm:$0xff] }
 0x35d   : > { %v7231_v9 = vld.sshfl [vmem:[#allocation1] sm:$0xff pattern:$0x75316420]  ;;  %v7233_v49 = vld.sshfl [vmem:[#allocation1 + $0x8] sm:$0xff pattern:$0x75316420]  ;;  %v1364_v37 = vadd.f32 %v1362_v16, %v1345_v13  ;;  %v1428_v48 = vsel %vm10571_vm0, %v7046_v33, %v7016_v42  ;;  %v1464_v40 = vsel %vm10460_vm7, %v7061_v32, %v7091_v58  ;;  %v1465_v33 = vsel %vm10460_vm7, %v7091_v58, %v7061_v32 }
 0x35e   : > { %1937 = vst [vmem:[#allocation1] ss:$2 sm:$0xff] %v1935_v39  ;;  %v1401_v54 = vadd.f32 %v1399_v22, %v1382_v47  ;;  %v1446_v39 = vsel %vm10461_vm4, %v7030_v27, %v7078_v61  ;;  %v1972_v42 = vld [vmem:[#allocation8 + $0x130] sm:$0xff]  ;;  %v1437_v14 = vmul.f32 %v6765_v63, %v1428_v48  ;;  %v1438_v16 = vmul.f32 %v6767_v8, %v1427_v23  ;;  %v10801_v48 = vld [vmem:[#allocation38_spill] sm:$0xff] }
 0x35f   : > { %2080 = vrot.lane.b32.xlu2 %v6861_v15, %s10502_s11  ;;  %v1383_v26 = vadd.f32 %v1381_v45, %v1364_v37  ;;  %v1455_v61 = vmul.f32 %v6790_v28, %v1446_v39  ;;  %v1456_v27 = vmul.f32 %v6792_v1, %v1445_v31  ;;  %vm1482_vm6 = vcmp.lt.s32.totalorder %v6557_v56, 90  ;;  %v10802_v39 = vld [vmem:[#allocation39_spill] sm:$0xff] }
 0x360   : > { %2117 = vrot.lane.b32.xlu0 %v6861_v15, %s10458_s25  ;;  %2078 = vrot.lane.b32.xlu1 %v6858_v17, %s10502_s11  ;;  %v1420_v2 = vadd.f32 %v1418_v3, %v1401_v54  ;;  %vm1501_vm5 = vcmp.lt.s32.totalorder %v6557_v56, 87  ;;  %v1474_v8 = vmul.f32 %v6819_v5, %v1465_v33  ;;  %v1475_v28 = vmul.f32 %v6821_v12, %v1464_v40  ;;  %s10879_s11 = smov 114  }
 0x361   : > { %v7245_v25 = vpop.permute.xlu2 %1775  ;;  %v1402_v34 = vadd.f32 %v1400_v60, %v1383_v26  ;;  %vm1520_vm7 = vcmp.lt.s32.totalorder %v6557_v56, 57  ;;  %v1483_v50 = vsel %vm1482_vm6, %v7044_v41, %v7076_v19  ;;  %v1484_v5 = vsel %vm1482_vm6, %v7076_v19, %v7044_v41  ;;  %v1991_v19 = vld [vmem:[#allocation8 + $0x138] sm:$0xff]  ;;  %v10797_v41 = vld [vmem:[#allocation34_spill] sm:$0xff]  ;;  %v10798_v60 = vld [vmem:[#allocation35_spill] sm:$0xff] }
 0x362   : > { %v7252_v20 = vpop.permute.xlu0 %1720  ;;  %v7254_v55 = vpop.permute.xlu1 %1668  ;;  %v1439_v58 = vadd.f32 %v1437_v14, %v1420_v2  ;;  %v1502_v12 = vsel %vm1501_vm5, %v7105_v46, %v7059_v44  ;;  %v1503_v18 = vsel %vm1501_vm5, %v7059_v44, %v7105_v46  ;;  %v1521_v10 = vsel %vm1520_vm7, %v10796_v11, %v10795_v53  ;;  %v10799_v26 = vld [vmem:[#allocation36_spill] sm:$0xff]  ;;  %v10803_v14 = vld [vmem:[#allocation83_spill] sm:$0xff] }
 0x363   : > { %v1421_v21 = vadd.f32 %v1419_v51, %v1402_v34  ;;  %v1493_v22 = vmul.f32 %v10797_v41, %v1484_v5  ;;  %v1494_v47 = vmul.f32 %v10798_v60, %v1483_v50  ;;  %v1512_v3 = vmul.f32 %v10799_v26, %v1503_v18  ;;  %v10800_v51 = vld [vmem:[#allocation37_spill] sm:$0xff]  ;;  %v10807_v50 = vld [vmem:[#allocation98_spill] sm:$0xff]  ;;  %v10808_v5 = vld [vmem:[#allocation87_spill] sm:$0xff] }
 0x364   : > { %v1457_v1 = vadd.f32 %v1455_v61, %v1439_v58  ;;  %v1513_v54 = vmul.f32 %v10800_v51, %v1502_v12  ;;  %vm1539_vm5 = vcmp.lt.s32.totalorder %v6557_v56, 54  ;;  %vm10465_vm6 = vcmp.lt.s32.totalorder %v6557_v56, 51  ;;  %v10805_v58 = vld [vmem:[#allocation78_spill] sm:$0xff]  ;;  %v10812_v41 = vld [vmem:[#allocation43_spill] sm:$0xff] }
 0x365   : > { %v7272_v29 = vld.sshfl [vmem:[#allocation1] sm:$0xff pattern:$0x75316420]  ;;  %v7274_v36 = vld.sshfl [vmem:[#allocation1 + $0x8] sm:$0xff pattern:$0x75316420]  ;;  %v1440_v63 = vadd.f32 %v1438_v16, %v1421_v21  ;;  %v1532_v2 = vmul.f32 %v10802_v39, %v1521_v10 }
 0x366   : > { %1956 = vst [vmem:[#allocation1] ss:$2 sm:$0xff] %v1954_v43  ;;  %v1476_v52 = vadd.f32 %v1474_v8, %v1457_v1  ;;  %v1522_v43 = vsel %vm1520_vm7, %v10795_v53, %v10796_v11  ;;  %vm10462_vm7 = vcmp.lt.s32.totalorder %v6557_v56, 48  ;;  %v10804_v16 = vld [vmem:[#allocation75_spill] sm:$0xff]  ;;  %v10810_v11 = vld [vmem:[#allocation41_spill] sm:$0xff]  ;;  %vm1615_vm4 = vcmp.lt.s32.totalorder %v6557_v56, 42 }
 0x367   : > { %2115 = vrot.lane.b32.xlu2 %v6858_v17, %s10458_s25  ;;  %s6059_s25 = smov 106   ;;  %v1458_v32 = vadd.f32 %v1456_v27, %v1440_v63  ;;  %v1531_v31 = vmul.f32 %v10801_v48, %v1522_v43  ;;  %v1540_v61 = vsel %vm1539_vm5, %v10804_v16, %v10803_v14  ;;  %v1541_v27 = vsel %vm1539_vm5, %v10803_v14, %v10804_v16  ;;  %v10806_v63 = vld [vmem:[#allocation93_spill] sm:$0xff]  ;;  %v10811_v43 = vld [vmem:[#allocation42_spill] sm:$0xff] }
 0x368   : > { %2153 = vrot.lane.b32.xlu0 %v6858_v17, %s6058_s3  ;;  %2099 = vrot.lane.b32.xlu1 %v6861_v15, %s10472_s30  ;;  %v1495_v34 = vadd.f32 %v1493_v22, %v1476_v52  ;;  %v1559_v8 = vsel %vm10465_vm6, %v10806_v63, %v10805_v58  ;;  %v1578_v12 = vsel %vm10462_vm7, %v10808_v5, %v10807_v50  ;;  %v2010_v52 = vld [vmem:[#allocation8 + $0x140] sm:$0xff]  ;;  %vm10463_vm5 = vcmp.lt.s32.totalorder %v6557_v56, 45  ;;  %s10857_s30 = sld [smem:[#allocation186_spill]] }
 0x369   : > { %v7306_v57 = vpop.permute.xlu2 %1796  ;;  %v1477_v37 = vadd.f32 %v1475_v28, %v1458_v32  ;;  %v1560_v28 = vsel %vm10465_vm6, %v10805_v58, %v10806_v63  ;;  %v1579_v18 = vsel %vm10462_vm7, %v10807_v50, %v10808_v5  ;;  %v1551_v10 = vmul.f32 %v10810_v11, %v1540_v61  ;;  %v10816_v14 = vld [vmem:[#allocation82_spill] sm:$0xff]  ;;  %v10818_v58 = vld [vmem:[#allocation103_spill] sm:$0xff]  ;;  %v10822_v11 = vld [vmem:[#allocation52_spill] sm:$0xff] }
 0x36a   : > { %v7286_v4 = vpop.permute.xlu0 %1756  ;;  %v7288_v24 = vpop.permute.xlu1 %1689  ;;  %v1514_v21 = vadd.f32 %v1512_v3, %v1495_v34  ;;  %v1570_v22 = vmul.f32 %v10812_v41, %v1559_v8  ;;  %vm1634_vm7 = vcmp.lt.s32.totalorder %v6557_v56, 39  ;;  %vm1798_vm6 = vcmp.lt.s32.totalorder %v6557_v56, 86 }
 0x36b   : > { %v1496_v23 = vadd.f32 %v1494_v47, %v1477_v37  ;;  %v10809_v37 = vld [vmem:[#allocation40_spill] sm:$0xff] }
 0x36c   : > { %v1533_v1 = vadd.f32 %v1531_v31, %v1514_v21  ;;  %v1550_v53 = vmul.f32 %v10809_v37, %v1541_v27  ;;  %v10817_v27 = vld [vmem:[#allocation86_spill] sm:$0xff]  ;;  %v10821_v37 = vld [vmem:[#allocation51_spill] sm:$0xff] }
 0x36d   : > { %v7320_v7 = vld.sshfl [vmem:[#allocation1] sm:$0xff pattern:$0x75316420]  ;;  %v7322_v38 = vld.sshfl [vmem:[#allocation1 + $0x8] sm:$0xff pattern:$0x75316420]  ;;  %v1515_v40 = vadd.f32 %v1513_v54, %v1496_v23  ;;  %v1616_v63 = vsel %vm1615_vm4, %v10818_v58, %v10817_v27  ;;  %v1617_v8 = vsel %vm1615_vm4, %v10817_v27, %v10818_v58 }
 0x36e   : > { %1974 = vst [vmem:[#allocation1] ss:$2 sm:$0xff] %v1972_v42  ;;  %v1552_v3 = vadd.f32 %v1550_v53, %v1533_v1  ;;  %v10813_v54 = vld [vmem:[#allocation44_spill] sm:$0xff]  ;;  %v10814_v23 = vld [vmem:[#allocation49_spill] sm:$0xff]  ;;  %vm1653_vm4 = vcmp.lt.s32.totalorder %v6557_v56, 9 }
 0x36f   : > { %2136 = vrot.lane.b32.xlu2 %v6861_v15, %s6059_s25  ;;  %v1534_v32 = vadd.f32 %v1532_v2, %v1515_v40  ;;  %v1588_v34 = vmul.f32 %v10813_v54, %v1579_v18  ;;  %v1589_v48 = vmul.f32 %v10814_v23, %v1578_v12  ;;  %v10815_v40 = vld [vmem:[#allocation92_spill] sm:$0xff]  ;;  %v2029_v12 = vld [vmem:[#allocation8 + $0x148] sm:$0xff]  ;;  %v10820_v18 = vld [vmem:[#allocation50_spill] sm:$0xff] }
 0x370   : > { %2134 = vrot.lane.b32.xlu1 %v6858_v17, %s6059_s25  ;;  %v1597_v16 = vsel %vm10463_vm5, %v10816_v14, %v10815_v40  ;;  %v1598_v61 = vsel %vm10463_vm5, %v10815_v40, %v10816_v14  ;;  %vm1672_vm5 = vcmp.lt.s32.totalorder %v6557_v56, 6  ;;  %s10498_s25 = smov 49  }
 0x371   : > { %v7355_v45 = vpop.permute.xlu2 %1832  ;;  %v1553_v51 = vadd.f32 %v1551_v10, %v1534_v32  ;;  %v10819_v32 = vld [vmem:[#allocation97_spill] sm:$0xff]  ;;  %v1608_v53 = vmul.f32 %v10821_v37, %v1597_v16  ;;  %v1626_v10 = vmul.f32 %v10822_v11, %v1617_v8  ;;  %v10826_v16 = vld [vmem:[#allocation102_spill] sm:$0xff]  ;;  %v10831_v11 = vld [vmem:[#allocation63_spill] sm:$0xff] }
 0x372   : > { %v7331_v13 = vpop.permute.xlu0 %1777  ;;  %v7333_v6 = vpop.permute.xlu1 %1737  ;;  %v1635_v50 = vsel %vm1634_vm7, %v10819_v32, %v7213_v35  ;;  %v1636_v5 = vsel %vm1634_vm7, %v7213_v35, %v10819_v32  ;;  %vm10464_vm7 = vcmp.lt.s32.totalorder %v6557_v56, 3  ;;  %v10830_v37 = vld [vmem:[#allocation62_spill] sm:$0xff] }
 0x373   : > { %v1572_v39 = vadd.f32 %v1570_v22, %v1553_v51  ;;  %v10824_v51 = vld [vmem:[#allocation54_spill] sm:$0xff] }
 0x374   : > { %v1645_v54 = vmul.f32 %v10824_v51, %v1636_v5  ;;  %v1693_v5 = vsel %vm10464_vm7, %v7288_v24, %v7211_v59 }
 0x375   : > { %v7361_v46 = vld.sshfl [vmem:[#allocation1] sm:$0xff pattern:$0x75316420]  ;;  %v7363_v44 = vld.sshfl [vmem:[#allocation1 + $0x8] sm:$0xff pattern:$0x75316420]  ;;  %v1591_v1 = vadd.f32 %v1589_v48, %v1572_v39 }
 0x376   : > { %1993 = vst [vmem:[#allocation1] ss:$2 sm:$0xff] %v1991_v19  ;;  %v1569_v19 = vmul.f32 %v10811_v43, %v1560_v28  ;;  %v10823_v43 = vld [vmem:[#allocation53_spill] sm:$0xff] }
 0x377   : > { %v1610_v35 = vadd.f32 %v1608_v53, %v1591_v1 }
 0x378   : > { %2155 = vrot.lane.b32.xlu1 %v6861_v15, %s6058_s3  ;;  %v1571_v31 = vadd.f32 %v1569_v19, %v1552_v3  ;;  %v1627_v19 = vmul.f32 %v10823_v43, %v1616_v63  ;;  %v10828_v63 = vld [vmem:[#allocation96_spill] sm:$0xff]  ;;  %s10494_s3 = smov 47  }
 0x379   : > { %v7406_v26 = vpop.permute.xlu2 %1853  ;;  %v1673_v8 = vsel %vm1672_vm5, %v7254_v55, %v10828_v63 }
 0x37a   : > { %v7372_v33 = vpop.permute.xlu0 %1813  ;;  %v7374_v42 = vpop.permute.xlu1 %1758  ;;  %v1590_v28 = vadd.f32 %v1588_v34, %v1571_v31  ;;  %v10825_v34 = vld [vmem:[#allocation47_spill] sm:$0xff]  ;;  %v1629_v39 = vadd.f32 %v1627_v19, %v1610_v35 }
 0x37b   : > { %v1646_v23 = vmul.f32 %v10825_v34, %v1635_v50  ;;  %v1692_v50 = vsel %vm10464_vm7, %v7211_v59, %v7288_v24  ;;  %vm1760_vm7 = vcmp.lt.s32.totalorder %v6557_v56, 119 }
 0x37d   : > { %v7400_v60 = vld.sshfl [vmem:[#allocation1] sm:$0xff pattern:$0x75316420]  ;;  %v7402_v47 = vld.sshfl [vmem:[#allocation1 + $0x8] sm:$0xff pattern:$0x75316420]  ;;  %v1648_v32 = vadd.f32 %v1646_v23, %v1629_v39 }
 0x37e   : > { %2012 = vst [vmem:[#allocation1] ss:$2 sm:$0xff] %v2010_v52  ;;  %v1607_v52 = vmul.f32 %v10820_v18, %v1598_v61  ;;  %v10827_v61 = vld [vmem:[#allocation91_spill] sm:$0xff]  ;;  %v10829_v18 = vld [vmem:[#allocation61_spill] sm:$0xff]  ;;  %v10834_v23 = vld [vmem:[#allocation66_spill] sm:$0xff] }
 0x37f   : > { %v1654_v27 = vsel %vm1653_vm4, %v10827_v61, %v10826_v16  ;;  %v1655_v58 = vsel %vm1653_vm4, %v10826_v16, %v10827_v61  ;;  %v1703_v59 = vmul.f32 %v10834_v23, %v1692_v50  ;;  %vm1741_vm4 = vcmp.lt.s32.totalorder %v6557_v56, 122 }
 0x380   : > { %v1609_v3 = vadd.f32 %v1607_v52, %v1590_v28  ;;  %v1674_v28 = vsel %vm1672_vm5, %v10828_v63, %v7254_v55  ;;  %v1664_v52 = vmul.f32 %v10829_v18, %v1655_v58  ;;  %v1665_v53 = vmul.f32 %v10830_v37, %v1654_v27  ;;  %v10832_v55 = vld [vmem:[#allocation64_spill] sm:$0xff]  ;;  %v2067_v63 = vld [vmem:[#allocation8 + $0x158] sm:$0xff] }
 0x381   : > { %v7443_v48 = vpop.permute.xlu2 %1889  ;;  %v1684_v43 = vmul.f32 %v10832_v55, %v1673_v8  ;;  %vm1722_vm5 = vcmp.lt.s32.totalorder %v6557_v56, 125  ;;  %v10835_v8 = vld [vmem:[#allocation68_spill] sm:$0xff]  ;;  %v10838_v55 = vld [vmem:[#allocation69_spill] sm:$0xff] }
 0x382   : > { %v7411_v2 = vpop.permute.xlu0 %1834  ;;  %v7413_v21 = vpop.permute.xlu1 %1794  ;;  %v1628_v31 = vadd.f32 %v1626_v10, %v1609_v3  ;;  %v1683_v10 = vmul.f32 %v10831_v11, %v1674_v28  ;;  %v1667_v51 = vadd.f32 %v1665_v53, %v1648_v32  ;;  %v1715_v28 = vmul.f32 %v10835_v8, %v6861_v15 }
 0x383   : > { %v1742_v15 = vsel %vm1741_vm4, %v7333_v6, %v7201_v0  ;;  %v1761_v11 = vsel %vm1760_vm7, %v7286_v4, %v7374_v42 }
 0x384   : > { %v1647_v1 = vadd.f32 %v1645_v54, %v1628_v31  ;;  %v10833_v54 = vld [vmem:[#allocation65_spill] sm:$0xff]  ;;  %v1686_v31 = vadd.f32 %v1684_v43, %v1667_v51 }
 0x385   : > { %v7435_v41 = vld.sshfl [vmem:[#allocation1] sm:$0xff pattern:$0x75316420]  ;;  %v7437_v22 = vld.sshfl [vmem:[#allocation1 + $0x8] sm:$0xff pattern:$0x75316420]  ;;  %v1702_v34 = vmul.f32 %v10833_v54, %v1693_v5 }
 0x386   : > { %2031 = vst [vmem:[#allocation1] ss:$2 sm:$0xff] %v2029_v12  ;;  %v2048_v12 = vld [vmem:[#allocation8 + $0x150] sm:$0xff]  ;;  %v1666_v35 = vadd.f32 %v1664_v52, %v1647_v1  ;;  %v1705_v27 = vadd.f32 %v1703_v59, %v1686_v31  ;;  %v10836_v1 = vld [vmem:[#allocation67_spill] sm:$0xff]  ;;  %v10842_v31 = vld [vmem:[#allocation73_spill] sm:$0xff] }
 0x387   : > { %v1714_v32 = vmul.f32 %v10836_v1, %v6858_v17  ;;  %v1743_v17 = vsel %vm1741_vm4, %v7201_v0, %v7333_v6  ;;  %vm1779_vm4 = vcmp.lt.s32.totalorder %v6557_v56, 89 }
 0x388   : > { %v1685_v24 = vadd.f32 %v1683_v10, %v1666_v35  ;;  %v1717_v53 = vadd.f32 %v1715_v28, %v1705_v27  ;;  %v1762_v10 = vsel %vm1760_vm7, %v7374_v42, %v7286_v4  ;;  %v10839_v35 = vld [vmem:[#allocation70_spill] sm:$0xff]  ;;  %vm10466_vm7 = vcmp.lt.s32.totalorder %v6557_v56, 83 }
 0x389   : > { %v7482_v58 = vpop.permute.xlu2 %1910  ;;  %v10843_v4 = vld [vmem:[#allocation74_spill] sm:$0xff] }
 0x38a   : > { %v7446_v40 = vpop.permute.xlu0 %1870  ;;  %v7448_v14 = vpop.permute.xlu1 %1815  ;;  %v1704_v61 = vadd.f32 %v1702_v34, %v1685_v24  ;;  %v10841_v34 = vld [vmem:[#allocation72_spill] sm:$0xff]  ;;  %v1772_v42 = vmul.f32 %v10843_v4, %v1762_v10  ;;  %v2086_v27 = vld [vmem:[#allocation8 + $0x160] sm:$0xff]  ;;  %v10845_v10 = vld [vmem:[#allocation77_spill] sm:$0xff] }
 0x38b   : > { %v1753_v23 = vmul.f32 %v10841_v34, %v1743_v17 }
 0x38c   : > { %v1716_v37 = vadd.f32 %v1714_v32, %v1704_v61  ;;  %v1771_v61 = vmul.f32 %v10842_v31, %v1761_v11  ;;  %v1819_v11 = vsel %vm10466_vm7, %v7448_v14, %v7372_v33 }
 0x38d   : > { %v7470_v19 = vld.sshfl [vmem:[#allocation1] sm:$0xff pattern:$0x75316420]  ;;  %v7472_v3 = vld.sshfl [vmem:[#allocation1 + $0x8] sm:$0xff pattern:$0x75316420] }
 0x38e   : > { %2050 = vst [vmem:[#allocation1] ss:$2 sm:$0xff] %v2048_v12  ;;  %v10837_v12 = vld [vmem:[#allocation101_spill] sm:$0xff] }
 0x38f   : > { %v1723_v18 = vsel %vm1722_vm5, %v10837_v12, %v7252_v20  ;;  %v1724_v52 = vsel %vm1722_vm5, %v7252_v20, %v10837_v12  ;;  %v10840_v20 = vld [vmem:[#allocation71_spill] sm:$0xff]  ;;  %v1780_v12 = vsel %vm1779_vm4, %v7245_v25, %v7331_v13 }
 0x390   : > { %v1733_v43 = vmul.f32 %v10838_v55, %v1723_v18  ;;  %v1734_v51 = vmul.f32 %v10839_v35, %v1724_v52  ;;  %v1752_v54 = vmul.f32 %v10840_v20, %v1742_v15  ;;  %v1781_v18 = vsel %vm1779_vm4, %v7331_v13, %v7245_v25  ;;  %v10844_v25 = vld [vmem:[#allocation76_spill] sm:$0xff] }
 0x391   : > { %v7520_v28 = vpop.permute.xlu2 %1946  ;;  %v1799_v52 = vsel %vm1798_vm6, %v7413_v21, %v7306_v57  ;;  %v1800_v15 = vsel %vm1798_vm6, %v7306_v57, %v7413_v21  ;;  %v1790_v13 = vmul.f32 %v10844_v25, %v1780_v12  ;;  %v1791_v55 = vmul.f32 %v10845_v10, %v1781_v18  ;;  %v10847_v57 = vld [vmem:[#allocation81_spill] sm:$0xff]  ;;  %v10852_v25 = vld [vmem:[#allocation94_spill] sm:$0xff]  ;;  %v10853_v10 = vld [vmem:[#allocation95_spill] sm:$0xff] }
 0x392   : > { %v7476_v39 = vpop.permute.xlu0 %1891  ;;  %v7478_v16 = vpop.permute.xlu1 %1851  ;;  %v1736_v6 = vadd.f32 %v1734_v51, %v1717_v53  ;;  %v1735_v24 = vadd.f32 %v1733_v43, %v1716_v37  ;;  %v1818_v53 = vsel %vm10466_vm7, %v7372_v33, %v7448_v14  ;;  %v10846_v43 = vld [vmem:[#allocation80_spill] sm:$0xff]  ;;  %v1810_v21 = vmul.f32 %v10847_v57, %v1800_v15  ;;  %v10849_v33 = vld [vmem:[#allocation85_spill] sm:$0xff]  ;;  %v10854_v57 = vld [vmem:[#allocation99_spill] sm:$0xff] }
 0x393   : > { %v1809_v35 = vmul.f32 %v10846_v43, %v1799_v52  ;;  %vm10468_vm6 = vcmp.lt.s32.totalorder %v6557_v56, 80  ;;  %vm10467_vm4 = vcmp.lt.s32.totalorder %v6557_v56, 77  ;;  %v1829_v14 = vmul.f32 %v10849_v33, %v1819_v11 }
 0x394   : > { %v1755_v8 = vadd.f32 %v1753_v23, %v1736_v6  ;;  %v10848_v23 = vld [vmem:[#allocation84_spill] sm:$0xff]  ;;  %vm1874_vm7 = vcmp.lt.s32.totalorder %v6557_v56, 74  ;;  %v1857_v12 = vsel %vm10467_vm4, %v7406_v26, %v7478_v16 }
 0x395   : > { %v7489_v50 = vld.sshfl [vmem:[#allocation1] sm:$0xff pattern:$0x75316420]  ;;  %v7491_v5 = vld.sshfl [vmem:[#allocation1 + $0x8] sm:$0xff pattern:$0x75316420]  ;;  %v1828_v6 = vmul.f32 %v10848_v23, %v1818_v53 }
 0x396   : > { %2069 = vst [vmem:[#allocation1] ss:$2 sm:$0xff] %v2067_v63  ;;  %v1754_v63 = vadd.f32 %v1752_v54, %v1735_v24  ;;  %v1774_v37 = vadd.f32 %v1772_v42, %v1755_v8  ;;  %v2104_v24 = vld [vmem:[#allocation8 + $0x168] sm:$0xff]  ;;  %v1856_v8 = vsel %vm10467_vm4, %v7478_v16, %v7406_v26  ;;  %v10850_v53 = vld [vmem:[#allocation89_spill] sm:$0xff]  ;;  %vm1893_vm4 = vcmp.lt.s32.totalorder %v6557_v56, 71 }
 0x398   : > { %v1773_v17 = vadd.f32 %v1771_v61, %v1754_v63  ;;  %v1793_v54 = vadd.f32 %v1791_v55, %v1774_v37  ;;  %v1838_v63 = vsel %vm10468_vm6, %v7411_v2, %v7355_v45  ;;  %v1867_v55 = vmul.f32 %v10853_v10, %v1857_v12 }
 0x399   : > { %v1968_v15 = vpop.permute.xlu2 %1967 }
 0x39a   : > { %v7513_v59 = vpop.permute.xlu0 %1927  ;;  %v1873_v0 = vpop.permute.xlu1 %1872  ;;  %v1792_v34 = vadd.f32 %v1790_v13, %v1773_v17  ;;  %v1812_v61 = vadd.f32 %v1810_v21, %v1793_v54  ;;  %v1866_v13 = vmul.f32 %v10852_v25, %v1856_v8  ;;  %v10855_v54 = vld [vmem:[#allocation100_spill] sm:$0xff] }
 0x39b   : > { %v1875_v17 = vsel %vm1874_vm7, %v7446_v40, %v1873_v0  ;;  %v1876_v37 = vsel %vm1874_vm7, %v1873_v0, %v7446_v40  ;;  %vm1931_vm7 = vcmp.lt.s32.totalorder %v6557_v56, 38  ;;  %v2123_v0 = vld [vmem:[#allocation8 + $0x170] sm:$0xff] }
 0x39c   : > { %v1811_v31 = vadd.f32 %v1809_v35, %v1792_v34  ;;  %v1831_v52 = vadd.f32 %v1829_v14, %v1812_v61  ;;  %v1885_v21 = vmul.f32 %v10854_v57, %v1875_v17  ;;  %v1886_v40 = vmul.f32 %v10855_v54, %v1876_v37 }
 0x39d   : > { %v7522_v1 = vld.sshfl [vmem:[#allocation1] sm:$0xff pattern:$0x75316420]  ;;  %v7524_v32 = vld.sshfl [vmem:[#allocation1 + $0x8] sm:$0xff pattern:$0x75316420]  ;;  %v1894_v14 = vsel %vm1893_vm4, %v7443_v48, %v7476_v39 }
 0x39e   : > { %2088 = vst [vmem:[#allocation1] ss:$2 sm:$0xff] %v2086_v27  ;;  %v1837_v27 = vsel %vm10468_vm6, %v7355_v45, %v7411_v2  ;;  %v1830_v18 = vadd.f32 %v1828_v6, %v1811_v31  ;;  %v10851_v2 = vld [vmem:[#allocation90_spill] sm:$0xff]  ;;  %vm1912_vm6 = vcmp.lt.s32.totalorder %v6557_v56, 41 }
 0x39f   : > { %v1847_v45 = vmul.f32 %v10850_v53, %v1837_v27  ;;  %v1848_v11 = vmul.f32 %v10851_v2, %v1838_v63 }
 0x3a1   : > { %v1850_v26 = vadd.f32 %v1848_v11, %v1831_v52  ;;  %v1849_v16 = vadd.f32 %v1847_v45, %v1830_v18  ;;  %v1904_v18 = vmul.f32 %v7186_v62, %v1894_v14  ;;  %v2003_v17 = vpop.permute.xlu2 %2002 }
 0x3a2   : > { %v7546_v51 = vpop.permute.xlu0 %1948  ;;  %v1909_v20 = vpop.permute.xlu1 %1908 }
 0x3a3   : > { %v1868_v34 = vadd.f32 %v1866_v13, %v1849_v16  ;;  %v1869_v23 = vadd.f32 %v1867_v55, %v1850_v26  ;;  %v1913_v31 = vsel %vm1912_vm6, %v1909_v20, %v7482_v58  ;;  %v1914_v61 = vsel %vm1912_vm6, %v7482_v58, %v1909_v20 }
 0x3a4   : > { %v1923_v37 = vmul.f32 %v7231_v9, %v1913_v31  ;;  %vm10469_vm6 = vcmp.lt.s32.totalorder %v6557_v56, 29 }
 0x3a5   : > { %v7553_v4 = vld.sshfl [vmem:[#allocation1] sm:$0xff pattern:$0x75316420]  ;;  %v7555_v42 = vld.sshfl [vmem:[#allocation1 + $0x8] sm:$0xff pattern:$0x75316420]  ;;  %v1887_v27 = vadd.f32 %v1885_v21, %v1868_v34  ;;  %v1888_v63 = vadd.f32 %v1886_v40, %v1869_v23 }
 0x3a6   : > { %2106 = vst [vmem:[#allocation1] ss:$2 sm:$0xff] %v2104_v24  ;;  %v1895_v24 = vsel %vm1893_vm4, %v7476_v39, %v7443_v48  ;;  %v1924_v48 = vmul.f32 %v7233_v49, %v1914_v61  ;;  %vm10471_vm4 = vcmp.lt.s32.totalorder %v6557_v56, 35 }
 0x3a7   : > { %v1905_v52 = vmul.f32 %v7188_v30, %v1895_v24  ;;  %v1906_v20 = vadd.f32 %v1904_v18, %v1887_v27  ;;  %v1951_v30 = vsel %vm10471_vm4, %v7520_v28, %v7546_v51  ;;  %v1952_v62 = vsel %vm10471_vm4, %v7546_v51, %v7520_v28 }
 0x3a8   : > { %v1961_v25 = vmul.f32 %v7320_v7, %v1951_v30  ;;  %v1962_v13 = vmul.f32 %v7322_v38, %v1952_v62  ;;  %vm2157_vm4 = vcmp.lt.s32.totalorder %v6557_v56, 103 }
 0x3a9   : > { %v1907_v58 = vadd.f32 %v1905_v52, %v1888_v63 }
 0x3aa   : > { %v1984_v43 = vpop.permute.xlu0 %1983  ;;  %v1930_v35 = vpop.permute.xlu1 %1929 }
 0x3ab   : > { %v1932_v8 = vsel %vm1931_vm7, %v7513_v59, %v1930_v35  ;;  %v1933_v12 = vsel %vm1931_vm7, %v1930_v35, %v7513_v59  ;;  %v1925_v59 = vadd.f32 %v1923_v37, %v1906_v20  ;;  %v1926_v11 = vadd.f32 %v1924_v48, %v1907_v58 }
 0x3ac   : > { %v1942_v53 = vmul.f32 %v7272_v29, %v1932_v8  ;;  %v1943_v45 = vmul.f32 %v7274_v36, %v1933_v12  ;;  %vm2006_vm7 = vcmp.lt.s32.totalorder %v6557_v56, 26  ;;  %v2161_v12 = vld [vmem:[#allocation8 + $0x180] sm:$0xff] }
 0x3ad   : > { %v7584_v6 = vld.sshfl [vmem:[#allocation1] sm:$0xff pattern:$0x75316420]  ;;  %v7586_v33 = vld.sshfl [vmem:[#allocation1 + $0x8] sm:$0xff pattern:$0x75316420] }
 0x3ae   : > { %2125 = vst [vmem:[#allocation1] ss:$2 sm:$0xff] %v2123_v0  ;;  %v1944_v29 = vadd.f32 %v1942_v53, %v1925_v59  ;;  %v1945_v36 = vadd.f32 %v1943_v45, %v1926_v11 }
 0x3b0   : > { %v1964_v26 = vadd.f32 %v1962_v13, %v1945_v36  ;;  %v1963_v16 = vadd.f32 %v1961_v25, %v1944_v29 }
 0x3b2   : > { %v1966_v39 = vpop.permute.xlu1 %1965  ;;  %v2005_v2 = vpop.permute.xlu0 %2004 }
 0x3b3   : > { %v1969_v9 = vsel %vm10470_vm2, %v1966_v39, %v1968_v15  ;;  %v1970_v49 = vsel %vm10470_vm2, %v1968_v15, %v1966_v39  ;;  %v2024_v15 = vpop.permute.xlu2 %2023  ;;  %v2007_v0 = vsel %vm2006_vm7, %v2003_v17, %v2005_v2  ;;  %vm2044_vm2 = vcmp.lt.s32.totalorder %v6557_v56, 121 }
 0x3b4   : > { %v1979_v10 = vmul.f32 %v7361_v46, %v1969_v9  ;;  %v1980_v55 = vmul.f32 %v7363_v44, %v1970_v49  ;;  %v2142_v44 = vld [vmem:[#allocation8 + $0x178] sm:$0xff] }
 0x3b5   : > { %v7627_v57 = vld.sshfl [vmem:[#allocation1] sm:$0xff pattern:$0x75316420]  ;;  %v7629_v46 = vld.sshfl [vmem:[#allocation1 + $0x8] sm:$0xff pattern:$0x75316420] }
 0x3b6   : > { %v1981_v21 = vadd.f32 %v1979_v10, %v1963_v16  ;;  %v1982_v54 = vadd.f32 %v1980_v55, %v1964_v26  ;;  %2144 = vst [vmem:[#allocation1] ss:$2 sm:$0xff] %v2142_v44 }
 0x3ba   : > { %v1986_v35 = vpop.permute.xlu1 %1985  ;;  %v2041_v40 = vpop.permute.xlu0 %2040 }
 0x3bb   : > { %v1988_v28 = vsel %vm10469_vm6, %v1984_v43, %v1986_v35  ;;  %v1989_v51 = vsel %vm10469_vm6, %v1986_v35, %v1984_v43  ;;  %v2008_v43 = vsel %vm2006_vm7, %v2005_v2, %v2003_v17  ;;  %vm2025_vm6 = vcmp.lt.s32.totalorder %v6557_v56, 23  ;;  %v2060_v17 = vpop.permute.xlu2 %2059 }
 0x3bc   : > { %v1998_v7 = vmul.f32 %v7400_v60, %v1988_v28  ;;  %v1999_v38 = vmul.f32 %v7402_v47, %v1989_v51  ;;  %v2017_v60 = vmul.f32 %v7435_v41, %v2007_v0  ;;  %v2018_v47 = vmul.f32 %v7437_v22, %v2008_v43 }
 0x3bd   : > { %v2145_v18 = vld.sshfl [vmem:[#allocation1] sm:$0xff pattern:$0x75316420]  ;;  %v2146_v52 = vld.sshfl [vmem:[#allocation1 + $0x8] sm:$0xff pattern:$0x75316420] }
 0x3be   : > { %v2000_v34 = vadd.f32 %v1998_v7, %v1981_v21  ;;  %v2001_v23 = vadd.f32 %v1999_v38, %v1982_v54  ;;  %2163 = vst [vmem:[#allocation1] ss:$2 sm:$0xff] %v2161_v12  ;;  %vm2063_vm7 = vcmp.lt.s32.totalorder %v6557_v56, 118 }
 0x3c0   : > { %v2020_v61 = vadd.f32 %v2018_v47, %v2001_v23  ;;  %v2019_v27 = vadd.f32 %v2017_v60, %v2000_v34 }
 0x3c2   : > { %v2022_v14 = vpop.permute.xlu1 %2021  ;;  %v2062_v41 = vpop.permute.xlu0 %2061 }
 0x3c3   : > { %v2026_v24 = vsel %vm2025_vm6, %v2022_v14, %v2024_v15  ;;  %v2027_v31 = vsel %vm2025_vm6, %v2024_v15, %v2022_v14  ;;  %v2064_v39 = vsel %vm2063_vm7, %v2060_v17, %v2062_v41  ;;  %v2065_v58 = vsel %vm2063_vm7, %v2062_v41, %v2060_v17  ;;  %v2081_v30 = vpop.permute.xlu2 %2080  ;;  %v10856_v17 = vld [vmem:[#allocation46_spill] sm:$0xff] }
 0x3c4   : > { %v2036_v63 = vmul.f32 %v7470_v19, %v2026_v24  ;;  %v2037_v8 = vmul.f32 %v7472_v3, %v2027_v31  ;;  %v2074_v45 = vmul.f32 %v7522_v1, %v2065_v58  ;;  %v2075_v2 = vmul.f32 %v7524_v32, %v2064_v39 }
 0x3c5   : > { %vm2082_vm6 = vcmp.lt.s32.totalorder %v6557_v56, 115  ;;  %vm2138_vm7 = vcmp.lt.s32.totalorder %v6557_v56, 106  ;;  %v2164_v0 = vld.sshfl [vmem:[#allocation1] sm:$0xff pattern:$0x75316420] }
 0x3c6   : > { %v2038_v37 = vadd.f32 %v2036_v63, %v2019_v27  ;;  %v2039_v48 = vadd.f32 %v2037_v8, %v2020_v61  ;;  %v2165_v43 = vld.sshfl [vmem:[#allocation1 + $0x8] sm:$0xff pattern:$0x75316420] }
 0x3ca   : > { %v2043_v22 = vpop.permute.xlu1 %2042  ;;  %v2098_v29 = vpop.permute.xlu0 %2097 }
 0x3cb   : > { %v2045_v20 = vsel %vm2044_vm2, %v2041_v40, %v2043_v22  ;;  %v2046_v53 = vsel %vm2044_vm2, %v2043_v22, %v2041_v40  ;;  %v2116_v36 = vpop.permute.xlu2 %2115  ;;  %vm10575_vm2 = vcmp.lt.s32.totalorder %v6557_v56, 109 }
 0x3cc   : > { %v2055_v19 = vmul.f32 %v7489_v50, %v2046_v53  ;;  %v2056_v3 = vmul.f32 %v7491_v5, %v2045_v20 }
 0x3ce   : > { %v2057_v59 = vadd.f32 %v2055_v19, %v2038_v37  ;;  %v2058_v11 = vadd.f32 %v2056_v3, %v2039_v48  ;;  %v2235_v37 = vpop.f32.mrf.mxu1  ;;  %v10858_v48 = vld [vmem:[#allocation48_spill] sm:$0xff] }
 0x3cf   : > { %v7681_v22 = vadd.f32 %v2235_v37, %v10858_v48 }
 0x3d0   : > { %v2077_v62 = vadd.f32 %v2075_v2, %v2058_v11  ;;  %v2076_v9 = vadd.f32 %v2074_v45, %v2057_v59  ;;  %v10861_v59 = vld [vmem:[#allocation45_spill] sm:$0xff] }
 0x3d1   : > { %10860 = vst [vmem:[#allocation58_spill] sm:$0xff] %v7681_v22 }
 0x3d2   : > { %v2079_v49 = vpop.permute.xlu1 %2078  ;;  %v2118_v13 = vpop.permute.xlu0 %2117 }
 0x3d3   : > { %v2083_v50 = vsel %vm2082_vm6, %v2079_v49, %v2081_v30  ;;  %v2084_v5 = vsel %vm2082_vm6, %v2081_v30, %v2079_v49  ;;  %v2137_v15 = vpop.permute.xlu2 %2136  ;;  %v2120_v7 = vsel %vm10575_vm2, %v2116_v36, %v2118_v13 }
 0x3d4   : > { %v2093_v10 = vmul.f32 %v7553_v4, %v2084_v5  ;;  %v2094_v55 = vmul.f32 %v7555_v42, %v2083_v50  ;;  %v2121_v4 = vsel %vm10575_vm2, %v2118_v13, %v2116_v36 }
 0x3d6   : > { %v2095_v26 = vadd.f32 %v2093_v10, %v2076_v9  ;;  %v2096_v16 = vadd.f32 %v2094_v55, %v2077_v62 }
 0x3da   : > { %v2100_v25 = vpop.permute.xlu1 %2099  ;;  %v2154_v34 = vpop.permute.xlu0 %2153 }
 0x3db   : > { %v2101_v1 = vsel %vm1062_vm10, %v2098_v29, %v2100_v25  ;;  %v2102_v32 = vsel %vm1062_vm10, %v2100_v25, %v2098_v29 }
 0x3dc   : > { %v2111_v35 = vmul.f32 %v7584_v6, %v2102_v32  ;;  %v2112_v28 = vmul.f32 %v7586_v33, %v2101_v1  ;;  %v2130_v6 = vmul.f32 %v7627_v57, %v2121_v4  ;;  %v2131_v33 = vmul.f32 %v7629_v46, %v2120_v7 }
 0x3de   : > { %v2113_v44 = vadd.f32 %v2111_v35, %v2095_v26  ;;  %v2114_v21 = vadd.f32 %v2112_v28, %v2096_v16 }
 0x3e0   : > { %v2132_v60 = vadd.f32 %v2130_v6, %v2113_v44  ;;  %v2133_v47 = vadd.f32 %v2131_v33, %v2114_v21 }
 0x3e2   : > { %v2135_v51 = vpop.permute.xlu1 %2134 }
 0x3e3   : > { %v2139_v38 = vsel %vm2138_vm7, %v2135_v51, %v2137_v15  ;;  %v2140_v42 = vsel %vm2138_vm7, %v2137_v15, %v2135_v51  ;;  %vm2470_vm7 = vcmp.lt.s32.totalorder %v6557_v56, 49 }
 0x3e4   : > { %v2149_v54 = vmul.f32 %v2145_v18, %v2140_v42  ;;  %v2150_v40 = vmul.f32 %v2146_v52, %v2139_v38  ;;  %v2238_v18 = vld [vmem:[%s10857_s30] sm:$0x3]  ;;  %v2215_v52 = vpop.f32.mrf.mxu0  ;;  %s10500_s30 = smov 50  }
 0x3e5   : > { %v7678_v41 = vadd.f32 %v2215_v52, %v10858_v48 }
 0x3e6   : > { %v2151_v27 = vadd.f32 %v2149_v54, %v2132_v60  ;;  %v2152_v63 = vadd.f32 %v2150_v40, %v2133_v47 }
 0x3e7   : > { %10859 = vst [vmem:[#allocation57_spill] sm:$0xff] %v7678_v41 }
 0x3ea   : > { %v2156_v23 = vpop.permute.xlu1 %2155 }
 0x3eb   : > { %v2158_v14 = vsel %vm2157_vm4, %v2154_v34, %v2156_v23  ;;  %v2159_v24 = vsel %vm2157_vm4, %v2156_v23, %v2154_v34  ;;  %vm10569_vm4 = vcmask 1041408  }
 0x3ec   : > { %v2168_v31 = vmul.f32 %v2164_v0, %v2159_v24  ;;  %v2169_v61 = vmul.f32 %v2165_v43, %v2158_v14  ;;  %v2327_v39 = vsel %vm10569_vm4, %v7678_v41, -inf  ;;  %v2334_v58 = vsel %vm10569_vm4, %v7681_v22, -inf }
 0x3ed   : > { %v2328_v20 = vrot.slane %v2327_v39, 4  ;;  %v2335_v53 = vrot.slane %v2334_v58, 4 }
 0x3ee   : > { %v2170_v8 = vadd.f32 %v2168_v31, %v2151_v27  ;;  %v2171_v12 = vadd.f32 %v2169_v61, %v2152_v63 }
 0x3ef   : > { %v2329_v19 = vmax.f32 %v2327_v39, %v2328_v20  ;;  %v2336_v3 = vmax.f32 %v2334_v58, %v2335_v53 }
 0x3f0   : > { %v2178_v57 = vadd.f32 %v10856_v17, %v2170_v8  ;;  %v2179_v46 = vadd.f32 %v10856_v17, %v2171_v12 }
 0x3f1   : > { %v2330_v62 = vrot.slane %v2329_v19, 2  ;;  %v2337_v9 = vrot.slane %v2336_v3, 2 }
 0x3f2   : > { %5434 = vmatpush.msk.msra.mxu2 %vm10566_vm3, %v2178_v57  ;;  %5436 = vmatpush.msk.msra.mxu3 %vm10566_vm3, %v2179_v46  ;;  %vm2583_vm3 = vcmp.lt.s32.totalorder %v6557_v56, 47 }
 0x3f3   : > { %5435 = vmatmul.msk.f32.vlgmr.msra.gmra.mxu2 %vm2187_vm1, %v2238_v18  ;;  %5437 = vmatmul.msk.f32.vlgmr.msra.gmra.mxu3 %vm2187_vm1, %v2238_v18  ;;  %v2331_v50 = vmax.f32 %v2329_v19, %v2330_v62  ;;  %v2338_v5 = vmax.f32 %v2336_v3, %v2337_v9  ;;  %vm2413_vm1 = vcmp.lt.s32.totalorder %v6557_v56, 50 }
 0x3f5   : > { %v2332_v55 = vrot.slane %v2331_v50, 1  ;;  %v2339_v35 = vrot.slane %v2338_v5, 1 }
 0x3f7   : > { %v2333_v16 = vmax.f32 %v2331_v50, %v2332_v55  ;;  %v2340_v7 = vmax.f32 %v2338_v5, %v2339_v35 }
 0x476   : > { %v2271_v45 = vpop.f32.mrf.mxu2  ;;  %v2291_v2 = vpop.f32.mrf.mxu3 }
 0x477   : > { %v7688_v11 = vadd.f32 %v2271_v45, %v10861_v59  ;;  %v7691_v30 = vadd.f32 %v2291_v2, %v10861_v59 }
 0x479   : > { %10862 = vst [vmem:[#allocation55_spill] sm:$0xff] %v7688_v11  ;;  %v2341_v49 = vsel %vm10569_vm4, %v7688_v11, -inf  ;;  %v2348_v29 = vsel %vm10569_vm4, %v7691_v30, -inf  ;;  %v2316_v5 = vsel %vm10569_vm4, %v7691_v30, 0.0 }
 0x47a   : > { %10863 = vst [vmem:[#allocation59_spill] sm:$0xff] %v7691_v30  ;;  %v2342_v36 = vrot.slane %v2341_v49, 4  ;;  %v2349_v25 = vrot.slane %v2348_v29, 4 }
 0x47c   : > { %v2343_v1 = vmax.f32 %v2341_v49, %v2342_v36  ;;  %v2350_v32 = vmax.f32 %v2348_v29, %v2349_v25 }
 0x47e   : > { %v2344_v13 = vrot.slane %v2343_v1, 2  ;;  %v2351_v10 = vrot.slane %v2350_v32, 2 }
 0x480   : > { %v2345_v28 = vmax.f32 %v2343_v1, %v2344_v13  ;;  %v2352_v51 = vmax.f32 %v2350_v32, %v2351_v10  ;;  %v2302_v1 = vsel %vm10569_vm4, %v7681_v22, 0.0  ;;  %v2317_v32 = vrot.slane %v2316_v5, 4 }
 0x481   : > { %v2303_v35 = vrot.slane %v2302_v1, 4 }
 0x482   : > { %v2346_v15 = vrot.slane %v2345_v28, 1  ;;  %v2353_v26 = vrot.slane %v2352_v51, 1 }
 0x484   : > { %v2347_v4 = vmax.f32 %v2345_v28, %v2346_v15  ;;  %v2354_v38 = vmax.f32 %v2352_v51, %v2353_v26  ;;  %v2318_v28 = vadd.f32 %v2317_v32, %v2316_v5  ;;  %v2309_v51 = vsel %vm10569_vm4, %v7688_v11, 0.0 }
 0x485   : > { %v2304_v15 = vadd.f32 %v2303_v35, %v2302_v1  ;;  %v2295_v26 = vsel %vm10569_vm4, %v7678_v41, 0.0  ;;  %vm10953_vm4 = vcmp.lt.s32.totalorder %v6557_v56, 51 }
 0x486   : > { %v7697_v42 = vmax.f32 %v2333_v16, %v2347_v4  ;;  %v7699_v44 = vmax.f32 %v2340_v7, %v2354_v38  ;;  %v2310_v16 = vrot.slane %v2309_v51, 4  ;;  %v2319_v7 = vrot.slane %v2318_v28, 2 }
 0x487   : > { %v2296_v1 = vrot.slane %v2295_v26, 4  ;;  %v2305_v32 = vrot.slane %v2304_v15, 2 }
 0x488   : > { %10864 = vst [vmem:[#allocation56_spill] sm:$0xff] %v7697_v42  ;;  %2418 = vrot.lane.b32.xlu0 %v7699_v44, %s10500_s30  ;;  %2365 = vrot.lane.b32.xlu2 %v7699_v44, %s10474_s9  ;;  %v2311_v35 = vadd.f32 %v2310_v16, %v2309_v51  ;;  %v2320_v30 = vadd.f32 %v2319_v7, %v2318_v28 }
 0x489   : > { %10865 = vst [vmem:[#allocation60_spill] sm:$0xff] %v7699_v44  ;;  %2363 = vrot.lane.b32.xlu1 %v7697_v42, %s10474_s9  ;;  %s10492_s9 = smov 46   ;;  %v2297_v11 = vadd.f32 %v2296_v1, %v2295_v26  ;;  %v2306_v22 = vadd.f32 %v2305_v32, %v2304_v15 }
 0x48a   : > { %v2312_v41 = vrot.slane %v2311_v35, 2 }
 0x48c   : > { %v2313_v15 = vadd.f32 %v2312_v41, %v2311_v35 }
 0x48e   : > { %v2314_v1 = vrot.slane %v2313_v15, 1 }
 0x490   : > { %2473 = vrot.lane.b32.xlu0 %v7697_v42, %s10498_s25  ;;  %2416 = vrot.lane.b32.xlu2 %v7697_v42, %s10500_s30  ;;  %s10878_s30 = smov 125  }
 0x491   : > { %2475 = vrot.lane.b32.xlu1 %v7699_v44, %s10498_s25  ;;  %s10877_s25 = smov 127  }
 0x498   : > { %2588 = vrot.lane.b32.xlu0 %v7699_v44, %s10494_s3  ;;  %2531 = vrot.lane.b32.xlu2 %v7699_v44, %s10496_s5 }
 0x499   : > { %2529 = vrot.lane.b32.xlu1 %v7697_v42, %s10496_s5  ;;  %s10876_s5 = smov 126  }
 0x4a0   : > { %2643 = vrot.lane.b32.xlu0 %v7697_v42, %s10492_s9  ;;  %2586 = vrot.lane.b32.xlu2 %v7697_v42, %s10494_s3  ;;  %s10875_s3 = smov 1  }
 0x4a1   : > { %2645 = vrot.lane.b32.xlu1 %v7699_v44, %s10492_s9  ;;  %s10874_s9 = smov 3  }
 0x4a8   : > { %2757 = vrot.lane.b32.xlu0 %v7699_v44, %s10488_s26  ;;  %2701 = vrot.lane.b32.xlu2 %v7699_v44, %s10490_s16 }
 0x4a9   : > { %2699 = vrot.lane.b32.xlu1 %v7697_v42, %s10490_s16  ;;  %s10873_s16 = smov 2  }
 0x4b0   : > { %2811 = vrot.lane.b32.xlu0 %v7697_v42, %s10476_s29  ;;  %2755 = vrot.lane.b32.xlu2 %v7697_v42, %s10488_s26  ;;  %s10872_s26 = smov 13  }
 0x4b1   : > { %2813 = vrot.lane.b32.xlu1 %v7699_v44, %s10476_s29  ;;  %s10866_s29 = smov 19  }
 0x4b8   : > { %2925 = vrot.lane.b32.xlu0 %v7699_v44, %s10478_s19  ;;  %2869 = vrot.lane.b32.xlu2 %v7699_v44, %s10482_s15 }
 0x4b9   : > { %2867 = vrot.lane.b32.xlu1 %v7697_v42, %s10482_s15  ;;  %s10869_s15 = smov 16  }
 0x4c0   : > { %2979 = vrot.lane.b32.xlu0 %v7697_v42, %s10480_s1  ;;  %2923 = vrot.lane.b32.xlu2 %v7697_v42, %s10478_s19  ;;  %s10867_s19 = smov 17  }
 0x4c1   : > { %2981 = vrot.lane.b32.xlu1 %v7699_v44, %s10480_s1  ;;  %s10868_s1 = smov 18  }
 0x4c8   : > { %3093 = vrot.lane.b32.xlu0 %v7699_v44, %s10484_s7  ;;  %3037 = vrot.lane.b32.xlu2 %v7699_v44, %s10486_s10 }
 0x4c9   : > { %3035 = vrot.lane.b32.xlu1 %v7697_v42, %s10486_s10  ;;  %s10871_s10 = smov 15  }
 0x4d0   : > { %3147 = vrot.lane.b32.xlu0 %v7697_v42, %s10866_s29  ;;  %3091 = vrot.lane.b32.xlu2 %v7697_v42, %s10484_s7  ;;  %s10870_s7 = smov 14  }
 0x4d1   : > { %3149 = vrot.lane.b32.xlu1 %v7699_v44, %s10866_s29 }
 0x4d8   : > { %3261 = vrot.lane.b32.xlu0 %v7699_v44, %s10867_s19  ;;  %3205 = vrot.lane.b32.xlu2 %v7699_v44, %s10868_s1 }
 0x4d9   : > { %3203 = vrot.lane.b32.xlu1 %v7697_v42, %s10868_s1 }
 0x4e0   : > { %3315 = vrot.lane.b32.xlu0 %v7697_v42, %s10869_s15  ;;  %3259 = vrot.lane.b32.xlu2 %v7697_v42, %s10867_s19 }
 0x4e1   : > { %3317 = vrot.lane.b32.xlu1 %v7699_v44, %s10869_s15 }
 0x4e2   : > { %v7773_v21 = vpop.permute.xlu2 %2365 }
 0x4e8   : > { %3429 = vrot.lane.b32.xlu0 %v7699_v44, %s10870_s7  ;;  %3373 = vrot.lane.b32.xlu2 %v7699_v44, %s10871_s10 }
 0x4e9   : > { %3371 = vrot.lane.b32.xlu1 %v7697_v42, %s10871_s10 }
 0x4ea   : > { %v7781_v6 = vpop.permute.xlu2 %2416 }
 0x4f0   : > { %3483 = vrot.lane.b32.xlu0 %v7697_v42, %s10872_s26  ;;  %3427 = vrot.lane.b32.xlu2 %v7697_v42, %s10870_s7 }
 0x4f1   : > { %3485 = vrot.lane.b32.xlu1 %v7699_v44, %s10872_s26 }
 0x4f2   : > { %v7789_v33 = vpop.permute.xlu2 %2531 }
 0x4f8   : > { %3597 = vrot.lane.b32.xlu0 %v7699_v44, %s10873_s16  ;;  %3541 = vrot.lane.b32.xlu2 %v7699_v44, %s10874_s9 }
 0x4f9   : > { %3539 = vrot.lane.b32.xlu1 %v7697_v42, %s10874_s9 }
 0x4fa   : > { %v7797_v54 = vpop.permute.xlu0 %2418  ;;  %v7799_v40 = vpop.permute.xlu2 %2586 }
 0x4fb   : > { %v7801_v0 = vpop.permute.xlu1 %2363 }
 0x500   : > { %3651 = vrot.lane.b32.xlu0 %v7697_v42, %s10875_s3  ;;  %3595 = vrot.lane.b32.xlu2 %v7697_v42, %s10873_s16 }
 0x501   : > { %3653 = vrot.lane.b32.xlu1 %v7699_v44, %s10875_s3 }
 0x502   : > { %v7809_v43 = vpop.permute.xlu0 %2473  ;;  %v7811_v34 = vpop.permute.xlu2 %2701 }
 0x503   : > { %v7813_v23 = vpop.permute.xlu1 %2475 }
 0x508   : > { %3809 = vrot.lane.b32.xlu0 %v7699_v44, %s10876_s5  ;;  %3753 = vrot.lane.b32.xlu2 %v7699_v44, %s10877_s25 }
 0x509   : > { %3751 = vrot.lane.b32.xlu1 %v7697_v42, %s10877_s25 }
 0x50a   : > { %v7821_v60 = vpop.permute.xlu0 %2588  ;;  %v7823_v47 = vpop.permute.xlu2 %2755 }
 0x50b   : > { %v7825_v14 = vpop.permute.xlu1 %2529 }
 0x510   : > { %3863 = vrot.lane.b32.xlu0 %v7697_v42, %s10878_s30  ;;  %3807 = vrot.lane.b32.xlu2 %v7697_v42, %s10876_s5 }
 0x511   : > { %3865 = vrot.lane.b32.xlu1 %v7699_v44, %s10878_s30 }
 0x512   : > { %v7833_v24 = vpop.permute.xlu0 %2643  ;;  %v7835_v31 = vpop.permute.xlu2 %2869 }
 0x513   : > { %v7837_v61 = vpop.permute.xlu1 %2645 }
 0x518   : > { %3977 = vrot.lane.b32.xlu0 %v7699_v44, %s10879_s11  ;;  %3921 = vrot.lane.b32.xlu2 %v7699_v44, %s10880_s0 }
 0x519   : > { %3919 = vrot.lane.b32.xlu1 %v7697_v42, %s10880_s0 }
 0x51a   : > { %v7845_v27 = vpop.permute.xlu0 %2757  ;;  %v7847_v63 = vpop.permute.xlu2 %2923 }
 0x51b   : > { %v7849_v8 = vpop.permute.xlu1 %2699 }
 0x520   : > { %4031 = vrot.lane.b32.xlu0 %v7697_v42, %s10881_s2  ;;  %3975 = vrot.lane.b32.xlu2 %v7697_v42, %s10879_s11 }
 0x521   : > { %4033 = vrot.lane.b32.xlu1 %v7699_v44, %s10881_s2 }
 0x522   : > { %v7857_v12 = vpop.permute.xlu0 %2811  ;;  %v7859_v17 = vpop.permute.xlu2 %3037 }
 0x523   : > { %v7861_v57 = vpop.permute.xlu1 %2813 }
 0x528   : > { %4145 = vrot.lane.b32.xlu0 %v7699_v44, %s10882_s4  ;;  %4089 = vrot.lane.b32.xlu2 %v7699_v44, %s10883_s6 }
 0x529   : > { %4087 = vrot.lane.b32.xlu1 %v7697_v42, %s10883_s6 }
 0x52a   : > { %v7869_v46 = vpop.permute.xlu0 %2925  ;;  %v7871_v18 = vpop.permute.xlu2 %3091 }
 0x52b   : > { %v7873_v52 = vpop.permute.xlu1 %2867 }
 0x530   : > { %4199 = vrot.lane.b32.xlu0 %v7697_v42, %s10884_s8  ;;  %4143 = vrot.lane.b32.xlu2 %v7697_v42, %s10882_s4 }
 0x531   : > { %4201 = vrot.lane.b32.xlu1 %v7699_v44, %s10884_s8 }
 0x532   : > { %v7881_v37 = vpop.permute.xlu0 %2979  ;;  %v7883_v48 = vpop.permute.xlu2 %3205 }
 0x533   : > { %10885 = vst [vmem:[#allocation88_spill] sm:$0xff] %v7883_v48  ;;  %v7885_v39 = vpop.permute.xlu1 %2981 }
 0x538   : > { %4313 = vrot.lane.b32.xlu0 %v7699_v44, %s10886_s12  ;;  %4257 = vrot.lane.b32.xlu2 %v7699_v44, %s10887_s13 }
 0x539   : > { %4255 = vrot.lane.b32.xlu1 %v7697_v42, %s10887_s13 }
 0x53a   : > { %v7893_v58 = vpop.permute.xlu0 %3093  ;;  %v7895_v20 = vpop.permute.xlu2 %3259 }
 0x53b   : > { %10888 = vst [vmem:[#allocation79_spill] sm:$0xff] %v7895_v20  ;;  %v7897_v53 = vpop.permute.xlu1 %3035 }
 0x540   : > { %4367 = vrot.lane.b32.xlu0 %v7697_v42, %s10889_s14  ;;  %4311 = vrot.lane.b32.xlu2 %v7697_v42, %s10886_s12 }
 0x541   : > { %4369 = vrot.lane.b32.xlu1 %v7699_v44, %s10889_s14 }
 0x542   : > { %v7905_v19 = vpop.permute.xlu0 %3147  ;;  %v7907_v3 = vpop.permute.xlu2 %3373 }
 0x543   : > { %10890 = vst [vmem:[#allocation34_spill] sm:$0xff] %v7907_v3  ;;  %v7909_v45 = vpop.permute.xlu1 %3149 }
 0x548   : > { %4481 = vrot.lane.b32.xlu0 %v7699_v44, %s10891_s23  ;;  %4425 = vrot.lane.b32.xlu2 %v7699_v44, %s10892_s22 }
 0x549   : > { %4423 = vrot.lane.b32.xlu1 %v7697_v42, %s10892_s22 }
 0x54a   : > { %v7917_v2 = vpop.permute.xlu0 %3261  ;;  %v7919_v59 = vpop.permute.xlu2 %3427 }
 0x54b   : > { %10893 = vst [vmem:[#allocation35_spill] sm:$0xff] %v7917_v2  ;;  %v7921_v62 = vpop.permute.xlu1 %3203 }
 0x54c   : > { %10894 = vst [vmem:[#allocation36_spill] sm:$0xff] %v7919_v59 }
 0x54d   : > { %10895 = vst [vmem:[#allocation37_spill] sm:$0xff] %v7921_v62  ;;  %v8137_v62 = vld [vmem:[#allocation11 + $0x4] ss:$8 sm:$0x3] }
 0x550   : > { %4535 = vrot.lane.b32.xlu0 %v7697_v42, %s10896_s18  ;;  %4479 = vrot.lane.b32.xlu2 %v7697_v42, %s10891_s23 }
 0x551   : > { %4537 = vrot.lane.b32.xlu1 %v7699_v44, %s10896_s18 }
 0x552   : > { %v7929_v9 = vpop.permute.xlu0 %3315  ;;  %v7931_v49 = vpop.permute.xlu2 %3541 }
 0x553   : > { %10897 = vst [vmem:[#allocation38_spill] sm:$0xff] %v7929_v9  ;;  %v7933_v29 = vpop.permute.xlu1 %3317 }
 0x554   : > { %10898 = vst [vmem:[#allocation39_spill] sm:$0xff] %v7931_v49  ;;  %v2321_v49 = vrot.slane %v2320_v30, 1 }
 0x555   : > { %10899 = vst [vmem:[#allocation83_spill] sm:$0xff] %v7933_v29 }
 0x556   : > { %v2322_v26 = vadd.f32 %v2321_v49, %v2320_v30 }
 0x558   : > { %4649 = vrot.lane.b32.xlu0 %v7699_v44, %s10900_s24  ;;  %4593 = vrot.lane.b32.xlu2 %v7699_v44, %s10901_s27 }
 0x559   : > { %4591 = vrot.lane.b32.xlu1 %v7697_v42, %s10901_s27 }
 0x55a   : > { %v7941_v36 = vpop.permute.xlu0 %3429  ;;  %v7943_v25 = vpop.permute.xlu2 %3595 }
 0x55b   : > { %10902 = vst [vmem:[#allocation75_spill] sm:$0xff] %v7941_v36  ;;  %v7945_v50 = vpop.permute.xlu1 %3371  ;;  %v8159_v36 = vld [vmem:[#allocation14 + $0x3] ss:$8 sm:$0x3] }
 0x55c   : > { %10903 = vst [vmem:[#allocation78_spill] sm:$0xff] %v7943_v25 }
 0x55d   : > { %10904 = vst [vmem:[#allocation93_spill] sm:$0xff] %v7945_v50  ;;  %v8123_v50 = vld [vmem:[#allocation11 + $0x2] ss:$8 sm:$0x3] }
 0x560   : > { %4703 = vrot.lane.b32.xlu0 %v7697_v42, %s10905_s21  ;;  %4647 = vrot.lane.b32.xlu2 %v7697_v42, %s10900_s24 }
 0x561   : > { %4705 = vrot.lane.b32.xlu1 %v7699_v44, %s10905_s21 }
 0x562   : > { %v7957_v13 = vpop.permute.xlu0 %3483  ;;  %v3754_v10 = vpop.permute.xlu2 %3753 }
 0x563   : > { %10906 = vst [vmem:[#allocation98_spill] sm:$0xff] %v7957_v13  ;;  %v7959_v55 = vpop.permute.xlu1 %3485  ;;  %v2307_v13 = vrot.slane %v2306_v22, 1 }
 0x564   : > { %10907 = vst [vmem:[#allocation87_spill] sm:$0xff] %v7959_v55  ;;  %v2298_v55 = vrot.slane %v2297_v11, 2 }
 0x565   : > { %v2308_v7 = vadd.f32 %v2307_v13, %v2306_v22 }
 0x566   : > { %v2299_v16 = vadd.f32 %v2298_v55, %v2297_v11  ;;  %v2315_v55 = vadd.f32 %v2314_v1, %v2313_v15 }
 0x567   : > { %v2324_v32 = vadd.f32 %v2322_v26, %v2308_v7 }
 0x568   : > { %4819 = vrot.lane.b32.xlu0 %v7699_v44, %s10519_s20  ;;  %4762 = vrot.lane.b32.xlu2 %v7699_v44, %s10529_s17  ;;  %s10910_s20 = smov 80   ;;  %v2300_v30 = vrot.slane %v2299_v16, 1 }
 0x569   : > { %4760 = vrot.lane.b32.xlu1 %v7697_v42, %s10529_s17  ;;  %s10535_s17 = smov 78  }
 0x56a   : > { %v7971_v4 = vpop.permute.xlu0 %3597  ;;  %v3808_v38 = vpop.permute.xlu2 %3807  ;;  %v2301_v35 = vadd.f32 %v2300_v30, %v2299_v16 }
 0x56b   : > { %10908 = vst [vmem:[#allocation40_spill] sm:$0xff] %v7971_v4  ;;  %v7973_v5 = vpop.permute.xlu1 %3539 }
 0x56c   : > { %10909 = vst [vmem:[#allocation41_spill] sm:$0xff] %v7973_v5 }
 0x570   : > { %4873 = vrot.lane.b32.xlu0 %v7697_v42, %s10910_s20  ;;  %4817 = vrot.lane.b32.xlu2 %v7697_v42, %s10911_s28  ;;  %s10919_s28 = smov 50  }
 0x571   : > { %4875 = vrot.lane.b32.xlu1 %v7699_v44, %s10910_s20  ;;  %s10533_s20 = smov 79  }
 0x572   : > { %v3652_v25 = vpop.permute.xlu0 %3651  ;;  %v3922_v4 = vpop.permute.xlu2 %3921 }
 0x573   : > { %v3654_v5 = vpop.permute.xlu1 %3653 }
 0x574   : > { %v7983_v28 = vsel %vm931_vm11, %v3652_v25, %v3654_v5  ;;  %v7987_v51 = vsel %vm931_vm11, %v3654_v5, %v3652_v25  ;;  %v8011_v5 = vmul.f32 0.25, %v2324_v32 }
 0x575   : > { %10912 = vst [vmem:[#allocation42_spill] sm:$0xff] %v7983_v28 }
 0x576   : > { %10913 = vst [vmem:[#allocation43_spill] sm:$0xff] %v7987_v51 }
 0x578   : > { %4989 = vrot.lane.b32.xlu0 %v7699_v44, %s10535_s17  ;;  %4932 = vrot.lane.b32.xlu2 %v7699_v44, %s10533_s20 }
 0x579   : > { %4930 = vrot.lane.b32.xlu1 %v7697_v42, %s10533_s20  ;;  %s10918_s20 = smov 51  }
 0x57a   : > { %v3810_v28 = vpop.permute.xlu0 %3809  ;;  %v3976_v25 = vpop.permute.xlu2 %3975 }
 0x57b   : > { %v7997_v41 = vsel %vm990_vm13, %v3808_v38, %v3810_v28  ;;  %v8001_v22 = vsel %vm990_vm13, %v3810_v28, %v3808_v38  ;;  %v3752_v11 = vpop.permute.xlu1 %3751  ;;  %v2323_v38 = vadd.f32 %v2315_v55, %v2301_v35 }
 0x57c   : > { %10914 = vst [vmem:[#allocation44_spill] sm:$0xff] %v7997_v41  ;;  %v8005_v49 = vsel %vm966_vm12, %v3752_v11, %v3754_v10  ;;  %v8009_v13 = vsel %vm966_vm12, %v3754_v10, %v3752_v11  ;;  %v8109_v41 = vld [vmem:[#allocation11] ss:$8 sm:$0x3] }
 0x57d   : > { %10915 = vst [vmem:[#allocation49_spill] sm:$0xff] %v8001_v22  ;;  %v8027_v16 = vmul.f32 0.25, %v2323_v38 }
 0x57e   : > { %10916 = vst [vmem:[#allocation92_spill] sm:$0xff] %v8005_v49  ;;  %v8107_v49 = vld [vmem:[#allocation14 + $0x1] ss:$8 sm:$0x3] }
 0x57f   : > { %10917 = vst [vmem:[#allocation82_spill] sm:$0xff] %v8009_v13  ;;  %v8105_v13 = vld [vmem:[#allocation11 + $0x1] ss:$8 sm:$0x3] }
 0x580   : > { %2359 = vrot.lane.b32.xlu0 %v8011_v5, %s10918_s20  ;;  %4987 = vrot.lane.b32.xlu2 %v7697_v42, %s10535_s17  ;;  %s10922_s17 = smov 49  }
 0x581   : > { %2411 = vrot.lane.b32.xlu1 %v8011_v5, %s10919_s28 }
 0x582   : > { %v3864_v28 = vpop.permute.xlu0 %3863  ;;  %v4090_v26 = vpop.permute.xlu2 %4089 }
 0x583   : > { %v3866_v7 = vpop.permute.xlu1 %3865 }
 0x584   : > { %v8021_v10 = vsel %vm1722_vm5, %v3864_v28, %v3866_v7  ;;  %v8025_v15 = vsel %vm1722_vm5, %v3866_v7, %v3864_v28 }
 0x585   : > { %10920 = vst [vmem:[#allocation86_spill] sm:$0xff] %v8021_v10 }
 0x586   : > { %10921 = vst [vmem:[#allocation103_spill] sm:$0xff] %v8025_v15  ;;  %v3735_v15 = vld [vmem:[#allocation14 + $0x30] ss:$8 sm:$0x3] }
 0x587   : > { %v3738_v10 = vperm.slane %v3735_v15, 1 }
 0x588   : > { %2409 = vrot.lane.b32.xlu0 %v8027_v16, %s10919_s28  ;;  %2357 = vrot.lane.b32.xlu2 %v8027_v16, %s10918_s20  ;;  %s10927_s28 = smov 48   ;;  %s10928_s20 = smov 47  }
 0x589   : > { %2466 = vrot.lane.b32.xlu1 %v8027_v16, %s10922_s17 }
 0x58a   : > { %v3978_v1 = vpop.permute.xlu0 %3977  ;;  %v4144_v32 = vpop.permute.xlu2 %4143 }
 0x58b   : > { %v8037_v11 = vsel %vm1014_vm14, %v3976_v25, %v3978_v1  ;;  %v8041_v30 = vsel %vm1014_vm14, %v3978_v1, %v3976_v25  ;;  %v3920_v55 = vpop.permute.xlu1 %3919 }
 0x58c   : > { %10923 = vst [vmem:[#allocation97_spill] sm:$0xff] %v8037_v11  ;;  %v8045_v35 = vsel %vm2082_vm6, %v3920_v55, %v3922_v4  ;;  %v8049_v38 = vsel %vm2082_vm6, %v3922_v4, %v3920_v55  ;;  %v8091_v11 = vld [vmem:[#allocation9 + $0x30] ss:$8 sm:$0x3] }
 0x58d   : > { %10924 = vst [vmem:[#allocation50_spill] sm:$0xff] %v8041_v30  ;;  %v3713_v30 = vld [vmem:[#allocation11 + $0x30] ss:$8 sm:$0x3] }
 0x58e   : > { %10925 = vst [vmem:[#allocation51_spill] sm:$0xff] %v8045_v35 }
 0x58f   : > { %10926 = vst [vmem:[#allocation52_spill] sm:$0xff] %v8049_v38 }
 0x590   : > { %2525 = vrot.lane.b32.xlu0 %v8011_v5, %s10927_s28  ;;  %2468 = vrot.lane.b32.xlu2 %v8011_v5, %s10922_s17  ;;  %s10931_s17 = smov 46  }
 0x591   : > { %2581 = vrot.lane.b32.xlu1 %v8011_v5, %s10928_s20 }
 0x592   : > { %v4032_v25 = vpop.permute.xlu0 %4031  ;;  %v8057_v28 = vpop.permute.xlu2 %4257 }
 0x593   : > { %v4034_v7 = vpop.permute.xlu1 %4033 }
 0x594   : > { %v8061_v1 = vsel %vm1038_vm15, %v4032_v25, %v4034_v7  ;;  %v8065_v4 = vsel %vm1038_vm15, %v4034_v7, %v4032_v25 }
 0x595   : > { %10929 = vst [vmem:[#allocation53_spill] sm:$0xff] %v8061_v1 }
 0x596   : > { %10930 = vst [vmem:[#allocation54_spill] sm:$0xff] %v8065_v4 }
 0x598   : > { %2579 = vrot.lane.b32.xlu0 %v8027_v16, %s10928_s20  ;;  %2523 = vrot.lane.b32.xlu2 %v8027_v16, %s10927_s28  ;;  %s10936_s28 = smov 45   ;;  %s10937_s20 = smov 35  }
 0x599   : > { %2636 = vrot.lane.b32.xlu1 %v8027_v16, %s10931_s17 }
 0x59a   : > { %v4146_v55 = vpop.permute.xlu0 %4145  ;;  %v8073_v38 = vpop.permute.xlu2 %4311 }
 0x59b   : > { %v8077_v35 = vsel %vm10586_vm8, %v4144_v32, %v4146_v55  ;;  %v8081_v25 = vsel %vm10586_vm8, %v4146_v55, %v4144_v32  ;;  %v4088_v7 = vpop.permute.xlu1 %4087  ;;  %v3715_v32 = vperm.slane %v3713_v30, 0  ;;  %v3716_v55 = vperm.slane %v3713_v30, 1 }
 0x59c   : > { %10932 = vst [vmem:[#allocation47_spill] sm:$0xff] %v8077_v35  ;;  %v8085_v4 = vsel %vm1062_vm10, %v4088_v7, %v4090_v26  ;;  %v8089_v1 = vsel %vm1062_vm10, %v4090_v26, %v4088_v7  ;;  %v3704_v7 = vperm.slane %v8091_v11, 0  ;;  %v3737_v35 = vperm.slane %v3735_v15, 0  ;;  %v8121_v15 = vld [vmem:[#allocation14] ss:$8 sm:$0x3] }
 0x59d   : > { %10933 = vst [vmem:[#allocation102_spill] sm:$0xff] %v8081_v25  ;;  %v8151_v29 = vmul.f32 %v3715_v32, %v7697_v42  ;;  %v8154_v48 = vmul.f32 %v3716_v55, %v7699_v44  ;;  %v8182_v32 = vld [vmem:[#allocation11 + $0x5] ss:$8 sm:$0x3]  ;;  %v8185_v55 = vmul.f32 %v3738_v10, %v7699_v44 }
 0x59e   : > { %10934 = vst [vmem:[#allocation91_spill] sm:$0xff] %v8085_v4  ;;  %v8099_v4 = vld [vmem:[#allocation12 + $0x30] ss:$8 sm:$0x3]  ;;  %v8164_v2 = vmul.f32 %v3737_v35, %v7697_v42  ;;  %v8212_v42 = vmul.f32 %v3704_v7, %v8027_v16  ;;  %v10957_v7 = vperm.slane %v8105_v13, 0 }
 0x59f   : > { %10935 = vst [vmem:[#allocation96_spill] sm:$0xff] %v8089_v1  ;;  %v3705_v1 = vperm.slane %v8091_v11, 1  ;;  %v3726_v3 = vperm.slane %v8099_v4, 0  ;;  %v3727_v11 = vperm.slane %v8099_v4, 1 }
 0x5a0   : > { %2695 = vrot.lane.b32.xlu0 %v8011_v5, %s10936_s28  ;;  %2638 = vrot.lane.b32.xlu2 %v8011_v5, %s10931_s17  ;;  %s10940_s17 = smov 34   ;;  %10941 = vst [vmem:[#allocation63_spill] sm:$0xff] %v8151_v29  ;;  %v8203_v10 = vld [vmem:[#allocation14 + $0x7] ss:$8 sm:$0x3] }
 0x5a1   : > { %2751 = vrot.lane.b32.xlu1 %v8011_v5, %s10937_s20  ;;  %10942 = vst [vmem:[#allocation64_spill] sm:$0xff] %v8154_v48  ;;  %v8206_v48 = vmul.f32 %v3705_v1, %v8011_v5  ;;  %v8209_v29 = vmul.f32 %v3727_v11, %v8011_v5  ;;  %v8215_v35 = vmul.f32 %v3726_v3, %v8027_v16  ;;  %v8263_v44 = vld [vmem:[#allocation14 + $0x6] ss:$8 sm:$0x3] }
 0x5a2   : > { %v4200_v25 = vpop.permute.xlu0 %4199  ;;  %v8101_v26 = vpop.permute.xlu2 %4425  ;;  %10943 = vst [vmem:[#allocation65_spill] sm:$0xff] %v8164_v2  ;;  %v8201_v2 = vld [vmem:[#allocation11 + $0x7] ss:$8 sm:$0x3]  ;;  %v2421_v1 = vsel %vm2413_vm1, %v7797_v54, %v7781_v6  ;;  %v2368_v3 = vsel %vm10953_vm4, %v7773_v21, %v7801_v0 }
 0x5a3   : > { %v4202_v22 = vpop.permute.xlu1 %4201  ;;  %10946 = vst [vmem:[#allocation67_spill] sm:$0xff] %v8185_v55  ;;  %v8252_v11 = vmul.f32 %v10957_v7, %v2421_v1  ;;  %v10965_v7 = vperm.slane %v8109_v41, 0 }
 0x5a4   : > { %v8113_v30 = vsel %vm10578_vm9, %v4200_v25, %v4202_v22  ;;  %v8117_v51 = vsel %vm10578_vm9, %v4202_v22, %v4200_v25  ;;  %v8144_v22 = vld [vmem:[#allocation14 + $0x4] ss:$8 sm:$0x3]  ;;  %v8146_v25 = vld [vmem:[#allocation11 + $0x3] ss:$8 sm:$0x3] }
 0x5a5   : > { %10938 = vst [vmem:[#allocation61_spill] sm:$0xff] %v8113_v30  ;;  %vm10987_vm9 = vcmp.lt.s32.totalorder %v6557_v56, 96 }
 0x5a6   : > { %10939 = vst [vmem:[#allocation62_spill] sm:$0xff] %v8117_v51  ;;  %v8132_v51 = vld [vmem:[#allocation14 + $0x2] ss:$8 sm:$0x3] }
 0x5a7   : > { %10949 = vst [vmem:[#allocation70_spill] sm:$0xff] %v8206_v48 }
 0x5a8   : > { %2749 = vrot.lane.b32.xlu0 %v8027_v16, %s10937_s20  ;;  %2693 = vrot.lane.b32.xlu2 %v8027_v16, %s10936_s28  ;;  %10950 = vst [vmem:[#allocation71_spill] sm:$0xff] %v8209_v29  ;;  %v8234_v29 = vld [vmem:[#allocation11 + $0x6] ss:$8 sm:$0x3]  ;;  %s10954_s28 = smov 33   ;;  %s10956_s20 = smov 32  }
 0x5a9   : > { %2805 = vrot.lane.b32.xlu1 %v8027_v16, %s10940_s17  ;;  %10951 = vst [vmem:[#allocation72_spill] sm:$0xff] %v8212_v42  ;;  %v10963_v42 = vperm.slane %v8107_v49, 1 }
 0x5aa   : > { %v4314_v59 = vpop.permute.xlu0 %4313  ;;  %v8161_v20 = vpop.permute.xlu2 %4479  ;;  %10952 = vst [vmem:[#allocation73_spill] sm:$0xff] %v8215_v35 }
 0x5ab   : > { %v8172_v9 = vsel %vm10571_vm0, %v8073_v38, %v4314_v59  ;;  %v8177_v30 = vsel %vm10571_vm0, %v4314_v59, %v8073_v38  ;;  %v4256_v4 = vpop.permute.xlu1 %4255  ;;  %vm10955_vm0 = vmmov %vm10953_vm4  ;;  %vm2640_vm4 = vcmp.lt.s32.totalorder %v6557_v56, 46  ;;  %10958 = vst [vmem:[#allocation74_spill] sm:$0xff] %v8252_v11  ;;  %v8344_v11 = vld [vmem:[#allocation11 + $0x11] ss:$8 sm:$0x3] }
 0x5ac   : > { %10944 = vst [vmem:[#allocation66_spill] sm:$0xff] %v8172_v9  ;;  %v8189_v9 = vld [vmem:[#allocation14 + $0x5] ss:$8 sm:$0x3]  ;;  %v8194_v59 = vsel %vm10575_vm2, %v4256_v4, %v8057_v28  ;;  %v8199_v38 = vsel %vm10575_vm2, %v8057_v28, %v4256_v4  ;;  %v2420_v28 = vsel %vm2413_vm1, %v7781_v6, %v7797_v54  ;;  %v2367_v6 = vsel %vm10955_vm0, %v7801_v0, %v7773_v21 }
 0x5ad   : > { %10945 = vst [vmem:[#allocation68_spill] sm:$0xff] %v8177_v30  ;;  %v10959_v4 = vperm.slane %v8105_v13, 1  ;;  %v10961_v21 = vperm.slane %v8107_v49, 0  ;;  %v8273_v13 = vmul.f32 %v10965_v7, %v2368_v3  ;;  %v8287_v49 = vld [vmem:[#allocation14 + $0x10] ss:$8 sm:$0x3] }
 0x5ae   : > { %10947 = vst [vmem:[#allocation101_spill] sm:$0xff] %v8194_v59  ;;  %v10966_v59 = vperm.slane %v8109_v41, 1  ;;  %vm10967_vm0 = vcmp.lt.s32.totalorder %v6557_v56, 98 }
 0x5af   : > { %10948 = vst [vmem:[#allocation69_spill] sm:$0xff] %v8199_v38  ;;  %v8256_v35 = vmul.f32 %v10959_v4, %v2420_v28  ;;  %v8260_v0 = vmul.f32 %v10961_v21, %v2421_v1  ;;  %v8269_v38 = vmul.f32 %v10963_v42, %v2420_v28  ;;  %v8277_v21 = vld [vmem:[#allocation11 + $0x10] ss:$8 sm:$0x3]  ;;  %v2478_v42 = vsel %vm2470_vm7, %v7813_v23, %v7809_v43  ;;  %vm10969_vm2 = vmmov %vm10967_vm0 }
 0x5b0   : > { %2863 = vrot.lane.b32.xlu0 %v8011_v5, %s10954_s28  ;;  %2807 = vrot.lane.b32.xlu2 %v8011_v5, %s10940_s17  ;;  %v8281_v30 = vmul.f32 %v10966_v59, %v2367_v6  ;;  %v10971_v1 = vperm.slane %v8121_v15, 0  ;;  %v10972_v59 = vperm.slane %v8121_v15, 1  ;;  %s10979_s17 = smov 31  }
 0x5b1   : > { %2919 = vrot.lane.b32.xlu1 %v8011_v5, %s10956_s20  ;;  %10960 = vst [vmem:[#allocation76_spill] sm:$0xff] %v8256_v35 }
 0x5b2   : > { %10962 = vst [vmem:[#allocation77_spill] sm:$0xff] %v8260_v0  ;;  %v4368_v55 = vpop.permute.xlu0 %4367  ;;  %v8265_v48 = vpop.permute.xlu2 %4593  ;;  %v8299_v41 = vmul.f32 %v10971_v1, %v2368_v3  ;;  %v8303_v4 = vmul.f32 %v10972_v59, %v2367_v6  ;;  %v10973_v1 = vperm.slane %v8123_v50, 0  ;;  %v10975_v3 = vperm.slane %v8123_v50, 1 }
 0x5b3   : > { %10964 = vst [vmem:[#allocation80_spill] sm:$0xff] %v8269_v38  ;;  %v4370_v54 = vpop.permute.xlu1 %4369  ;;  %v2477_v38 = vsel %vm2470_vm7, %v7809_v43, %v7813_v23  ;;  %v2590_v23 = vsel %vm2583_vm3, %v7799_v40, %v7821_v60  ;;  %v10976_v6 = vperm.slane %v8132_v51, 0 }
 0x5b4   : > { %v8291_v28 = vsel %vm10967_vm0, %v4368_v55, %v4370_v54  ;;  %v8295_v7 = vsel %vm10969_vm2, %v4370_v54, %v4368_v55  ;;  %v2591_v55 = vsel %vm2583_vm3, %v7821_v60, %v7799_v40  ;;  %v8319_v54 = vld [vmem:[#allocation14 + $0x12] ss:$8 sm:$0x3]  ;;  %v8323_v43 = vmul.f32 %v10973_v1, %v2478_v42 }
 0x5b5   : > { %10968 = vst [vmem:[#allocation81_spill] sm:$0xff] %v8291_v28  ;;  %v8310_v28 = vld [vmem:[#allocation11 + $0x12] ss:$8 sm:$0x3]  ;;  %v8333_v15 = vmul.f32 %v10975_v3, %v2477_v38  ;;  %v10977_v1 = vperm.slane %v8132_v51, 1  ;;  %v10978_v40 = vperm.slane %v8137_v62, 0 }
 0x5b6   : > { %10970 = vst [vmem:[#allocation84_spill] sm:$0xff] %v8295_v7  ;;  %v8337_v7 = vmul.f32 %v10976_v6, %v2478_v42  ;;  %v8357_v42 = vld [vmem:[#allocation14 + $0x11] ss:$8 sm:$0x3]  ;;  %v10980_v3 = vperm.slane %v8137_v62, 1  ;;  %vm10985_vm2 = vcmp.lt.s32.totalorder %v6557_v56, 48 }
 0x5b7   : > { %10974 = vst [vmem:[#allocation85_spill] sm:$0xff] %v8323_v43  ;;  %v8341_v43 = vmul.f32 %v10977_v1, %v2477_v38  ;;  %v8352_v60 = vmul.f32 %v10978_v40, %v2591_v55  ;;  %v10981_v1 = vperm.slane %v8144_v22, 0  ;;  %v10983_v40 = vperm.slane %v8144_v22, 1  ;;  %v8377_v51 = vld [vmem:[#allocation11 + $0x13] ss:$8 sm:$0x3]  ;;  %vm10986_vm0 = vmmov %vm10985_vm2 }
 0x5b8   : > { %2917 = vrot.lane.b32.xlu0 %v8027_v16, %s10956_s20  ;;  %2861 = vrot.lane.b32.xlu2 %v8027_v16, %s10954_s28  ;;  %v8363_v6 = vmul.f32 %v10980_v3, %v2590_v23  ;;  %v2533_v38 = vsel %vm10985_vm2, %v7825_v14, %v7789_v33  ;;  %v2534_v62 = vsel %vm10986_vm0, %v7789_v33, %v7825_v14  ;;  %vm10989_vm2 = vmmov %vm10987_vm9  ;;  %s11006_s28 = smov 30   ;;  %s11009_s20 = smov 29  }
 0x5b9   : > { %2973 = vrot.lane.b32.xlu1 %v8027_v16, %s10979_s17  ;;  %v8367_v35 = vmul.f32 %v10981_v1, %v2591_v55  ;;  %v8371_v50 = vmul.f32 %v10983_v40, %v2590_v23  ;;  %v2648_v1 = vsel %vm2640_vm4, %v7837_v61, %v7833_v24  ;;  %v8403_v55 = vld [vmem:[#allocation14 + $0x13] ss:$8 sm:$0x3]  ;;  %v10995_v40 = vperm.slane %v8146_v25, 0 }
 0x5ba   : > { %v4482_v0 = vpop.permute.xlu0 %4481  ;;  %v8379_v59 = vpop.permute.xlu2 %4647 }
 0x5bb   : > { %10982 = vst [vmem:[#allocation89_spill] sm:$0xff] %v8367_v35  ;;  %v8389_v22 = vsel %vm10987_vm9, %v8161_v20, %v4482_v0  ;;  %v8394_v23 = vsel %vm10989_vm2, %v4482_v0, %v8161_v20  ;;  %v4424_v3 = vpop.permute.xlu1 %4423  ;;  %v2647_v20 = vsel %vm2640_vm4, %v7833_v24, %v7837_v61  ;;  %vm10991_vm9 = vcmp.lt.s32.totalorder %v6557_v56, 97  ;;  %v8436_v35 = vld [vmem:[#allocation11 + $0x15] ss:$8 sm:$0x3] }
 0x5bc   : > { %10984 = vst [vmem:[#allocation90_spill] sm:$0xff] %v8371_v50  ;;  %vm10993_vm0 = vmmov %vm10991_vm9  ;;  %v8422_v33 = vmul.f32 %v10995_v40, %v2534_v62  ;;  %v10997_v24 = vperm.slane %v8159_v36, 0  ;;  %v10998_v0 = vperm.slane %v8159_v36, 1  ;;  %vm11001_vm2 = vcmp.lt.s32.totalorder %v6557_v56, 35 }
 0x5bd   : > { %10988 = vst [vmem:[#allocation94_spill] sm:$0xff] %v8389_v22  ;;  %v8418_v14 = vsel %vm10993_vm0, %v8101_v26, %v4424_v3  ;;  %v10996_v22 = vperm.slane %v8146_v25, 1  ;;  %v2760_v25 = vsel %vm11001_vm2, %v7845_v27, %v7823_v47  ;;  %v11002_v36 = vperm.slane %v8182_v32, 1 }
 0x5be   : > { %10990 = vst [vmem:[#allocation95_spill] sm:$0xff] %v8394_v23  ;;  %v8413_v23 = vsel %vm10991_vm9, %v4424_v3, %v8101_v26  ;;  %v8430_v61 = vmul.f32 %v10997_v24, %v2534_v62  ;;  %v8438_v26 = vld [vmem:[#allocation14 + $0x15] ss:$8 sm:$0x3]  ;;  %v10999_v3 = vperm.slane %v8182_v32, 0  ;;  %vm11005_vm9 = vmmov %vm11001_vm2  ;;  %v11007_v32 = vperm.slane %v8189_v9, 1 }
 0x5bf   : > { %10992 = vst [vmem:[#allocation99_spill] sm:$0xff] %v8413_v23  ;;  %v8426_v50 = vmul.f32 %v10996_v22, %v2533_v38  ;;  %v8434_v23 = vmul.f32 %v10998_v0, %v2533_v38  ;;  %v8452_v38 = vmul.f32 %v11002_v36, %v2647_v20  ;;  %v11003_v0 = vperm.slane %v8189_v9, 0 }
 0x5c0   : > { %10994 = vst [vmem:[#allocation100_spill] sm:$0xff] %v8418_v14  ;;  %v8442_v40 = vmul.f32 %v10999_v3, %v2648_v1  ;;  %v2759_v3 = vsel %vm11005_vm9, %v7823_v47, %v7845_v27  ;;  %3031 = vrot.lane.b32.xlu0 %v8011_v5, %s11006_s28  ;;  %2975 = vrot.lane.b32.xlu2 %v8011_v5, %s10979_s17  ;;  %v11010_v27 = vperm.slane %v8201_v2, 0  ;;  %vm11012_vm0 = vcmp.lt.s32.totalorder %v6557_v56, 45  ;;  %v8491_v47 = vld [vmem:[#allocation14 + $0x14] ss:$8 sm:$0x3] }
 0x5c1   : > { %v8456_v24 = vmul.f32 %v11003_v0, %v2648_v1  ;;  %v8471_v36 = vmul.f32 %v11007_v32, %v2647_v20  ;;  %3087 = vrot.lane.b32.xlu1 %v8011_v5, %s11009_s20  ;;  %v2703_v9 = vsel %vm11012_vm0, %v7849_v8, %v7811_v34  ;;  %vm11013_vm2 = vmmov %vm11012_vm0  ;;  %v11016_v62 = vperm.slane %v8203_v10, 0 }
 0x5c2   : > { %11000 = vst [vmem:[#allocation46_spill] sm:$0xff] %v8442_v40  ;;  %v8463_v40 = vld [vmem:[#allocation11 + $0x14] ss:$8 sm:$0x3]  ;;  %v8480_v14 = vmul.f32 %v11010_v27, %v2760_v25  ;;  %v2704_v20 = vsel %vm11013_vm2, %v7811_v34, %v7849_v8  ;;  %v4536_v0 = vpop.permute.xlu0 %4535  ;;  %v8493_v1 = vpop.permute.xlu2 %4762  ;;  %v11014_v27 = vperm.slane %v8201_v2, 1  ;;  %vm11020_vm9 = vcmp.lt.s32.totalorder %v6557_v56, 34 }
 0x5c3   : > { %11004 = vst [vmem:[#allocation48_spill] sm:$0xff] %v8456_v24  ;;  %v8508_v8 = vld [vmem:[#allocation11 + $0x16] ss:$8 sm:$0x3]  ;;  %v4538_v32 = vpop.permute.xlu1 %4537  ;;  %v2816_v2 = vsel %vm11020_vm9, %v7861_v57, %v7857_v12  ;;  %vm11021_vm0 = vcmp.lt.s32.totalorder %v6557_v56, 95 }
 0x5c4   : > { %11008 = vst [vmem:[#allocation45_spill] sm:$0xff] %v8471_v36  ;;  %v8497_v22 = vmul.f32 %v11014_v27, %v2759_v3  ;;  %v11018_v36 = vperm.slane %v8203_v10, 1  ;;  %vm11023_vm2 = vmmov %vm11021_vm0  ;;  %v11027_v27 = vperm.slane %v8263_v44, 0 }
 0x5c5   : > { %11011 = vst [vmem:[#allocation104_spill] sm:$0xff] %v8480_v14  ;;  %v8501_v14 = vmul.f32 %v11016_v62, %v2760_v25  ;;  %v8519_v25 = vsel %vm11021_vm0, %v4536_v0, %v4538_v32  ;;  %v8523_v10 = vsel %vm11023_vm2, %v4538_v32, %v4536_v0  ;;  %v11025_v62 = vperm.slane %v8234_v29, 0 }
 0x5c6   : > { %11015 = vst [vmem:[#allocation105_spill] sm:$0xff] %v8497_v22  ;;  %v8505_v24 = vmul.f32 %v11018_v36, %v2759_v3  ;;  %v8515_v22 = vld [vmem:[#allocation14 + $0x16] ss:$8 sm:$0x3]  ;;  %v11026_v36 = vperm.slane %v8234_v29, 1  ;;  %v11028_v0 = vperm.slane %v8263_v44, 1 }
 0x5c7   : > { %11017 = vst [vmem:[#allocation106_spill] sm:$0xff] %v8501_v14  ;;  %v8527_v3 = vmul.f32 %v11025_v62, %v2704_v20  ;;  %vm11032_vm0 = vcmp.lt.s32.totalorder %v6557_v56, 32  ;;  %v8607_v44 = vld [vmem:[#allocation14 + $0x17] ss:$8 sm:$0x3] }
 0x5c8   : > { %11019 = vst [vmem:[#allocation107_spill] sm:$0xff] %v8505_v24  ;;  %v8531_v34 = vmul.f32 %v11026_v36, %v2703_v9  ;;  %v8535_v24 = vmul.f32 %v11027_v27, %v2704_v20  ;;  %v8543_v32 = vmul.f32 %v11028_v0, %v2703_v9  ;;  %v8548_v36 = vld [vmem:[#allocation11 + $0x20] ss:$8 sm:$0x3]  ;;  %v11030_v20 = vperm.slane %v8277_v21, 0  ;;  %3085 = vrot.lane.b32.xlu0 %v8027_v16, %s11009_s20  ;;  %vm11039_vm2 = vmmov %vm11032_vm0 }
 0x5c9   : > { %11022 = vst [vmem:[#allocation108_spill] sm:$0xff] %v8519_v25  ;;  %v2815_v25 = vsel %vm11020_vm9, %v7857_v12, %v7861_v57  ;;  %v2928_v12 = vsel %vm11032_vm0, %v7869_v46, %v7847_v63  ;;  %v8560_v9 = vld [vmem:[#allocation14 + $0x20] ss:$8 sm:$0x3]  ;;  %v11033_v0 = vperm.slane %v8277_v21, 1  ;;  %3029 = vrot.lane.b32.xlu2 %v8027_v16, %s11006_s28  ;;  %v2927_v21 = vsel %vm11039_vm2, %v7847_v63, %v7869_v46 }
 0x5ca   : > { %11024 = vst [vmem:[#allocation109_spill] sm:$0xff] %v8523_v10  ;;  %v8552_v27 = vmul.f32 %v11030_v20, %v2816_v2  ;;  %v11035_v10 = vperm.slane %v8287_v49, 0  ;;  %v11037_v20 = vperm.slane %v8287_v49, 1  ;;  %vm11040_vm9 = vcmp.lt.s32.totalorder %v6557_v56, 33  ;;  %3141 = vrot.lane.b32.xlu1 %v8027_v16, %s10866_s29  ;;  %v4650_v14 = vpop.permute.xlu0 %4649 }
 0x5cb   : > { %11029 = vst [vmem:[#allocation110_spill] sm:$0xff] %v8543_v32  ;;  %v8564_v29 = vmul.f32 %v11033_v0, %v2815_v25  ;;  %v8575_v32 = vld [vmem:[#allocation11 + $0x17] ss:$8 sm:$0x3]  ;;  %v2872_v49 = vsel %vm11040_vm9, %v7835_v31, %v7873_v52  ;;  %vm11043_vm0 = vmmov %vm11040_vm9  ;;  %vm11044_vm2 = vcmp.lt.s32.totalorder %v6557_v56, 93 }
 0x5cc   : > { %11031 = vst [vmem:[#allocation111_spill] sm:$0xff] %v8552_v27  ;;  %v8568_v62 = vmul.f32 %v11035_v10, %v2816_v2  ;;  %v8572_v27 = vmul.f32 %v11037_v20, %v2815_v25  ;;  %v11041_v10 = vperm.slane %v8310_v28, 0  ;;  %v2871_v63 = vsel %vm11043_vm0, %v7873_v52, %v7835_v31  ;;  %v8603_v2 = vpop.permute.xlu2 %4817  ;;  %vm11046_vm9 = vmmov %vm11044_vm2  ;;  %v4592_v52 = vpop.permute.xlu1 %4591 }
 0x5cd   : > { %11034 = vst [vmem:[#allocation112_spill] sm:$0xff] %v8564_v29  ;;  %v8617_v31 = vsel %vm11046_vm9, %v4650_v14, %v8379_v59  ;;  %v11048_v20 = vperm.slane %v8310_v28, 1  ;;  %v11050_v25 = vperm.slane %v8319_v54, 0  ;;  %v8635_v29 = vld [vmem:[#allocation11 + $0x21] ss:$8 sm:$0x3] }
 0x5ce   : > { %11036 = vst [vmem:[#allocation113_spill] sm:$0xff] %v8568_v62  ;;  %v8595_v0 = vmul.f32 %v11041_v10, %v2928_v12  ;;  %v8612_v10 = vsel %vm11044_vm2, %v8379_v59, %v4650_v14  ;;  %v8637_v59 = vld [vmem:[#allocation14 + $0x21] ss:$8 sm:$0x3]  ;;  %v11055_v28 = vperm.slane %v8344_v11, 1  ;;  %vm11056_vm0 = vcmp.lt.s32.totalorder %v6557_v56, 31 }
 0x5cf   : > { %11038 = vst [vmem:[#allocation114_spill] sm:$0xff] %v8572_v27  ;;  %v8621_v46 = vmul.f32 %v11048_v20, %v2927_v21  ;;  %v8625_v57 = vmul.f32 %v11050_v25, %v2928_v12  ;;  %v2984_v12 = vsel %vm11056_vm0, %v7885_v39, %v7881_v37  ;;  %vm11057_vm2 = vcmp.lt.s32.totalorder %v6557_v56, 94  ;;  %vm11062_vm8 = vmmov %vm11056_vm0 }
 0x5d0   : > { %11042 = vst [vmem:[#allocation115_spill] sm:$0xff] %v8595_v0  ;;  %v11052_v0 = vperm.slane %v8319_v54, 1  ;;  %v8641_v14 = vmul.f32 %v11055_v28, %v2871_v63  ;;  %v8650_v54 = vsel %vm11057_vm2, %v4592_v52, %v8265_v48  ;;  %vm11059_vm9 = vmmov %vm11057_vm2  ;;  %v11061_v25 = vperm.slane %v8357_v42, 0  ;;  %v8667_v28 = vld [vmem:[#allocation11 + $0x23] ss:$8 sm:$0x3]  ;;  %3199 = vrot.lane.b32.xlu0 %v8011_v5, %s10868_s1 }
 0x5d1   : > { %11045 = vst [vmem:[#allocation116_spill] sm:$0xff] %v8612_v10  ;;  %v11054_v10 = vperm.slane %v8344_v11, 0  ;;  %3143 = vrot.lane.b32.xlu2 %v8011_v5, %s10866_s29  ;;  %vm11075_vm2 = vcmp.lt.s32.totalorder %v6557_v56, 30  ;;  %v11089_v20 = vperm.slane %v8463_v40, 0  ;;  %s11610_s29 = sld [smem:[#allocation193_spill]] }
 0x5d2   : > { %11047 = vst [vmem:[#allocation117_spill] sm:$0xff] %v8617_v31  ;;  %v8629_v27 = vmul.f32 %v11052_v0, %v2927_v21  ;;  %v8655_v21 = vsel %vm11059_vm9, %v8265_v48, %v4592_v52  ;;  %v8659_v11 = vmul.f32 %v11061_v25, %v2872_v49  ;;  %v2983_v0 = vsel %vm11062_vm8, %v7881_v37, %v7885_v39  ;;  %v8676_v25 = vld [vmem:[#allocation14 + $0x23] ss:$8 sm:$0x3]  ;;  %vm11080_vm9 = vmmov %vm11075_vm2 }
 0x5d3   : > { %11049 = vst [vmem:[#allocation118_spill] sm:$0xff] %v8621_v46  ;;  %v8633_v62 = vmul.f32 %v11054_v10, %v2872_v49  ;;  %v11065_v37 = vperm.slane %v8377_v51, 0  ;;  %vm11067_vm8 = vcmp.lt.s32.totalorder %v6557_v56, 29  ;;  %v11071_v49 = vperm.slane %v8403_v55, 0  ;;  %3255 = vrot.lane.b32.xlu1 %v8011_v5, %s10867_s19 }
 0x5d4   : > { %11051 = vst [vmem:[#allocation119_spill] sm:$0xff] %v8625_v57  ;;  %v3095_v10 = vsel %vm11067_vm8, %v7871_v18, %v7893_v58  ;;  %vm11068_vm0 = vmmov %vm11067_vm8  ;;  %vm11085_vm8 = vcmp.lt.s32.totalorder %v6557_v56, 83 }
 0x5d5   : > { %11053 = vst [vmem:[#allocation120_spill] sm:$0xff] %v8629_v27  ;;  %v8680_v39 = vmul.f32 %v11065_v37, %v2984_v12  ;;  %v11069_v37 = vperm.slane %v8377_v51, 1  ;;  %v8703_v48 = vmul.f32 %v11071_v49, %v2984_v12  ;;  %v3040_v51 = vsel %vm11075_vm2, %v7859_v17, %v7897_v53  ;;  %v4704_v49 = vpop.permute.xlu0 %4703  ;;  %v4706_v12 = vpop.permute.xlu1 %4705 }
 0x5d6   : > { %11058 = vst [vmem:[#allocation121_spill] sm:$0xff] %v8650_v54  ;;  %v11063_v54 = vperm.slane %v8357_v42, 1  ;;  %v3096_v42 = vsel %vm11068_vm0, %v7893_v58, %v7871_v18  ;;  %v11073_v18 = vperm.slane %v8403_v55, 1  ;;  %v8719_v55 = vpop.permute.xlu2 %4932  ;;  %vm11087_vm0 = vmmov %vm11085_vm8  ;;  %vm11091_vm2 = vcmp.lt.s32.totalorder %v6557_v56, 19 }
 0x5d7   : > { %11060 = vst [vmem:[#allocation122_spill] sm:$0xff] %v8655_v21  ;;  %v8699_v52 = vmul.f32 %v11069_v37, %v2983_v0  ;;  %v3039_v37 = vsel %vm11080_vm9, %v7897_v53, %v7859_v17  ;;  %v8750_v17 = vsel %vm11085_vm8, %v4704_v49, %v4706_v12  ;;  %v8754_v53 = vsel %vm11087_vm0, %v4706_v12, %v4704_v49  ;;  %vm11092_vm9 = vmmov %vm11091_vm2 }
 0x5d8   : > { %v8671_v31 = vmul.f32 %v11063_v54, %v2871_v63  ;;  %11066 = vst [vmem:[#allocation124_spill] sm:$0xff] %v8680_v39  ;;  %v8691_v54 = vld [vmem:[#allocation11 + $0x22] ss:$8 sm:$0x3]  ;;  %v8707_v58 = vmul.f32 %v11073_v18, %v2983_v0  ;;  %v11076_v0 = vperm.slane %v8436_v35, 0  ;;  %v11078_v63 = vperm.slane %v8436_v35, 1  ;;  %3253 = vrot.lane.b32.xlu0 %v8027_v16, %s10867_s19 }
 0x5d9   : > { %11070 = vst [vmem:[#allocation125_spill] sm:$0xff] %v8699_v52  ;;  %v8744_v35 = vld [vmem:[#allocation11 + $0x24] ss:$8 sm:$0x3]  ;;  %v11095_v49 = vperm.slane %v8491_v47, 0  ;;  %3197 = vrot.lane.b32.xlu2 %v8027_v16, %s10868_s1  ;;  %vm10596_vm8 = vcmp.lt.s32.totalorder %v6557_v56, 81 }
 0x5da   : > { %11064 = vst [vmem:[#allocation123_spill] sm:$0xff] %v8671_v31  ;;  %v8723_v18 = vmul.f32 %v11076_v0, %v3096_v42  ;;  %v8727_v21 = vmul.f32 %v11078_v63, %v3095_v10  ;;  %v11083_v0 = vperm.slane %v8438_v26, 1  ;;  %v8746_v63 = vld [vmem:[#allocation14 + $0x24] ss:$8 sm:$0x3]  ;;  %vm11107_vm0 = vcmp.lt.s32.totalorder %v6557_v56, 17 }
 0x5db   : > { %11072 = vst [vmem:[#allocation126_spill] sm:$0xff] %v8703_v48  ;;  %v11081_v48 = vperm.slane %v8438_v26, 0  ;;  %v3151_v26 = vsel %vm11091_vm2, %v7905_v19, %v7909_v45  ;;  %vm11108_vm2 = vmmov %vm11107_vm0  ;;  %3309 = vrot.lane.b32.xlu1 %v8027_v16, %s10869_s15  ;;  %v2558_v39 = vld [vmem:[#allocation12 + $0x3] ss:$8 sm:$0x3] }
 0x5dc   : > { %11074 = vst [vmem:[#allocation127_spill] sm:$0xff] %v8707_v58  ;;  %v8734_v58 = vld [vmem:[#allocation14 + $0x22] ss:$8 sm:$0x3] }
 0x5dd   : > { %11077 = vst [vmem:[#allocation128_spill] sm:$0xff] %v8723_v18  ;;  %v8738_v52 = vmul.f32 %v11081_v48, %v3096_v42  ;;  %v8742_v18 = vmul.f32 %v11083_v0, %v3095_v10  ;;  %v8758_v48 = vmul.f32 %v11089_v20, %v3040_v51  ;;  %v3152_v10 = vsel %vm11092_vm9, %v7909_v45, %v7905_v19  ;;  %v8825_v42 = vld [vmem:[#allocation11 + $0x25] ss:$8 sm:$0x3] }
 0x5de   : > { %11079 = vst [vmem:[#allocation129_spill] sm:$0xff] %v8727_v21  ;;  %v11093_v0 = vperm.slane %v8463_v40, 1  ;;  %v8775_v20 = vmul.f32 %v11095_v49, %v3040_v51  ;;  %v11099_v51 = vperm.slane %v8508_v8, 0  ;;  %v11106_v40 = vld [vmem:[#allocation79_spill] sm:$0xff]  ;;  %v11109_v45 = vperm.slane %v8515_v22, 1 }
 0x5df   : > { %11082 = vst [vmem:[#allocation130_spill] sm:$0xff] %v8738_v52  ;;  %v11097_v52 = vperm.slane %v8491_v47, 1  ;;  %vm10599_vm9 = vcmp.lt.s32.totalorder %v6557_v56, 82  ;;  %v9255_v31 = vld [vmem:[#allocation11 + $0x41] ss:$8 sm:$0x3] }
 0x5e0   : > { %11084 = vst [vmem:[#allocation131_spill] sm:$0xff] %v8742_v18  ;;  %v8771_v12 = vmul.f32 %v11093_v0, %v3039_v37  ;;  %v8779_v18 = vld [vmem:[#allocation11 + $0x26] ss:$8 sm:$0x3]  ;;  %v8792_v49 = vmul.f32 %v11099_v51, %v3152_v10  ;;  %v11105_v51 = vld [vmem:[#allocation35_spill] sm:$0xff]  ;;  %v8821_v19 = vmul.f32 %v11109_v45, %v3151_v26  ;;  %3367 = vrot.lane.b32.xlu0 %v8011_v5, %s10871_s10 }
 0x5e1   : > { %11086 = vst [vmem:[#allocation132_spill] sm:$0xff] %v8750_v17  ;;  %v8783_v21 = vmul.f32 %v11097_v52, %v3039_v37  ;;  %v8788_v0 = vld [vmem:[#allocation14 + $0x26] ss:$8 sm:$0x3]  ;;  %v11101_v17 = vperm.slane %v8508_v8, 1  ;;  %v11103_v52 = vperm.slane %v8515_v22, 0  ;;  %v3263_v8 = vsel %vm11107_vm0, %v11106_v40, %v11105_v51  ;;  %3311 = vrot.lane.b32.xlu2 %v8011_v5, %s10869_s15 }
 0x5e2   : > { %11088 = vst [vmem:[#allocation133_spill] sm:$0xff] %v8754_v53  ;;  %vm11113_vm0 = vcmp.lt.s32.totalorder %v6557_v56, 18  ;;  %v11120_v22 = vperm.slane %v8560_v9, 0  ;;  %s11611_s15 = sld [smem:[#allocation32_spill]] }
 0x5e3   : > { %11090 = vst [vmem:[#allocation134_spill] sm:$0xff] %v8758_v48  ;;  %v8796_v53 = vmul.f32 %v11101_v17, %v3151_v26  ;;  %v8806_v37 = vmul.f32 %v11103_v52, %v3152_v10  ;;  %v3264_v17 = vsel %vm11108_vm2, %v11105_v51, %v11106_v40  ;;  %v11111_v40 = vld [vmem:[#allocation37_spill] sm:$0xff]  ;;  %v11112_v51 = vld [vmem:[#allocation88_spill] sm:$0xff]  ;;  %v4761_v52 = vpop.permute.xlu1 %4760  ;;  %v11116_v10 = vperm.slane %v8548_v36, 0  ;;  %vm11124_vm2 = vmmov %vm11113_vm0  ;;  %3423 = vrot.lane.b32.xlu1 %v8011_v5, %s10870_s7 }
 0x5e4   : > { %11094 = vst [vmem:[#allocation135_spill] sm:$0xff] %v8771_v12  ;;  %v3208_v47 = vsel %vm11113_vm0, %v11112_v51, %v11111_v40  ;;  %v8861_v48 = vld [vmem:[#allocation14 + $0x25] ss:$8 sm:$0x3]  ;;  %vm11131_vm0 = vcmp.lt.s32.totalorder %v6557_v56, 16 }
 0x5e5   : > { %11096 = vst [vmem:[#allocation136_spill] sm:$0xff] %v8775_v20  ;;  %v8855_v20 = vmul.f32 %v11120_v22, %v3264_v17  ;;  %v11130_v22 = vld [vmem:[#allocation38_spill] sm:$0xff] }
 0x5e6   : > { %11098 = vst [vmem:[#allocation137_spill] sm:$0xff] %v8783_v21 }
 0x5e7   : > { %11100 = vst [vmem:[#allocation138_spill] sm:$0xff] %v8792_v49  ;;  %v11118_v49 = vperm.slane %v8548_v36, 1  ;;  %v8893_v36 = vld [vmem:[#allocation14 + $0x27] ss:$8 sm:$0x3] }
 0x5e8   : > { %11102 = vst [vmem:[#allocation139_spill] sm:$0xff] %v8796_v53  ;;  %v8827_v53 = vpop.permute.xlu2 %4987  ;;  %3421 = vrot.lane.b32.xlu0 %v8027_v16, %s10870_s7 }
 0x5e9   : > { %11104 = vst [vmem:[#allocation140_spill] sm:$0xff] %v8806_v37  ;;  %v4820_v37 = vpop.permute.xlu0 %4819  ;;  %v8851_v21 = vmul.f32 %v11118_v49, %v3263_v8  ;;  %v8873_v49 = vsel %vm10599_vm9, %v4761_v52, %v8493_v1  ;;  %3365 = vrot.lane.b32.xlu2 %v8027_v16, %s10871_s10 }
 0x5ea   : > { %11110 = vst [vmem:[#allocation35_spill] sm:$0xff] %v8821_v19  ;;  %v8838_v26 = vsel %vm10596_vm8, %v8603_v2, %v4820_v37  ;;  %v8843_v45 = vsel %vm10596_vm8, %v4820_v37, %v8603_v2  ;;  %v8847_v19 = vmul.f32 %v11116_v10, %v3264_v17  ;;  %v8863_v2 = vld [vmem:[#allocation11 + $0x27] ss:$8 sm:$0x3]  ;;  %v3207_v37 = vsel %vm11124_vm2, %v11111_v40, %v11112_v51  ;;  %v11129_v10 = vld [vmem:[#allocation83_spill] sm:$0xff]  ;;  %vm11132_vm2 = vmmov %vm11131_vm0 }
 0x5eb   : > { %11114 = vst [vmem:[#allocation79_spill] sm:$0xff] %v8838_v26  ;;  %v11122_v26 = vperm.slane %v8560_v9, 1  ;;  %v8878_v9 = vsel %vm10599_vm9, %v8493_v1, %v4761_v52  ;;  %v3319_v40 = vsel %vm11131_vm0, %v11130_v22, %v11129_v10  ;;  %v3320_v51 = vsel %vm11132_vm2, %v11129_v10, %v11130_v22  ;;  %v8913_v1 = vld [vmem:[#allocation14 + $0x32] ss:$8 sm:$0x3]  ;;  %3477 = vrot.lane.b32.xlu1 %v8027_v16, %s10872_s26 }
 0x5ec   : > { %11115 = vst [vmem:[#allocation37_spill] sm:$0xff] %v8843_v45  ;;  %v11137_v10 = vperm.slane %v8607_v44, 1  ;;  %vm11149_vm0 = vcmp.lt.s32.totalorder %v6557_v56, 14  ;;  %vm11153_vm8 = vcmp.lt.s32.totalorder %v6557_v56, 15 }
 0x5ed   : > { %11117 = vst [vmem:[#allocation88_spill] sm:$0xff] %v8847_v19  ;;  %v8859_v12 = vmul.f32 %v11122_v26, %v3263_v8  ;;  %v11127_v8 = vperm.slane %v8575_v32, 0  ;;  %v8911_v26 = vld [vmem:[#allocation11 + $0x32] ss:$8 sm:$0x3]  ;;  %vm11150_vm2 = vmmov %vm11149_vm0  ;;  %v11161_v19 = vperm.slane %v8667_v28, 1 }
 0x5ee   : > { %11119 = vst [vmem:[#allocation141_spill] sm:$0xff] %v8851_v21  ;;  %v8909_v22 = vmul.f32 %v11137_v10, %v3207_v37  ;;  %v11143_v10 = vperm.slane %v8637_v59, 0 }
 0x5ef   : > { %11121 = vst [vmem:[#allocation142_spill] sm:$0xff] %v8855_v20  ;;  %v8882_v17 = vmul.f32 %v11127_v8, %v3208_v47  ;;  %v11145_v8 = vperm.slane %v8637_v59, 1 }
 0x5f0   : > { %11123 = vst [vmem:[#allocation143_spill] sm:$0xff] %v8859_v12  ;;  %v11135_v12 = vperm.slane %v8607_v44, 0  ;;  %v8947_v44 = vpop.permute.xlu2 %2357  ;;  %3535 = vrot.lane.b32.xlu0 %v8011_v5, %s10874_s9 }
 0x5f1   : > { %11125 = vst [vmem:[#allocation144_spill] sm:$0xff] %v8873_v49  ;;  %v11133_v49 = vperm.slane %v8575_v32, 1  ;;  %v11139_v32 = vperm.slane %v8635_v29, 0  ;;  %v8937_v52 = vmul.f32 %v11145_v8, %v3319_v40  ;;  %3479 = vrot.lane.b32.xlu2 %v8011_v5, %s10872_s26  ;;  %s11616_s26 = sshll.u32 %s11611_s15, 3 }
 0x5f2   : > { %11126 = vst [vmem:[#allocation145_spill] sm:$0xff] %v8878_v9  ;;  %v8905_v20 = vmul.f32 %v11135_v12, %v3208_v47  ;;  %v11141_v12 = vperm.slane %v8635_v29, 1  ;;  %v8933_v9 = vmul.f32 %v11143_v10, %v3320_v51  ;;  %v11159_v10 = vperm.slane %v8667_v28, 0  ;;  %v11170_v28 = vld [vmem:[#allocation87_spill] sm:$0xff]  ;;  %s652_s7 = scalar_lea.vmem [#allocation16], %s11616_s26 }
 0x5f3   : > { %11128 = vst [vmem:[#allocation146_spill] sm:$0xff] %v8882_v17  ;;  %v8901_v45 = vmul.f32 %v11133_v49, %v3207_v37  ;;  %v8921_v49 = vmul.f32 %v11139_v32, %v3320_v51  ;;  %v11147_v32 = vld [vmem:[#allocation75_spill] sm:$0xff]  ;;  %v4874_v37 = vpop.permute.xlu0 %4873  ;;  %v11152_v51 = vld [vmem:[#allocation34_spill] sm:$0xff]  ;;  %3591 = vrot.lane.b32.xlu1 %v8011_v5, %s10873_s16 }
 0x5f4   : > { %11136 = vst [vmem:[#allocation38_spill] sm:$0xff] %v8905_v20  ;;  %v8925_v47 = vmul.f32 %v11141_v12, %v3319_v40  ;;  %v9089_v17 = vld [vmem:[#allocation11 + $0x36] ss:$8 sm:$0x3] }
 0x5f5   : > { %11134 = vst [vmem:[#allocation83_spill] sm:$0xff] %v8901_v45  ;;  %v9087_v45 = vld [vmem:[#allocation14 + $0x34] ss:$8 sm:$0x3] }
 0x5f6   : > { %11138 = vst [vmem:[#allocation147_spill] sm:$0xff] %v8909_v22 }
 0x5f7   : > { %11140 = vst [vmem:[#allocation148_spill] sm:$0xff] %v8921_v49  ;;  %v11148_v49 = vld [vmem:[#allocation36_spill] sm:$0xff] }
 0x5f8   : > { %11142 = vst [vmem:[#allocation149_spill] sm:$0xff] %v8925_v47  ;;  %v3431_v29 = vsel %vm11149_vm0, %v11148_v49, %v11147_v32  ;;  %v3432_v12 = vsel %vm11150_vm2, %v11147_v32, %v11148_v49  ;;  %v11151_v47 = vld [vmem:[#allocation93_spill] sm:$0xff]  ;;  %vm11154_vm0 = vmmov %vm11153_vm8  ;;  %vm11155_vm2 = vcmp.lt.s32.totalorder %v6557_v56, 80  ;;  %v11165_v32 = vperm.slane %v8676_v25, 1  ;;  %3589 = vrot.lane.b32.xlu0 %v8027_v16, %s10873_s16  ;;  %s11614_s16 = sld [smem:[#allocation195_spill]] }
 0x5f9   : > { %11144 = vst [vmem:[#allocation150_spill] sm:$0xff] %v8933_v9  ;;  %v3376_v59 = vsel %vm11153_vm8, %v11152_v51, %v11151_v47  ;;  %v4876_v9 = vpop.permute.xlu1 %4875  ;;  %v3375_v49 = vsel %vm11154_vm0, %v11151_v47, %v11152_v51  ;;  %vm11157_vm8 = vmmov %vm11155_vm2  ;;  %v8973_v8 = vmul.f32 %v11159_v10, %v3432_v12  ;;  %v8977_v22 = vmul.f32 %v11161_v19, %v3431_v29 }
 0x5fa   : > { %11146 = vst [vmem:[#allocation151_spill] sm:$0xff] %v8937_v52  ;;  %v8956_v52 = vld [vmem:[#allocation11 + $0x31] ss:$8 sm:$0x3]  ;;  %v8965_v21 = vsel %vm11155_vm2, %v4874_v37, %v4876_v9  ;;  %v8969_v40 = vsel %vm11157_vm8, %v4876_v9, %v4874_v37  ;;  %v11163_v47 = vperm.slane %v8676_v25, 0  ;;  %v8985_v20 = vmul.f32 %v11165_v32, %v3431_v29  ;;  %3533 = vrot.lane.b32.xlu2 %v8027_v16, %s10874_s9 }
 0x5fb   : > { %11156 = vst [vmem:[#allocation75_spill] sm:$0xff] %v8965_v21  ;;  %v8987_v21 = vld [vmem:[#allocation14 + $0x31] ss:$8 sm:$0x3]  ;;  %v11167_v37 = vperm.slane %v8691_v54, 0  ;;  %vm11171_vm0 = vcmp.lt.s32.totalorder %v6557_v56, 13  ;;  %3645 = vrot.lane.b32.xlu1 %v8027_v16, %s10875_s3 }
 0x5fc   : > { %11158 = vst [vmem:[#allocation36_spill] sm:$0xff] %v8969_v40  ;;  %v8981_v51 = vmul.f32 %v11163_v47, %v3432_v12  ;;  %v8989_v9 = vld [vmem:[#allocation11 + $0x33] ss:$8 sm:$0x3]  ;;  %v11169_v40 = vld [vmem:[#allocation98_spill] sm:$0xff]  ;;  %v11172_v29 = vperm.slane %v8691_v54, 1  ;;  %vm11178_vm2 = vmmov %vm11171_vm0 }
 0x5fd   : > { %11160 = vst [vmem:[#allocation93_spill] sm:$0xff] %v8973_v8  ;;  %v8993_v10 = vmul.f32 %v11167_v37, %v3376_v59  ;;  %v3488_v19 = vsel %vm11171_vm0, %v11170_v28, %v11169_v40  ;;  %v9001_v25 = vld [vmem:[#allocation14 + $0x33] ss:$8 sm:$0x3]  ;;  %v11176_v37 = vperm.slane %v8734_v58, 1  ;;  %v3487_v12 = vsel %vm11178_vm2, %v11169_v40, %v11170_v28  ;;  %v4990_v8 = vpop.permute.xlu0 %4989 }
 0x5fe   : > { %11162 = vst [vmem:[#allocation34_spill] sm:$0xff] %v8977_v22  ;;  %v9005_v32 = vmul.f32 %v11172_v29, %v3375_v49  ;;  %v9019_v47 = vld [vmem:[#allocation11 + $0x35] ss:$8 sm:$0x3]  ;;  %vm4984_vm8 = vcmp.lt.s32.totalorder %v6557_v56, 78  ;;  %vm4927_vm0 = vcmp.lt.s32.totalorder %v6557_v56, 79 }
 0x5ff   : > { %11164 = vst [vmem:[#allocation152_spill] sm:$0xff] %v8981_v51  ;;  %v9013_v22 = vmul.f32 %v11176_v37, %v3375_v49  ;;  %v9036_v28 = vld [vmem:[#allocation14 + $0x35] ss:$8 sm:$0x3]  ;;  %v11181_v37 = vperm.slane %v8744_v35, 1  ;;  %v11184_v49 = vld [vmem:[#allocation78_spill] sm:$0xff] }
 0x600   : > { %11166 = vst [vmem:[#allocation153_spill] sm:$0xff] %v8985_v20  ;;  %v11174_v20 = vperm.slane %v8734_v58, 0  ;;  %v11179_v58 = vperm.slane %v8744_v35, 0  ;;  %v11183_v40 = vld [vmem:[#allocation40_spill] sm:$0xff]  ;;  %vm11185_vm2 = vcmp.lt.s32.totalorder %v6557_v56, 2  ;;  %3747 = vrot.lane.b32.xlu0 %v8011_v5, %s10877_s25 }
 0x601   : > { %11168 = vst [vmem:[#allocation154_spill] sm:$0xff] %v8993_v10  ;;  %v9042_v29 = vmul.f32 %v11181_v37, %v3487_v12  ;;  %vm11186_vm9 = vmmov %vm11185_vm2  ;;  %v9060_v37 = vsel %vm4984_vm8, %v8827_v53, %v4990_v8  ;;  %v4931_v54 = vpop.permute.xlu1 %4930 }
 0x602   : > { %11173 = vst [vmem:[#allocation98_spill] sm:$0xff] %v9005_v32  ;;  %v9009_v51 = vmul.f32 %v11174_v20, %v3376_v59  ;;  %v9031_v20 = vmul.f32 %v11179_v58, %v3488_v19  ;;  %v9047_v59 = vpop.permute.xlu2 %2468  ;;  %v3600_v35 = vsel %vm11186_vm9, %v11183_v40, %v11184_v49  ;;  %v9065_v58 = vsel %vm4984_vm8, %v4990_v8, %v8827_v53  ;;  %v9077_v32 = vld [vmem:[#allocation11 + $0x34] ss:$8 sm:$0x3] }
 0x603   : > { %11177 = vst [vmem:[#allocation155_spill] sm:$0xff] %v9013_v22  ;;  %v11190_v22 = vld [vmem:[#allocation41_spill] sm:$0xff]  ;;  %v11193_v53 = vperm.slane %v8746_v63, 0  ;;  %3803 = vrot.lane.b32.xlu1 %v8011_v5, %s10876_s5  ;;  %3647 = vrot.lane.b32.xlu2 %v8011_v5, %s10875_s3 }
 0x604   : > { %11175 = vst [vmem:[#allocation87_spill] sm:$0xff] %v9009_v51 }
 0x605   : > { %11180 = vst [vmem:[#allocation156_spill] sm:$0xff] %v9031_v20  ;;  %v3599_v20 = vsel %vm11185_vm2, %v11184_v49, %v11183_v40  ;;  %vm11191_vm2 = vcmp.lt.s32.totalorder %v6557_v56, 3  ;;  %v9081_v8 = vmul.f32 %v11193_v53, %v3488_v19  ;;  %v11199_v19 = vperm.slane %v8779_v18, 0 }
 0x606   : > { %11182 = vst [vmem:[#allocation157_spill] sm:$0xff] %v9042_v29  ;;  %v11189_v29 = vld [vmem:[#allocation39_spill] sm:$0xff]  ;;  %vm11192_vm9 = vmmov %vm11191_vm2  ;;  %v11205_v49 = vperm.slane %v8788_v0, 1 }
 0x607   : > { %11187 = vst [vmem:[#allocation40_spill] sm:$0xff] %v9060_v37  ;;  %v3543_v51 = vsel %vm11191_vm2, %v11190_v22, %v11189_v29  ;;  %v3544_v40 = vsel %vm11192_vm9, %v11189_v29, %v11190_v22  ;;  %v9094_v22 = vsel %vm4927_vm0, %v4931_v54, %v8719_v55  ;;  %v9099_v29 = vsel %vm4927_vm0, %v8719_v55, %v4931_v54 }
 0x608   : > { %11188 = vst [vmem:[#allocation78_spill] sm:$0xff] %v9065_v58  ;;  %v11195_v58 = vperm.slane %v8746_v63, 1  ;;  %v9103_v53 = vmul.f32 %v11199_v19, %v3600_v35  ;;  %v11201_v63 = vperm.slane %v8779_v18, 1  ;;  %v11208_v55 = vperm.slane %v8825_v42, 0  ;;  %3801 = vrot.lane.b32.xlu0 %v8027_v16, %s10876_s5 }
 0x609   : > { %11194 = vst [vmem:[#allocation39_spill] sm:$0xff] %v9081_v8  ;;  %v11210_v19 = vperm.slane %v8825_v42, 1  ;;  %v2369_v42 = vld [vmem:[#allocation9] ss:$8 sm:$0x3]  ;;  %v11219_v18 = vperm.slane %v8863_v2, 0 }
 0x60a   : > { %v9085_v10 = vmul.f32 %v11195_v58, %v3487_v12  ;;  %11197 = vst [vmem:[#allocation158_spill] sm:$0xff] %v9094_v22  ;;  %v9107_v12 = vmul.f32 %v11201_v63, %v3599_v20  ;;  %v11203_v58 = vperm.slane %v8788_v0, 0  ;;  %v9115_v22 = vmul.f32 %v11205_v49, %v3599_v20 }
 0x60b   : > { %11198 = vst [vmem:[#allocation159_spill] sm:$0xff] %v9099_v29  ;;  %v9121_v54 = vmul.f32 %v11208_v55, %v3544_v40  ;;  %v9125_v29 = vmul.f32 %v11210_v19, %v3543_v51  ;;  %v11213_v0 = vperm.slane %v8861_v48, 0  ;;  %v11215_v19 = vperm.slane %v8861_v48, 1  ;;  %v11218_v55 = vld [vmem:[#allocation43_spill] sm:$0xff]  ;;  %3857 = vrot.lane.b32.xlu1 %v8027_v16, %s10878_s30  ;;  %3745 = vrot.lane.b32.xlu2 %v8027_v16, %s10877_s25  ;;  %s5252_s25 = scalar_lea.sflag [#allocation4], %s11611_s15 }
 0x60c   : > { %11196 = vst [vmem:[#allocation41_spill] sm:$0xff] %v9085_v10  ;;  %v9111_v37 = vmul.f32 %v11203_v58, %v3600_v35  ;;  %v9117_v10 = vld [vmem:[#allocation14 + $0x36] ss:$8 sm:$0x3]  ;;  %v11222_v48 = vperm.slane %v8863_v2, 1  ;;  %vm11229_vm2 = vcmp.lt.s32.totalorder %v6557_v56, 51 }
 0x60d   : > { %11200 = vst [vmem:[#allocation160_spill] sm:$0xff] %v9103_v53  ;;  %v9129_v35 = vld [vmem:[#allocation11 + $0x40] ss:$8 sm:$0x3]  ;;  %v9133_v20 = vmul.f32 %v11213_v0, %v3544_v40  ;;  %v9144_v63 = vmul.f32 %v11215_v19, %v3543_v51  ;;  %v11224_v19 = vperm.slane %v8893_v36, 0  ;;  %v9169_v53 = vpop.permute.xlu2 %2523  ;;  %vm11230_vm9 = vmmov %vm11229_vm2 }
 0x60e   : > { %11202 = vst [vmem:[#allocation161_spill] sm:$0xff] %v9107_v12  ;;  %v9149_v58 = vld [vmem:[#allocation14 + $0x40] ss:$8 sm:$0x3]  ;;  %v2360_v12 = vpop.permute.xlu0 %2359 }
 0x60f   : > { %11204 = vst [vmem:[#allocation162_spill] sm:$0xff] %v9111_v37  ;;  %v11221_v37 = vld [vmem:[#allocation42_spill] sm:$0xff]  ;;  %v9166_v0 = vmul.f32 %v11224_v19, %v11218_v55  ;;  %v2389_v40 = vld [vmem:[#allocation12] ss:$8 sm:$0x3]  ;;  %v2361_v49 = vsel %vm11229_vm2, %v8947_v44, %v2360_v12  ;;  %vm11282_vm2 = vcmp.lt.s32.totalorder %v6557_v56, 35 }
 0x610   : > { %11206 = vst [vmem:[#allocation163_spill] sm:$0xff] %v9115_v22  ;;  %v9156_v22 = vmul.f32 %v11219_v18, %v11218_v55  ;;  %v9161_v51 = vmul.f32 %v11222_v48, %v11221_v37  ;;  %v11226_v18 = vperm.slane %v8893_v36, 1  ;;  %v9177_v48 = vld [vmem:[#allocation11 + $0x37] ss:$8 sm:$0x3]  ;;  %v2362_v36 = vsel %vm11230_vm9, %v2360_v12, %v8947_v44  ;;  %3915 = vrot.lane.b32.xlu0 %v8011_v5, %s10880_s0  ;;  %vm11283_vm9 = vmmov %vm11282_vm2 }
 0x611   : > { %11207 = vst [vmem:[#allocation164_spill] sm:$0xff] %v9117_v10  ;;  %v2391_v55 = vperm.slane %v2389_v40, 0  ;;  %v2392_v19 = vperm.slane %v2389_v40, 1  ;;  %v11239_v44 = vperm.slane %v8913_v1, 1  ;;  %v11243_v40 = vperm.slane %v8956_v52, 0 }
 0x612   : > { %11209 = vst [vmem:[#allocation165_spill] sm:$0xff] %v9121_v54  ;;  %v11237_v54 = vperm.slane %v8913_v1, 0 }
 0x613   : > { %11211 = vst [vmem:[#allocation166_spill] sm:$0xff] %v9125_v29  ;;  %v2423_v29 = vld [vmem:[#allocation9 + $0x1] ss:$8 sm:$0x3]  ;;  %3971 = vrot.lane.b32.xlu1 %v8011_v5, %s10879_s11  ;;  %3859 = vrot.lane.b32.xlu2 %v8011_v5, %s10878_s30 }
 0x614   : > { %11212 = vst [vmem:[#allocation167_spill] sm:$0xff] %v9129_v35 }
 0x615   : > { %11214 = vst [vmem:[#allocation168_spill] sm:$0xff] %v9133_v20  ;;  %v2412_v20 = vpop.permute.xlu1 %2411 }
 0x616   : > { %11216 = vst [vmem:[#allocation169_spill] sm:$0xff] %v9144_v63  ;;  %v2372_v63 = vperm.slane %v2369_v42, 1 }
 0x617   : > { %11217 = vst [vmem:[#allocation170_spill] sm:$0xff] %v9149_v58  ;;  %v11245_v58 = vld [vmem:[#allocation82_spill] sm:$0xff] }
 0x618   : > { %11220 = vst [vmem:[#allocation43_spill] sm:$0xff] %v9156_v22  ;;  %v9174_v22 = vmul.f32 %v11226_v18, %v11221_v37  ;;  %v11231_v37 = vld [vmem:[#allocation44_spill] sm:$0xff]  ;;  %v11232_v18 = vperm.slane %v8911_v26, 0  ;;  %v2376_v1 = vmul.f32 %v2372_v63, %v2361_v49  ;;  %v2426_v63 = vperm.slane %v2423_v29, 1  ;;  %3969 = vrot.lane.b32.xlu0 %v8027_v16, %s10879_s11  ;;  %s5265_s11 = sshll.u32 %s652_s7, 4  ;;  %s5266_s11 = int_to_ptr.vmem [resolvable:$true] %s5265_s11 }
 0x619   : > { %11223 = vst [vmem:[#allocation42_spill] sm:$0xff] %v9161_v51  ;;  %v2371_v51 = vperm.slane %v2369_v42, 0  ;;  %v11235_v42 = vperm.slane %v8911_v26, 1  ;;  %v9200_v8 = vmul.f32 %v11237_v54, %v11231_v37  ;;  %v9209_v26 = vld [vmem:[#allocation14 + $0x37] ss:$8 sm:$0x3] }
 0x61a   : > { %11225 = vst [vmem:[#allocation171_spill] sm:$0xff] %v9166_v0  ;;  %v9190_v2 = vmul.f32 %v11232_v18, %v11231_v37  ;;  %v11246_v54 = vperm.slane %v8956_v52, 1  ;;  %v11248_v18 = vperm.slane %v8987_v21, 0  ;;  %v2425_v52 = vperm.slane %v2423_v29, 0 }
 0x61b   : > { %11227 = vst [vmem:[#allocation172_spill] sm:$0xff] %v9174_v22  ;;  %v11234_v22 = vld [vmem:[#allocation49_spill] sm:$0xff]  ;;  %v2388_v29 = vadd.f32 %v8281_v30, %v2376_v1  ;;  %4025 = vrot.lane.b32.xlu1 %v8027_v16, %s10881_s2  ;;  %3913 = vrot.lane.b32.xlu2 %v8027_v16, %s10880_s0 }
 0x61c   : > { %11228 = vst [vmem:[#allocation173_spill] sm:$0xff] %v9177_v48  ;;  %v9195_v0 = vmul.f32 %v11235_v42, %v11234_v22  ;;  %v9205_v12 = vmul.f32 %v11239_v44, %v11234_v22  ;;  %v11242_v42 = vld [vmem:[#allocation92_spill] sm:$0xff]  ;;  %v9219_v37 = vmul.f32 %v11246_v54, %v11245_v58  ;;  %v2395_v54 = vmul.f32 %v2391_v55, %v2362_v36 }
 0x61d   : > { %11233 = vst [vmem:[#allocation44_spill] sm:$0xff] %v9190_v2  ;;  %v2480_v22 = vld [vmem:[#allocation9 + $0x2] ss:$8 sm:$0x3]  ;;  %v9224_v2 = vmul.f32 %v11248_v18, %v11242_v42  ;;  %v2396_v18 = vmul.f32 %v2392_v19, %v2361_v49 }
 0x61e   : > { %11236 = vst [vmem:[#allocation49_spill] sm:$0xff] %v9195_v0  ;;  %v9214_v0 = vmul.f32 %v11243_v40, %v11242_v42  ;;  %v2445_v44 = vld [vmem:[#allocation12 + $0x1] ss:$8 sm:$0x3]  ;;  %v2407_v30 = vadd.f32 %v8299_v41, %v2395_v54 }
 0x61f   : > { %11238 = vst [vmem:[#allocation174_spill] sm:$0xff] %v9200_v8  ;;  %v2375_v8 = vmul.f32 %v2371_v51, %v2362_v36  ;;  %v2447_v42 = vperm.slane %v2445_v44, 0  ;;  %v2467_v51 = vpop.permute.xlu1 %2466 }
 0x620   : > { %11240 = vst [vmem:[#allocation175_spill] sm:$0xff] %v9205_v12  ;;  %v11250_v12 = vperm.slane %v8987_v21, 1  ;;  %v2502_v21 = vld [vmem:[#allocation12 + $0x2] ss:$8 sm:$0x3]  ;;  %v2471_v19 = vsel %vm2470_vm7, %v2467_v51, %v9047_v59  ;;  %v2472_v36 = vsel %vm2470_vm7, %v9047_v59, %v2467_v51  ;;  %v11252_v59 = vld [vmem:[#allocation74_spill] sm:$0xff]  ;;  %4083 = vrot.lane.b32.xlu0 %v8011_v5, %s10883_s6 }
 0x621   : > { %11241 = vst [vmem:[#allocation176_spill] sm:$0xff] %v9209_v26  ;;  %v2504_v1 = vperm.slane %v2502_v21, 0  ;;  %v2505_v40 = vperm.slane %v2502_v21, 1  ;;  %v11254_v21 = vld [vmem:[#allocation77_spill] sm:$0xff] }
 0x622   : > { %11244 = vst [vmem:[#allocation92_spill] sm:$0xff] %v9214_v0  ;;  %v9229_v48 = vmul.f32 %v11250_v12, %v11245_v58  ;;  %v2482_v58 = vperm.slane %v2480_v22, 0  ;;  %v2483_v12 = vperm.slane %v2480_v22, 1  ;;  %v2387_v0 = vadd.f32 %v8273_v13, %v2375_v8  ;;  %v2536_v13 = vld [vmem:[#allocation9 + $0x3] ss:$8 sm:$0x3] }
 0x623   : > { %11247 = vst [vmem:[#allocation82_spill] sm:$0xff] %v9219_v37  ;;  %v9239_v37 = vpop.permute.xlu2 %2638  ;;  %v2408_v8 = vadd.f32 %v8303_v4, %v2396_v18  ;;  %v2538_v57 = vperm.slane %v2536_v13, 0  ;;  %v2539_v46 = vperm.slane %v2536_v13, 1  ;;  %v2508_v4 = vmul.f32 %v2504_v1, %v2472_v36  ;;  %4139 = vrot.lane.b32.xlu1 %v8011_v5, %s10882_s4  ;;  %4027 = vrot.lane.b32.xlu2 %v8011_v5, %s10881_s2  ;;  %s11409_s2 = smov 82  }
 0x624   : > { %11249 = vst [vmem:[#allocation177_spill] sm:$0xff] %v9224_v2  ;;  %v2410_v2 = vpop.permute.xlu0 %2409  ;;  %v2486_v10 = vmul.f32 %v2482_v58, %v2472_v36  ;;  %v2487_v27 = vmul.f32 %v2483_v12, %v2471_v19  ;;  %v2561_v18 = vperm.slane %v2558_v39, 1 }
 0x625   : > { %11251 = vst [vmem:[#allocation178_spill] sm:$0xff] %v9229_v48  ;;  %v2448_v48 = vperm.slane %v2445_v44, 1  ;;  %v2414_v55 = vsel %vm2413_vm1, %v2410_v2, %v2412_v20  ;;  %v2415_v49 = vsel %vm2413_vm1, %v2412_v20, %v2410_v2  ;;  %vm11256_vm1 = vcmp.lt.s32.totalorder %v6557_v56, 48 }
 0x626   : > { %v2429_v22 = vmul.f32 %v2425_v52, %v2415_v49  ;;  %v2430_v44 = vmul.f32 %v2426_v63, %v2414_v55  ;;  %v2451_v20 = vmul.f32 %v2447_v42, %v2415_v49  ;;  %v11253_v63 = vld [vmem:[#allocation76_spill] sm:$0xff]  ;;  %vm11257_vm7 = vmmov %vm11256_vm1 }
 0x627   : > { %v2452_v2 = vmul.f32 %v2448_v48, %v2414_v55  ;;  %v2560_v48 = vperm.slane %v2558_v39, 0  ;;  %v2582_v36 = vpop.permute.xlu1 %2581 }
 0x628   : > { %v2431_v26 = vadd.f32 %v2429_v22, %v2387_v0  ;;  %v2432_v35 = vadd.f32 %v2430_v44, %v2388_v29  ;;  %v2453_v41 = vadd.f32 %v2451_v20, %v2407_v30  ;;  %v2509_v0 = vmul.f32 %v2505_v40, %v2471_v19  ;;  %v9271_v19 = vld [vmem:[#allocation14 + $0x41] ss:$8 sm:$0x3]  ;;  %v9413_v40 = vld [vmem:[#allocation14 + $0x42] ss:$8 sm:$0x3]  ;;  %4137 = vrot.lane.b32.xlu0 %v8027_v16, %s10882_s4 }
 0x629   : > { %v2454_v54 = vadd.f32 %v2452_v2, %v2408_v8  ;;  %s11410_s4 = smov 81  }
 0x62a   : > { %v2442_v52 = vadd.f32 %v11252_v59, %v2431_v26  ;;  %v2443_v51 = vadd.f32 %v11253_v63, %v2432_v35  ;;  %v2464_v58 = vadd.f32 %v11254_v21, %v2453_v41  ;;  %v11255_v26 = vld [vmem:[#allocation80_spill] sm:$0xff] }
 0x62b   : > { %v2465_v12 = vadd.f32 %v11255_v26, %v2454_v54  ;;  %v9267_v55 = vpop.permute.xlu2 %2693  ;;  %v2593_v59 = vld [vmem:[#allocation9 + $0x4] ss:$8 sm:$0x3]  ;;  %v11259_v54 = vld [vmem:[#allocation86_spill] sm:$0xff]  ;;  %v11263_v26 = vperm.slane %v9001_v25, 0  ;;  %4193 = vrot.lane.b32.xlu1 %v8027_v16, %s10884_s8  ;;  %4081 = vrot.lane.b32.xlu2 %v8027_v16, %s10883_s6  ;;  %s11435_s6 = smov 80  }
 0x62c   : > { %v2488_v35 = vadd.f32 %v2486_v10, %v2442_v52  ;;  %v2489_v42 = vadd.f32 %v2487_v27, %v2443_v51  ;;  %v2526_v29 = vpop.permute.xlu0 %2525  ;;  %v11258_v10 = vld [vmem:[#allocation85_spill] sm:$0xff]  ;;  %v2510_v13 = vadd.f32 %v2508_v4, %v2464_v58  ;;  %v2650_v21 = vld [vmem:[#allocation9 + $0x5] ss:$8 sm:$0x3] }
 0x62d   : > { %v2527_v39 = vsel %vm11256_vm1, %v9169_v53, %v2526_v29  ;;  %v2528_v22 = vsel %vm11257_vm7, %v2526_v29, %v9169_v53  ;;  %v2511_v30 = vadd.f32 %v2509_v0, %v2465_v12  ;;  %v9283_v51 = vld [vmem:[#allocation11 + $0x43] ss:$8 sm:$0x3]  ;;  %v2615_v58 = vld [vmem:[#allocation12 + $0x4] ss:$8 sm:$0x3] }
 0x62e   : > { %v2499_v27 = vadd.f32 %v11258_v10, %v2488_v35  ;;  %v2500_v44 = vadd.f32 %v8333_v15, %v2489_v42  ;;  %v2542_v8 = vmul.f32 %v2538_v57, %v2528_v22  ;;  %v2543_v1 = vmul.f32 %v2539_v46, %v2527_v39  ;;  %v11261_v57 = vld [vmem:[#allocation103_spill] sm:$0xff]  ;;  %v9331_v52 = vld [vmem:[#allocation14 + $0x43] ss:$8 sm:$0x3] }
 0x62f   : > { %v2564_v20 = vmul.f32 %v2560_v48, %v2528_v22  ;;  %v2565_v2 = vmul.f32 %v2561_v18, %v2527_v39  ;;  %v2521_v41 = vadd.f32 %v8337_v7, %v2510_v13  ;;  %v2522_v53 = vadd.f32 %v8341_v43, %v2511_v30 }
 0x630   : > { %v11260_v15 = vperm.slane %v8989_v9, 0  ;;  %v11262_v46 = vperm.slane %v8989_v9, 1  ;;  %v2544_v48 = vadd.f32 %v2542_v8, %v2499_v27  ;;  %v2545_v18 = vadd.f32 %v2543_v1, %v2500_v44  ;;  %4251 = vrot.lane.b32.xlu0 %v8011_v5, %s10887_s13 }
 0x631   : > { %v9300_v7 = vmul.f32 %v11263_v26, %v11259_v54  ;;  %v11264_v43 = vperm.slane %v9001_v25, 1  ;;  %v2595_v9 = vperm.slane %v2593_v59, 0  ;;  %v2596_v35 = vperm.slane %v2593_v59, 1  ;;  %v2672_v25 = vld [vmem:[#allocation12 + $0x5] ss:$8 sm:$0x3] }
 0x632   : > { %v9290_v4 = vmul.f32 %v11260_v15, %v11259_v54  ;;  %v9295_v0 = vmul.f32 %v11262_v46, %v11261_v57  ;;  %v2566_v39 = vadd.f32 %v2564_v20, %v2521_v41  ;;  %v2567_v22 = vadd.f32 %v2565_v2, %v2522_v53  ;;  %v2637_v20 = vpop.permute.xlu1 %2636 }
 0x633   : > { %v9305_v12 = vmul.f32 %v11264_v43, %v11261_v57  ;;  %v2652_v10 = vperm.slane %v2650_v21, 0  ;;  %v2653_v27 = vperm.slane %v2650_v21, 1  ;;  %v2617_v44 = vperm.slane %v2615_v58, 0  ;;  %v9315_v8 = vpop.permute.xlu2 %2807  ;;  %v2728_v43 = vld [vmem:[#allocation12 + $0x6] ss:$8 sm:$0x3]  ;;  %4307 = vrot.lane.b32.xlu1 %v8011_v5, %s10886_s12  ;;  %4195 = vrot.lane.b32.xlu2 %v8011_v5, %s10884_s8 }
 0x634   : > { %v2618_v13 = vperm.slane %v2615_v58, 1  ;;  %v2580_v30 = vpop.permute.xlu0 %2579  ;;  %v2555_v1 = vadd.f32 %v8422_v33, %v2544_v48  ;;  %v2556_v59 = vadd.f32 %v8426_v50, %v2545_v18  ;;  %v2641_v53 = vsel %vm2640_vm4, %v2637_v20, %v9239_v37  ;;  %v2706_v33 = vld [vmem:[#allocation9 + $0x6] ss:$8 sm:$0x3]  ;;  %s11446_s8 = smov 79  }
 0x635   : > { %v2584_v2 = vsel %vm2583_vm3, %v2580_v30, %v2582_v36  ;;  %v2585_v41 = vsel %vm2583_vm3, %v2582_v36, %v2580_v30  ;;  %v2642_v54 = vsel %vm2640_vm4, %v9239_v37, %v2637_v20  ;;  %v2577_v50 = vadd.f32 %v8430_v61, %v2566_v39 }
 0x636   : > { %v2599_v15 = vmul.f32 %v2595_v9, %v2585_v41  ;;  %v2600_v57 = vmul.f32 %v2596_v35, %v2584_v2  ;;  %v2578_v46 = vadd.f32 %v8434_v23, %v2567_v22  ;;  %v2674_v48 = vperm.slane %v2672_v25, 0 }
 0x637   : > { %v2675_v18 = vperm.slane %v2672_v25, 1  ;;  %v2621_v36 = vmul.f32 %v2617_v44, %v2585_v41  ;;  %v2622_v26 = vmul.f32 %v2618_v13, %v2584_v2  ;;  %v2656_v30 = vmul.f32 %v2652_v10, %v2642_v54  ;;  %v11265_v10 = vld [vmem:[#allocation89_spill] sm:$0xff] }
 0x638   : > { %v2601_v21 = vadd.f32 %v2599_v15, %v2555_v1  ;;  %v2602_v58 = vadd.f32 %v2600_v57, %v2556_v59  ;;  %v2657_v29 = vmul.f32 %v2653_v27, %v2641_v53  ;;  %v2708_v42 = vperm.slane %v2706_v33, 0  ;;  %v11269_v15 = vld [vmem:[#allocation46_spill] sm:$0xff]  ;;  %4305 = vrot.lane.b32.xlu0 %v8027_v16, %s10886_s12  ;;  %s11447_s12 = smov 78  }
 0x639   : > { %v2709_v63 = vperm.slane %v2706_v33, 1  ;;  %v2623_v61 = vadd.f32 %v2621_v36, %v2577_v50  ;;  %v2624_v35 = vadd.f32 %v2622_v26, %v2578_v46  ;;  %v2678_v23 = vmul.f32 %v2674_v48, %v2642_v54  ;;  %v9355_v46 = vld [vmem:[#allocation11 + $0x42] ss:$8 sm:$0x3] }
 0x63a   : > { %v2612_v37 = vadd.f32 %v8352_v60, %v2601_v21  ;;  %v2613_v9 = vadd.f32 %v8363_v6, %v2602_v58  ;;  %v2679_v39 = vmul.f32 %v2675_v18, %v2641_v53  ;;  %v2730_v22 = vperm.slane %v2728_v43, 0  ;;  %v11266_v60 = vld [vmem:[#allocation90_spill] sm:$0xff]  ;;  %v2752_v41 = vpop.permute.xlu1 %2751  ;;  %v2762_v36 = vld [vmem:[#allocation9 + $0x7] ss:$8 sm:$0x3]  ;;  %v11270_v26 = vld [vmem:[#allocation97_spill] sm:$0xff] }
 0x63b   : > { %v2731_v25 = vperm.slane %v2728_v43, 1  ;;  %v2634_v27 = vadd.f32 %v11265_v10, %v2623_v61  ;;  %v2635_v44 = vadd.f32 %v11266_v60, %v2624_v35  ;;  %v9343_v59 = vpop.permute.xlu2 %2861  ;;  %vm11267_vm3 = vcmp.lt.s32.totalorder %v6557_v56, 45  ;;  %v11275_v35 = vld [vmem:[#allocation45_spill] sm:$0xff]  ;;  %v11278_v60 = vld [vmem:[#allocation51_spill] sm:$0xff]  ;;  %4361 = vrot.lane.b32.xlu1 %v8027_v16, %s10889_s14  ;;  %4249 = vrot.lane.b32.xlu2 %v8027_v16, %s10887_s13  ;;  %s11461_s13 = smov 77  }
 0x63c   : > { %v2696_v6 = vpop.permute.xlu0 %2695  ;;  %v2658_v13 = vadd.f32 %v2656_v30, %v2612_v37  ;;  %v2659_v1 = vadd.f32 %v2657_v29, %v2613_v9  ;;  %vm11268_vm4 = vmmov %vm11267_vm3  ;;  %v11271_v43 = vperm.slane %v9019_v47, 0  ;;  %v11272_v37 = vld [vmem:[#allocation50_spill] sm:$0xff]  ;;  %vm11284_vm1 = vcmp.lt.s32.totalorder %v6557_v56, 34 }
 0x63d   : > { %v2697_v53 = vsel %vm11267_vm3, %v9267_v55, %v2696_v6  ;;  %v2698_v54 = vsel %vm11268_vm4, %v2696_v6, %v9267_v55  ;;  %v2680_v29 = vadd.f32 %v2678_v23, %v2634_v27  ;;  %v2681_v50 = vadd.f32 %v2679_v39, %v2635_v44  ;;  %v2818_v27 = vld [vmem:[#allocation9 + $0x10] ss:$8 sm:$0x3]  ;;  %vm11285_vm7 = vmmov %vm11284_vm1 }
 0x63e   : > { %v2669_v57 = vadd.f32 %v11269_v15, %v2658_v13  ;;  %v2670_v33 = vadd.f32 %v8452_v38, %v2659_v1  ;;  %v2712_v48 = vmul.f32 %v2708_v42, %v2698_v54  ;;  %v2713_v18 = vmul.f32 %v2709_v63, %v2697_v53  ;;  %v11274_v38 = vld [vmem:[#allocation48_spill] sm:$0xff] }
 0x63f   : > { %v2734_v21 = vmul.f32 %v2730_v22, %v2698_v54  ;;  %v2735_v58 = vmul.f32 %v2731_v25, %v2697_v53  ;;  %v9360_v30 = vmul.f32 %v11271_v43, %v11270_v26  ;;  %v11273_v55 = vperm.slane %v9019_v47, 1  ;;  %v2784_v47 = vld [vmem:[#allocation12 + $0x7] ss:$8 sm:$0x3] }
 0x640   : > { %v2691_v61 = vadd.f32 %v11274_v38, %v2680_v29  ;;  %v2692_v23 = vadd.f32 %v11275_v35, %v2681_v50  ;;  %v11276_v63 = vperm.slane %v9036_v28, 0  ;;  %v11277_v39 = vperm.slane %v9036_v28, 1  ;;  %v11280_v54 = vld [vmem:[#allocation52_spill] sm:$0xff]  ;;  %v2840_v50 = vld [vmem:[#allocation12 + $0x10] ss:$8 sm:$0x3]  ;;  %4419 = vrot.lane.b32.xlu0 %v8011_v5, %s10892_s22 }
 0x641   : > { %v9365_v9 = vmul.f32 %v11273_v55, %v11272_v37  ;;  %v2714_v25 = vadd.f32 %v2712_v48, %v2669_v57  ;;  %v2715_v10 = vadd.f32 %v2713_v18, %v2670_v33  ;;  %v11279_v44 = vperm.slane %v9077_v32, 0 }
 0x642   : > { %v9372_v42 = vmul.f32 %v11276_v63, %v11270_v26  ;;  %v9377_v22 = vmul.f32 %v11277_v39, %v11272_v37  ;;  %v2764_v1 = vperm.slane %v2762_v36, 0  ;;  %v2765_v53 = vperm.slane %v2762_v36, 1  ;;  %v2874_v39 = vld [vmem:[#allocation9 + $0x11] ss:$8 sm:$0x3] }
 0x643   : > { %v9382_v6 = vmul.f32 %v11279_v44, %v11278_v60  ;;  %v11281_v28 = vperm.slane %v9077_v32, 1  ;;  %v2736_v33 = vadd.f32 %v2734_v21, %v2691_v61  ;;  %v2737_v29 = vadd.f32 %v2735_v58, %v2692_v23  ;;  %v9397_v37 = vpop.permute.xlu2 %2975  ;;  %v2806_v32 = vpop.permute.xlu1 %2805  ;;  %4475 = vrot.lane.b32.xlu1 %v8011_v5, %s10891_s23  ;;  %4363 = vrot.lane.b32.xlu2 %v8011_v5, %s10889_s14  ;;  %s11606_s14 = sld [smem:[#allocation27_spill]] }
 0x644   : > { %v2820_v48 = vperm.slane %v2818_v27, 0  ;;  %v2821_v18 = vperm.slane %v2818_v27, 1  ;;  %v2786_v26 = vperm.slane %v2784_v47, 0  ;;  %v2787_v36 = vperm.slane %v2784_v47, 1  ;;  %v2750_v43 = vpop.permute.xlu0 %2749 }
 0x645   : > { %v9390_v15 = vmul.f32 %v11281_v28, %v11280_v54  ;;  %v2725_v55 = vadd.f32 %v8527_v3, %v2714_v25  ;;  %v2726_v21 = vadd.f32 %v8531_v34, %v2715_v10  ;;  %v2753_v58 = vsel %vm11282_vm2, %v2750_v43, %v2752_v41  ;;  %v11286_v10 = vld [vmem:[#allocation110_spill] sm:$0xff] }
 0x646   : > { %v2754_v38 = vsel %vm11283_vm9, %v2752_v41, %v2750_v43  ;;  %v2809_v61 = vsel %vm11284_vm1, %v2806_v32, %v9315_v8  ;;  %v2810_v35 = vsel %vm11285_vm7, %v9315_v8, %v2806_v32  ;;  %v2769_v63 = vmul.f32 %v2765_v53, %v2753_v58  ;;  %v2896_v43 = vld [vmem:[#allocation12 + $0x11] ss:$8 sm:$0x3]  ;;  %v11287_v8 = vld [vmem:[#allocation104_spill] sm:$0xff] }
 0x647   : > { %v2768_v23 = vmul.f32 %v2764_v1, %v2754_v38  ;;  %v2842_v3 = vperm.slane %v2840_v50, 0  ;;  %v2843_v25 = vperm.slane %v2840_v50, 1  ;;  %v2747_v34 = vadd.f32 %v8535_v24, %v2736_v33  ;;  %v11288_v53 = vld [vmem:[#allocation105_spill] sm:$0xff] }
 0x648   : > { %v2748_v27 = vadd.f32 %v11286_v10, %v2737_v29  ;;  %v2771_v44 = vadd.f32 %v2769_v63, %v2726_v21  ;;  %v2790_v41 = vmul.f32 %v2786_v26, %v2754_v38  ;;  %v2791_v28 = vmul.f32 %v2787_v36, %v2753_v58  ;;  %v11290_v36 = vld [vmem:[#allocation107_spill] sm:$0xff]  ;;  %v9429_v63 = vld [vmem:[#allocation11 + $0x44] ss:$8 sm:$0x3]  ;;  %4473 = vrot.lane.b32.xlu0 %v8027_v16, %s10891_s23  ;;  %s11480_s23 = sld [smem:[#allocation194_spill]] }
 0x649   : > { %v2770_v47 = vadd.f32 %v2768_v23, %v2725_v55  ;;  %v2824_v57 = vmul.f32 %v2820_v48, %v2810_v35  ;;  %v2825_v13 = vmul.f32 %v2821_v18, %v2809_v61  ;;  %v2876_v2 = vperm.slane %v2874_v39, 0  ;;  %v11289_v18 = vld [vmem:[#allocation106_spill] sm:$0xff]  ;;  %s5453_s19 = sshll.u32 %s11606_s14, 3 }
 0x64a   : > { %v2877_v20 = vperm.slane %v2874_v39, 1  ;;  %v2782_v32 = vadd.f32 %v11288_v53, %v2771_v44  ;;  %v2792_v50 = vadd.f32 %v2790_v41, %v2747_v34  ;;  %v2793_v49 = vadd.f32 %v2791_v28, %v2748_v27  ;;  %s5263_s9 = scalar_lea.hbm %s11614_s16, %s5453_s19 }
 0x64b   : > { %v2781_v1 = vadd.f32 %v11287_v8, %v2770_v47  ;;  %v2846_v24 = vmul.f32 %v2842_v3, %v2810_v35  ;;  %v2847_v33 = vmul.f32 %v2843_v25, %v2809_v61  ;;  %v2898_v29 = vperm.slane %v2896_v43, 0  ;;  %v9425_v23 = vpop.permute.xlu2 %3029  ;;  %v2920_v39 = vpop.permute.xlu1 %2919  ;;  %v11293_v25 = vld [vmem:[#allocation111_spill] sm:$0xff]  ;;  %v9439_v47 = vld [vmem:[#allocation14 + $0x44] ss:$8 sm:$0x3]  ;;  %4529 = vrot.lane.b32.xlu1 %v8027_v16, %s10896_s18  ;;  %4417 = vrot.lane.b32.xlu2 %v8027_v16, %s10892_s22  ;;  %s5267_s30 = sshll.u32 %s5263_s9, 4  ;;  %s5268_s30 = int_to_ptr.hbm [resolvable:$true] %s5267_s30 }
 0x64c   : > { %v2899_v48 = vperm.slane %v2896_v43, 1  ;;  %v2803_v26 = vadd.f32 %v11289_v18, %v2792_v50  ;;  %v2804_v55 = vadd.f32 %v11290_v36, %v2793_v49  ;;  %v2864_v21 = vpop.permute.xlu0 %2863  ;;  %v2827_v38 = vadd.f32 %v2825_v13, %v2782_v32  ;;  %v11294_v13 = vld [vmem:[#allocation112_spill] sm:$0xff]  ;;  %v2930_v8 = vld [vmem:[#allocation9 + $0x12] ss:$8 sm:$0x3]  ;;  %s5910_s3 = sshra.s32 %s5268_s30, 4  ;;  %s5911_s3 = int_to_ptr.hbm [resolvable:$true] %s5910_s3 }
 0x64d   : > { %v2826_v58 = vadd.f32 %v2824_v57, %v2781_v1  ;;  %vm11291_vm3 = vcmp.lt.s32.totalorder %v6557_v56, 33  ;;  %v11295_v32 = vld [vmem:[#allocation113_spill] sm:$0xff]  ;;  %v11297_v36 = vperm.slane %v9087_v45, 0  ;;  %vm11305_vm2 = vcmp.lt.s32.totalorder %v6557_v56, 32  ;;  %s5912_s17 = scalar_lea.hbm %s5911_s3, 8  ;;  %p5917_p12 = scmp.lt.s32.totalorder %s5911_s3, %s11614_s16 }
 0x64e   : > { %v2865_v3 = vsel %vm11291_vm3, %v9343_v59, %v2864_v21  ;;  %vm11292_vm4 = vmmov %vm11291_vm3  ;;  %v2838_v34 = vadd.f32 %v11294_v13, %v2827_v38  ;;  %v2848_v10 = vadd.f32 %v2846_v24, %v2803_v26  ;;  %v2849_v27 = vadd.f32 %v2847_v33, %v2804_v55  ;;  %v2952_v26 = vld [vmem:[#allocation12 + $0x12] ss:$8 sm:$0x3]  ;;  %v3064_v38 = vld [vmem:[#allocation12 + $0x14] ss:$8 sm:$0x3]  ;;  %p5913_p1 = scmp.ne.s32.totalorder %s5911_s3, %s5912_s17 }
 0x64f   : > { %v2866_v49 = vsel %vm11292_vm4, %v2864_v21, %v9343_v59  ;;  %v2837_v57 = vadd.f32 %v11293_v25, %v2826_v58  ;;  %v2881_v41 = vmul.f32 %v2877_v20, %v2865_v3  ;;  %v2903_v43 = vmul.f32 %v2899_v48, %v2865_v3  ;;  %v11296_v59 = vld [vmem:[#allocation114_spill] sm:$0xff]  ;;  %v11299_v55 = vld [vmem:[#allocation53_spill] sm:$0xff]  ;;  %vm11306_vm9 = vmmov %vm11305_vm2 }
 0x650   : > { %v2880_v44 = vmul.f32 %v2876_v2, %v2866_v49  ;;  %v2902_v28 = vmul.f32 %v2898_v29, %v2866_v49  ;;  %v2859_v50 = vadd.f32 %v11295_v32, %v2848_v10  ;;  %v2860_v18 = vadd.f32 %v11296_v59, %v2849_v27  ;;  %v2986_v48 = vld [vmem:[#allocation9 + $0x13] ss:$8 sm:$0x3]  ;;  %4587 = vrot.lane.b32.xlu0 %v8011_v5, %s10901_s27  ;;  %p5914_p3 = pnand %p5913_p1, %p6261_p13 }
 0x651   : > { %v9448_v24 = vmul.f32 %v11297_v36, %v11278_v60  ;;  %v11298_v2 = vperm.slane %v9087_v45, 1  ;;  %v2883_v29 = vadd.f32 %v2881_v41, %v2838_v34  ;;  %v11300_v21 = vperm.slane %v9089_v17, 0  ;;  %v11302_v49 = vld [vmem:[#allocation54_spill] sm:$0xff] }
 0x652   : > { %v2882_v33 = vadd.f32 %v2880_v44, %v2837_v57  ;;  %v2932_v60 = vperm.slane %v2930_v8, 0  ;;  %v2933_v3 = vperm.slane %v2930_v8, 1  ;;  %v11303_v45 = vperm.slane %v9089_v17, 1  ;;  %v3008_v34 = vld [vmem:[#allocation12 + $0x13] ss:$8 sm:$0x3]  ;;  %p5915_p5 = pneg %p5914_p3 }
 0x653   : > { %v9453_v20 = vmul.f32 %v11298_v2, %v11280_v54  ;;  %v9458_v58 = vmul.f32 %v11300_v21, %v11299_v55  ;;  %v2904_v57 = vadd.f32 %v2902_v28, %v2859_v50  ;;  %v2905_v13 = vadd.f32 %v2903_v43, %v2860_v18  ;;  %v9473_v32 = vpop.permute.xlu2 %3143  ;;  %v2974_v17 = vpop.permute.xlu1 %2973  ;;  %4643 = vrot.lane.b32.xlu1 %v8011_v5, %s10900_s24 }
 0x654   : > { %v9466_v54 = vmul.f32 %v11303_v45, %v11302_v49  ;;  %v2988_v10 = vperm.slane %v2986_v48, 0  ;;  %v2989_v27 = vperm.slane %v2986_v48, 1  ;;  %v2954_v44 = vperm.slane %v2952_v26, 0  ;;  %v2918_v8 = vpop.permute.xlu0 %2917  ;;  %4531 = vrot.lane.b32.xlu2 %v8011_v5, %s10896_s18  ;;  %s10272_s18 = sld [smem:[#allocation15 + $0x1]] }
 0x655   : > { %11301 = vst [vmem:[#allocation74_spill] sm:$0xff] %v9458_v58  ;;  %v2955_v41 = vperm.slane %v2952_v26, 1  ;;  %v2893_v59 = vadd.f32 %v8633_v62, %v2882_v33  ;;  %v2894_v28 = vadd.f32 %v8641_v14, %v2883_v29  ;;  %v2921_v43 = vsel %vm11305_vm2, %v2918_v8, %v2920_v39  ;;  %v3042_v26 = vld [vmem:[#allocation9 + $0x14] ss:$8 sm:$0x3]  ;;  %v11309_v29 = vld [vmem:[#allocation123_spill] sm:$0xff] }
 0x656   : > { %11304 = vst [vmem:[#allocation76_spill] sm:$0xff] %v9466_v54  ;;  %v2922_v50 = vsel %vm11306_vm9, %v2920_v39, %v2918_v8  ;;  %vm11307_vm1 = vcmp.lt.s32.totalorder %v6557_v56, 31  ;;  %v2937_v48 = vmul.f32 %v2933_v3, %v2921_v43  ;;  %v3010_v62 = vperm.slane %v3008_v34, 0  ;;  %v9489_v54 = vld [vmem:[#allocation11 + $0x46] ss:$8 sm:$0x3] }
 0x657   : > { %v2977_v18 = vsel %vm11307_vm1, %v2974_v17, %v9397_v37  ;;  %vm11308_vm7 = vmmov %vm11307_vm1  ;;  %v2936_v2 = vmul.f32 %v2932_v60, %v2922_v50  ;;  %v3011_v33 = vperm.slane %v3008_v34, 1  ;;  %v2915_v14 = vadd.f32 %v8659_v11, %v2904_v57  ;;  %v11311_v3 = vld [vmem:[#allocation118_spill] sm:$0xff] }
 0x658   : > { %v2978_v36 = vsel %vm11308_vm7, %v9397_v37, %v2974_v17  ;;  %v2916_v21 = vadd.f32 %v11309_v29, %v2905_v13  ;;  %v2939_v25 = vadd.f32 %v2937_v48, %v2894_v28  ;;  %v2958_v39 = vmul.f32 %v2954_v44, %v2922_v50  ;;  %v11310_v37 = vld [vmem:[#allocation115_spill] sm:$0xff]  ;;  %v3232_v48 = vld [vmem:[#allocation12 + $0x17] ss:$8 sm:$0x3]  ;;  %4641 = vrot.lane.b32.xlu0 %v8027_v16, %s10900_s24  ;;  %s10270_s24 = sld [smem:[#allocation15]] }
 0x659   : > { %v2938_v45 = vadd.f32 %v2936_v2, %v2893_v59  ;;  %v2959_v8 = vmul.f32 %v2955_v41, %v2921_v43  ;;  %v2992_v53 = vmul.f32 %v2988_v10, %v2978_v36  ;;  %v2993_v1 = vmul.f32 %v2989_v27, %v2977_v18  ;;  %v11312_v27 = vld [vmem:[#allocation119_spill] sm:$0xff]  ;;  %v11313_v41 = vld [vmem:[#allocation120_spill] sm:$0xff] }
 0x65a   : > { %v3044_v61 = vperm.slane %v3042_v26, 0  ;;  %v3045_v35 = vperm.slane %v3042_v26, 1  ;;  %v2950_v17 = vadd.f32 %v11311_v3, %v2939_v25  ;;  %v2960_v34 = vadd.f32 %v2958_v39, %v2915_v14  ;;  %v9509_v26 = vld [vmem:[#allocation14 + $0x46] ss:$8 sm:$0x3] }
 0x65b   : > { %v2949_v60 = vadd.f32 %v11310_v37, %v2938_v45  ;;  %v2961_v58 = vadd.f32 %v2959_v8, %v2916_v21  ;;  %v3014_v11 = vmul.f32 %v3010_v62, %v2978_v36  ;;  %v3015_v57 = vmul.f32 %v3011_v33, %v2977_v18  ;;  %v9501_v50 = vpop.permute.xlu2 %3197  ;;  %v11314_v36 = vld [vmem:[#allocation164_spill] sm:$0xff]  ;;  %11316 = vst [vmem:[#allocation77_spill] sm:$0xff] %v9509_v26  ;;  %v3088_v62 = vpop.permute.xlu1 %3087  ;;  %v11320_v33 = vld [vmem:[#allocation125_spill] sm:$0xff] }
 0x65c   : > { %v3066_v13 = vperm.slane %v3064_v38, 0  ;;  %v3067_v10 = vperm.slane %v3064_v38, 1  ;;  %v2971_v44 = vadd.f32 %v11312_v27, %v2960_v34  ;;  %v3032_v25 = vpop.permute.xlu0 %3031  ;;  %v2995_v43 = vadd.f32 %v2993_v1, %v2950_v17  ;;  %v3098_v37 = vld [vmem:[#allocation9 + $0x15] ss:$8 sm:$0x3]  ;;  %v11322_v27 = vld [vmem:[#allocation127_spill] sm:$0xff]  ;;  %4697 = vrot.lane.b32.xlu1 %v8027_v16, %s10905_s21  ;;  %4585 = vrot.lane.b32.xlu2 %v8027_v16, %s10901_s27 }
 0x65d   : > { %v2972_v59 = vadd.f32 %v11313_v41, %v2961_v58  ;;  %v2994_v28 = vadd.f32 %v2992_v53, %v2949_v60  ;;  %v11315_v18 = vperm.slane %v11314_v36, 0  ;;  %vm11317_vm3 = vcmp.lt.s32.totalorder %v6557_v56, 30  ;;  %v11319_v53 = vld [vmem:[#allocation124_spill] sm:$0xff]  ;;  %v11321_v17 = vld [vmem:[#allocation126_spill] sm:$0xff] }
 0x65e   : > { %v3033_v38 = vsel %vm11317_vm3, %v9425_v23, %v3032_v25  ;;  %vm11318_vm4 = vmmov %vm11317_vm3  ;;  %v3006_v14 = vadd.f32 %v11320_v33, %v2995_v43  ;;  %v3016_v29 = vadd.f32 %v3014_v11, %v2971_v44  ;;  %v11325_v11 = vld [vmem:[#allocation47_spill] sm:$0xff]  ;;  %v3154_v44 = vld [vmem:[#allocation9 + $0x16] ss:$8 sm:$0x3]  ;;  %vm11339_vm2 = vcmp.lt.s32.totalorder %v6557_v56, 29 }
 0x65f   : > { %v9506_v2 = vmul.f32 %v11315_v18, %v11299_v55  ;;  %v3034_v1 = vsel %vm11318_vm4, %v3032_v25, %v9425_v23  ;;  %v3005_v58 = vadd.f32 %v11319_v53, %v2994_v28  ;;  %v3017_v55 = vadd.f32 %v3015_v57, %v2972_v59  ;;  %v11326_v57 = vld [vmem:[#allocation167_spill] sm:$0xff]  ;;  %v3120_v59 = vld [vmem:[#allocation12 + $0x15] ss:$8 sm:$0x3]  ;;  %vm11340_vm9 = vmmov %vm11339_vm2 }
 0x660   : > { %v3048_v21 = vmul.f32 %v3044_v61, %v3034_v1  ;;  %v3049_v45 = vmul.f32 %v3045_v35, %v3033_v38  ;;  %v3070_v39 = vmul.f32 %v3066_v13, %v3034_v1  ;;  %v3071_v8 = vmul.f32 %v3067_v10, %v3033_v38  ;;  %v11329_v28 = vld [vmem:[#allocation102_spill] sm:$0xff]  ;;  %4755 = vrot.lane.b32.xlu0 %v8011_v5, %s11409_s2 }
 0x661   : > { %v3027_v34 = vadd.f32 %v11321_v17, %v3016_v29  ;;  %v3028_v41 = vadd.f32 %v11322_v27, %v3017_v55  ;;  %v11323_v23 = vperm.slane %v11314_v36, 1  ;;  %v11327_v61 = vperm.slane %v11326_v57, 0  ;;  %v11332_v38 = vld [vmem:[#allocation170_spill] sm:$0xff] }
 0x662   : > { %v3050_v13 = vadd.f32 %v3048_v21, %v3005_v58  ;;  %v3051_v10 = vadd.f32 %v3049_v45, %v3006_v14  ;;  %v11330_v43 = vperm.slane %v11326_v57, 1  ;;  %v11333_v1 = vperm.slane %v11332_v38, 0  ;;  %v3176_v21 = vld [vmem:[#allocation12 + $0x16] ss:$8 sm:$0x3] }
 0x663   : > { %v9526_v25 = vmul.f32 %v11323_v23, %v11302_v49  ;;  %v9531_v35 = vmul.f32 %v11327_v61, %v11325_v11  ;;  %v3100_v49 = vperm.slane %v3098_v37, 0  ;;  %v3101_v53 = vperm.slane %v3098_v37, 1  ;;  %v3142_v57 = vpop.permute.xlu1 %3141  ;;  %v11337_v61 = vld [vmem:[#allocation134_spill] sm:$0xff] }
 0x664   : > { %v9536_v18 = vmul.f32 %v11330_v43, %v11329_v28  ;;  %v9541_v36 = vmul.f32 %v11333_v1, %v11325_v11  ;;  %v11335_v58 = vperm.slane %v11332_v38, 1  ;;  %v3072_v29 = vadd.f32 %v3070_v39, %v3027_v34  ;;  %v3086_v23 = vpop.permute.xlu0 %3085  ;;  %v9555_v11 = vpop.permute.xlu2 %3311  ;;  %v11338_v43 = vld [vmem:[#allocation135_spill] sm:$0xff]  ;;  %v3210_v1 = vld [vmem:[#allocation9 + $0x17] ss:$8 sm:$0x3]  ;;  %4812 = vrot.lane.b32.xlu1 %v8011_v5, %s11410_s4  ;;  %4699 = vrot.lane.b32.xlu2 %v8011_v5, %s10905_s21 }
 0x665   : > { %11324 = vst [vmem:[#allocation80_spill] sm:$0xff] %v9526_v25  ;;  %v3073_v55 = vadd.f32 %v3071_v8, %v3028_v41  ;;  %v3156_v45 = vperm.slane %v3154_v44, 0  ;;  %v3157_v17 = vperm.slane %v3154_v44, 1  ;;  %v3122_v27 = vperm.slane %v3120_v59, 0 }
 0x666   : > { %11328 = vst [vmem:[#allocation85_spill] sm:$0xff] %v9531_v35  ;;  %v9548_v33 = vmul.f32 %v11335_v58, %v11329_v28  ;;  %v3123_v37 = vperm.slane %v3120_v59, 1  ;;  %v3061_v28 = vadd.f32 %v11337_v61, %v3050_v13  ;;  %v3062_v39 = vadd.f32 %v11338_v43, %v3051_v10  ;;  %v11343_v10 = vld [vmem:[#allocation136_spill] sm:$0xff]  ;;  %v11344_v43 = vld [vmem:[#allocation137_spill] sm:$0xff] }
 0x667   : > { %11331 = vst [vmem:[#allocation86_spill] sm:$0xff] %v9536_v18  ;;  %v3089_v8 = vsel %vm11339_vm2, %v3086_v23, %v3088_v62  ;;  %v3090_v34 = vsel %vm11340_vm9, %v3088_v62, %v3086_v23  ;;  %vm11341_vm1 = vcmp.lt.s32.totalorder %v6557_v56, 19  ;;  %v3178_v13 = vperm.slane %v3176_v21, 0  ;;  %v9571_v26 = vld [vmem:[#allocation11 + $0x45] ss:$8 sm:$0x3] }
 0x668   : > { %11334 = vst [vmem:[#allocation103_spill] sm:$0xff] %v9541_v36  ;;  %v3145_v41 = vsel %vm11341_vm1, %v3142_v57, %v9473_v32  ;;  %vm11342_vm7 = vmmov %vm11341_vm1  ;;  %v3104_v59 = vmul.f32 %v3100_v49, %v3090_v34  ;;  %v3105_v38 = vmul.f32 %v3101_v53, %v3089_v8  ;;  %v3179_v58 = vperm.slane %v3176_v21, 1  ;;  %v11347_v53 = vld [vmem:[#allocation129_spill] sm:$0xff]  ;;  %4810 = vrot.lane.b32.xlu0 %v8027_v16, %s11410_s4 }
 0x669   : > { %11336 = vst [vmem:[#allocation89_spill] sm:$0xff] %v9548_v33  ;;  %v3146_v44 = vsel %vm11342_vm7, %v9473_v32, %v3142_v57  ;;  %v3083_v61 = vadd.f32 %v11343_v10, %v3072_v29  ;;  %v3084_v14 = vadd.f32 %v11344_v43, %v3073_v55  ;;  %v3126_v62 = vmul.f32 %v3122_v27, %v3090_v34  ;;  %v11346_v32 = vld [vmem:[#allocation128_spill] sm:$0xff]  ;;  %v11348_v27 = vld [vmem:[#allocation130_spill] sm:$0xff] }
 0x66a   : > { %v3106_v3 = vadd.f32 %v3104_v59, %v3061_v28  ;;  %v3107_v60 = vadd.f32 %v3105_v38, %v3062_v39  ;;  %v3127_v23 = vmul.f32 %v3123_v37, %v3089_v8  ;;  %v3160_v33 = vmul.f32 %v3156_v45, %v3146_v44  ;;  %11345 = vst [vmem:[#allocation90_spill] sm:$0xff] %v9571_v26  ;;  %v11352_v38 = vld [vmem:[#allocation138_spill] sm:$0xff] }
 0x66b   : > { %v3161_v36 = vmul.f32 %v3157_v17, %v3145_v41  ;;  %v3212_v18 = vperm.slane %v3210_v1, 0  ;;  %v3213_v35 = vperm.slane %v3210_v1, 1  ;;  %v3128_v21 = vadd.f32 %v3126_v62, %v3083_v61  ;;  %v11353_v1 = vld [vmem:[#allocation139_spill] sm:$0xff] }
 0x66c   : > { %v3117_v49 = vadd.f32 %v11346_v32, %v3106_v3  ;;  %v3118_v57 = vadd.f32 %v11347_v53, %v3107_v60  ;;  %v3129_v25 = vadd.f32 %v3127_v23, %v3084_v14  ;;  %v3182_v29 = vmul.f32 %v3178_v13, %v3146_v44  ;;  %v11349_v3 = vld [vmem:[#allocation131_spill] sm:$0xff]  ;;  %v3200_v60 = vpop.permute.xlu0 %3199  ;;  %v9583_v8 = vpop.permute.xlu2 %3365  ;;  %4867 = vrot.lane.b32.xlu1 %v8027_v16, %s11435_s6 }
 0x66d   : > { %v3183_v55 = vmul.f32 %v3179_v58, %v3145_v41  ;;  %v3234_v45 = vperm.slane %v3232_v48, 0  ;;  %v3235_v17 = vperm.slane %v3232_v48, 1  ;;  %v3139_v37 = vadd.f32 %v11348_v27, %v3128_v21  ;;  %v3256_v44 = vpop.permute.xlu1 %3255  ;;  %v9595_v58 = vld [vmem:[#allocation14 + $0x45] ss:$8 sm:$0x3]  ;;  %v11355_v32 = vld [vmem:[#allocation91_spill] sm:$0xff]  ;;  %4753 = vrot.lane.b32.xlu2 %v8027_v16, %s11409_s2 }
 0x66e   : > { %v3140_v28 = vadd.f32 %v11349_v3, %v3129_v25  ;;  %v3162_v39 = vadd.f32 %v3160_v33, %v3117_v49  ;;  %v3163_v14 = vadd.f32 %v3161_v36, %v3118_v57  ;;  %vm11350_vm3 = vcmp.lt.s32.totalorder %v6557_v56, 18  ;;  %11354 = vst [vmem:[#allocation46_spill] sm:$0xff] %v9595_v58  ;;  %v3266_v23 = vld [vmem:[#allocation9 + $0x20] ss:$8 sm:$0x3]  ;;  %v11356_v49 = vld [vmem:[#allocation173_spill] sm:$0xff] }
 0x66f   : > { %v3201_v59 = vsel %vm11350_vm3, %v9501_v50, %v3200_v60  ;;  %vm11351_vm4 = vmmov %vm11350_vm3  ;;  %v3184_v36 = vadd.f32 %v3182_v29, %v3139_v37  ;;  %v11357_v53 = vperm.slane %v11356_v49, 0  ;;  %v11359_v21 = vld [vmem:[#allocation96_spill] sm:$0xff]  ;;  %v9607_v3 = vld [vmem:[#allocation11 + $0x47] ss:$8 sm:$0x3]  ;;  %vm11372_vm2 = vcmp.lt.s32.totalorder %v6557_v56, 17 }
 0x670   : > { %v3202_v48 = vsel %vm11351_vm4, %v3200_v60, %v9501_v50  ;;  %v3173_v25 = vadd.f32 %v11352_v38, %v3162_v39  ;;  %v3174_v33 = vadd.f32 %v11353_v1, %v3163_v14  ;;  %v3185_v13 = vadd.f32 %v3183_v55, %v3140_v28  ;;  %11362 = vst [vmem:[#allocation48_spill] sm:$0xff] %v9607_v3  ;;  %v11363_v29 = vld [vmem:[#allocation140_spill] sm:$0xff]  ;;  %v11364_v37 = vld [vmem:[#allocation35_spill] sm:$0xff]  ;;  %vm11373_vm9 = vmmov %vm11372_vm2  ;;  %s5916_s2 = scalar_lea.hbm %s11614_s16, 16 }
 0x671   : > { %v3216_v10 = vmul.f32 %v3212_v18, %v3202_v48  ;;  %v3217_v61 = vmul.f32 %v3213_v35, %v3201_v59  ;;  %v3238_v43 = vmul.f32 %v3234_v45, %v3202_v48  ;;  %v3239_v62 = vmul.f32 %v3235_v17, %v3201_v59  ;;  %v11365_v35 = vld [vmem:[#allocation176_spill] sm:$0xff]  ;;  %v11377_v1 = vld [vmem:[#allocation147_spill] sm:$0xff]  ;;  %4925 = vrot.lane.b32.xlu0 %v8011_v5, %s11446_s8  ;;  %p5918_p8 = scmp.lt.s32.totalorder %s5916_s2, %s5912_s17 }
 0x672   : > { %v9600_v57 = vmul.f32 %v11357_v53, %v11355_v32  ;;  %v11360_v50 = vperm.slane %v11356_v49, 1  ;;  %v3195_v55 = vadd.f32 %v11363_v29, %v3184_v36  ;;  %v3196_v18 = vadd.f32 %v11364_v37, %v3185_v13  ;;  %v3322_v59 = vld [vmem:[#allocation9 + $0x21] ss:$8 sm:$0x3] }
 0x673   : > { %v11366_v45 = vperm.slane %v11365_v35, 0  ;;  %v11368_v28 = vperm.slane %v11365_v35, 1  ;;  %v3218_v39 = vadd.f32 %v3216_v10, %v3173_v25  ;;  %v3219_v14 = vadd.f32 %v3217_v61, %v3174_v33  ;;  %v3288_v48 = vld [vmem:[#allocation12 + $0x20] ss:$8 sm:$0x3]  ;;  %v11370_v35 = vld [vmem:[#allocation146_spill] sm:$0xff]  ;;  %p5919_p7 = por %p5918_p8, %p5917_p12 }
 0x674   : > { %11358 = vst [vmem:[#allocation97_spill] sm:$0xff] %v9600_v57  ;;  %v9605_v27 = vmul.f32 %v11360_v50, %v11359_v21  ;;  %v3268_v36 = vperm.slane %v3266_v23, 0  ;;  %v3269_v13 = vperm.slane %v3266_v23, 1  ;;  %v3240_v53 = vadd.f32 %v3238_v43, %v3195_v55  ;;  %v3344_v25 = vld [vmem:[#allocation12 + $0x21] ss:$8 sm:$0x3]  ;;  %v3254_v29 = vpop.permute.xlu0 %3253  ;;  %v9631_v37 = vpop.permute.xlu2 %3479  ;;  %4982 = vrot.lane.b32.xlu1 %v8011_v5, %s11447_s12 }
 0x675   : > { %v9614_v17 = vmul.f32 %v11366_v45, %v11355_v32  ;;  %v9619_v60 = vmul.f32 %v11368_v28, %v11359_v21  ;;  %v3241_v21 = vadd.f32 %v3239_v62, %v3196_v18  ;;  %v3324_v33 = vperm.slane %v3322_v59, 0  ;;  %v3310_v23 = vpop.permute.xlu1 %3309  ;;  %v11371_v28 = vld [vmem:[#allocation83_spill] sm:$0xff]  ;;  %v9647_v57 = vld [vmem:[#allocation14 + $0x47] ss:$8 sm:$0x3]  ;;  %4869 = vrot.lane.b32.xlu2 %v8011_v5, %s11435_s6  ;;  %p5920_p9 = pnand %p5919_p7, %p5915_p5 }
 0x676   : > { %11361 = vst [vmem:[#allocation50_spill] sm:$0xff] %v9605_v27  ;;  %v3325_v10 = vperm.slane %v3322_v59, 1  ;;  %v3290_v61 = vperm.slane %v3288_v48, 0  ;;  %v3291_v50 = vperm.slane %v3288_v48, 1  ;;  %v3229_v45 = vadd.f32 %v11370_v35, %v3218_v39 }
 0x677   : > { %11367 = vst [vmem:[#allocation45_spill] sm:$0xff] %v9614_v17  ;;  %v3230_v43 = vadd.f32 %v11371_v28, %v3219_v14  ;;  %v3257_v62 = vsel %vm11372_vm2, %v3254_v29, %v3256_v44  ;;  %v3258_v55 = vsel %vm11373_vm9, %v3256_v44, %v3254_v29  ;;  %vm11374_vm1 = vcmp.lt.s32.totalorder %v6557_v56, 16  ;;  %v3378_v32 = vld [vmem:[#allocation9 + $0x22] ss:$8 sm:$0x3]  ;;  %v11376_v14 = vld [vmem:[#allocation38_spill] sm:$0xff] }
 0x678   : > { %11369 = vst [vmem:[#allocation51_spill] sm:$0xff] %v9619_v60  ;;  %v3313_v18 = vsel %vm11374_vm1, %v3310_v23, %v9555_v11  ;;  %vm11375_vm7 = vmmov %vm11374_vm1  ;;  %v3272_v48 = vmul.f32 %v3268_v36, %v3258_v55  ;;  %v3273_v49 = vmul.f32 %v3269_v13, %v3257_v62  ;;  %v3346_v39 = vperm.slane %v3344_v25, 0  ;;  %v3400_v3 = vld [vmem:[#allocation12 + $0x22] ss:$8 sm:$0x3]  ;;  %v11380_v13 = vld [vmem:[#allocation141_spill] sm:$0xff] }
 0x679   : > { %v3314_v59 = vsel %vm11375_vm7, %v9555_v11, %v3310_v23  ;;  %v3347_v35 = vperm.slane %v3344_v25, 1  ;;  %v3251_v28 = vadd.f32 %v11376_v14, %v3240_v53  ;;  %v3252_v38 = vadd.f32 %v11377_v1, %v3241_v21  ;;  %11378 = vst [vmem:[#allocation52_spill] sm:$0xff] %v9647_v57  ;;  %v11379_v11 = vld [vmem:[#allocation88_spill] sm:$0xff]  ;;  %v11381_v21 = vld [vmem:[#allocation142_spill] sm:$0xff]  ;;  %4980 = vrot.lane.b32.xlu0 %v8027_v16, %s11447_s12 }
 0x67a   : > { %v3274_v41 = vadd.f32 %v3272_v48, %v3229_v45  ;;  %v3275_v34 = vadd.f32 %v3273_v49, %v3230_v43  ;;  %v3294_v44 = vmul.f32 %v3290_v61, %v3258_v55  ;;  %v3295_v29 = vmul.f32 %v3291_v50, %v3257_v62  ;;  %v3568_v43 = vld [vmem:[#allocation12 + $0x25] ss:$8 sm:$0x3] }
 0x67b   : > { %v3328_v58 = vmul.f32 %v3324_v33, %v3314_v59  ;;  %v3329_v60 = vmul.f32 %v3325_v10, %v3313_v18  ;;  %v3380_v17 = vperm.slane %v3378_v32, 0  ;;  %v3381_v27 = vperm.slane %v3378_v32, 1 }
 0x67c   : > { %v3285_v36 = vadd.f32 %v11379_v11, %v3274_v41  ;;  %v3286_v23 = vadd.f32 %v11380_v13, %v3275_v34  ;;  %v3296_v25 = vadd.f32 %v3294_v44, %v3251_v28  ;;  %v3297_v26 = vadd.f32 %v3295_v29, %v3252_v38  ;;  %v11382_v41 = vld [vmem:[#allocation143_spill] sm:$0xff]  ;;  %v3368_v34 = vpop.permute.xlu0 %3367  ;;  %v9659_v50 = vpop.permute.xlu2 %3533  ;;  %v11388_v11 = vld [vmem:[#allocation61_spill] sm:$0xff]  ;;  %5037 = vrot.lane.b32.xlu1 %v8027_v16, %s11461_s13 }
 0x67d   : > { %v3350_v1 = vmul.f32 %v3346_v39, %v3314_v59  ;;  %v3351_v49 = vmul.f32 %v3347_v35, %v3313_v18  ;;  %v3402_v32 = vperm.slane %v3400_v3, 0  ;;  %v3403_v53 = vperm.slane %v3400_v3, 1  ;;  %v3424_v62 = vpop.permute.xlu1 %3423  ;;  %v11385_v18 = vld [vmem:[#allocation148_spill] sm:$0xff]  ;;  %v11386_v59 = vld [vmem:[#allocation149_spill] sm:$0xff]  ;;  %4923 = vrot.lane.b32.xlu2 %v8027_v16, %s11446_s8 }
 0x67e   : > { %v3307_v33 = vadd.f32 %v11381_v21, %v3296_v25  ;;  %v3308_v10 = vadd.f32 %v11382_v41, %v3297_v26  ;;  %v3330_v61 = vadd.f32 %v3328_v58, %v3285_v36  ;;  %v3331_v38 = vadd.f32 %v3329_v60, %v3286_v23  ;;  %v9671_v39 = vld [vmem:[#allocation11 + $0x51] ss:$8 sm:$0x3]  ;;  %v3434_v29 = vld [vmem:[#allocation9 + $0x23] ss:$8 sm:$0x3] }
 0x67f   : > { %vm11383_vm3 = vcmp.lt.s32.totalorder %v6557_v56, 15  ;;  %11387 = vst [vmem:[#allocation110_spill] sm:$0xff] %v9671_v39  ;;  %v11389_v36 = vperm.slane %v9255_v31, 0  ;;  %v11390_v23 = vld [vmem:[#allocation62_spill] sm:$0xff]  ;;  %vm11401_vm2 = vcmp.lt.s32.totalorder %v6557_v56, 14  ;;  %vm11403_vm1 = vcmp.lt.s32.totalorder %v6557_v56, 13 }
 0x680   : > { %v3369_v55 = vsel %vm11383_vm3, %v9583_v8, %v3368_v34  ;;  %vm11384_vm4 = vmmov %vm11383_vm3  ;;  %v3341_v26 = vadd.f32 %v11385_v18, %v3330_v61  ;;  %v3342_v58 = vadd.f32 %v11386_v59, %v3331_v38  ;;  %v3352_v60 = vadd.f32 %v3350_v1, %v3307_v33  ;;  %v9683_v21 = vld [vmem:[#allocation14 + $0x51] ss:$8 sm:$0x3]  ;;  %v11393_v1 = vld [vmem:[#allocation150_spill] sm:$0xff] }
 0x681   : > { %v3370_v3 = vsel %vm11384_vm4, %v3368_v34, %v9583_v8  ;;  %v3353_v48 = vadd.f32 %v3351_v49, %v3308_v10  ;;  %v3385_v14 = vmul.f32 %v3381_v27, %v3369_v55  ;;  %v3407_v44 = vmul.f32 %v3403_v53, %v3369_v55  ;;  %11392 = vst [vmem:[#allocation104_spill] sm:$0xff] %v9683_v21  ;;  %v11394_v33 = vld [vmem:[#allocation151_spill] sm:$0xff]  ;;  %vm11402_vm9 = vmmov %vm11401_vm2 }
 0x682   : > { %v3384_v35 = vmul.f32 %v3380_v17, %v3370_v3  ;;  %v3406_v28 = vmul.f32 %v3402_v32, %v3370_v3  ;;  %v9676_v13 = vmul.f32 %v11389_v36, %v11388_v11  ;;  %v11391_v8 = vperm.slane %v9255_v31, 1  ;;  %v3490_v34 = vld [vmem:[#allocation9 + $0x24] ss:$8 sm:$0x3]  ;;  %vm11404_vm7 = vmmov %vm11403_vm1 }
 0x683   : > { %v3363_v49 = vadd.f32 %v11393_v1, %v3352_v60  ;;  %v3364_v17 = vadd.f32 %v11394_v33, %v3353_v48  ;;  %v11395_v27 = vperm.slane %v9271_v19, 0  ;;  %v11397_v53 = vperm.slane %v9271_v19, 1  ;;  %v3456_v61 = vld [vmem:[#allocation12 + $0x23] ss:$8 sm:$0x3]  ;;  %v11400_v1 = vld [vmem:[#allocation98_spill] sm:$0xff] }
 0x684   : > { %v9681_v25 = vmul.f32 %v11391_v8, %v11390_v23  ;;  %v3386_v10 = vadd.f32 %v3384_v35, %v3341_v26  ;;  %v3387_v31 = vadd.f32 %v3385_v14, %v3342_v58  ;;  %v3436_v3 = vperm.slane %v3434_v29, 0  ;;  %v3512_v26 = vld [vmem:[#allocation12 + $0x24] ss:$8 sm:$0x3]  ;;  %v3422_v36 = vpop.permute.xlu0 %3421 }
 0x685   : > { %v9690_v32 = vmul.f32 %v11395_v27, %v11388_v11  ;;  %v9695_v41 = vmul.f32 %v11397_v53, %v11390_v23  ;;  %v3437_v18 = vperm.slane %v3434_v29, 1  ;;  %v3408_v19 = vadd.f32 %v3406_v28, %v3363_v49  ;;  %v3478_v23 = vpop.permute.xlu1 %3477  ;;  %v11399_v29 = vld [vmem:[#allocation154_spill] sm:$0xff]  ;;  %v9713_v49 = vpop.permute.xlu2 %3647  ;;  %v11406_v60 = vld [vmem:[#allocation155_spill] sm:$0xff]  ;;  %5039 = vrot.lane.b32.xlu2 %v8011_v5, %s11461_s13 }
 0x686   : > { %v3409_v48 = vadd.f32 %v3407_v44, %v3364_v17  ;;  %v3492_v58 = vperm.slane %v3490_v34, 0  ;;  %v3493_v35 = vperm.slane %v3490_v34, 1  ;;  %v3458_v14 = vperm.slane %v3456_v61, 0  ;;  %v3546_v34 = vld [vmem:[#allocation9 + $0x25] ss:$8 sm:$0x3] }
 0x687   : > { %11396 = vst [vmem:[#allocation105_spill] sm:$0xff] %v9690_v32  ;;  %v3459_v11 = vperm.slane %v3456_v61, 1  ;;  %v3397_v8 = vadd.f32 %v11399_v29, %v3386_v10  ;;  %v3398_v33 = vadd.f32 %v11400_v1, %v3387_v31  ;;  %v3425_v28 = vsel %vm11401_vm2, %v3422_v36, %v3424_v62  ;;  %v11405_v29 = vld [vmem:[#allocation87_spill] sm:$0xff] }
 0x688   : > { %11398 = vst [vmem:[#allocation106_spill] sm:$0xff] %v9695_v41  ;;  %v3426_v44 = vsel %vm11402_vm9, %v3424_v62, %v3422_v36  ;;  %v3481_v17 = vsel %vm11403_vm1, %v3478_v23, %v9631_v37  ;;  %v3482_v27 = vsel %vm11404_vm7, %v9631_v37, %v3478_v23  ;;  %v3441_v10 = vmul.f32 %v3437_v18, %v3425_v28  ;;  %v11407_v41 = vld [vmem:[#allocation93_spill] sm:$0xff] }
 0x689   : > { %v3440_v53 = vmul.f32 %v3436_v3, %v3426_v44  ;;  %v3514_v31 = vperm.slane %v3512_v26, 0  ;;  %v3515_v61 = vperm.slane %v3512_v26, 1  ;;  %v3419_v1 = vadd.f32 %v11405_v29, %v3408_v19  ;;  %v11408_v3 = vld [vmem:[#allocation34_spill] sm:$0xff] }
 0x68a   : > { %v3420_v59 = vadd.f32 %v11406_v60, %v3409_v48  ;;  %v3443_v36 = vadd.f32 %v3441_v10, %v3398_v33  ;;  %v3462_v55 = vmul.f32 %v3458_v14, %v3426_v44  ;;  %v3463_v38 = vmul.f32 %v3459_v11, %v3425_v28  ;;  %v11415_v28 = vld [vmem:[#allocation68_spill] sm:$0xff] }
 0x68b   : > { %v3442_v62 = vadd.f32 %v3440_v53, %v3397_v8  ;;  %v3496_v45 = vmul.f32 %v3492_v58, %v3482_v27  ;;  %v3497_v21 = vmul.f32 %v3493_v35, %v3481_v17  ;;  %v3548_v39 = vperm.slane %v3546_v34, 0  ;;  %v11411_v58 = vld [vmem:[#allocation152_spill] sm:$0xff] }
 0x68c   : > { %v3549_v57 = vperm.slane %v3546_v34, 1  ;;  %v3454_v18 = vadd.f32 %v11408_v3, %v3443_v36  ;;  %v3464_v23 = vadd.f32 %v3462_v55, %v3419_v1  ;;  %v3465_v32 = vadd.f32 %v3463_v38, %v3420_v59  ;;  %v3536_v11 = vpop.permute.xlu0 %3535  ;;  %v11413_v59 = vld [vmem:[#allocation66_spill] sm:$0xff]  ;;  %v11421_v53 = vld [vmem:[#allocation156_spill] sm:$0xff]  ;;  %v11422_v34 = vld [vmem:[#allocation157_spill] sm:$0xff] }
 0x68d   : > { %v3453_v37 = vadd.f32 %v11407_v41, %v3442_v62  ;;  %v3518_v19 = vmul.f32 %v3514_v31, %v3482_v27  ;;  %v3519_v60 = vmul.f32 %v3515_v61, %v3481_v17  ;;  %v3570_v48 = vperm.slane %v3568_v43, 0  ;;  %v11412_v41 = vld [vmem:[#allocation153_spill] sm:$0xff]  ;;  %v9743_v27 = vld [vmem:[#allocation11 + $0x50] ss:$8 sm:$0x3] }
 0x68e   : > { %v3571_v26 = vperm.slane %v3568_v43, 1  ;;  %v3475_v35 = vadd.f32 %v11411_v58, %v3464_v23  ;;  %v3476_v14 = vadd.f32 %v11412_v41, %v3465_v32  ;;  %v3499_v38 = vadd.f32 %v3497_v21, %v3454_v18  ;;  %11418 = vst [vmem:[#allocation111_spill] sm:$0xff] %v9743_v27  ;;  %v3592_v43 = vpop.permute.xlu1 %3591  ;;  %v9751_v21 = vpop.permute.xlu2 %3745  ;;  %v11425_v23 = vld [vmem:[#allocation39_spill] sm:$0xff]  ;;  %v11426_v41 = vld [vmem:[#allocation41_spill] sm:$0xff] }
 0x68f   : > { %v3498_v55 = vadd.f32 %v3496_v45, %v3453_v37  ;;  %v11414_v8 = vperm.slane %v9283_v51, 0  ;;  %v11416_v44 = vperm.slane %v9283_v51, 1  ;;  %vm11419_vm3 = vcmp.lt.s32.totalorder %v6557_v56, 3  ;;  %v3602_v37 = vld [vmem:[#allocation9 + $0x26] ss:$8 sm:$0x3] }
 0x690   : > { %v3537_v32 = vsel %vm11419_vm3, %v9659_v50, %v3536_v11  ;;  %vm11420_vm4 = vmmov %vm11419_vm3  ;;  %v3510_v31 = vadd.f32 %v11422_v34, %v3499_v38  ;;  %v3520_v51 = vadd.f32 %v3518_v19, %v3475_v35  ;;  %v3521_v61 = vadd.f32 %v3519_v60, %v3476_v14  ;;  %v3658_v14 = vld [vmem:[#allocation9 + $0x27] ss:$8 sm:$0x3]  ;;  %v11431_v38 = vld [vmem:[#allocation69_spill] sm:$0xff] }
 0x691   : > { %v9736_v33 = vmul.f32 %v11414_v8, %v11413_v59  ;;  %v9741_v17 = vmul.f32 %v11416_v44, %v11415_v28  ;;  %v3538_v45 = vsel %vm11420_vm4, %v3536_v11, %v9659_v50  ;;  %v3509_v10 = vadd.f32 %v11421_v53, %v3498_v55  ;;  %v3624_v55 = vld [vmem:[#allocation12 + $0x26] ss:$8 sm:$0x3] }
 0x692   : > { %v3552_v29 = vmul.f32 %v3548_v39, %v3538_v45  ;;  %v3553_v1 = vmul.f32 %v3549_v57, %v3537_v32  ;;  %v3574_v62 = vmul.f32 %v3570_v48, %v3538_v45  ;;  %v3575_v36 = vmul.f32 %v3571_v26, %v3537_v32  ;;  %v11429_v57 = vld [vmem:[#allocation101_spill] sm:$0xff] }
 0x693   : > { %11417 = vst [vmem:[#allocation107_spill] sm:$0xff] %v9741_v17  ;;  %v11423_v3 = vperm.slane %v9331_v52, 0  ;;  %v3531_v58 = vadd.f32 %v11425_v23, %v3520_v51  ;;  %v3532_v11 = vadd.f32 %v11426_v41, %v3521_v61  ;;  %v11427_v19 = vperm.slane %v9331_v52, 1  ;;  %v11437_v41 = vld [vmem:[#allocation166_spill] sm:$0xff] }
 0x694   : > { %v11430_v39 = vperm.slane %v9355_v46, 0  ;;  %v3554_v26 = vadd.f32 %v3552_v29, %v3509_v10  ;;  %v3555_v35 = vadd.f32 %v3553_v1, %v3510_v31  ;;  %v11433_v44 = vperm.slane %v9413_v40, 0  ;;  %v3680_v31 = vld [vmem:[#allocation12 + $0x27] ss:$8 sm:$0x3] }
 0x695   : > { %v9758_v18 = vmul.f32 %v11423_v3, %v11413_v59  ;;  %v9766_v60 = vmul.f32 %v11427_v19, %v11415_v28  ;;  %v11432_v59 = vperm.slane %v9355_v46, 1  ;;  %v3604_v28 = vperm.slane %v3602_v37, 0  ;;  %v9891_v17 = vld [vmem:[#allocation11 + $0x54] ss:$8 sm:$0x3] }
 0x696   : > { %v9771_v48 = vmul.f32 %v11430_v39, %v11429_v57  ;;  %v9781_v52 = vmul.f32 %v11433_v44, %v11429_v57  ;;  %v3605_v32 = vperm.slane %v3602_v37, 1  ;;  %v11434_v45 = vperm.slane %v9413_v40, 1  ;;  %v3590_v37 = vpop.permute.xlu0 %3589  ;;  %v3646_v3 = vpop.permute.xlu1 %3645  ;;  %v11436_v40 = vld [vmem:[#allocation165_spill] sm:$0xff] }
 0x697   : > { %11424 = vst [vmem:[#allocation112_spill] sm:$0xff] %v9758_v18  ;;  %v9776_v8 = vmul.f32 %v11432_v59, %v11431_v38  ;;  %v3576_v46 = vadd.f32 %v3574_v62, %v3531_v58  ;;  %v3577_v34 = vadd.f32 %v3575_v36, %v3532_v11  ;;  %v3660_v51 = vperm.slane %v3658_v14, 0  ;;  %v9801_v58 = vpop.permute.xlu2 %3859  ;;  %v9803_v11 = vld [vmem:[#allocation14 + $0x50] ss:$8 sm:$0x3]  ;;  %v11442_v44 = vld [vmem:[#allocation169_spill] sm:$0xff] }
 0x698   : > { %11428 = vst [vmem:[#allocation113_spill] sm:$0xff] %v9766_v60  ;;  %v9788_v53 = vmul.f32 %v11434_v45, %v11431_v38  ;;  %v3661_v61 = vperm.slane %v3658_v14, 1  ;;  %v3626_v29 = vperm.slane %v3624_v55, 0  ;;  %v3627_v1 = vperm.slane %v3624_v55, 1  ;;  %v11441_v38 = vld [vmem:[#allocation168_spill] sm:$0xff] }
 0x699   : > { %v3565_v23 = vadd.f32 %v11436_v40, %v3554_v26  ;;  %v3566_v19 = vadd.f32 %v11437_v41, %v3555_v35  ;;  %vm11438_vm2 = vcmp.lt.s32.totalorder %v6557_v56, 2  ;;  %11440 = vst [vmem:[#allocation114_spill] sm:$0xff] %v9803_v11  ;;  %v3649_v57 = vsel %vm931_vm11, %v3646_v3, %v9713_v49  ;;  %v9813_v45 = vld [vmem:[#allocation11 + $0x52] ss:$8 sm:$0x3] }
 0x69a   : > { %v3593_v62 = vsel %vm11438_vm2, %v3590_v37, %v3592_v43  ;;  %vm11439_vm9 = vmmov %vm11438_vm2  ;;  %v3650_v39 = vsel %vm931_vm11, %v9713_v49, %v3646_v3  ;;  %v3682_v14 = vperm.slane %v3680_v31, 0  ;;  %v3683_v55 = vperm.slane %v3680_v31, 1  ;;  %11443 = vst [vmem:[#allocation53_spill] sm:$0xff] %v9813_v45  ;;  %v11445_v3 = vld [vmem:[#allocation161_spill] sm:$0xff]  ;;  %v11474_v11 = vld [vmem:[#allocation56_spill] sm:$0xff] }
 0x69b   : > { %v3594_v36 = vsel %vm11439_vm9, %v3592_v43, %v3590_v37  ;;  %v3609_v35 = vmul.f32 %v3605_v32, %v3593_v62  ;;  %v3587_v59 = vadd.f32 %v11441_v38, %v3576_v46  ;;  %v3588_v43 = vadd.f32 %v11442_v44, %v3577_v34  ;;  %v3758_v34 = vld [vmem:[#allocation9 + $0x31] ss:$8 sm:$0x3]  ;;  %5043 = vrot.lane.b32.xlu0 %v11474_v11, %s11461_s13 }
 0x69c   : > { %v3608_v26 = vmul.f32 %v3604_v28, %v3594_v36  ;;  %v3630_v41 = vmul.f32 %v3626_v29, %v3594_v36  ;;  %v3631_v10 = vmul.f32 %v3627_v1, %v3593_v62  ;;  %v3664_v60 = vmul.f32 %v3660_v51, %v3650_v39  ;;  %v11444_v28 = vld [vmem:[#allocation160_spill] sm:$0xff]  ;;  %v11450_v62 = vld [vmem:[#allocation163_spill] sm:$0xff]  ;;  %v3780_v38 = vld [vmem:[#allocation12 + $0x31] ss:$8 sm:$0x3] }
 0x69d   : > { %v3611_v40 = vadd.f32 %v3609_v35, %v3566_v19  ;;  %v3665_v49 = vmul.f32 %v3661_v61, %v3649_v57  ;;  %v3686_v1 = vmul.f32 %v3682_v14, %v3650_v39  ;;  %v3687_v19 = vmul.f32 %v3683_v55, %v3649_v57  ;;  %v9827_v51 = vld [vmem:[#allocation14 + $0x52] ss:$8 sm:$0x3]  ;;  %v11449_v61 = vld [vmem:[#allocation162_spill] sm:$0xff] }
 0x69e   : > { %v3610_v37 = vadd.f32 %v3608_v26, %v3565_v23  ;;  %v3632_v18 = vadd.f32 %v3630_v41, %v3587_v59  ;;  %v3633_v46 = vadd.f32 %v3631_v10, %v3588_v43  ;;  %11448 = vst [vmem:[#allocation54_spill] sm:$0xff] %v9827_v51  ;;  %v3748_v59 = vpop.permute.xlu0 %3747  ;;  %v3804_v44 = vpop.permute.xlu1 %3803  ;;  %v3760_v43 = vperm.slane %v3758_v34, 0  ;;  %v11452_v41 = vld [vmem:[#allocation42_spill] sm:$0xff] }
 0x69f   : > { %v3622_v31 = vadd.f32 %v11445_v3, %v3611_v40  ;;  %v3761_v39 = vperm.slane %v3758_v34, 1  ;;  %v3749_v57 = vsel %vm966_vm12, %v9751_v21, %v3748_v59  ;;  %v3750_v14 = vsel %vm966_vm12, %v3748_v59, %v9751_v21  ;;  %v9837_v55 = vpop.permute.xlu2 %3913  ;;  %v11451_v40 = vld [vmem:[#allocation43_spill] sm:$0xff]  ;;  %v11455_v59 = vld [vmem:[#allocation72_spill] sm:$0xff] }
 0x6a0   : > { %v3621_v32 = vadd.f32 %v11444_v28, %v3610_v37  ;;  %v3643_v10 = vadd.f32 %v11449_v61, %v3632_v18  ;;  %v3644_v36 = vadd.f32 %v11450_v62, %v3633_v46  ;;  %v9841_v28 = vld [vmem:[#allocation9 + $0x33] ss:$8 sm:$0x3]  ;;  %v3783_v46 = vperm.slane %v3780_v38, 1  ;;  %v11453_v34 = vld [vmem:[#allocation171_spill] sm:$0xff]  ;;  %v11454_v62 = vld [vmem:[#allocation172_spill] sm:$0xff] }
 0x6a1   : > { %v3667_v35 = vadd.f32 %v3665_v49, %v3622_v31  ;;  %v3782_v31 = vperm.slane %v3780_v38, 0  ;;  %v11458_v3 = vld [vmem:[#allocation64_spill] sm:$0xff]  ;;  %v11459_v38 = vld [vmem:[#allocation73_spill] sm:$0xff]  ;;  %vm11502_vm12 = vcmp.lt.s32.totalorder %v6557_v56, 110  ;;  %vm11519_vm1 = vcmp.lt.s32.totalorder %v6557_v56, 98 }
 0x6a2   : > { %v3666_v26 = vadd.f32 %v3664_v60, %v3621_v32  ;;  %v3688_v18 = vadd.f32 %v3686_v1, %v3643_v10  ;;  %v3689_v37 = vadd.f32 %v3687_v19, %v3644_v36  ;;  %v11456_v1 = vld [vmem:[#allocation70_spill] sm:$0xff]  ;;  %v3764_v36 = vmul.f32 %v3760_v43, %v3749_v57  ;;  %vm11520_vm7 = vmmov %vm11519_vm1 }
 0x6a3   : > { %v3678_v49 = vadd.f32 %v11452_v41, %v3667_v35  ;;  %v3892_v10 = vld [vmem:[#allocation12 + $0x33] ss:$8 sm:$0x3]  ;;  %v3872_v35 = vperm.slane %v9841_v28, 0  ;;  %v11457_v41 = vld [vmem:[#allocation63_spill] sm:$0xff]  ;;  %v3787_v43 = vmul.f32 %v3783_v46, %v3750_v14  ;;  %vm11532_vm3 = vcmp.lt.s32.totalorder %v6557_v56, 97 }
 0x6a4   : > { %v3677_v60 = vadd.f32 %v11451_v40, %v3666_v26  ;;  %v3699_v61 = vadd.f32 %v11453_v34, %v3688_v18  ;;  %v3700_v21 = vadd.f32 %v11454_v62, %v3689_v37  ;;  %v3765_v26 = vmul.f32 %v3761_v39, %v3750_v14  ;;  %v11460_v18 = vld [vmem:[#allocation71_spill] sm:$0xff]  ;;  %v3814_v37 = vld [vmem:[#allocation9 + $0x32] ss:$8 sm:$0x3]  ;;  %vm11533_vm4 = vmmov %vm11532_vm3 }
 0x6a5   : > { %v3711_v19 = vadd.f32 %v11456_v1, %v3678_v49  ;;  %v3873_v40 = vperm.slane %v9841_v28, 1  ;;  %v3786_v49 = vmul.f32 %v3782_v31, %v3749_v57  ;;  %v3895_v39 = vperm.slane %v3892_v10, 1  ;;  %v11462_v28 = vld [vmem:[#allocation65_spill] sm:$0xff] }
 0x6a6   : > { %v3710_v29 = vadd.f32 %v11455_v59, %v3677_v60  ;;  %v3732_v27 = vadd.f32 %v11459_v38, %v3699_v61  ;;  %v3733_v34 = vadd.f32 %v11460_v18, %v3700_v21  ;;  %v3836_v60 = vld [vmem:[#allocation12 + $0x32] ss:$8 sm:$0x3]  ;;  %v11463_v61 = vld [vmem:[#allocation67_spill] sm:$0xff]  ;;  %v3802_v1 = vpop.permute.xlu0 %3801  ;;  %v3817_v38 = vperm.slane %v3814_v37, 1 }
 0x6a7   : > { %v3722_v23 = vadd.f32 %v11458_v3, %v3711_v19  ;;  %v3858_v19 = vpop.permute.xlu1 %3857  ;;  %v3838_v57 = vperm.slane %v3836_v60, 0  ;;  %v3839_v14 = vperm.slane %v3836_v60, 1  ;;  %v9863_v31 = vpop.permute.xlu2 %4027  ;;  %v3805_v16 = vsel %vm990_vm13, %v3802_v1, %v3804_v44 }
 0x6a8   : > { %v3721_v32 = vadd.f32 %v11457_v41, %v3710_v29  ;;  %v3894_v29 = vperm.slane %v3892_v10, 0  ;;  %v3743_v3 = vadd.f32 %v11462_v28, %v3732_v27  ;;  %v3744_v62 = vadd.f32 %v11463_v61, %v3733_v34  ;;  %v11464_v10 = vld [vmem:[#allocation81_spill] sm:$0xff] }
 0x6a9   : > { %v3767_v59 = vadd.f32 %v3765_v26, %v3722_v23  ;;  %v3816_v41 = vperm.slane %v3814_v37, 0  ;;  %v3806_v27 = vsel %vm990_vm13, %v3804_v44, %v3802_v1  ;;  %v11468_v26 = vperm.slane %v9429_v63, 1  ;;  %v3948_v44 = vld [vmem:[#allocation12 + $0x34] ss:$8 sm:$0x3]  ;;  %vm11503_vm13 = vmmov %vm11502_vm12 }
 0x6aa   : > { %v3766_v21 = vadd.f32 %v3764_v36, %v3721_v32  ;;  %v3788_v46 = vadd.f32 %v3786_v49, %v3743_v3  ;;  %v3789_v18 = vadd.f32 %v3787_v43, %v3744_v62  ;;  %v11465_v32 = vperm.slane %v9429_v63, 0  ;;  %v11467_v36 = vld [vmem:[#allocation84_spill] sm:$0xff]  ;;  %v3926_v49 = vld [vmem:[#allocation9 + $0x34] ss:$8 sm:$0x3] }
 0x6ab   : > { %v9877_v34 = vmul.f32 %v11468_v26, %v11467_v36  ;;  %v3861_v37 = vsel %vm1722_vm5, %v3858_v19, %v9801_v58  ;;  %v3862_v60 = vsel %vm1722_vm5, %v9801_v58, %v3858_v19  ;;  %v11470_v43 = vld [vmem:[#allocation92_spill] sm:$0xff]  ;;  %v11471_v3 = vld [vmem:[#allocation82_spill] sm:$0xff]  ;;  %v11472_v62 = vld [vmem:[#allocation177_spill] sm:$0xff]  ;;  %v3820_v26 = vmul.f32 %v3816_v41, %v3805_v16 }
 0x6ac   : > { %v9872_v23 = vmul.f32 %v11465_v32, %v11464_v10  ;;  %v3777_v28 = vadd.f32 %v11470_v43, %v3766_v21  ;;  %v3778_v61 = vadd.f32 %v11471_v3, %v3767_v59  ;;  %v3799_v1 = vadd.f32 %v11472_v62, %v3788_v46  ;;  %v11473_v32 = vld [vmem:[#allocation178_spill] sm:$0xff]  ;;  %v11475_v46 = vld [vmem:[#allocation60_spill] sm:$0xff] }
 0x6ad   : > { %11469 = vst [vmem:[#allocation115_spill] sm:$0xff] %v9877_v34  ;;  %v3800_v63 = vadd.f32 %v11473_v32, %v3789_v18  ;;  %v3821_v50 = vmul.f32 %v3817_v38, %v3806_v27  ;;  %v3842_v51 = vmul.f32 %v3838_v57, %v3805_v16  ;;  %v3843_v45 = vmul.f32 %v3839_v14, %v3806_v27  ;;  %v11476_v18 = vld [vmem:[#allocation44_spill] sm:$0xff]  ;;  %v11477_v27 = vld [vmem:[#allocation49_spill] sm:$0xff] }
 0x6ae   : > { %11466 = vst [vmem:[#allocation123_spill] sm:$0xff] %v9872_v23  ;;  %v3928_v34 = vperm.slane %v3926_v49, 0  ;;  %v3929_v23 = vperm.slane %v3926_v49, 1  ;;  %v3950_v58 = vperm.slane %v3948_v44, 0  ;;  %v3951_v19 = vperm.slane %v3948_v44, 1  ;;  %5045 = vrot.lane.b32.xlu1 %v11475_v46, %s11461_s13  ;;  %v3916_v11 = vpop.permute.xlu0 %3915  ;;  %v11478_v44 = vld [vmem:[#allocation174_spill] sm:$0xff] }
 0x6af   : > { %v3822_v21 = vadd.f32 %v3820_v26, %v3777_v28  ;;  %v3823_v43 = vadd.f32 %v3821_v50, %v3778_v61  ;;  %v3844_v59 = vadd.f32 %v3842_v51, %v3799_v1  ;;  %v3845_v3 = vadd.f32 %v3843_v45, %v3800_v63  ;;  %v11479_v50 = vld [vmem:[#allocation175_spill] sm:$0xff]  ;;  %v3972_v45 = vpop.permute.xlu1 %3971  ;;  %v9901_v61 = vpop.permute.xlu2 %4081  ;;  %v4038_v32 = vld [vmem:[#allocation9 + $0x36] ss:$8 sm:$0x3] }
 0x6b0   : > { %v3876_v41 = vmul.f32 %v3872_v35, %v3861_v37  ;;  %v3877_v38 = vmul.f32 %v3873_v40, %v3862_v60  ;;  %v3898_v57 = vmul.f32 %v3894_v29, %v3861_v37  ;;  %v3899_v14 = vmul.f32 %v3895_v39, %v3862_v60  ;;  %v9911_v39 = vld [vmem:[#allocation14 + $0x54] ss:$8 sm:$0x3] }
 0x6b1   : > { %v3833_v16 = vadd.f32 %v11476_v18, %v3822_v21  ;;  %v3834_v49 = vadd.f32 %v11477_v27, %v3823_v43  ;;  %v3855_v28 = vadd.f32 %v11478_v44, %v3844_v59  ;;  %v3856_v51 = vadd.f32 %v11479_v50, %v3845_v3  ;;  %v5188_v59 = vld [vmem:[%s11480_s23] sm:$0xf]  ;;  %v4060_v27 = vld [vmem:[#allocation12 + $0x36] ss:$8 sm:$0x3] }
 0x6b2   : > { %v4837_v35 = vperm.slane %v9891_v17, 0  ;;  %v4838_v40 = vperm.slane %v9891_v17, 1  ;;  %v3917_v5 = vsel %vm2082_vm6, %v9837_v55, %v3916_v11  ;;  %v3918_v29 = vsel %vm2082_vm6, %v3916_v11, %v9837_v55  ;;  %5191 = vperm.xlu2 %5653, %v5188_v59  }
 0x6b3   : > { %v3878_v37 = vadd.f32 %v3876_v41, %v3833_v16  ;;  %v3879_v60 = vadd.f32 %v3877_v38, %v3834_v49  ;;  %v3900_v62 = vadd.f32 %v3898_v57, %v3855_v28  ;;  %v3901_v1 = vadd.f32 %v3899_v14, %v3856_v51  ;;  %v3982_v38 = vld [vmem:[#allocation9 + $0x35] ss:$8 sm:$0x3] }
 0x6b4   : > { %v3932_v63 = vmul.f32 %v3928_v34, %v3917_v5  ;;  %v3933_v26 = vmul.f32 %v3929_v23, %v3918_v29  ;;  %v3954_v21 = vmul.f32 %v3950_v58, %v3917_v5  ;;  %v3955_v43 = vmul.f32 %v3951_v19, %v3918_v29  ;;  %v4004_v57 = vld [vmem:[#allocation12 + $0x35] ss:$8 sm:$0x3] }
 0x6b5   : > { %v3889_v3 = vadd.f32 %v9290_v4, %v3878_v37  ;;  %v3890_v46 = vadd.f32 %v9295_v0, %v3879_v60  ;;  %v3911_v55 = vadd.f32 %v9300_v7, %v3900_v62  ;;  %v3912_v41 = vadd.f32 %v9305_v12, %v3901_v1 }
 0x6b6   : > { %v4040_v34 = vperm.slane %v4038_v32, 0  ;;  %v4041_v58 = vperm.slane %v4038_v32, 1  ;;  %v3984_v4 = vperm.slane %v3982_v38, 0  ;;  %v3985_v0 = vperm.slane %v3982_v38, 1  ;;  %v3970_v44 = vpop.permute.xlu0 %3969 }
 0x6b7   : > { %v3934_v19 = vadd.f32 %v3932_v63, %v3889_v3  ;;  %v3935_v11 = vadd.f32 %v3933_v26, %v3890_v46  ;;  %v3956_v18 = vadd.f32 %v3954_v21, %v3911_v55  ;;  %v3957_v16 = vadd.f32 %v3955_v43, %v3912_v41  ;;  %v4026_v12 = vpop.permute.xlu1 %4025  ;;  %v9926_v29 = vpop.permute.xlu2 %4195 }
 0x6b8   : > { %v4006_v49 = vperm.slane %v4004_v57, 0  ;;  %v4007_v7 = vperm.slane %v4004_v57, 1  ;;  %v11481_v37 = vperm.slane %v9439_v47, 0  ;;  %v11482_v62 = vperm.slane %v9439_v47, 1 }
 0x6b9   : > { %v3945_v28 = vadd.f32 %v9382_v6, %v3934_v19  ;;  %v3946_v50 = vadd.f32 %v9390_v15, %v3935_v11  ;;  %v3967_v51 = vadd.f32 %v9448_v24, %v3956_v18  ;;  %v3968_v5 = vadd.f32 %v9453_v20, %v3957_v16  ;;  %v4094_v24 = vld [vmem:[#allocation9 + $0x37] ss:$8 sm:$0x3] }
 0x6ba   : > { %v9931_v60 = vmul.f32 %v11481_v37, %v11464_v10  ;;  %v9936_v1 = vmul.f32 %v11482_v62, %v11467_v36  ;;  %v3973_v6 = vsel %vm1014_vm14, %v3970_v44, %v3972_v45  ;;  %v3974_v15 = vsel %vm1014_vm14, %v3972_v45, %v3970_v44  ;;  %v4116_v20 = vld [vmem:[#allocation12 + $0x37] ss:$8 sm:$0x3]  ;;  %v4150_v62 = vld [vmem:[#allocation9 + $0x40] ss:$8 sm:$0x3] }
 0x6bb   : > { %v4062_v32 = vperm.slane %v4060_v27, 0  ;;  %v4063_v63 = vperm.slane %v4060_v27, 1  ;;  %v4029_v10 = vsel %vm1038_vm15, %v4026_v12, %v9863_v31  ;;  %v4030_v47 = vsel %vm1038_vm15, %v9863_v31, %v4026_v12 }
 0x6bc   : > { %v3988_v36 = vmul.f32 %v3984_v4, %v3973_v6  ;;  %v3989_v26 = vmul.f32 %v3985_v0, %v3974_v15  ;;  %v4010_v21 = vmul.f32 %v4006_v49, %v3973_v6  ;;  %v4011_v43 = vmul.f32 %v4007_v7, %v3974_v15  ;;  %v11483_v7 = vld [vmem:[#allocation94_spill] sm:$0xff] }
 0x6bd   : > { %v4096_v59 = vperm.slane %v4094_v24, 0  ;;  %v4097_v3 = vperm.slane %v4094_v24, 1  ;;  %v4118_v46 = vperm.slane %v4116_v20, 0  ;;  %v4119_v45 = vperm.slane %v4116_v20, 1 }
 0x6be   : > { %v3990_v55 = vadd.f32 %v3988_v36, %v3945_v28  ;;  %v3991_v41 = vadd.f32 %v3989_v26, %v3946_v50  ;;  %v4012_v38 = vadd.f32 %v4010_v21, %v3967_v51  ;;  %v4013_v57 = vadd.f32 %v4011_v43, %v3968_v5  ;;  %v4084_v49 = vpop.permute.xlu0 %4083  ;;  %v11485_v28 = vld [vmem:[#allocation95_spill] sm:$0xff]  ;;  %v11490_v43 = vld [vmem:[#allocation77_spill] sm:$0xff] }
 0x6bf   : > { %v4044_v19 = vmul.f32 %v4040_v34, %v4029_v10  ;;  %v4045_v11 = vmul.f32 %v4041_v58, %v4030_v47  ;;  %v4066_v18 = vmul.f32 %v4062_v32, %v4029_v10  ;;  %v4067_v16 = vmul.f32 %v4063_v63, %v4030_v47  ;;  %v4140_v50 = vpop.permute.xlu1 %4139  ;;  %v9970_v20 = vld [vmem:[#allocation11 + $0x53] ss:$8 sm:$0x3]  ;;  %v11487_v32 = vld [vmem:[#allocation74_spill] sm:$0xff] }
 0x6c0   : > { %v4001_v27 = vadd.f32 %v9360_v30, %v3990_v55  ;;  %v4002_v31 = vadd.f32 %v9365_v9, %v3991_v41  ;;  %v4023_v4 = vadd.f32 %v9372_v42, %v4012_v38  ;;  %v4024_v0 = vadd.f32 %v9377_v22, %v4013_v57  ;;  %v9968_v42 = vpop.permute.xlu2 %4249  ;;  %v11488_v10 = vld [vmem:[#allocation76_spill] sm:$0xff] }
 0x6c1   : > { %v11484_v44 = vperm.slane %v9489_v54, 0  ;;  %v11486_v34 = vperm.slane %v9489_v54, 1  ;;  %v4085_v30 = vsel %vm1062_vm10, %v9901_v61, %v4084_v49  ;;  %v4086_v9 = vsel %vm1062_vm10, %v4084_v49, %v9901_v61  ;;  %v11489_v61 = vld [vmem:[#allocation80_spill] sm:$0xff] }
 0x6c2   : > { %v4046_v22 = vadd.f32 %v4044_v19, %v4001_v27  ;;  %v4047_v51 = vadd.f32 %v4045_v11, %v4002_v31  ;;  %v4068_v5 = vadd.f32 %v4066_v18, %v4023_v4  ;;  %v4069_v37 = vadd.f32 %v4067_v16, %v4024_v0  ;;  %v4172_v21 = vld [vmem:[#allocation12 + $0x40] ss:$8 sm:$0x3]  ;;  %v11494_v16 = vld [vmem:[#allocation90_spill] sm:$0xff] }
 0x6c3   : > { %v9955_v12 = vmul.f32 %v11484_v44, %v11483_v7  ;;  %v9960_v58 = vmul.f32 %v11486_v34, %v11485_v28  ;;  %v4100_v6 = vmul.f32 %v4096_v59, %v4085_v30  ;;  %v4101_v54 = vmul.f32 %v4097_v3, %v4086_v9  ;;  %v11493_v18 = vld [vmem:[#allocation99_spill] sm:$0xff] }
 0x6c4   : > { %v4122_v15 = vmul.f32 %v4118_v46, %v4085_v30  ;;  %v4123_v24 = vmul.f32 %v4119_v45, %v4086_v9  ;;  %v4057_v63 = vadd.f32 %v11487_v32, %v4046_v22  ;;  %v4058_v47 = vadd.f32 %v11488_v10, %v4047_v51  ;;  %v11497_v30 = vld [vmem:[#allocation50_spill] sm:$0xff]  ;;  %v11498_v22 = vld [vmem:[#allocation45_spill] sm:$0xff] }
 0x6c5   : > { %v4079_v36 = vadd.f32 %v9506_v2, %v4068_v5  ;;  %v4080_v26 = vadd.f32 %v11489_v61, %v4069_v37  ;;  %v11491_v55 = vperm.slane %v11490_v43, 0  ;;  %v11492_v59 = vperm.slane %v11490_v43, 1  ;;  %v4206_v2 = vld [vmem:[#allocation9 + $0x41] ss:$8 sm:$0x3] }
 0x6c6   : > { %v4152_v46 = vperm.slane %v4150_v62, 0  ;;  %v4153_v45 = vperm.slane %v4150_v62, 1  ;;  %v4102_v38 = vadd.f32 %v4100_v6, %v4057_v63  ;;  %v4103_v57 = vadd.f32 %v4101_v54, %v4058_v47  ;;  %v4138_v44 = vpop.permute.xlu0 %4137  ;;  %v11499_v5 = vld [vmem:[#allocation51_spill] sm:$0xff] }
 0x6c7   : > { %v9979_v41 = vmul.f32 %v11491_v55, %v11483_v7  ;;  %v9984_v3 = vmul.f32 %v11492_v59, %v11485_v28  ;;  %v4124_v19 = vadd.f32 %v4122_v15, %v4079_v36  ;;  %v4125_v11 = vadd.f32 %v4123_v24, %v4080_v26  ;;  %v4228_v7 = vld [vmem:[#allocation12 + $0x41] ss:$8 sm:$0x3]  ;;  %v11496_v28 = vld [vmem:[#allocation97_spill] sm:$0xff]  ;;  %v4194_v54 = vpop.permute.xlu1 %4193 }
 0x6c8   : > { %v11495_v27 = vperm.slane %v11494_v16, 0  ;;  %v4780_v4 = vperm.slane %v9970_v20, 0  ;;  %v4174_v0 = vperm.slane %v4172_v21, 0  ;;  %v4175_v49 = vperm.slane %v4172_v21, 1  ;;  %v10006_v36 = vpop.permute.xlu2 %4363  ;;  %v11504_v26 = vld [vmem:[#allocation100_spill] sm:$0xff] }
 0x6c9   : > { %v4113_v34 = vadd.f32 %v11496_v28, %v4102_v38  ;;  %v4114_v9 = vadd.f32 %v11497_v30, %v4103_v57  ;;  %v4135_v51 = vadd.f32 %v11498_v22, %v4124_v19  ;;  %v4136_v37 = vadd.f32 %v11499_v5, %v4125_v11  ;;  %v4262_v61 = vld [vmem:[#allocation9 + $0x42] ss:$8 sm:$0x3]  ;;  %v11508_v30 = vld [vmem:[#allocation85_spill] sm:$0xff]  ;;  %v11509_v22 = vld [vmem:[#allocation86_spill] sm:$0xff] }
 0x6ca   : > { %v9989_v31 = vmul.f32 %v11495_v27, %v11493_v18  ;;  %v4208_v62 = vperm.slane %v4206_v2, 0  ;;  %v4209_v6 = vperm.slane %v4206_v2, 1  ;;  %vm11500_vm10 = vcmp.lt.s32.totalorder %v6557_v56, 111 }
 0x6cb   : > { %v4141_v15 = vsel %vm11500_vm10, %v4138_v44, %v4140_v50  ;;  %vm11501_vm11 = vmmov %vm11500_vm10  ;;  %v4197_v32 = vsel %vm11502_vm12, %v4194_v54, %v9926_v29  ;;  %v4198_v63 = vsel %vm11503_vm13, %v9926_v29, %v4194_v54  ;;  %v11505_v21 = vperm.slane %v11494_v16, 1 }
 0x6cc   : > { %v4142_v24 = vsel %vm11501_vm11, %v4140_v50, %v4138_v44  ;;  %v4156_v10 = vmul.f32 %v4152_v46, %v4141_v15  ;;  %v11506_v50 = vld [vmem:[#allocation46_spill] sm:$0xff]  ;;  %v4230_v38 = vperm.slane %v4228_v7, 0  ;;  %v4231_v57 = vperm.slane %v4228_v7, 1  ;;  %v11510_v7 = vld [vmem:[#allocation103_spill] sm:$0xff] }
 0x6cd   : > { %v4157_v47 = vmul.f32 %v4153_v45, %v4142_v24  ;;  %v10011_v43 = vmul.f32 %v11505_v21, %v11504_v26  ;;  %v11507_v55 = vperm.slane %v11506_v50, 0  ;;  %v4178_v29 = vmul.f32 %v4174_v0, %v4141_v15  ;;  %v4284_v45 = vld [vmem:[#allocation12 + $0x42] ss:$8 sm:$0x3] }
 0x6ce   : > { %v4158_v19 = vadd.f32 %v4156_v10, %v4113_v34  ;;  %v4179_v46 = vmul.f32 %v4175_v49, %v4142_v24  ;;  %v4212_v2 = vmul.f32 %v4208_v62, %v4197_v32  ;;  %v4213_v27 = vmul.f32 %v4209_v6, %v4198_v63  ;;  %v4252_v49 = vpop.permute.xlu0 %4251 }
 0x6cf   : > { %v10016_v59 = vmul.f32 %v11507_v55, %v11493_v18  ;;  %v4159_v11 = vadd.f32 %v4157_v47, %v4114_v9  ;;  %v4264_v44 = vperm.slane %v4262_v61, 0  ;;  %v4265_v28 = vperm.slane %v4262_v61, 1  ;;  %v11511_v9 = vld [vmem:[#allocation89_spill] sm:$0xff]  ;;  %v10036_v47 = vld [vmem:[#allocation11 + $0x55] ss:$8 sm:$0x3] }
 0x6d0   : > { %v4169_v16 = vadd.f32 %v11508_v30, %v4158_v19  ;;  %v4180_v54 = vadd.f32 %v4178_v29, %v4135_v51  ;;  %v4181_v21 = vadd.f32 %v4179_v46, %v4136_v37  ;;  %v4234_v23 = vmul.f32 %v4230_v38, %v4197_v32  ;;  %v10028_v51 = vld [vmem:[#allocation14 + $0x53] ss:$8 sm:$0x3]  ;;  %v4308_v37 = vpop.permute.xlu1 %4307 }
 0x6d1   : > { %v4170_v5 = vadd.f32 %v11509_v22, %v4159_v11  ;;  %v4235_v18 = vmul.f32 %v4231_v57, %v4198_v63  ;;  %v4286_v55 = vperm.slane %v4284_v45, 0  ;;  %v4287_v14 = vperm.slane %v4284_v45, 1  ;;  %v4318_v46 = vld [vmem:[#allocation9 + $0x43] ss:$8 sm:$0x3] }
 0x6d2   : > { %v4191_v34 = vadd.f32 %v11510_v7, %v4180_v54  ;;  %v4192_v0 = vadd.f32 %v11511_v9, %v4181_v21  ;;  %v4214_v15 = vadd.f32 %v4212_v2, %v4169_v16  ;;  %v11512_v6 = vperm.slane %v11506_v50, 1  ;;  %v11516_v16 = vld [vmem:[#allocation106_spill] sm:$0xff]  ;;  %v4374_v21 = vld [vmem:[#allocation9 + $0x44] ss:$8 sm:$0x3] }
 0x6d3   : > { %v4215_v62 = vadd.f32 %v4213_v27, %v4170_v5  ;;  %v4781_v10 = vperm.slane %v9970_v20, 1  ;;  %vm11513_vm14 = vcmp.lt.s32.totalorder %v6557_v56, 109  ;;  %v10042_v27 = vld [vmem:[#allocation14 + $0x55] ss:$8 sm:$0x3]  ;;  %vm11517_vm5 = vcmp.lt.s32.totalorder %v6557_v56, 99 }
 0x6d4   : > { %v10025_v24 = vmul.f32 %v11512_v6, %v11504_v26  ;;  %v4253_v32 = vsel %vm11513_vm14, %v9968_v42, %v4252_v49  ;;  %vm11514_vm15 = vmmov %vm11513_vm14  ;;  %v4225_v61 = vadd.f32 %v9676_v13, %v4214_v15  ;;  %v4236_v50 = vadd.f32 %v4234_v23, %v4191_v34  ;;  %v10046_v13 = vpop.permute.xlu2 %4417 }
 0x6d5   : > { %v4254_v63 = vsel %vm11514_vm15, %v4252_v49, %v9968_v42  ;;  %v4226_v26 = vadd.f32 %v9681_v25, %v4215_v62  ;;  %v4237_v38 = vadd.f32 %v4235_v18, %v4192_v0  ;;  %v4268_v57 = vmul.f32 %v4264_v44, %v4253_v32  ;;  %v11515_v42 = vld [vmem:[#allocation105_spill] sm:$0xff]  ;;  %v4396_v49 = vld [vmem:[#allocation12 + $0x44] ss:$8 sm:$0x3]  ;;  %vm11518_vm6 = vmmov %vm11517_vm5 }
 0x6d6   : > { %v4269_v19 = vmul.f32 %v4265_v28, %v4254_v63  ;;  %v4290_v11 = vmul.f32 %v4286_v55, %v4253_v32  ;;  %v4291_v29 = vmul.f32 %v4287_v14, %v4254_v63  ;;  %v4247_v30 = vadd.f32 %v11515_v42, %v4236_v50  ;;  %v4340_v14 = vld [vmem:[#allocation12 + $0x43] ss:$8 sm:$0x3]  ;;  %v4306_v6 = vpop.permute.xlu0 %4305 }
 0x6d7   : > { %v4248_v22 = vadd.f32 %v11516_v16, %v4237_v38  ;;  %v4270_v44 = vadd.f32 %v4268_v57, %v4225_v61  ;;  %v4320_v18 = vperm.slane %v4318_v46, 0  ;;  %v4321_v55 = vperm.slane %v4318_v46, 1 }
 0x6d8   : > { %v4271_v28 = vadd.f32 %v4269_v19, %v4226_v26  ;;  %v4292_v5 = vadd.f32 %v4290_v11, %v4247_v30  ;;  %v4342_v15 = vperm.slane %v4340_v14, 0  ;;  %v4343_v62 = vperm.slane %v4340_v14, 1  ;;  %v4362_v50 = vpop.permute.xlu1 %4361  ;;  %v11521_v11 = vld [vmem:[#allocation108_spill] sm:$0xff]  ;;  %v11524_v30 = vld [vmem:[#allocation109_spill] sm:$0xff] }
 0x6d9   : > { %v4293_v54 = vadd.f32 %v4291_v29, %v4248_v22  ;;  %v4281_v9 = vadd.f32 %v9771_v48, %v4270_v44  ;;  %v4376_v61 = vperm.slane %v4374_v21, 0  ;;  %v4377_v26 = vperm.slane %v4374_v21, 1  ;;  %v11522_v29 = vld [vmem:[#allocation48_spill] sm:$0xff] }
 0x6da   : > { %v4282_v0 = vadd.f32 %v9776_v8, %v4271_v28  ;;  %v4303_v32 = vadd.f32 %v9781_v52, %v4292_v5  ;;  %v4309_v38 = vsel %vm11517_vm5, %v4306_v6, %v4308_v37  ;;  %v4310_v57 = vsel %vm11518_vm6, %v4308_v37, %v4306_v6 }
 0x6db   : > { %v4304_v63 = vadd.f32 %v9788_v53, %v4293_v54  ;;  %v4365_v48 = vsel %vm11519_vm1, %v4362_v50, %v10006_v36  ;;  %v4366_v8 = vsel %vm11520_vm7, %v10006_v36, %v4362_v50  ;;  %v4324_v52 = vmul.f32 %v4320_v18, %v4309_v38  ;;  %v4430_v53 = vld [vmem:[#allocation9 + $0x45] ss:$8 sm:$0x3] }
 0x6dc   : > { %v4325_v19 = vmul.f32 %v4321_v55, %v4310_v57  ;;  %v11523_v46 = vperm.slane %v11522_v29, 0  ;;  %v11525_v16 = vperm.slane %v11522_v29, 1  ;;  %v4398_v22 = vperm.slane %v4396_v49, 0  ;;  %v4452_v36 = vld [vmem:[#allocation12 + $0x45] ss:$8 sm:$0x3]  ;;  %v4532_v29 = vpop.permute.xlu2 %4531 }
 0x6dd   : > { %v4399_v44 = vperm.slane %v4396_v49, 1  ;;  %v4326_v28 = vadd.f32 %v4324_v52, %v4281_v9  ;;  %v4346_v5 = vmul.f32 %v4342_v15, %v4309_v38  ;;  %v4347_v54 = vmul.f32 %v4343_v62, %v4310_v57  ;;  %v11527_v9 = vld [vmem:[#allocation112_spill] sm:$0xff]  ;;  %v11528_v15 = vld [vmem:[#allocation113_spill] sm:$0xff] }
 0x6de   : > { %v10069_v42 = vmul.f32 %v11523_v46, %v11521_v11  ;;  %v10074_v37 = vmul.f32 %v11525_v16, %v11524_v30  ;;  %v4327_v14 = vadd.f32 %v4325_v19, %v4282_v0  ;;  %v4380_v21 = vmul.f32 %v4376_v61, %v4365_v48  ;;  %v11526_v46 = vld [vmem:[#allocation107_spill] sm:$0xff]  ;;  %v4420_v38 = vpop.permute.xlu0 %4419  ;;  %v11529_v57 = vld [vmem:[#allocation52_spill] sm:$0xff] }
 0x6df   : > { %v4381_v18 = vmul.f32 %v4377_v26, %v4366_v8  ;;  %v4432_v55 = vperm.slane %v4430_v53, 0  ;;  %v4433_v6 = vperm.slane %v4430_v53, 1  ;;  %v4337_v50 = vadd.f32 %v9736_v33, %v4326_v28  ;;  %v11535_v53 = vld [vmem:[#allocation115_spill] sm:$0xff] }
 0x6e0   : > { %v4338_v34 = vadd.f32 %v11526_v46, %v4327_v14  ;;  %v4348_v7 = vadd.f32 %v4346_v5, %v4303_v32  ;;  %v4349_v23 = vadd.f32 %v4347_v54, %v4304_v63  ;;  %v4402_v16 = vmul.f32 %v4398_v22, %v4365_v48  ;;  %v10090_v48 = vld [vmem:[#allocation11 + $0x57] ss:$8 sm:$0x3]  ;;  %v4486_v54 = vld [vmem:[#allocation9 + $0x46] ss:$8 sm:$0x3] }
 0x6e1   : > { %v4403_v25 = vmul.f32 %v4399_v44, %v4366_v8  ;;  %v4454_v2 = vperm.slane %v4452_v36, 0  ;;  %v4455_v49 = vperm.slane %v4452_v36, 1  ;;  %v4382_v61 = vadd.f32 %v4380_v21, %v4337_v50  ;;  %v4476_v8 = vpop.permute.xlu1 %4475  ;;  %v11537_v46 = vld [vmem:[#allocation110_spill] sm:$0xff] }
 0x6e2   : > { %v4359_v0 = vadd.f32 %v11527_v9, %v4348_v7  ;;  %v4360_v62 = vadd.f32 %v11528_v15, %v4349_v23  ;;  %v4383_v26 = vadd.f32 %v4381_v18, %v4338_v34  ;;  %v11530_v52 = vperm.slane %v11529_v57, 0  ;;  %v11534_v34 = vld [vmem:[#allocation123_spill] sm:$0xff] }
 0x6e3   : > { %v11531_v32 = vperm.slane %v11529_v57, 1  ;;  %v4421_v23 = vsel %vm11532_vm3, %v10046_v13, %v4420_v38  ;;  %v4422_v7 = vsel %vm11533_vm4, %v4420_v38, %v10046_v13  ;;  %v4393_v19 = vadd.f32 %v11534_v34, %v4382_v61  ;;  %v11536_v13 = vld [vmem:[#allocation116_spill] sm:$0xff] }
 0x6e4   : > { %v10083_v33 = vmul.f32 %v11530_v52, %v11521_v11  ;;  %v4394_v11 = vadd.f32 %v11535_v53, %v4383_v26  ;;  %v4404_v22 = vadd.f32 %v4402_v16, %v4359_v0  ;;  %v4405_v44 = vadd.f32 %v4403_v25, %v4360_v62  ;;  %v11539_v16 = vld [vmem:[#allocation117_spill] sm:$0xff]  ;;  %v4542_v38 = vld [vmem:[#allocation9 + $0x47] ss:$8 sm:$0x3] }
 0x6e5   : > { %v10088_v63 = vmul.f32 %v11531_v32, %v11524_v30  ;;  %v4436_v28 = vmul.f32 %v4432_v55, %v4421_v23  ;;  %v4437_v30 = vmul.f32 %v4433_v6, %v4422_v7  ;;  %v4458_v14 = vmul.f32 %v4454_v2, %v4421_v23  ;;  %v10124_v23 = vld [vmem:[#allocation11 + $0x56] ss:$8 sm:$0x3]  ;;  %v4564_v53 = vld [vmem:[#allocation12 + $0x47] ss:$8 sm:$0x3] }
 0x6e6   : > { %v4459_v5 = vmul.f32 %v4455_v49, %v4422_v7  ;;  %v4415_v18 = vadd.f32 %v9931_v60, %v4404_v22  ;;  %v4416_v50 = vadd.f32 %v9936_v1, %v4405_v44  ;;  %v11538_v9 = vperm.slane %v11537_v46, 0  ;;  %v4508_v49 = vld [vmem:[#allocation12 + $0x46] ss:$8 sm:$0x3]  ;;  %v4474_v44 = vpop.permute.xlu0 %4473 }
 0x6e7   : > { %v11540_v25 = vperm.slane %v11537_v46, 1  ;;  %v4438_v2 = vadd.f32 %v4436_v28, %v4393_v19  ;;  %v4439_v6 = vadd.f32 %v4437_v30, %v4394_v11  ;;  %v4488_v61 = vperm.slane %v4486_v54, 0  ;;  %v11541_v1 = vld [vmem:[#allocation104_spill] sm:$0xff]  ;;  %v4586_v19 = vpop.permute.xlu2 %4585 }
 0x6e8   : > { %v10107_v15 = vmul.f32 %v11538_v9, %v11536_v13  ;;  %v4460_v0 = vadd.f32 %v4458_v14, %v4415_v18  ;;  %v4461_v62 = vadd.f32 %v4459_v5, %v4416_v50  ;;  %v4489_v60 = vperm.slane %v4486_v54, 1  ;;  %v11548_v9 = vld [vmem:[#allocation121_spill] sm:$0xff] }
 0x6e9   : > { %v10112_v55 = vmul.f32 %v11540_v25, %v11539_v16  ;;  %v11542_v26 = vperm.slane %v11541_v1, 0  ;;  %v11543_v52 = vperm.slane %v11541_v1, 1  ;;  %v4449_v7 = vadd.f32 %v9989_v31, %v4438_v2  ;;  %v4530_v54 = vpop.permute.xlu1 %4529  ;;  %v4620_v1 = vld [vmem:[#allocation12 + $0x50] ss:$8 sm:$0x3] }
 0x6ea   : > { %v4450_v34 = vadd.f32 %v10011_v43, %v4439_v6  ;;  %v4510_v11 = vperm.slane %v4508_v49, 0  ;;  %v4511_v22 = vperm.slane %v4508_v49, 1  ;;  %v4471_v28 = vadd.f32 %v10016_v59, %v4460_v0  ;;  %v4598_v59 = vld [vmem:[#allocation9 + $0x50] ss:$8 sm:$0x3] }
 0x6eb   : > { %v10117_v57 = vmul.f32 %v11542_v26, %v11536_v13  ;;  %v10122_v32 = vmul.f32 %v11543_v52, %v11539_v16  ;;  %v4472_v30 = vadd.f32 %v10025_v24, %v4461_v62  ;;  %v4544_v14 = vperm.slane %v4542_v38, 0  ;;  %v11549_v24 = vld [vmem:[#allocation111_spill] sm:$0xff] }
 0x6ec   : > { %v4545_v5 = vperm.slane %v4542_v38, 1  ;;  %vm11544_vm2 = vcmp.lt.s32.totalorder %v6557_v56, 96  ;;  %vm11546_vm10 = vcmp.lt.s32.totalorder %v6557_v56, 95  ;;  %v11550_v16 = vperm.slane %v11549_v24, 0 }
 0x6ed   : > { %v4477_v18 = vsel %vm11544_vm2, %v4474_v44, %v4476_v8  ;;  %vm11545_vm9 = vmmov %vm11544_vm2  ;;  %v4533_v43 = vsel %vm11546_vm10, %v4530_v54, %v4532_v29  ;;  %v4566_v6 = vperm.slane %v4564_v53, 0  ;;  %v4567_v49 = vperm.slane %v4564_v53, 1 }
 0x6ee   : > { %v4478_v31 = vsel %vm11545_vm9, %v4476_v8, %v4474_v44  ;;  %vm11547_vm11 = vmmov %vm11546_vm10  ;;  %v4492_v13 = vmul.f32 %v4488_v61, %v4477_v18  ;;  %v4615_v25 = vmul.f32 %v11550_v16, %v11548_v9  ;;  %v4514_v8 = vmul.f32 %v4510_v11, %v4477_v18  ;;  %v4588_v53 = vpop.permute.xlu0 %4587 }
 0x6ef   : > { %v4534_v50 = vsel %vm11547_vm11, %v4532_v29, %v4530_v54  ;;  %v4493_v46 = vmul.f32 %v4489_v60, %v4478_v31  ;;  %v4515_v38 = vmul.f32 %v4511_v22, %v4478_v31  ;;  %v4548_v26 = vmul.f32 %v4544_v14, %v4533_v43  ;;  %v11551_v14 = vld [vmem:[#allocation122_spill] sm:$0xff] }
 0x6f0   : > { %v4494_v0 = vadd.f32 %v4492_v13, %v4449_v7  ;;  %v4549_v52 = vmul.f32 %v4545_v5, %v4534_v50  ;;  %v4600_v44 = vperm.slane %v4598_v59, 0  ;;  %v4601_v29 = vperm.slane %v4598_v59, 1 }
 0x6f1   : > { %v4495_v62 = vadd.f32 %v4493_v46, %v4450_v34  ;;  %v4516_v54 = vadd.f32 %v4514_v8, %v4471_v28  ;;  %v4517_v21 = vadd.f32 %v4515_v38, %v4472_v30  ;;  %v4570_v16 = vmul.f32 %v4566_v6, %v4533_v43  ;;  %v4644_v30 = vpop.permute.xlu1 %4643  ;;  %v10156_v43 = vld [vmem:[#allocation14 + $0x56] ss:$8 sm:$0x3] }
 0x6f2   : > { %v4505_v61 = vadd.f32 %v9955_v12, %v4494_v0  ;;  %v4571_v36 = vmul.f32 %v4567_v49, %v4534_v50  ;;  %v4622_v2 = vperm.slane %v4620_v1, 0  ;;  %v4623_v45 = vperm.slane %v4620_v1, 1  ;;  %v11553_v12 = vld [vmem:[#allocation114_spill] sm:$0xff] }
 0x6f3   : > { %v4506_v60 = vadd.f32 %v9960_v58, %v4495_v62  ;;  %v4527_v7 = vadd.f32 %v9979_v41, %v4516_v54  ;;  %v4528_v34 = vadd.f32 %v9984_v3, %v4517_v21  ;;  %v11552_v5 = vperm.slane %v11549_v24, 1  ;;  %v4700_v3 = vpop.permute.xlu2 %4699  ;;  %v4654_v49 = vld [vmem:[#allocation9 + $0x51] ss:$8 sm:$0x3] }
 0x6f4   : > { %v4550_v11 = vadd.f32 %v4548_v26, %v4505_v61  ;;  %v11554_v58 = vperm.slane %v11553_v12, 0  ;;  %vm11555_vm12 = vcmp.lt.s32.totalorder %v6557_v56, 94  ;;  %v11557_v0 = vperm.slane %v11553_v12, 1  ;;  %v4676_v26 = vld [vmem:[#allocation12 + $0x51] ss:$8 sm:$0x3] }
 0x6f5   : > { %v4551_v22 = vadd.f32 %v4549_v52, %v4506_v60  ;;  %v4616_v18 = vmul.f32 %v11552_v5, %v11551_v14  ;;  %v4589_v31 = vsel %vm11555_vm12, %v4586_v19, %v4588_v53  ;;  %vm11556_vm13 = vmmov %vm11555_vm12  ;;  %v4572_v13 = vadd.f32 %v4570_v16, %v4527_v7  ;;  %v4710_v52 = vld [vmem:[#allocation9 + $0x52] ss:$8 sm:$0x3]  ;;  %v11558_v61 = vld [vmem:[#allocation132_spill] sm:$0xff] }
 0x6f6   : > { %v4637_v28 = vmul.f32 %v11554_v58, %v11548_v9  ;;  %v4590_v41 = vsel %vm11556_vm13, %v4588_v53, %v4586_v19  ;;  %v4561_v21 = vadd.f32 %v10069_v42, %v4550_v11  ;;  %v4573_v46 = vadd.f32 %v4571_v36, %v4528_v34  ;;  %v11559_v60 = vld [vmem:[#allocation53_spill] sm:$0xff]  ;;  %v4642_v5 = vpop.permute.xlu0 %4641 }
 0x6f7   : > { %v4562_v50 = vadd.f32 %v10074_v37, %v4551_v22  ;;  %v4604_v59 = vmul.f32 %v4600_v44, %v4589_v31  ;;  %v4605_v24 = vmul.f32 %v4601_v29, %v4590_v41  ;;  %v4626_v6 = vmul.f32 %v4622_v2, %v4589_v31  ;;  %v11561_v7 = vld [vmem:[#allocation133_spill] sm:$0xff] }
 0x6f8   : > { %v4627_v9 = vmul.f32 %v4623_v45, %v4590_v41  ;;  %v4638_v62 = vmul.f32 %v11557_v0, %v11551_v14  ;;  %v4951_v19 = vperm.slane %v10124_v23, 1  ;;  %v4583_v8 = vadd.f32 %v10083_v33, %v4572_v13  ;;  %v4732_v11 = vld [vmem:[#allocation12 + $0x52] ss:$8 sm:$0x3] }
 0x6f9   : > { %v4584_v38 = vadd.f32 %v10088_v63, %v4573_v46  ;;  %v4972_v42 = vperm.slane %v10156_v43, 0  ;;  %v4973_v37 = vperm.slane %v10156_v43, 1  ;;  %v4606_v36 = vadd.f32 %v4604_v59, %v4561_v21  ;;  %v4698_v21 = vpop.permute.xlu1 %4697  ;;  %v11593_v43 = vld [vmem:[#allocation40_spill] sm:$0xff] }
 0x6fa   : > { %v4607_v1 = vadd.f32 %v4605_v24, %v4562_v50  ;;  %v4628_v2 = vadd.f32 %v4626_v6, %v4583_v8  ;;  %v4656_v44 = vperm.slane %v4654_v49, 0  ;;  %v4657_v29 = vperm.slane %v4654_v49, 1  ;;  %v4767_v24 = vld [vmem:[#allocation9 + $0x53] ss:$8 sm:$0x3] }
 0x6fb   : > { %v4629_v45 = vadd.f32 %v4627_v9, %v4584_v38  ;;  %v11560_v54 = vperm.slane %v11559_v60, 0  ;;  %v11562_v33 = vperm.slane %v11559_v60, 1  ;;  %v4617_v34 = vadd.f32 %v4615_v25, %v4606_v36 }
 0x6fc   : > { %v4618_v53 = vadd.f32 %v4616_v18, %v4607_v1  ;;  %v4678_v22 = vperm.slane %v4676_v26, 0  ;;  %v4679_v14 = vperm.slane %v4676_v26, 1  ;;  %v4639_v12 = vadd.f32 %v4637_v28, %v4628_v2  ;;  %v11567_v28 = vld [vmem:[#allocation54_spill] sm:$0xff] }
 0x6fd   : > { %v4727_v16 = vmul.f32 %v11560_v54, %v11558_v61  ;;  %v4728_v63 = vmul.f32 %v11562_v33, %v11561_v7  ;;  %v4640_v58 = vadd.f32 %v4638_v62, %v4629_v45  ;;  %v4712_v31 = vperm.slane %v4710_v52, 0  ;;  %v4789_v2 = vld [vmem:[#allocation12 + $0x53] ss:$8 sm:$0x3] }
 0x6fe   : > { %v4713_v41 = vperm.slane %v4710_v52, 1  ;;  %vm11563_vm14 = vcmp.lt.s32.totalorder %v6557_v56, 93  ;;  %vm11565_vm5 = vcmp.lt.s32.totalorder %v6557_v56, 83  ;;  %v11568_v6 = vperm.slane %v11567_v28, 0 }
 0x6ff   : > { %v4645_v50 = vsel %vm11563_vm14, %v4642_v5, %v4644_v30  ;;  %vm11564_vm15 = vmmov %vm11563_vm14  ;;  %v4701_v46 = vsel %vm11565_vm5, %v4698_v21, %v4700_v3  ;;  %v11569_v49 = vperm.slane %v11567_v28, 1  ;;  %v4734_v62 = vperm.slane %v4732_v11, 0  ;;  %v11574_v28 = vld [vmem:[#allocation144_spill] sm:$0xff] }
 0x700   : > { %v4646_v13 = vsel %vm11564_vm15, %v4644_v30, %v4642_v5  ;;  %vm11566_vm6 = vmmov %vm11565_vm5  ;;  %v4660_v18 = vmul.f32 %v4656_v44, %v4645_v50  ;;  %v4749_v9 = vmul.f32 %v11568_v6, %v11558_v61  ;;  %v4735_v8 = vperm.slane %v4732_v11, 1  ;;  %v4754_v30 = vpop.permute.xlu2 %4753 }
 0x701   : > { %v4702_v25 = vsel %vm11566_vm6, %v4700_v3, %v4698_v21  ;;  %v4661_v59 = vmul.f32 %v4657_v29, %v4646_v13  ;;  %v4750_v0 = vmul.f32 %v11569_v49, %v11561_v7  ;;  %v4682_v1 = vmul.f32 %v4678_v22, %v4645_v50  ;;  %v4756_v22 = vpop.permute.xlu0 %4755 }
 0x702   : > { %v4662_v38 = vadd.f32 %v4660_v18, %v4617_v34  ;;  %v4683_v26 = vmul.f32 %v4679_v14, %v4646_v13  ;;  %v4716_v3 = vmul.f32 %v4712_v31, %v4701_v46  ;;  %v4717_v45 = vmul.f32 %v4713_v41, %v4702_v25  ;;  %v11570_v41 = vld [vmem:[#allocation79_spill] sm:$0xff] }
 0x703   : > { %v4663_v36 = vadd.f32 %v4661_v59, %v4618_v53  ;;  %v4769_v52 = vperm.slane %v4767_v24, 0  ;;  %v4770_v44 = vperm.slane %v4767_v24, 1  ;;  %v4684_v60 = vadd.f32 %v4682_v1, %v4639_v12  ;;  %v4813_v12 = vpop.permute.xlu1 %4812  ;;  %v4846_v1 = vld [vmem:[#allocation12 + $0x54] ss:$8 sm:$0x3] }
 0x704   : > { %v4673_v29 = vadd.f32 %v10107_v15, %v4662_v38  ;;  %v4685_v54 = vadd.f32 %v4683_v26, %v4640_v58  ;;  %v4738_v33 = vmul.f32 %v4734_v62, %v4701_v46  ;;  %v4739_v7 = vmul.f32 %v4735_v8, %v4702_v25  ;;  %v11571_v15 = vld [vmem:[#allocation37_spill] sm:$0xff] }
 0x705   : > { %v4674_v61 = vadd.f32 %v10112_v55, %v4663_v36  ;;  %v4791_v5 = vperm.slane %v4789_v2, 0  ;;  %v4792_v11 = vperm.slane %v4789_v2, 1  ;;  %v4695_v34 = vadd.f32 %v10117_v57, %v4684_v60 }
 0x706   : > { %v4696_v53 = vadd.f32 %v10122_v32, %v4685_v54  ;;  %v4718_v14 = vadd.f32 %v4716_v3, %v4673_v29  ;;  %v4841_v21 = vmul.f32 %v4837_v35, %v11570_v41  ;;  %v4842_v55 = vmul.f32 %v4838_v40, %v11571_v15  ;;  %v4824_v35 = vld [vmem:[#allocation9 + $0x54] ss:$8 sm:$0x3]  ;;  %v4880_v3 = vld [vmem:[#allocation9 + $0x55] ss:$8 sm:$0x3] }
 0x707   : > { %v4719_v31 = vadd.f32 %v4717_v45, %v4674_v61  ;;  %vm11572_vm1 = vcmp.lt.s32.totalorder %v6557_v56, 82  ;;  %v4740_v13 = vadd.f32 %v4738_v33, %v4695_v34  ;;  %v4784_v17 = vmul.f32 %v4780_v4, %v11574_v28  ;;  %v11575_v40 = vld [vmem:[#allocation145_spill] sm:$0xff] }
 0x708   : > { %v4758_v58 = vsel %vm11572_vm1, %v4754_v30, %v4756_v22  ;;  %vm11573_vm7 = vmmov %vm11572_vm1  ;;  %v4729_v50 = vadd.f32 %v4727_v16, %v4718_v14  ;;  %v4741_v46 = vadd.f32 %v4739_v7, %v4696_v53  ;;  %v4785_v6 = vmul.f32 %v4781_v10, %v11575_v40  ;;  %v4870_v26 = vpop.permute.xlu2 %4869  ;;  %v4902_v29 = vld [vmem:[#allocation12 + $0x55] ss:$8 sm:$0x3] }
 0x709   : > { %v4759_v57 = vsel %vm11573_vm7, %v4756_v22, %v4754_v30  ;;  %v4730_v32 = vadd.f32 %v4728_v63, %v4719_v31  ;;  %v4773_v25 = vmul.f32 %v4769_v52, %v4758_v58  ;;  %v4795_v59 = vmul.f32 %v4791_v5, %v4758_v58  ;;  %v4811_v54 = vpop.permute.xlu0 %4810  ;;  %v11584_v58 = vld [vmem:[#allocation75_spill] sm:$0xff] }
 0x70a   : > { %v4774_v18 = vmul.f32 %v4770_v44, %v4759_v57  ;;  %v4796_v24 = vmul.f32 %v4792_v11, %v4759_v57  ;;  %v4751_v49 = vadd.f32 %v4749_v9, %v4740_v13  ;;  %v4752_v62 = vadd.f32 %v4750_v0, %v4741_v46 }
 0x70b   : > { %v11576_v16 = vperm.slane %v10028_v51, 0  ;;  %v11577_v8 = vperm.slane %v10028_v51, 1  ;;  %v4775_v38 = vadd.f32 %v4773_v25, %v4729_v50  ;;  %v4826_v45 = vperm.slane %v4824_v35, 0  ;;  %v4868_v34 = vpop.permute.xlu1 %4867 }
 0x70c   : > { %v4776_v36 = vadd.f32 %v4774_v18, %v4730_v32  ;;  %v4797_v2 = vadd.f32 %v4795_v59, %v4751_v49  ;;  %v4798_v4 = vadd.f32 %v4796_v24, %v4752_v62  ;;  %v4827_v20 = vperm.slane %v4824_v35, 1  ;;  %v11586_v32 = vld [vmem:[#allocation36_spill] sm:$0xff] }
 0x70d   : > { %v4806_v63 = vmul.f32 %v11576_v16, %v11574_v28  ;;  %v4807_v30 = vmul.f32 %v11577_v8, %v11575_v40  ;;  %v11578_v10 = vperm.slane %v9911_v39, 0  ;;  %v11579_v0 = vperm.slane %v9911_v39, 1  ;;  %v4959_v28 = vld [vmem:[#allocation12 + $0x56] ss:$8 sm:$0x3] }
 0x70e   : > { %v4786_v44 = vadd.f32 %v4784_v17, %v4775_v38  ;;  %v4787_v51 = vadd.f32 %v4785_v6, %v4776_v36  ;;  %v4848_v61 = vperm.slane %v4846_v1, 0  ;;  %v4849_v60 = vperm.slane %v4846_v1, 1 }
 0x70f   : > { %v4863_v9 = vmul.f32 %v11578_v10, %v11570_v41  ;;  %v4864_v52 = vmul.f32 %v11579_v0, %v11571_v15  ;;  %v4808_v33 = vadd.f32 %v4806_v63, %v4797_v2  ;;  %v4809_v7 = vadd.f32 %v4807_v30, %v4798_v4  ;;  %v4937_v15 = vld [vmem:[#allocation9 + $0x56] ss:$8 sm:$0x3] }
 0x710   : > { %v4882_v5 = vperm.slane %v4880_v3, 0  ;;  %v4883_v11 = vperm.slane %v4880_v3, 1  ;;  %vm11580_vm3 = vcmp.lt.s32.totalorder %v6557_v56, 81  ;;  %vm11582_vm2 = vcmp.lt.s32.totalorder %v6557_v56, 80  ;;  %v4924_v1 = vpop.permute.xlu2 %4923 }
 0x711   : > { %v4815_v53 = vsel %vm11580_vm3, %v4811_v54, %v4813_v12  ;;  %vm11581_vm4 = vmmov %vm11580_vm3  ;;  %v4871_v39 = vsel %vm11582_vm2, %v4868_v34, %v4870_v26  ;;  %v11585_v57 = vperm.slane %v10036_v47, 0  ;;  %v11587_v13 = vperm.slane %v10036_v47, 1  ;;  %v4926_v4 = vpop.permute.xlu0 %4925 }
 0x712   : > { %v4816_v22 = vsel %vm11581_vm4, %v4813_v12, %v4811_v54  ;;  %vm11583_vm9 = vmmov %vm11582_vm2  ;;  %v4830_v31 = vmul.f32 %v4826_v45, %v4815_v53  ;;  %v4904_v25 = vperm.slane %v4902_v29, 0  ;;  %v4905_v18 = vperm.slane %v4902_v29, 1 }
 0x713   : > { %v4872_v14 = vsel %vm11583_vm9, %v4870_v26, %v4868_v34  ;;  %v4831_v41 = vmul.f32 %v4827_v20, %v4816_v22  ;;  %v4897_v50 = vmul.f32 %v11585_v57, %v11584_v58  ;;  %v4898_v46 = vmul.f32 %v11587_v13, %v11586_v32  ;;  %v4983_v0 = vpop.permute.xlu1 %4982  ;;  %v11590_v34 = vld [vmem:[#allocation158_spill] sm:$0xff] }
 0x714   : > { %v4832_v12 = vadd.f32 %v4830_v31, %v4786_v44  ;;  %v4852_v24 = vmul.f32 %v4848_v61, %v4815_v53  ;;  %v4853_v35 = vmul.f32 %v4849_v60, %v4816_v22  ;;  %v4886_v17 = vmul.f32 %v4882_v5, %v4871_v39  ;;  %v4994_v5 = vld [vmem:[#allocation9 + $0x57] ss:$8 sm:$0x3]  ;;  %v11592_v22 = vld [vmem:[#allocation159_spill] sm:$0xff] }
 0x715   : > { %v4833_v59 = vadd.f32 %v4831_v41, %v4787_v51  ;;  %v4887_v40 = vmul.f32 %v4883_v11, %v4872_v14  ;;  %v4939_v6 = vperm.slane %v4937_v15, 0  ;;  %v4940_v49 = vperm.slane %v4937_v15, 1  ;;  %v5027_v11 = vld [vmem:[#allocation14 + $0x57] ss:$8 sm:$0x3] }
 0x716   : > { %v4843_v62 = vadd.f32 %v4841_v21, %v4832_v12  ;;  %v4854_v63 = vadd.f32 %v4852_v24, %v4808_v33  ;;  %v4855_v8 = vadd.f32 %v4853_v35, %v4809_v7  ;;  %v4908_v30 = vmul.f32 %v4904_v25, %v4871_v39  ;;  %v5072_v24 = vld [vmem:[#allocation12 + $0x60] ss:$8 sm:$0x3] }
 0x717   : > { %v4844_v16 = vadd.f32 %v4842_v55, %v4833_v59  ;;  %v4909_v38 = vmul.f32 %v4905_v18, %v4872_v14  ;;  %v4961_v36 = vperm.slane %v4959_v28, 0  ;;  %v4962_v47 = vperm.slane %v4959_v28, 1 }
 0x718   : > { %v4865_v26 = vadd.f32 %v4863_v9, %v4854_v63  ;;  %v4866_v2 = vadd.f32 %v4864_v52, %v4855_v8  ;;  %v4888_v3 = vadd.f32 %v4886_v17, %v4843_v62  ;;  %v11588_v20 = vperm.slane %v10042_v27, 0 }
 0x719   : > { %v4889_v45 = vadd.f32 %v4887_v40, %v4844_v16  ;;  %v11589_v21 = vperm.slane %v10042_v27, 1  ;;  %v4928_v44 = vsel %vm4927_vm0, %v4924_v1, %v4926_v4  ;;  %v4929_v51 = vsel %vm4927_vm0, %v4926_v4, %v4924_v1 }
 0x71a   : > { %v4919_v10 = vmul.f32 %v11588_v20, %v11584_v58  ;;  %v4899_v9 = vadd.f32 %v4897_v50, %v4888_v3  ;;  %v4910_v29 = vadd.f32 %v4908_v30, %v4865_v26  ;;  %v4911_v61 = vadd.f32 %v4909_v38, %v4866_v2  ;;  %v5016_v50 = vld [vmem:[#allocation12 + $0x57] ss:$8 sm:$0x3]  ;;  %v5040_v38 = vpop.permute.xlu2 %5039  ;;  %v5061_v2 = vld [vmem:[#allocation11 + $0x60] ss:$8 sm:$0x3] }
 0x71b   : > { %v4920_v55 = vmul.f32 %v11589_v21, %v11586_v32  ;;  %v4900_v52 = vadd.f32 %v4898_v46, %v4889_v45  ;;  %v4943_v60 = vmul.f32 %v4939_v6, %v4928_v44  ;;  %v4944_v54 = vmul.f32 %v4940_v49, %v4929_v51  ;;  %v11595_v49 = vld [vmem:[#allocation78_spill] sm:$0xff]  ;;  %v5038_v63 = vpop.permute.xlu1 %5037 }
 0x71c   : > { %v4965_v33 = vmul.f32 %v4961_v36, %v4928_v44  ;;  %v4966_v7 = vmul.f32 %v4962_v47, %v4929_v51  ;;  %v11591_v27 = vperm.slane %v10124_v23, 0  ;;  %v4955_v39 = vmul.f32 %v4951_v19, %v11592_v22  ;;  %v5050_v19 = vld [vmem:[#allocation9 + $0x60] ss:$8 sm:$0x3] }
 0x71d   : > { %v4921_v14 = vadd.f32 %v4919_v10, %v4910_v29  ;;  %v4922_v31 = vadd.f32 %v4920_v55, %v4911_v61  ;;  %v4976_v41 = vmul.f32 %v4972_v42, %v11590_v34  ;;  %v4977_v15 = vmul.f32 %v4973_v37, %v11592_v22  ;;  %v4981_v42 = vpop.permute.xlu0 %4980 }
 0x71e   : > { %v4954_v53 = vmul.f32 %v11591_v27, %v11590_v34  ;;  %v4945_v58 = vadd.f32 %v4943_v60, %v4899_v9  ;;  %v4946_v57 = vadd.f32 %v4944_v54, %v4900_v52  ;;  %v4996_v46 = vperm.slane %v4994_v5, 0 }
 0x71f   : > { %v4967_v32 = vadd.f32 %v4965_v33, %v4921_v14  ;;  %v4968_v13 = vadd.f32 %v4966_v7, %v4922_v31  ;;  %v4997_v25 = vperm.slane %v4994_v5, 1  ;;  %v5029_v18 = vperm.slane %v5027_v11, 0 }
 0x720   : > { %v5030_v23 = vperm.slane %v5027_v11, 1  ;;  %v4956_v12 = vadd.f32 %v4954_v53, %v4945_v58  ;;  %v4957_v59 = vadd.f32 %v4955_v39, %v4946_v57  ;;  %v5018_v35 = vperm.slane %v5016_v50, 0 }
 0x721   : > { %v5019_v28 = vperm.slane %v5016_v50, 1  ;;  %v4978_v17 = vadd.f32 %v4976_v41, %v4967_v32  ;;  %v4979_v40 = vadd.f32 %v4977_v15, %v4968_v13  ;;  %v11594_v37 = vperm.slane %v10090_v48, 0 }
 0x722   : > { %v11596_v62 = vperm.slane %v10090_v48, 1  ;;  %v4985_v8 = vsel %vm4984_vm8, %v4981_v42, %v4983_v0  ;;  %v4986_v30 = vsel %vm4984_vm8, %v4983_v0, %v4981_v42  ;;  %v5052_v36 = vperm.slane %v5050_v19, 0  ;;  %v5083_v0 = vld [vmem:[#allocation14 + $0x60] ss:$8 sm:$0x3] }
 0x723   : > { %v5011_v6 = vmul.f32 %v11594_v37, %v11593_v43  ;;  %v5053_v47 = vperm.slane %v5050_v19, 1  ;;  %v5000_v1 = vmul.f32 %v4996_v46, %v4985_v8  ;;  %v5001_v26 = vmul.f32 %v4997_v25, %v4986_v30  ;;  %v5046_v14 = vpop.permute.xlu1 %5045 }
 0x724   : > { %v5012_v16 = vmul.f32 %v11596_v62, %v11595_v49  ;;  %v5074_v4 = vperm.slane %v5072_v24, 0  ;;  %v5075_v3 = vperm.slane %v5072_v24, 1  ;;  %vm11597_vm0 = vcmp.lt.s32.totalorder %v6557_v56, 77 }
 0x725   : > { %v5041_v45 = vsel %vm11597_vm0, %v5038_v63, %v5040_v38  ;;  %vm11598_vm10 = vmmov %vm11597_vm0  ;;  %v5002_v20 = vadd.f32 %v5000_v1, %v4956_v12  ;;  %v5003_v10 = vadd.f32 %v5001_v26, %v4957_v59  ;;  %v5022_v21 = vmul.f32 %v5018_v35, %v4985_v8  ;;  %v5044_v39 = vpop.permute.xlu0 %5043 }
 0x726   : > { %v5042_v48 = vsel %vm11598_vm10, %v5040_v38, %v5038_v63  ;;  %v5023_v55 = vmul.f32 %v5019_v28, %v4986_v30  ;;  %v5033_v44 = vmul.f32 %v5029_v18, %v11593_v43  ;;  %v5034_v51 = vmul.f32 %v5030_v23, %v11595_v49  ;;  %vm11599_vm8 = vmmov %vm11597_vm0 }
 0x727   : > { %v5063_v9 = vperm.slane %v5061_v2, 0  ;;  %v5064_v52 = vperm.slane %v5061_v2, 1  ;;  %v5013_v29 = vadd.f32 %v5011_v6, %v5002_v20  ;;  %v5014_v61 = vadd.f32 %v5012_v16, %v5003_v10  ;;  %vm11600_vm11 = vmmov %vm11597_vm0 }
 0x728   : > { %v5024_v60 = vadd.f32 %v5022_v21, %v4978_v17  ;;  %v5025_v54 = vadd.f32 %v5023_v55, %v4979_v40  ;;  %v5056_v33 = vmul.f32 %v5052_v36, %v5041_v45  ;;  %v5057_v7 = vmul.f32 %v5053_v47, %v5042_v48 }
 0x729   : > { %v5085_v5 = vperm.slane %v5083_v0, 0  ;;  %v5086_v11 = vperm.slane %v5083_v0, 1  ;;  %v5078_v34 = vmul.f32 %v5074_v4, %v5041_v45  ;;  %v5079_v27 = vmul.f32 %v5075_v3, %v5042_v48 }
 0x72a   : > { %v5035_v53 = vadd.f32 %v5033_v44, %v5024_v60  ;;  %v5036_v22 = vadd.f32 %v5034_v51, %v5025_v54  ;;  %v5058_v31 = vadd.f32 %v5056_v33, %v5013_v29  ;;  %v5059_v41 = vadd.f32 %v5057_v7, %v5014_v61 }
 0x72b   : > { %v5047_v15 = vsel %vm11599_vm8, %v5044_v39, %v5046_v14  ;;  %v5048_v58 = vsel %vm11600_vm11, %v5046_v14, %v5044_v39  ;;  %v5094_v18 = vstv %s10270_s24  ;;  %v5136_v23 = vstv %s10272_s18 }
 0x72c   : > { %v5080_v57 = vadd.f32 %v5078_v34, %v5035_v53  ;;  %v5081_v50 = vadd.f32 %v5079_v27, %v5036_v22  ;;  %v5067_v32 = vmul.f32 %v5063_v9, %v5047_v15  ;;  %v5068_v13 = vmul.f32 %v5064_v52, %v5048_v58 }
 0x72d   : > { %v5089_v46 = vmul.f32 %v5085_v5, %v5047_v15  ;;  %v5090_v25 = vmul.f32 %v5086_v11, %v5048_v58 }
 0x72e   : > { %v5069_v19 = vadd.f32 %v5067_v32, %v5058_v31  ;;  %v5070_v12 = vadd.f32 %v5068_v13, %v5059_v41 }
 0x72f   : > { %v5091_v59 = vadd.f32 %v5089_v46, %v5080_v57  ;;  %v5092_v24 = vadd.f32 %v5090_v25, %v5081_v50 }
 0x730   : > { %v5095_v35 = vadd.f32 %v5094_v18, %v5069_v19  ;;  %v5096_v28 = vadd.f32 %v5094_v18, %v5070_v12 }
 0x731   : > { %v5137_v42 = vadd.f32 %v5136_v23, %v5091_v59  ;;  %v5138_v17 = vadd.f32 %v5136_v23, %v5092_v24  ;;  %v11605_v23 = vld [vmem:[#allocation57_spill] sm:$0xff]  ;;  %v11607_v24 = vld [vmem:[#allocation58_spill] sm:$0xff] }
 0x732   : > { %v5438_v40 = vmul.f32 -1.442695, %v5095_v35  ;;  %v5439_v43 = vmul.f32 -1.442695, %v5096_v28 }
 0x733   : > { %v5441_v56 = vmul.f32 -1.442695, %v5137_v42  ;;  %v5442_v37 = vmul.f32 -1.442695, %v5138_v17  ;;  %v11608_v42 = vld [vmem:[#allocation55_spill] sm:$0xff] }
 0x734   : > { %5655 = vpow2.f32 %v5438_v40  ;;  %v11609_v40 = vld [vmem:[#allocation59_spill] sm:$0xff] }
 0x735   : > { %5657 = vpow2.f32 %v5439_v43 }
 0x736   : > { %5659 = vpow2.f32 %v5441_v56 }
 0x737   : > { %5661 = vpow2.f32 %v5442_v37  ;;  %v5187_v37 = vld [vmem:[%s11610_s29] sm:$0xf] }
 0x73a   : > { %v5656_v6 = vpop.eup %5655 }
 0x73b   : > { %v5658_v49 = vpop.eup %5657  ;;  %v5103_v62 = vadd.f32 1.0, %v5656_v6 }
 0x73c   : > { %v5660_v16 = vpop.eup %5659  ;;  %v5104_v63 = vadd.f32 1.0, %v5658_v49  ;;  %v5192_v49 = vpop.permute.xlu2 %5191 }
 0x73d   : > { %v5662_v8 = vpop.eup %5661  ;;  %5663 = vrcp.f32 %v5103_v62  ;;  %v5145_v30 = vadd.f32 1.0, %v5660_v16  ;;  %v5114_v36 = vand.u32 2147483647, %v5103_v62  ;;  %v5116_v47 = vand.u32 2147483648, %v5103_v62 }
 0x73e   : > { %5665 = vrcp.f32 %v5104_v63  ;;  %v5146_v38 = vadd.f32 1.0, %v5662_v8  ;;  %vm5110_vm12 = vweird.f32 %v5103_v62  ;;  %vm5125_vm15 = vweird.f32 %v5104_v63 }
 0x73f   : > { %5667 = vrcp.f32 %v5145_v30  ;;  %v5156_v26 = vand.u32 2147483647, %v5145_v30  ;;  %vm10282_vm13 = vcmp.eq.f32.partialorder %v5114_v36, 8.507059e+37  ;;  %vm5152_vm14 = vweird.f32 %v5145_v30  ;;  %v11618_v36 = vld [vmem:[#allocation33_spill] sm:$0xff] }
 0x740   : > { %5669 = vrcp.f32 %v5146_v38  ;;  %v5117_v21 = vor.u32 1.1754944e-38, %v5116_v47  ;;  %v5158_v0 = vand.u32 2147483648, %v5145_v30  ;;  %v5129_v9 = vand.u32 2147483647, %v5104_v63 }
 0x741   : > { %vm10286_vm5 = vcmp.eq.f32.partialorder %v5156_v26, 8.507059e+37  ;;  %v5131_v60 = vand.u32 2147483648, %v5104_v63  ;;  %vm5167_vm7 = vweird.f32 %v5146_v38  ;;  %v5173_v11 = vand.u32 2147483648, %v5146_v38 }
 0x742   : > { %v5171_v53 = vand.u32 2147483647, %v5146_v38  ;;  %v5159_v14 = vor.u32 1.1754944e-38, %v5158_v0  ;;  %vm5130_vm10 = vcmp.eq.f32.partialorder %v5129_v9, 8.507059e+37 }
 0x743   : > { %v5664_v1 = vpop.eup %5663  ;;  %v5132_v31 = vor.u32 1.1754944e-38, %v5131_v60  ;;  %v5174_v13 = vor.u32 1.1754944e-38, %v5173_v11 }
 0x744   : > { %v5666_v2 = vpop.eup %5665  ;;  %v5106_v4 = vmul.f32 %v5664_v1, %v5103_v62  ;;  %vm5111_vm6 = vweird.f32 %v5664_v1  ;;  %vm5172_vm11 = vcmp.eq.f32.partialorder %v5171_v53, 8.507059e+37 }
 0x745   : > { %v5668_v3 = vpop.eup %5667  ;;  %v5121_v48 = vmul.f32 %v5666_v2, %v5104_v63  ;;  %vm5126_vm1 = vweird.f32 %v5666_v2  ;;  %vm5112_vm4 = vmor %vm5110_vm12, %vm5111_vm6  ;;  %vm5194_vm12 = vcmask 15360  }
 0x746   : > { %v5670_v20 = vpop.eup %5669  ;;  %v5107_v10 = vsub.f32 1.0, %v5106_v4  ;;  %v5148_v55 = vmul.f32 %v5668_v3, %v5145_v30  ;;  %vm5153_vm3 = vweird.f32 %v5668_v3  ;;  %vm5127_vm9 = vmor %vm5125_vm15, %vm5126_vm1  ;;  %vm11617_vm15 = vcmask 1043456  }
 0x747   : > { %v5122_v51 = vsub.f32 1.0, %v5121_v48  ;;  %v5163_v52 = vmul.f32 %v5670_v20, %v5146_v38  ;;  %vm5168_vm2 = vweird.f32 %v5670_v20  ;;  %vm5154_vm0 = vmor %vm5152_vm14, %vm5153_vm3 }
 0x748   : > { %v5108_v29 = vmul.f32 %v5664_v1, %v5107_v10  ;;  %v5149_v61 = vsub.f32 1.0, %v5148_v55  ;;  %vm5169_vm8 = vmor %vm5167_vm7, %vm5168_vm2 }
 0x749   : > { %v5123_v54 = vmul.f32 %v5666_v2, %v5122_v51  ;;  %v5164_v33 = vsub.f32 1.0, %v5163_v52 }
 0x74a   : > { %v5109_v7 = vadd.f32 %v5664_v1, %v5108_v29  ;;  %v5150_v5 = vmul.f32 %v5668_v3, %v5149_v61 }
 0x74b   : > { %v5124_v34 = vadd.f32 %v5666_v2, %v5123_v54  ;;  %v5165_v27 = vmul.f32 %v5670_v20, %v5164_v33 }
 0x74c   : > { %v5113_v22 = vsel %vm5112_vm4, %v5664_v1, %v5109_v7  ;;  %v5151_v39 = vadd.f32 %v5668_v3, %v5150_v5 }
 0x74d   : > { %v5118_v41 = vsel %vm10282_vm13, %v5117_v21, %v5113_v22  ;;  %v5128_v15 = vsel %vm5127_vm9, %v5666_v2, %v5124_v34  ;;  %v5166_v58 = vadd.f32 %v5670_v20, %v5165_v27  ;;  %vm11612_vm13 = vcmask 1041408  }
 0x74e   : > { %v5155_v57 = vsel %vm5154_vm0, %v5668_v3, %v5151_v39  ;;  %v5177_v50 = vperm.slane %v5118_v41, 0  ;;  %v5133_v32 = vsel %vm5130_vm10, %v5132_v31, %v5128_v15  ;;  %vm11613_vm14 = vmmov %vm11612_vm13 }
 0x74f   : > { %v5160_v46 = vsel %vm10286_vm5, %v5159_v14, %v5155_v57  ;;  %v5170_v25 = vsel %vm5169_vm8, %v5670_v20, %v5166_v58  ;;  %v5178_v18 = vperm.slane %v5133_v32, 0 }
 0x750   : > { %v5179_v19 = vmul.f32 %v5177_v50, %v11605_v23  ;;  %v5181_v12 = vperm.slane %v5160_v46, 0  ;;  %v5175_v59 = vsel %vm5172_vm11, %v5174_v13, %v5170_v25 }
 0x751   : > { %v5180_v35 = vmul.f32 %v5178_v18, %v11607_v24  ;;  %v5182_v28 = vperm.slane %v5175_v59, 0 }
 0x752   : > { %v5183_v17 = vmul.f32 %v5181_v12, %v11608_v42 }
 0x753   : > { %v5184_v43 = vmul.f32 %v5182_v28, %v11609_v40 }
 0x754   : > { %v5185_v56 = vadd.f32 %v5183_v17, %v5179_v19 }
 0x755   : > { %v5186_v6 = vadd.f32 %v5184_v43, %v5180_v35 }
 0x756   : > { %5443 = vmatpush.msk.msrb.mxu0 %vm11612_vm13, %v5185_v56 }
 0x757   : > { %5445 = vmatpush.msk.msrb.mxu1 %vm11613_vm14, %v5186_v6  ;;  %5444 = vmatmul.msk.f32.vlgmr.msrb.gmra.mxu0 %vm5194_vm12, %v5187_v37 }
 0x758   : > { %5446 = vmatmul.msk.f32.vlgmr.msrb.gmra.mxu1 %vm5194_vm12, %v5187_v37 }
 0x7d4   : > { %v5221_v62 = vpop.f32.mrf.mxu0 }
 0x7d5   : > { %v5241_v16 = vpop.f32.mrf.mxu1  ;;  %v5222_v8 = vadd.f32 %v5221_v62, %v5192_v49 }
 0x7d6   : > { %v5242_v63 = vadd.f32 %v5241_v16, %v5192_v49 }
 0x7d8   : > { %v5246_v30 = vrot.slane %v5242_v63, 4 }
 0x7da   : > { %v5247_v38 = vsel %vm11617_vm15, %v5222_v8, %v5246_v30 }
 0x7db   : > { %v5249_v47 = vmul.f32 %v5247_v38, %v11618_v36 }
 0x7dd   : > { %5250 = vst [vmem:[%s652_s7] sm:$0xff] %v5249_v47 }
 0x7de   : > { %5923 = shalt.err (!%p5920_p9)
}
 0x7df   : > { %5484 = dma.vmem_to_hbm [thread:$0]  (%p6261_p13), %s5266_s11, 128, %s5268_s30, %s5252_s25  }
 0x7e0 PF: > { %s11619_s8 = sld [smem:[#allocation23_spill]] }
 0x7e1   : > { %s11621_s13 = sld [smem:[#allocation26_spill]] }
 0x7e6   : > { %s5279_s21 = sand.u32 1, %s11619_s8  }
 0x7e7   : > { %p11622_p10 = scmp.ge.s32.totalorder %s11621_s13, 2  ;;  %s5280_s22 = scalar_lea.sflag [#allocation4], %s5279_s21 }
 0x7e9   : > { %p5513_p11 = pnand %p11622_p10, %p6266_p4 }
 0x7eb   : > { %p5514_p0 = pneg %p5513_p11 }
 0x7ed   : > { %5961 = dma.done.wait (%p5514_p0), %s5280_s22, 128  }
 0x7ee   : > { %5963 = vsyncadd (%p5514_p0), %s5280_s22, 4294967168  ;;  %s11623_s24 = sld [smem:[#allocation28_spill]] }
 0x7ef   : > { %s11624_s21 = sld [smem:[#allocation24_spill]] }
 0x7f0   : > { %s11625_s22 = sld [smem:[#allocation25_spill]] }
 0x7f1   : > { %s11626_s23 = sld [smem:[#allocation29_spill]] }
 0x7f4   : > { %p33_p2 = scmp.ge.s32.totalorder %s11623_s24, 4  }
 0x7f6   :  { %35 = sbr.rel (!%p33_p2) target bundleno = 27 (0x1b), region = 422 }
 0x7fb   :  { %5286 = vsyncpa [#allocation3], 1 }
 0x7fc   :  { %5288 = vsyncpa [#allocation3 + $0x1], 1 }
 0x7fd   :  { %5289 = vsyncpa [#allocation7], 1 }
 0x7fe   :  { %5290 = vsyncpa [#allocation10], 1 }
 0x7ff   :  { %5291 = vsyncpa [#allocation13], 1 }
 0x800   :  { %5292 = vsyncpa [#allocation4], 1 }
 0x801   :  { %5294 = vsyncpa [#allocation4 + $0x1], 1 }
 0x802   :  { %5295 = vsyncpa [#allocation5], 1 }
 0x803   :  { %5297 = vsyncpa [#allocation5 + $0x1], 1 }

</bundles_post_ra>
